<compile_context>
chip_gen: v7x
topology: tpu7x:2x2x1
jax: 0.10.0
libtpu: 0.0.40
codegen_flags: <defaults>
</compile_context>

<pallas_src>
import functools

import jax
import jax.numpy as jnp
from jax.experimental import pallas as pl
from jax.experimental.pallas import tpu as pltpu

KSIZE = 3                          # kernel_sizes = [3, 3, 3] in the PyTorch module
_TARGET_PATCH_BYTES = 384 * 1024   # budget for the in-VMEM im2col value per grid step
_MLP_TB_CAP = 512                  # batch rows per MLP grid step
_VMEM_LIMIT = 48 * 1024 * 1024


def _round_up(x, m):
    return ((x + m - 1) // m) * m


# ---------------------------------------------------------------------------
# Pallas kernels
# ---------------------------------------------------------------------------
def _conv_pool_relu_kernel(p_ref, w_ref, b_ref, o_ref, *, We, Lg, tail):
    """Fused 3x3 VALID conv (one GEMM) + bias + 2x2 max-pool + ReLU.

    p_ref : (4, R, Cin) bf16 — the four (row-parity, col-parity) phase planes
            of the input activation.  Each image occupies a fixed row stride
            S_pad (R = images_per_step * S_pad) with its (He*We) pooled-grid
            rows flattened row-major and followed by junk padding, so every
            (pool-corner, tap) patch view is one contiguous shifted row slice.
    w_ref : (K, Cout) bf16 flattened conv weights, (ky, kx, cin) row order.
    b_ref : (1, Cout) f32 bias.
    o_ref : (R, Cout) bf16 pooled + ReLU'd activations on the extended
            (He, We) pooled grid; rows >= Lg are zero padding.
    """
    w = w_ref[...]

    corners = []
    for dy in range(2):
        for dx in range(2):
            taps = []
            for ky in range(KSIZE):
                for kx in range(KSIZE):
                    pr, oy = (dy + ky) % 2, (dy + ky) // 2
                    pc, ox = (dx + kx) % 2, (dx + kx) // 2
                    shift = oy * We + ox
                    # Contiguous shifted slice of one phase plane: the VMEM
                    # im2col — no HBM patch materialisation.
                    taps.append(p_ref[2 * pr + pc, shift:shift + Lg, :])
            corners.append(jnp.concatenate(taps, axis=-1))        # (Lg, K)

    patches = jnp.concatenate(corners, axis=0)                    # (4*Lg, K)
    z = jnp.dot(patches, w, preferred_element_type=jnp.float32)   # ONE MXU stream

    # 2x2 max-pool = max over the four aligned corner blocks of the GEMM rows.
    z = jnp.maximum(jnp.maximum(z[0 * Lg:1 * Lg], z[1 * Lg:2 * Lg]),
                    jnp.maximum(z[2 * Lg:3 * Lg], z[3 * Lg:4 * Lg]))
    z = jnp.maximum(z + b_ref[...], 0.0)          # bias add commutes with the max
    o_ref[0:Lg, :] = z.astype(o_ref.dtype)
    o_ref[Lg:Lg + tail, :] = jnp.zeros((tail, o_ref.shape[1]), o_ref.dtype)


def _mlp_head_kernel(x_ref, w1_ref, b1_ref, w2_ref, b2_ref, o_ref):
    """Fused FC1 + ReLU + FC2 + log_softmax (no intermediate HBM round-trip)."""
    h = jnp.dot(x_ref[...], w1_ref[...], preferred_element_type=jnp.float32)
    h = jnp.maximum(h + b1_ref[...], 0.0)
    z = jnp.dot(h.astype(jnp.bfloat16), w2_ref[...],
                preferred_element_type=jnp.float32)
    z = z + b2_ref[...]
    m = jnp.max(z, axis=-1, keepdims=True)
    z = z - m
    z = z - jnp.log(jnp.sum(jnp.exp(z), axis=-1, keepdims=True))
    o_ref[...] = z.astype(o_ref.dtype)


# ---------------------------------------------------------------------------
# Pallas wrappers
# ---------------------------------------------------------------------------
def _conv_pool_relu(x_nhwc, wmat, bias):
    """F.relu(F.max_pool2d(conv2d(x), 2)) with VALID padding, stride 1."""
    N, H, W, Cin = x_nhwc.shape
    K, Cout = wmat.shape
    Hp, Wp = (H - KSIZE + 1) // 2, (W - KSIZE + 1) // 2
    He, We = Hp + 1, Wp + 1                       # extended pooled grid (+1 junk row/col)

    tail = _round_up(We + 1, 16)                  # absorbs max tap shift, keeps Lg aligned
    s_pad = _round_up(He * We + tail, 16)         # per-image merged-row stride

    # Phase split (row/col parity planes): ~1x activation bytes, built by XLA.
    # The 9x im2col expansion happens only inside the kernel, in VMEM.
    phases = []
    for pr in range(2):
        for pc in range(2):
            ph = x_nhwc[:, pr::2, pc::2, :][:, :He, :We, :]       # (N, He, We, Cin)
            ph = ph.reshape(N, He * We, Cin)
            ph = jnp.pad(ph, ((0, 0), (0, s_pad - He * We), (0, 0)))
            phases.append(ph)
    p = jnp.stack(phases, axis=0)                                  # (4, N, s_pad, Cin)

    # Images per grid step: keep the in-VMEM im2col value ~_TARGET_PATCH_BYTES
    # and keep the grid >= 2 when N >= 2 so both v7x TensorCores get work.
    tnb = max(1, _TARGET_PATCH_BYTES // (8 * s_pad * K))
    if N >= 2:
        tnb = min(tnb, pl.cdiv(N, 2))
    tnb = min(tnb, N)
    Ng = _round_up(N, tnb)
    if Ng != N:
        p = jnp.pad(p, ((0, 0), (0, Ng - N), (0, 0), (0, 0)))
    p = p.reshape(4, Ng * s_pad, Cin)

    R = tnb * s_pad                 # rows per step (multiple of 16)
    Lg = R - tail                   # valid GEMM rows per corner (multiple of 16)
    grid = (Ng // tnb,)

    kernel = functools.partial(_conv_pool_relu_kernel, We=We, Lg=Lg, tail=tail)
    out = pl.pallas_call(
        kernel,
        out_shape=jax.ShapeDtypeStruct((Ng * s_pad, Cout), jnp.bfloat16),
        grid=grid,
        in_specs=[
            pl.BlockSpec((4, R, Cin), lambda i: (0, i, 0)),
            pl.BlockSpec((K, Cout), lambda i: (0, 0)),
            pl.BlockSpec((1, Cout), lambda i: (0, 0)),
        ],
        out_specs=pl.BlockSpec((R, Cout), lambda i: (i, 0)),
        compiler_params=pltpu.CompilerParams(
            dimension_semantics=("parallel",),
            vmem_limit_bytes=_VMEM_LIMIT),
    )(p, wmat, bias)

    # Drop per-image junk rows and the extended (He, We) garbage row/column.
    out = out[:N * s_pad].reshape(N, s_pad, Cout)[:, :He * We, :]
    out = out.reshape(N, He, We, Cout)[:, :Hp, :Wp, :]
    return out


def _mlp_head(x, w1, b1, w2, b2):
    """log_softmax(relu(x @ w1 + b1) @ w2 + b2), one fused kernel."""
    B, K1 = x.shape
    Hdim = w1.shape[1]
    C = w2.shape[1]

    Bp = _round_up(B, 8)                     # 8-aligned sublane blocks (review item 9)
    if Bp <= 16:
        TB = Bp
    else:
        TB = min(_MLP_TB_CAP, _round_up(pl.cdiv(Bp, 2), 16))
        Bp = _round_up(Bp, TB)
    if Bp != B:
        x = jnp.pad(x, ((0, Bp - B), (0, 0)))

    out = pl.pallas_call(
        _mlp_head_kernel,
        out_shape=jax.ShapeDtypeStruct((Bp, C), jnp.float32),
        grid=(Bp // TB,),
        in_specs=[
            pl.BlockSpec((TB, K1), lambda i: (i, 0)),
            pl.BlockSpec((K1, Hdim), lambda i: (0, 0)),
            pl.BlockSpec((1, Hdim), lambda i: (0, 0)),
            pl.BlockSpec((Hdim, C), lambda i: (0, 0)),
            pl.BlockSpec((1, C), lambda i: (0, 0)),
        ],
        out_specs=pl.BlockSpec((TB, C), lambda i: (i, 0)),
        compiler_params=pltpu.CompilerParams(
            dimension_semantics=("parallel",),
            vmem_limit_bytes=_VMEM_LIMIT),
    )(x, w1, b1, w2, b2)
    return out[:B] if Bp != B else out


# ---------------------------------------------------------------------------
# Parameter init (deterministic, PyTorch-like uniform(-1/sqrt(fan_in), ...))
# ---------------------------------------------------------------------------
def init_params(key, input_shape=(3, 32, 32), num_classes=10):
    num_filters = [32, 64, 64]
    params = {"convs": [], "fcs": []}
    cin = input_shape[0]
    s = input_shape[1]
    for cout in num_filters:
        key, kw_key, kb_key = jax.random.split(key, 3)
        fan_in = cin * KSIZE * KSIZE
        bound = 1.0 / (fan_in ** 0.5)
        w = jax.random.uniform(kw_key, (cout, cin, KSIZE, KSIZE),
                               jnp.float32, -bound, bound)
        b = jax.random.uniform(kb_key, (cout,), jnp.float32, -bound, bound)
        params["convs"].append((w, b))
        cin = cout
        s = (s - KSIZE - 1) // 2 + 1          # same formula as PyTorch __init__
    conv_out_len = num_filters[-1] * s * s
    dims = [conv_out_len, 64, num_classes]    # mlp_layers = [64]
    for i in range(len(dims) - 1):
        key, kw_key, kb_key = jax.random.split(key, 3)
        bound = 1.0 / (dims[i] ** 0.5)
        w = jax.random.uniform(kw_key, (dims[i + 1], dims[i]),
                               jnp.float32, -bound, bound)
        b = jax.random.uniform(kb_key, (dims[i + 1],), jnp.float32, -bound, bound)
        params["fcs"].append((w, b))
    return params


def prepare_params(params, input_shape=(3, 32, 32)):
    """One-time conversion to kernel-friendly layouts: bf16 GEMM operands,
    flattened (ky,kx,cin)-ordered conv weights, pre-transposed FC weights with
    the PyTorch NCHW-flatten order folded into fc1's rows, (1, N) f32 biases."""
    conv_k = []
    for (w, b) in params["convs"]:
        Cout, Cin, KH, KW = w.shape
        wmat = jnp.transpose(w, (2, 3, 1, 0)).reshape(KH * KW * Cin, Cout)
        conv_k.append((wmat.astype(jnp.bfloat16),
                       b.reshape(1, Cout).astype(jnp.float32)))

    # Spatial size after the conv+pool stages (same recursion as __init__).
    s = input_shape[1]
    for _ in params["convs"]:
        s = (s - KSIZE - 1) // 2 + 1
    c_last = params["convs"][-1][0].shape[0]

    fc_k = []
    (w1, b1) = params["fcs"][0]
    # Fold the NCHW (c,h,w)-flatten order into fc1's rows so the NHWC conv
    # output can be flattened directly (no per-call transpose).
    w1r = w1.reshape(w1.shape[0], c_last, s, s)                   # (out, c, h, w)
    w1r = jnp.transpose(w1r, (2, 3, 1, 0)).reshape(s * s * c_last, w1.shape[0])
    fc_k.append((w1r.astype(jnp.bfloat16),
                 b1.reshape(1, -1).astype(jnp.float32)))
    for (w, b) in params["fcs"][1:]:
        fc_k.append((jnp.transpose(w).astype(jnp.bfloat16),
                     b.reshape(1, -1).astype(jnp.float32)))
    return {"convs": conv_k, "fcs": fc_k}


# ---------------------------------------------------------------------------
# Forward pass (matches NaiveCNN.forward with final_pool=True)
# ---------------------------------------------------------------------------
def naive_cnn_forward(x_nchw, kparams):
    x = jnp.transpose(x_nchw, (0, 2, 3, 1)).astype(jnp.bfloat16)   # NCHW -> NHWC
    for (wmat, b) in kparams["convs"]:
        x = _conv_pool_relu(x, wmat, b)
    N = x.shape[0]
    x = x.reshape(N, -1)                  # NHWC flatten; fc1 rows pre-reordered
    (w1, b1), (w2, b2) = kparams["fcs"]
    return _mlp_head(x, w1, b1, w2, b2)


# ---------------------------------------------------------------------------
if __name__ == "__main__":
    key = jax.random.PRNGKey(0)
    pkey, xkey = jax.random.split(key)
    params = init_params(pkey, input_shape=(3, 32, 32), num_classes=10)
    kparams = prepare_params(params, input_shape=(3, 32, 32))
    # batch=2 with the module's default 3x32x32 input (smaller spatial sizes
    # would collapse to zero after three valid 3x3 convs + 2x2 pools).
    x = jax.random.normal(xkey, (2, 3, 32, 32), dtype=jnp.float32)

    out = jax.jit(naive_cnn_forward)(x, kparams)
    out = jax.block_until_ready(out)

    assert out.shape == (2, 10)
    assert bool(jnp.all(jnp.isfinite(out)))
    # log_softmax rows should exponentiate-sum to 1.
    assert bool(jnp.allclose(jnp.sum(jnp.exp(out), axis=1), 1.0, atol=1e-3))
    print("KERNEL_OK")
</pallas_src>

<mosaic_0001>
module attributes {stable_mosaic.version = 11 : i64} {
  func.func @_conv_pool_relu_kernel(%arg0: i32, %arg1: memref<4x288x3xbf16, #tpu.memory_space<vmem>>, %arg2: memref<27x32xbf16, #tpu.memory_space<vmem>>, %arg3: memref<1x32xf32, #tpu.memory_space<vmem>>, %arg4: memref<288x32xbf16, #tpu.memory_space<vmem>>) attributes {dimension_semantics = [#tpu.dimension_semantics<parallel>], iteration_bounds = array<i64: 2>, scalar_prefetch = 0 : i64, scratch_operands = 0 : i64, tpu.core_type = #tpu.core_type<tc>, window_params = [{transform_indices = @transform_0, window_bounds = array<i64: 4, 288, 3>}, {pipeline_mode = #tpu.pipeline_mode<synchronous>, transform_indices = @transform_1, window_bounds = array<i64: 27, 32>}, {pipeline_mode = #tpu.pipeline_mode<synchronous>, transform_indices = @transform_2, window_bounds = array<i64: 1, 32>}, {transform_indices = @transform_3, window_bounds = array<i64: 288, 32>}]} {
    %c0 = arith.constant 0 : index
    %c0_0 = arith.constant 0 : index
    %0 = vector.load %arg2[%c0, %c0_0] : memref<27x32xbf16, #tpu.memory_space<vmem>>, vector<27x32xbf16>
    %c0_1 = arith.constant 0 : index
    %c0_2 = arith.constant 0 : index
    %c0_3 = arith.constant 0 : index
    %1 = vector.load %arg1[%c0_1, %c0_2, %c0_3] : memref<4x288x3xbf16, #tpu.memory_space<vmem>>, vector<1x256x3xbf16>
    %2 = vector.shape_cast %1 : vector<1x256x3xbf16> to vector<256x3xbf16>
    %c1 = arith.constant 1 : index
    %c0_4 = arith.constant 0 : index
    %c0_5 = arith.constant 0 : index
    %3 = vector.load %arg1[%c1, %c0_4, %c0_5] : memref<4x288x3xbf16, #tpu.memory_space<vmem>>, vector<1x256x3xbf16>
    %4 = vector.shape_cast %3 : vector<1x256x3xbf16> to vector<256x3xbf16>
    %c0_6 = arith.constant 0 : index
    %c1_7 = arith.constant 1 : index
    %c0_8 = arith.constant 0 : index
    %5 = vector.load %arg1[%c0_6, %c1_7, %c0_8] : memref<4x288x3xbf16, #tpu.memory_space<vmem>>, vector<1x256x3xbf16>
    %6 = vector.shape_cast %5 : vector<1x256x3xbf16> to vector<256x3xbf16>
    %c2 = arith.constant 2 : index
    %c0_9 = arith.constant 0 : index
    %c0_10 = arith.constant 0 : index
    %7 = vector.load %arg1[%c2, %c0_9, %c0_10] : memref<4x288x3xbf16, #tpu.memory_space<vmem>>, vector<1x256x3xbf16>
    %8 = vector.shape_cast %7 : vector<1x256x3xbf16> to vector<256x3xbf16>
    %c3 = arith.constant 3 : index
    %c0_11 = arith.constant 0 : index
    %c0_12 = arith.constant 0 : index
    %9 = vector.load %arg1[%c3, %c0_11, %c0_12] : memref<4x288x3xbf16, #tpu.memory_space<vmem>>, vector<1x256x3xbf16>
    %10 = vector.shape_cast %9 : vector<1x256x3xbf16> to vector<256x3xbf16>
    %c2_13 = arith.constant 2 : index
    %c1_14 = arith.constant 1 : index
    %c0_15 = arith.constant 0 : index
    %11 = vector.load %arg1[%c2_13, %c1_14, %c0_15] : memref<4x288x3xbf16, #tpu.memory_space<vmem>>, vector<1x256x3xbf16>
    %12 = vector.shape_cast %11 : vector<1x256x3xbf16> to vector<256x3xbf16>
    %c0_16 = arith.constant 0 : index
    %c16 = arith.constant 16 : index
    %c0_17 = arith.constant 0 : index
    %13 = vector.load %arg1[%c0_16, %c16, %c0_17] : memref<4x288x3xbf16, #tpu.memory_space<vmem>>, vector<1x256x3xbf16>
    %14 = vector.shape_cast %13 : vector<1x256x3xbf16> to vector<256x3xbf16>
    %c1_18 = arith.constant 1 : index
    %c16_19 = arith.constant 16 : index
    %c0_20 = arith.constant 0 : index
    %15 = vector.load %arg1[%c1_18, %c16_19, %c0_20] : memref<4x288x3xbf16, #tpu.memory_space<vmem>>, vector<1x256x3xbf16>
    %16 = vector.shape_cast %15 : vector<1x256x3xbf16> to vector<256x3xbf16>
    %c0_21 = arith.constant 0 : index
    %c17 = arith.constant 17 : index
    %c0_22 = arith.constant 0 : index
    %17 = vector.load %arg1[%c0_21, %c17, %c0_22] : memref<4x288x3xbf16, #tpu.memory_space<vmem>>, vector<1x256x3xbf16>
    %18 = vector.shape_cast %17 : vector<1x256x3xbf16> to vector<256x3xbf16>
    %19 = tpu.concatenate %2, %4, %6, %8, %10, %12, %14, %16, %18 in 1 : vector<256x3xbf16>, vector<256x3xbf16>, vector<256x3xbf16>, vector<256x3xbf16>, vector<256x3xbf16>, vector<256x3xbf16>, vector<256x3xbf16>, vector<256x3xbf16>, vector<256x3xbf16> -> vector<256x27xbf16>
    %c1_23 = arith.constant 1 : index
    %c0_24 = arith.constant 0 : index
    %c0_25 = arith.constant 0 : index
    %20 = vector.load %arg1[%c1_23, %c0_24, %c0_25] : memref<4x288x3xbf16, #tpu.memory_space<vmem>>, vector<1x256x3xbf16>
    %21 = vector.shape_cast %20 : vector<1x256x3xbf16> to vector<256x3xbf16>
    %c0_26 = arith.constant 0 : index
    %c1_27 = arith.constant 1 : index
    %c0_28 = arith.constant 0 : index
    %22 = vector.load %arg1[%c0_26, %c1_27, %c0_28] : memref<4x288x3xbf16, #tpu.memory_space<vmem>>, vector<1x256x3xbf16>
    %23 = vector.shape_cast %22 : vector<1x256x3xbf16> to vector<256x3xbf16>
    %c1_29 = arith.constant 1 : index
    %c1_30 = arith.constant 1 : index
    %c0_31 = arith.constant 0 : index
    %24 = vector.load %arg1[%c1_29, %c1_30, %c0_31] : memref<4x288x3xbf16, #tpu.memory_space<vmem>>, vector<1x256x3xbf16>
    %25 = vector.shape_cast %24 : vector<1x256x3xbf16> to vector<256x3xbf16>
    %c3_32 = arith.constant 3 : index
    %c0_33 = arith.constant 0 : index
    %c0_34 = arith.constant 0 : index
    %26 = vector.load %arg1[%c3_32, %c0_33, %c0_34] : memref<4x288x3xbf16, #tpu.memory_space<vmem>>, vector<1x256x3xbf16>
    %27 = vector.shape_cast %26 : vector<1x256x3xbf16> to vector<256x3xbf16>
    %c2_35 = arith.constant 2 : index
    %c1_36 = arith.constant 1 : index
    %c0_37 = arith.constant 0 : index
    %28 = vector.load %arg1[%c2_35, %c1_36, %c0_37] : memref<4x288x3xbf16, #tpu.memory_space<vmem>>, vector<1x256x3xbf16>
    %29 = vector.shape_cast %28 : vector<1x256x3xbf16> to vector<256x3xbf16>
    %c3_38 = arith.constant 3 : index
    %c1_39 = arith.constant 1 : index
    %c0_40 = arith.constant 0 : index
    %30 = vector.load %arg1[%c3_38, %c1_39, %c0_40] : memref<4x288x3xbf16, #tpu.memory_space<vmem>>, vector<1x256x3xbf16>
    %31 = vector.shape_cast %30 : vector<1x256x3xbf16> to vector<256x3xbf16>
    %c1_41 = arith.constant 1 : index
    %c16_42 = arith.constant 16 : index
    %c0_43 = arith.constant 0 : index
    %32 = vector.load %arg1[%c1_41, %c16_42, %c0_43] : memref<4x288x3xbf16, #tpu.memory_space<vmem>>, vector<1x256x3xbf16>
    %33 = vector.shape_cast %32 : vector<1x256x3xbf16> to vector<256x3xbf16>
    %c0_44 = arith.constant 0 : index
    %c17_45 = arith.constant 17 : index
    %c0_46 = arith.constant 0 : index
    %34 = vector.load %arg1[%c0_44, %c17_45, %c0_46] : memref<4x288x3xbf16, #tpu.memory_space<vmem>>, vector<1x256x3xbf16>
    %35 = vector.shape_cast %34 : vector<1x256x3xbf16> to vector<256x3xbf16>
    %c1_47 = arith.constant 1 : index
    %c17_48 = arith.constant 17 : index
    %c0_49 = arith.constant 0 : index
    %36 = vector.load %arg1[%c1_47, %c17_48, %c0_49] : memref<4x288x3xbf16, #tpu.memory_space<vmem>>, vector<1x256x3xbf16>
    %37 = vector.shape_cast %36 : vector<1x256x3xbf16> to vector<256x3xbf16>
    %38 = tpu.concatenate %21, %23, %25, %27, %29, %31, %33, %35, %37 in 1 : vector<256x3xbf16>, vector<256x3xbf16>, vector<256x3xbf16>, vector<256x3xbf16>, vector<256x3xbf16>, vector<256x3xbf16>, vector<256x3xbf16>, vector<256x3xbf16>, vector<256x3xbf16> -> vector<256x27xbf16>
    %c2_50 = arith.constant 2 : index
    %c0_51 = arith.constant 0 : index
    %c0_52 = arith.constant 0 : index
    %39 = vector.load %arg1[%c2_50, %c0_51, %c0_52] : memref<4x288x3xbf16, #tpu.memory_space<vmem>>, vector<1x256x3xbf16>
    %40 = vector.shape_cast %39 : vector<1x256x3xbf16> to vector<256x3xbf16>
    %c3_53 = arith.constant 3 : index
    %c0_54 = arith.constant 0 : index
    %c0_55 = arith.constant 0 : index
    %41 = vector.load %arg1[%c3_53, %c0_54, %c0_55] : memref<4x288x3xbf16, #tpu.memory_space<vmem>>, vector<1x256x3xbf16>
    %42 = vector.shape_cast %41 : vector<1x256x3xbf16> to vector<256x3xbf16>
    %c2_56 = arith.constant 2 : index
    %c1_57 = arith.constant 1 : index
    %c0_58 = arith.constant 0 : index
    %43 = vector.load %arg1[%c2_56, %c1_57, %c0_58] : memref<4x288x3xbf16, #tpu.memory_space<vmem>>, vector<1x256x3xbf16>
    %44 = vector.shape_cast %43 : vector<1x256x3xbf16> to vector<256x3xbf16>
    %c0_59 = arith.constant 0 : index
    %c16_60 = arith.constant 16 : index
    %c0_61 = arith.constant 0 : index
    %45 = vector.load %arg1[%c0_59, %c16_60, %c0_61] : memref<4x288x3xbf16, #tpu.memory_space<vmem>>, vector<1x256x3xbf16>
    %46 = vector.shape_cast %45 : vector<1x256x3xbf16> to vector<256x3xbf16>
    %c1_62 = arith.constant 1 : index
    %c16_63 = arith.constant 16 : index
    %c0_64 = arith.constant 0 : index
    %47 = vector.load %arg1[%c1_62, %c16_63, %c0_64] : memref<4x288x3xbf16, #tpu.memory_space<vmem>>, vector<1x256x3xbf16>
    %48 = vector.shape_cast %47 : vector<1x256x3xbf16> to vector<256x3xbf16>
    %c0_65 = arith.constant 0 : index
    %c17_66 = arith.constant 17 : index
    %c0_67 = arith.constant 0 : index
    %49 = vector.load %arg1[%c0_65, %c17_66, %c0_67] : memref<4x288x3xbf16, #tpu.memory_space<vmem>>, vector<1x256x3xbf16>
    %50 = vector.shape_cast %49 : vector<1x256x3xbf16> to vector<256x3xbf16>
    %c2_68 = arith.constant 2 : index
    %c16_69 = arith.constant 16 : index
    %c0_70 = arith.constant 0 : index
    %51 = vector.load %arg1[%c2_68, %c16_69, %c0_70] : memref<4x288x3xbf16, #tpu.memory_space<vmem>>, vector<1x256x3xbf16>
    %52 = vector.shape_cast %51 : vector<1x256x3xbf16> to vector<256x3xbf16>
    %c3_71 = arith.constant 3 : index
    %c16_72 = arith.constant 16 : index
    %c0_73 = arith.constant 0 : index
    %53 = vector.load %arg1[%c3_71, %c16_72, %c0_73] : memref<4x288x3xbf16, #tpu.memory_space<vmem>>, vector<1x256x3xbf16>
    %54 = vector.shape_cast %53 : vector<1x256x3xbf16> to vector<256x3xbf16>
    %c2_74 = arith.constant 2 : index
    %c17_75 = arith.constant 17 : index
    %c0_76 = arith.constant 0 : index
    %55 = vector.load %arg1[%c2_74, %c17_75, %c0_76] : memref<4x288x3xbf16, #tpu.memory_space<vmem>>, vector<1x256x3xbf16>
    %56 = vector.shape_cast %55 : vector<1x256x3xbf16> to vector<256x3xbf16>
    %57 = tpu.concatenate %40, %42, %44, %46, %48, %50, %52, %54, %56 in 1 : vector<256x3xbf16>, vector<256x3xbf16>, vector<256x3xbf16>, vector<256x3xbf16>, vector<256x3xbf16>, vector<256x3xbf16>, vector<256x3xbf16>, vector<256x3xbf16>, vector<256x3xbf16> -> vector<256x27xbf16>
    %c3_77 = arith.constant 3 : index
    %c0_78 = arith.constant 0 : index
    %c0_79 = arith.constant 0 : index
    %58 = vector.load %arg1[%c3_77, %c0_78, %c0_79] : memref<4x288x3xbf16, #tpu.memory_space<vmem>>, vector<1x256x3xbf16>
    %59 = vector.shape_cast %58 : vector<1x256x3xbf16> to vector<256x3xbf16>
    %c2_80 = arith.constant 2 : index
    %c1_81 = arith.constant 1 : index
    %c0_82 = arith.constant 0 : index
    %60 = vector.load %arg1[%c2_80, %c1_81, %c0_82] : memref<4x288x3xbf16, #tpu.memory_space<vmem>>, vector<1x256x3xbf16>
    %61 = vector.shape_cast %60 : vector<1x256x3xbf16> to vector<256x3xbf16>
    %c3_83 = arith.constant 3 : index
    %c1_84 = arith.constant 1 : index
    %c0_85 = arith.constant 0 : index
    %62 = vector.load %arg1[%c3_83, %c1_84, %c0_85] : memref<4x288x3xbf16, #tpu.memory_space<vmem>>, vector<1x256x3xbf16>
    %63 = vector.shape_cast %62 : vector<1x256x3xbf16> to vector<256x3xbf16>
    %c1_86 = arith.constant 1 : index
    %c16_87 = arith.constant 16 : index
    %c0_88 = arith.constant 0 : index
    %64 = vector.load %arg1[%c1_86, %c16_87, %c0_88] : memref<4x288x3xbf16, #tpu.memory_space<vmem>>, vector<1x256x3xbf16>
    %65 = vector.shape_cast %64 : vector<1x256x3xbf16> to vector<256x3xbf16>
    %c0_89 = arith.constant 0 : index
    %c17_90 = arith.constant 17 : index
    %c0_91 = arith.constant 0 : index
    %66 = vector.load %arg1[%c0_89, %c17_90, %c0_91] : memref<4x288x3xbf16, #tpu.memory_space<vmem>>, vector<1x256x3xbf16>
    %67 = vector.shape_cast %66 : vector<1x256x3xbf16> to vector<256x3xbf16>
    %c1_92 = arith.constant 1 : index
    %c17_93 = arith.constant 17 : index
    %c0_94 = arith.constant 0 : index
    %68 = vector.load %arg1[%c1_92, %c17_93, %c0_94] : memref<4x288x3xbf16, #tpu.memory_space<vmem>>, vector<1x256x3xbf16>
    %69 = vector.shape_cast %68 : vector<1x256x3xbf16> to vector<256x3xbf16>
    %c3_95 = arith.constant 3 : index
    %c16_96 = arith.constant 16 : index
    %c0_97 = arith.constant 0 : index
    %70 = vector.load %arg1[%c3_95, %c16_96, %c0_97] : memref<4x288x3xbf16, #tpu.memory_space<vmem>>, vector<1x256x3xbf16>
    %71 = vector.shape_cast %70 : vector<1x256x3xbf16> to vector<256x3xbf16>
    %c2_98 = arith.constant 2 : index
    %c17_99 = arith.constant 17 : index
    %c0_100 = arith.constant 0 : index
    %72 = vector.load %arg1[%c2_98, %c17_99, %c0_100] : memref<4x288x3xbf16, #tpu.memory_space<vmem>>, vector<1x256x3xbf16>
    %73 = vector.shape_cast %72 : vector<1x256x3xbf16> to vector<256x3xbf16>
    %c3_101 = arith.constant 3 : index
    %c17_102 = arith.constant 17 : index
    %c0_103 = arith.constant 0 : index
    %74 = vector.load %arg1[%c3_101, %c17_102, %c0_103] : memref<4x288x3xbf16, #tpu.memory_space<vmem>>, vector<1x256x3xbf16>
    %75 = vector.shape_cast %74 : vector<1x256x3xbf16> to vector<256x3xbf16>
    %76 = tpu.concatenate %59, %61, %63, %65, %67, %69, %71, %73, %75 in 1 : vector<256x3xbf16>, vector<256x3xbf16>, vector<256x3xbf16>, vector<256x3xbf16>, vector<256x3xbf16>, vector<256x3xbf16>, vector<256x3xbf16>, vector<256x3xbf16>, vector<256x3xbf16> -> vector<256x27xbf16>
    %77 = tpu.concatenate %19, %38, %57, %76 in 0 : vector<256x27xbf16>, vector<256x27xbf16>, vector<256x27xbf16>, vector<256x27xbf16> -> vector<1024x27xbf16>
    %cst = arith.constant dense<0.000000e+00> : vector<1024x32xf32>
    %78 = tpu.matmul %77, %0, %cst {dimension_numbers = #tpu.dot_dimension_numbers<[1], [0], [0], [1], [0, 0, 1, 1], [], []>} : vector<1024x27xbf16>, vector<27x32xbf16>, vector<1024x32xf32> -> vector<1024x32xf32>
    %79 = vector.extract_strided_slice %78 {offsets = [0, 0], sizes = [256, 32], strides = [1, 1]} : vector<1024x32xf32> to vector<256x32xf32>
    %80 = vector.extract_strided_slice %78 {offsets = [256, 0], sizes = [256, 32], strides = [1, 1]} : vector<1024x32xf32> to vector<256x32xf32>
    %81 = arith.maximumf %79, %80 : vector<256x32xf32>
    %82 = vector.extract_strided_slice %78 {offsets = [512, 0], sizes = [256, 32], strides = [1, 1]} : vector<1024x32xf32> to vector<256x32xf32>
    %83 = vector.extract_strided_slice %78 {offsets = [768, 0], sizes = [256, 32], strides = [1, 1]} : vector<1024x32xf32> to vector<256x32xf32>
    %84 = arith.maximumf %82, %83 : vector<256x32xf32>
    %85 = arith.maximumf %81, %84 : vector<256x32xf32>
    %c0_104 = arith.constant 0 : index
    %c0_105 = arith.constant 0 : index
    %86 = vector.load %arg3[%c0_104, %c0_105] : memref<1x32xf32, #tpu.memory_space<vmem>>, vector<1x32xf32>
    %87 = vector.broadcast %86 : vector<1x32xf32> to vector<256x32xf32>
    %88 = arith.addf %85, %87 : vector<256x32xf32>
    %cst_106 = arith.constant 0.000000e+00 : f32
    %89 = vector.broadcast %cst_106 : f32 to vector<256x32xf32>
    %90 = arith.maximumf %88, %89 : vector<256x32xf32>
    %91 = arith.truncf %90 : vector<256x32xf32> to vector<256x32xbf16>
    %c0_107 = arith.constant 0 : index
    %c0_108 = arith.constant 0 : index
    %92 = vector.load %arg4[%c0_107, %c0_108] : memref<288x32xbf16, #tpu.memory_space<vmem>>, vector<256x32xbf16>
    tpu.vector_store %arg4[%c0_107, %c0_108], %91 {strides = array<i32>} : memref<288x32xbf16, #tpu.memory_space<vmem>>, vector<256x32xbf16>,
    %cst_109 = arith.constant 0.000000e+00 : bf16
    %93 = vector.broadcast %cst_109 : bf16 to vector<32x32xbf16>
    %c256 = arith.constant 256 : index
    %c0_110 = arith.constant 0 : index
    %94 = vector.load %arg4[%c256, %c0_110] : memref<288x32xbf16, #tpu.memory_space<vmem>>, vector<32x32xbf16>
    tpu.vector_store %arg4[%c256, %c0_110], %93 {strides = array<i32>} : memref<288x32xbf16, #tpu.memory_space<vmem>>, vector<32x32xbf16>,
    return
  }
  func.func @transform_0(%arg0: i32) -> (i32, i32, i32) {
    %c0_i32 = arith.constant 0 : i32
    %c0_i32_0 = arith.constant 0 : i32
    %c0_i32_1 = arith.constant 0 : i32
    return %c0_i32, %arg0, %c0_i32_0 : i32, i32, i32
  }
  func.func @transform_1(%arg0: i32) -> (i32, i32) {
    %c0_i32 = arith.constant 0 : i32
    %c0_i32_0 = arith.constant 0 : i32
    %c0_i32_1 = arith.constant 0 : i32
    return %c0_i32, %c0_i32_0 : i32, i32
  }
  func.func @transform_2(%arg0: i32) -> (i32, i32) {
    %c0_i32 = arith.constant 0 : i32
    %c0_i32_0 = arith.constant 0 : i32
    %c0_i32_1 = arith.constant 0 : i32
    return %c0_i32, %c0_i32_0 : i32, i32
  }
  func.func @transform_3(%arg0: i32) -> (i32, i32) {
    %c0_i32 = arith.constant 0 : i32
    %c0_i32_0 = arith.constant 0 : i32
    return %arg0, %c0_i32 : i32, i32
  }
}

module attributes {stable_mosaic.version = 11 : i64} {
  func.func @_conv_pool_relu_kernel(%arg0: i32, %arg1: memref<4x80x32xbf16, #tpu.memory_space<vmem>>, %arg2: memref<288x64xbf16, #tpu.memory_space<vmem>>, %arg3: memref<1x64xf32, #tpu.memory_space<vmem>>, %arg4: memref<80x64xbf16, #tpu.memory_space<vmem>>) attributes {dimension_semantics = [#tpu.dimension_semantics<parallel>], iteration_bounds = array<i64: 2>, scalar_prefetch = 0 : i64, scratch_operands = 0 : i64, tpu.core_type = #tpu.core_type<tc>, window_params = [{transform_indices = @transform_0, window_bounds = array<i64: 4, 80, 32>}, {pipeline_mode = #tpu.pipeline_mode<synchronous>, transform_indices = @transform_1, window_bounds = array<i64: 288, 64>}, {pipeline_mode = #tpu.pipeline_mode<synchronous>, transform_indices = @transform_2, window_bounds = array<i64: 1, 64>}, {transform_indices = @transform_3, window_bounds = array<i64: 80, 64>}]} {
    %c0 = arith.constant 0 : index
    %c0_0 = arith.constant 0 : index
    %0 = vector.load %arg2[%c0, %c0_0] : memref<288x64xbf16, #tpu.memory_space<vmem>>, vector<288x64xbf16>
    %c0_1 = arith.constant 0 : index
    %c0_2 = arith.constant 0 : index
    %c0_3 = arith.constant 0 : index
    %1 = vector.load %arg1[%c0_1, %c0_2, %c0_3] : memref<4x80x32xbf16, #tpu.memory_space<vmem>>, vector<1x64x32xbf16>
    %2 = vector.shape_cast %1 : vector<1x64x32xbf16> to vector<64x32xbf16>
    %c1 = arith.constant 1 : index
    %c0_4 = arith.constant 0 : index
    %c0_5 = arith.constant 0 : index
    %3 = vector.load %arg1[%c1, %c0_4, %c0_5] : memref<4x80x32xbf16, #tpu.memory_space<vmem>>, vector<1x64x32xbf16>
    %4 = vector.shape_cast %3 : vector<1x64x32xbf16> to vector<64x32xbf16>
    %c0_6 = arith.constant 0 : index
    %c1_7 = arith.constant 1 : index
    %c0_8 = arith.constant 0 : index
    %5 = vector.load %arg1[%c0_6, %c1_7, %c0_8] : memref<4x80x32xbf16, #tpu.memory_space<vmem>>, vector<1x64x32xbf16>
    %6 = vector.shape_cast %5 : vector<1x64x32xbf16> to vector<64x32xbf16>
    %c2 = arith.constant 2 : index
    %c0_9 = arith.constant 0 : index
    %c0_10 = arith.constant 0 : index
    %7 = vector.load %arg1[%c2, %c0_9, %c0_10] : memref<4x80x32xbf16, #tpu.memory_space<vmem>>, vector<1x64x32xbf16>
    %8 = vector.shape_cast %7 : vector<1x64x32xbf16> to vector<64x32xbf16>
    %c3 = arith.constant 3 : index
    %c0_11 = arith.constant 0 : index
    %c0_12 = arith.constant 0 : index
    %9 = vector.load %arg1[%c3, %c0_11, %c0_12] : memref<4x80x32xbf16, #tpu.memory_space<vmem>>, vector<1x64x32xbf16>
    %10 = vector.shape_cast %9 : vector<1x64x32xbf16> to vector<64x32xbf16>
    %c2_13 = arith.constant 2 : index
    %c1_14 = arith.constant 1 : index
    %c0_15 = arith.constant 0 : index
    %11 = vector.load %arg1[%c2_13, %c1_14, %c0_15] : memref<4x80x32xbf16, #tpu.memory_space<vmem>>, vector<1x64x32xbf16>
    %12 = vector.shape_cast %11 : vector<1x64x32xbf16> to vector<64x32xbf16>
    %c0_16 = arith.constant 0 : index
    %c7 = arith.constant 7 : index
    %c0_17 = arith.constant 0 : index
    %13 = vector.load %arg1[%c0_16, %c7, %c0_17] : memref<4x80x32xbf16, #tpu.memory_space<vmem>>, vector<1x64x32xbf16>
    %14 = vector.shape_cast %13 : vector<1x64x32xbf16> to vector<64x32xbf16>
    %c1_18 = arith.constant 1 : index
    %c7_19 = arith.constant 7 : index
    %c0_20 = arith.constant 0 : index
    %15 = vector.load %arg1[%c1_18, %c7_19, %c0_20] : memref<4x80x32xbf16, #tpu.memory_space<vmem>>, vector<1x64x32xbf16>
    %16 = vector.shape_cast %15 : vector<1x64x32xbf16> to vector<64x32xbf16>
    %c0_21 = arith.constant 0 : index
    %c8 = arith.constant 8 : index
    %c0_22 = arith.constant 0 : index
    %17 = vector.load %arg1[%c0_21, %c8, %c0_22] : memref<4x80x32xbf16, #tpu.memory_space<vmem>>, vector<1x64x32xbf16>
    %18 = vector.shape_cast %17 : vector<1x64x32xbf16> to vector<64x32xbf16>
    %19 = tpu.concatenate %2, %4, %6, %8, %10, %12, %14, %16, %18 in 1 : vector<64x32xbf16>, vector<64x32xbf16>, vector<64x32xbf16>, vector<64x32xbf16>, vector<64x32xbf16>, vector<64x32xbf16>, vector<64x32xbf16>, vector<64x32xbf16>, vector<64x32xbf16> -> vector<64x288xbf16>
    %c1_23 = arith.constant 1 : index
    %c0_24 = arith.constant 0 : index
    %c0_25 = arith.constant 0 : index
    %20 = vector.load %arg1[%c1_23, %c0_24, %c0_25] : memref<4x80x32xbf16, #tpu.memory_space<vmem>>, vector<1x64x32xbf16>
    %21 = vector.shape_cast %20 : vector<1x64x32xbf16> to vector<64x32xbf16>
    %c0_26 = arith.constant 0 : index
    %c1_27 = arith.constant 1 : index
    %c0_28 = arith.constant 0 : index
    %22 = vector.load %arg1[%c0_26, %c1_27, %c0_28] : memref<4x80x32xbf16, #tpu.memory_space<vmem>>, vector<1x64x32xbf16>
    %23 = vector.shape_cast %22 : vector<1x64x32xbf16> to vector<64x32xbf16>
    %c1_29 = arith.constant 1 : index
    %c1_30 = arith.constant 1 : index
    %c0_31 = arith.constant 0 : index
    %24 = vector.load %arg1[%c1_29, %c1_30, %c0_31] : memref<4x80x32xbf16, #tpu.memory_space<vmem>>, vector<1x64x32xbf16>
    %25 = vector.shape_cast %24 : vector<1x64x32xbf16> to vector<64x32xbf16>
    %c3_32 = arith.constant 3 : index
    %c0_33 = arith.constant 0 : index
    %c0_34 = arith.constant 0 : index
    %26 = vector.load %arg1[%c3_32, %c0_33, %c0_34] : memref<4x80x32xbf16, #tpu.memory_space<vmem>>, vector<1x64x32xbf16>
    %27 = vector.shape_cast %26 : vector<1x64x32xbf16> to vector<64x32xbf16>
    %c2_35 = arith.constant 2 : index
    %c1_36 = arith.constant 1 : index
    %c0_37 = arith.constant 0 : index
    %28 = vector.load %arg1[%c2_35, %c1_36, %c0_37] : memref<4x80x32xbf16, #tpu.memory_space<vmem>>, vector<1x64x32xbf16>
    %29 = vector.shape_cast %28 : vector<1x64x32xbf16> to vector<64x32xbf16>
    %c3_38 = arith.constant 3 : index
    %c1_39 = arith.constant 1 : index
    %c0_40 = arith.constant 0 : index
    %30 = vector.load %arg1[%c3_38, %c1_39, %c0_40] : memref<4x80x32xbf16, #tpu.memory_space<vmem>>, vector<1x64x32xbf16>
    %31 = vector.shape_cast %30 : vector<1x64x32xbf16> to vector<64x32xbf16>
    %c1_41 = arith.constant 1 : index
    %c7_42 = arith.constant 7 : index
    %c0_43 = arith.constant 0 : index
    %32 = vector.load %arg1[%c1_41, %c7_42, %c0_43] : memref<4x80x32xbf16, #tpu.memory_space<vmem>>, vector<1x64x32xbf16>
    %33 = vector.shape_cast %32 : vector<1x64x32xbf16> to vector<64x32xbf16>
    %c0_44 = arith.constant 0 : index
    %c8_45 = arith.constant 8 : index
    %c0_46 = arith.constant 0 : index
    %34 = vector.load %arg1[%c0_44, %c8_45, %c0_46] : memref<4x80x32xbf16, #tpu.memory_space<vmem>>, vector<1x64x32xbf16>
    %35 = vector.shape_cast %34 : vector<1x64x32xbf16> to vector<64x32xbf16>
    %c1_47 = arith.constant 1 : index
    %c8_48 = arith.constant 8 : index
    %c0_49 = arith.constant 0 : index
    %36 = vector.load %arg1[%c1_47, %c8_48, %c0_49] : memref<4x80x32xbf16, #tpu.memory_space<vmem>>, vector<1x64x32xbf16>
    %37 = vector.shape_cast %36 : vector<1x64x32xbf16> to vector<64x32xbf16>
    %38 = tpu.concatenate %21, %23, %25, %27, %29, %31, %33, %35, %37 in 1 : vector<64x32xbf16>, vector<64x32xbf16>, vector<64x32xbf16>, vector<64x32xbf16>, vector<64x32xbf16>, vector<64x32xbf16>, vector<64x32xbf16>, vector<64x32xbf16>, vector<64x32xbf16> -> vector<64x288xbf16>
    %c2_50 = arith.constant 2 : index
    %c0_51 = arith.constant 0 : index
    %c0_52 = arith.constant 0 : index
    %39 = vector.load %arg1[%c2_50, %c0_51, %c0_52] : memref<4x80x32xbf16, #tpu.memory_space<vmem>>, vector<1x64x32xbf16>
    %40 = vector.shape_cast %39 : vector<1x64x32xbf16> to vector<64x32xbf16>
    %c3_53 = arith.constant 3 : index
    %c0_54 = arith.constant 0 : index
    %c0_55 = arith.constant 0 : index
    %41 = vector.load %arg1[%c3_53, %c0_54, %c0_55] : memref<4x80x32xbf16, #tpu.memory_space<vmem>>, vector<1x64x32xbf16>
    %42 = vector.shape_cast %41 : vector<1x64x32xbf16> to vector<64x32xbf16>
    %c2_56 = arith.constant 2 : index
    %c1_57 = arith.constant 1 : index
    %c0_58 = arith.constant 0 : index
    %43 = vector.load %arg1[%c2_56, %c1_57, %c0_58] : memref<4x80x32xbf16, #tpu.memory_space<vmem>>, vector<1x64x32xbf16>
    %44 = vector.shape_cast %43 : vector<1x64x32xbf16> to vector<64x32xbf16>
    %c0_59 = arith.constant 0 : index
    %c7_60 = arith.constant 7 : index
    %c0_61 = arith.constant 0 : index
    %45 = vector.load %arg1[%c0_59, %c7_60, %c0_61] : memref<4x80x32xbf16, #tpu.memory_space<vmem>>, vector<1x64x32xbf16>
    %46 = vector.shape_cast %45 : vector<1x64x32xbf16> to vector<64x32xbf16>
    %c1_62 = arith.constant 1 : index
    %c7_63 = arith.constant 7 : index
    %c0_64 = arith.constant 0 : index
    %47 = vector.load %arg1[%c1_62, %c7_63, %c0_64] : memref<4x80x32xbf16, #tpu.memory_space<vmem>>, vector<1x64x32xbf16>
    %48 = vector.shape_cast %47 : vector<1x64x32xbf16> to vector<64x32xbf16>
    %c0_65 = arith.constant 0 : index
    %c8_66 = arith.constant 8 : index
    %c0_67 = arith.constant 0 : index
    %49 = vector.load %arg1[%c0_65, %c8_66, %c0_67] : memref<4x80x32xbf16, #tpu.memory_space<vmem>>, vector<1x64x32xbf16>
    %50 = vector.shape_cast %49 : vector<1x64x32xbf16> to vector<64x32xbf16>
    %c2_68 = arith.constant 2 : index
    %c7_69 = arith.constant 7 : index
    %c0_70 = arith.constant 0 : index
    %51 = vector.load %arg1[%c2_68, %c7_69, %c0_70] : memref<4x80x32xbf16, #tpu.memory_space<vmem>>, vector<1x64x32xbf16>
    %52 = vector.shape_cast %51 : vector<1x64x32xbf16> to vector<64x32xbf16>
    %c3_71 = arith.constant 3 : index
    %c7_72 = arith.constant 7 : index
    %c0_73 = arith.constant 0 : index
    %53 = vector.load %arg1[%c3_71, %c7_72, %c0_73] : memref<4x80x32xbf16, #tpu.memory_space<vmem>>, vector<1x64x32xbf16>
    %54 = vector.shape_cast %53 : vector<1x64x32xbf16> to vector<64x32xbf16>
    %c2_74 = arith.constant 2 : index
    %c8_75 = arith.constant 8 : index
    %c0_76 = arith.constant 0 : index
    %55 = vector.load %arg1[%c2_74, %c8_75, %c0_76] : memref<4x80x32xbf16, #tpu.memory_space<vmem>>, vector<1x64x32xbf16>
    %56 = vector.shape_cast %55 : vector<1x64x32xbf16> to vector<64x32xbf16>
    %57 = tpu.concatenate %40, %42, %44, %46, %48, %50, %52, %54, %56 in 1 : vector<64x32xbf16>, vector<64x32xbf16>, vector<64x32xbf16>, vector<64x32xbf16>, vector<64x32xbf16>, vector<64x32xbf16>, vector<64x32xbf16>, vector<64x32xbf16>, vector<64x32xbf16> -> vector<64x288xbf16>
    %c3_77 = arith.constant 3 : index
    %c0_78 = arith.constant 0 : index
    %c0_79 = arith.constant 0 : index
    %58 = vector.load %arg1[%c3_77, %c0_78, %c0_79] : memref<4x80x32xbf16, #tpu.memory_space<vmem>>, vector<1x64x32xbf16>
    %59 = vector.shape_cast %58 : vector<1x64x32xbf16> to vector<64x32xbf16>
    %c2_80 = arith.constant 2 : index
    %c1_81 = arith.constant 1 : index
    %c0_82 = arith.constant 0 : index
    %60 = vector.load %arg1[%c2_80, %c1_81, %c0_82] : memref<4x80x32xbf16, #tpu.memory_space<vmem>>, vector<1x64x32xbf16>
    %61 = vector.shape_cast %60 : vector<1x64x32xbf16> to vector<64x32xbf16>
    %c3_83 = arith.constant 3 : index
    %c1_84 = arith.constant 1 : index
    %c0_85 = arith.constant 0 : index
    %62 = vector.load %arg1[%c3_83, %c1_84, %c0_85] : memref<4x80x32xbf16, #tpu.memory_space<vmem>>, vector<1x64x32xbf16>
    %63 = vector.shape_cast %62 : vector<1x64x32xbf16> to vector<64x32xbf16>
    %c1_86 = arith.constant 1 : index
    %c7_87 = arith.constant 7 : index
    %c0_88 = arith.constant 0 : index
    %64 = vector.load %arg1[%c1_86, %c7_87, %c0_88] : memref<4x80x32xbf16, #tpu.memory_space<vmem>>, vector<1x64x32xbf16>
    %65 = vector.shape_cast %64 : vector<1x64x32xbf16> to vector<64x32xbf16>
    %c0_89 = arith.constant 0 : index
    %c8_90 = arith.constant 8 : index
    %c0_91 = arith.constant 0 : index
    %66 = vector.load %arg1[%c0_89, %c8_90, %c0_91] : memref<4x80x32xbf16, #tpu.memory_space<vmem>>, vector<1x64x32xbf16>
    %67 = vector.shape_cast %66 : vector<1x64x32xbf16> to vector<64x32xbf16>
    %c1_92 = arith.constant 1 : index
    %c8_93 = arith.constant 8 : index
    %c0_94 = arith.constant 0 : index
    %68 = vector.load %arg1[%c1_92, %c8_93, %c0_94] : memref<4x80x32xbf16, #tpu.memory_space<vmem>>, vector<1x64x32xbf16>
    %69 = vector.shape_cast %68 : vector<1x64x32xbf16> to vector<64x32xbf16>
    %c3_95 = arith.constant 3 : index
    %c7_96 = arith.constant 7 : index
    %c0_97 = arith.constant 0 : index
    %70 = vector.load %arg1[%c3_95, %c7_96, %c0_97] : memref<4x80x32xbf16, #tpu.memory_space<vmem>>, vector<1x64x32xbf16>
    %71 = vector.shape_cast %70 : vector<1x64x32xbf16> to vector<64x32xbf16>
    %c2_98 = arith.constant 2 : index
    %c8_99 = arith.constant 8 : index
    %c0_100 = arith.constant 0 : index
    %72 = vector.load %arg1[%c2_98, %c8_99, %c0_100] : memref<4x80x32xbf16, #tpu.memory_space<vmem>>, vector<1x64x32xbf16>
    %73 = vector.shape_cast %72 : vector<1x64x32xbf16> to vector<64x32xbf16>
    %c3_101 = arith.constant 3 : index
    %c8_102 = arith.constant 8 : index
    %c0_103 = arith.constant 0 : index
    %74 = vector.load %arg1[%c3_101, %c8_102, %c0_103] : memref<4x80x32xbf16, #tpu.memory_space<vmem>>, vector<1x64x32xbf16>
    %75 = vector.shape_cast %74 : vector<1x64x32xbf16> to vector<64x32xbf16>
    %76 = tpu.concatenate %59, %61, %63, %65, %67, %69, %71, %73, %75 in 1 : vector<64x32xbf16>, vector<64x32xbf16>, vector<64x32xbf16>, vector<64x32xbf16>, vector<64x32xbf16>, vector<64x32xbf16>, vector<64x32xbf16>, vector<64x32xbf16>, vector<64x32xbf16> -> vector<64x288xbf16>
    %77 = tpu.concatenate %19, %38, %57, %76 in 0 : vector<64x288xbf16>, vector<64x288xbf16>, vector<64x288xbf16>, vector<64x288xbf16> -> vector<256x288xbf16>
    %cst = arith.constant dense<0.000000e+00> : vector<256x64xf32>
    %78 = tpu.matmul %77, %0, %cst {dimension_numbers = #tpu.dot_dimension_numbers<[1], [0], [0], [1], [0, 0, 1, 1], [], []>} : vector<256x288xbf16>, vector<288x64xbf16>, vector<256x64xf32> -> vector<256x64xf32>
    %79 = vector.extract_strided_slice %78 {offsets = [0, 0], sizes = [64, 64], strides = [1, 1]} : vector<256x64xf32> to vector<64x64xf32>
    %80 = vector.extract_strided_slice %78 {offsets = [64, 0], sizes = [64, 64], strides = [1, 1]} : vector<256x64xf32> to vector<64x64xf32>
    %81 = arith.maximumf %79, %80 : vector<64x64xf32>
    %82 = vector.extract_strided_slice %78 {offsets = [128, 0], sizes = [64, 64], strides = [1, 1]} : vector<256x64xf32> to vector<64x64xf32>
    %83 = vector.extract_strided_slice %78 {offsets = [192, 0], sizes = [64, 64], strides = [1, 1]} : vector<256x64xf32> to vector<64x64xf32>
    %84 = arith.maximumf %82, %83 : vector<64x64xf32>
    %85 = arith.maximumf %81, %84 : vector<64x64xf32>
    %c0_104 = arith.constant 0 : index
    %c0_105 = arith.constant 0 : index
    %86 = vector.load %arg3[%c0_104, %c0_105] : memref<1x64xf32, #tpu.memory_space<vmem>>, vector<1x64xf32>
    %87 = vector.broadcast %86 : vector<1x64xf32> to vector<64x64xf32>
    %88 = arith.addf %85, %87 : vector<64x64xf32>
    %cst_106 = arith.constant 0.000000e+00 : f32
    %89 = vector.broadcast %cst_106 : f32 to vector<64x64xf32>
    %90 = arith.maximumf %88, %89 : vector<64x64xf32>
    %91 = arith.truncf %90 : vector<64x64xf32> to vector<64x64xbf16>
    %c0_107 = arith.constant 0 : index
    %c0_108 = arith.constant 0 : index
    %92 = vector.load %arg4[%c0_107, %c0_108] : memref<80x64xbf16, #tpu.memory_space<vmem>>, vector<64x64xbf16>
    tpu.vector_store %arg4[%c0_107, %c0_108], %91 {strides = array<i32>} : memref<80x64xbf16, #tpu.memory_space<vmem>>, vector<64x64xbf16>,
    %cst_109 = arith.constant 0.000000e+00 : bf16
    %93 = vector.broadcast %cst_109 : bf16 to vector<16x64xbf16>
    %c64 = arith.constant 64 : index
    %c0_110 = arith.constant 0 : index
    %94 = vector.load %arg4[%c64, %c0_110] : memref<80x64xbf16, #tpu.memory_space<vmem>>, vector<16x64xbf16>
    tpu.vector_store %arg4[%c64, %c0_110], %93 {strides = array<i32>} : memref<80x64xbf16, #tpu.memory_space<vmem>>, vector<16x64xbf16>,
    return
  }
  func.func @transform_0(%arg0: i32) -> (i32, i32, i32) {
    %c0_i32 = arith.constant 0 : i32
    %c0_i32_0 = arith.constant 0 : i32
    %c0_i32_1 = arith.constant 0 : i32
    return %c0_i32, %arg0, %c0_i32_0 : i32, i32, i32
  }
  func.func @transform_1(%arg0: i32) -> (i32, i32) {
    %c0_i32 = arith.constant 0 : i32
    %c0_i32_0 = arith.constant 0 : i32
    %c0_i32_1 = arith.constant 0 : i32
    return %c0_i32, %c0_i32_0 : i32, i32
  }
  func.func @transform_2(%arg0: i32) -> (i32, i32) {
    %c0_i32 = arith.constant 0 : i32
    %c0_i32_0 = arith.constant 0 : i32
    %c0_i32_1 = arith.constant 0 : i32
    return %c0_i32, %c0_i32_0 : i32, i32
  }
  func.func @transform_3(%arg0: i32) -> (i32, i32) {
    %c0_i32 = arith.constant 0 : i32
    %c0_i32_0 = arith.constant 0 : i32
    return %arg0, %c0_i32 : i32, i32
  }
}

module attributes {stable_mosaic.version = 11 : i64} {
  func.func @_conv_pool_relu_kernel(%arg0: i32, %arg1: memref<4x32x64xbf16, #tpu.memory_space<vmem>>, %arg2: memref<576x64xbf16, #tpu.memory_space<vmem>>, %arg3: memref<1x64xf32, #tpu.memory_space<vmem>>, %arg4: memref<32x64xbf16, #tpu.memory_space<vmem>>) attributes {dimension_semantics = [#tpu.dimension_semantics<parallel>], iteration_bounds = array<i64: 2>, scalar_prefetch = 0 : i64, scratch_operands = 0 : i64, tpu.core_type = #tpu.core_type<tc>, window_params = [{transform_indices = @transform_0, window_bounds = array<i64: 4, 32, 64>}, {pipeline_mode = #tpu.pipeline_mode<synchronous>, transform_indices = @transform_1, window_bounds = array<i64: 576, 64>}, {pipeline_mode = #tpu.pipeline_mode<synchronous>, transform_indices = @transform_2, window_bounds = array<i64: 1, 64>}, {transform_indices = @transform_3, window_bounds = array<i64: 32, 64>}]} {
    %c0 = arith.constant 0 : index
    %c0_0 = arith.constant 0 : index
    %0 = vector.load %arg2[%c0, %c0_0] : memref<576x64xbf16, #tpu.memory_space<vmem>>, vector<576x64xbf16>
    %c0_1 = arith.constant 0 : index
    %c0_2 = arith.constant 0 : index
    %c0_3 = arith.constant 0 : index
    %1 = vector.load %arg1[%c0_1, %c0_2, %c0_3] : memref<4x32x64xbf16, #tpu.memory_space<vmem>>, vector<1x16x64xbf16>
    %2 = vector.shape_cast %1 : vector<1x16x64xbf16> to vector<16x64xbf16>
    %c1 = arith.constant 1 : index
    %c0_4 = arith.constant 0 : index
    %c0_5 = arith.constant 0 : index
    %3 = vector.load %arg1[%c1, %c0_4, %c0_5] : memref<4x32x64xbf16, #tpu.memory_space<vmem>>, vector<1x16x64xbf16>
    %4 = vector.shape_cast %3 : vector<1x16x64xbf16> to vector<16x64xbf16>
    %c0_6 = arith.constant 0 : index
    %c1_7 = arith.constant 1 : index
    %c0_8 = arith.constant 0 : index
    %5 = vector.load %arg1[%c0_6, %c1_7, %c0_8] : memref<4x32x64xbf16, #tpu.memory_space<vmem>>, vector<1x16x64xbf16>
    %6 = vector.shape_cast %5 : vector<1x16x64xbf16> to vector<16x64xbf16>
    %c2 = arith.constant 2 : index
    %c0_9 = arith.constant 0 : index
    %c0_10 = arith.constant 0 : index
    %7 = vector.load %arg1[%c2, %c0_9, %c0_10] : memref<4x32x64xbf16, #tpu.memory_space<vmem>>, vector<1x16x64xbf16>
    %8 = vector.shape_cast %7 : vector<1x16x64xbf16> to vector<16x64xbf16>
    %c3 = arith.constant 3 : index
    %c0_11 = arith.constant 0 : index
    %c0_12 = arith.constant 0 : index
    %9 = vector.load %arg1[%c3, %c0_11, %c0_12] : memref<4x32x64xbf16, #tpu.memory_space<vmem>>, vector<1x16x64xbf16>
    %10 = vector.shape_cast %9 : vector<1x16x64xbf16> to vector<16x64xbf16>
    %c2_13 = arith.constant 2 : index
    %c1_14 = arith.constant 1 : index
    %c0_15 = arith.constant 0 : index
    %11 = vector.load %arg1[%c2_13, %c1_14, %c0_15] : memref<4x32x64xbf16, #tpu.memory_space<vmem>>, vector<1x16x64xbf16>
    %12 = vector.shape_cast %11 : vector<1x16x64xbf16> to vector<16x64xbf16>
    %c0_16 = arith.constant 0 : index
    %c3_17 = arith.constant 3 : index
    %c0_18 = arith.constant 0 : index
    %13 = vector.load %arg1[%c0_16, %c3_17, %c0_18] : memref<4x32x64xbf16, #tpu.memory_space<vmem>>, vector<1x16x64xbf16>
    %14 = vector.shape_cast %13 : vector<1x16x64xbf16> to vector<16x64xbf16>
    %c1_19 = arith.constant 1 : index
    %c3_20 = arith.constant 3 : index
    %c0_21 = arith.constant 0 : index
    %15 = vector.load %arg1[%c1_19, %c3_20, %c0_21] : memref<4x32x64xbf16, #tpu.memory_space<vmem>>, vector<1x16x64xbf16>
    %16 = vector.shape_cast %15 : vector<1x16x64xbf16> to vector<16x64xbf16>
    %c0_22 = arith.constant 0 : index
    %c4 = arith.constant 4 : index
    %c0_23 = arith.constant 0 : index
    %17 = vector.load %arg1[%c0_22, %c4, %c0_23] : memref<4x32x64xbf16, #tpu.memory_space<vmem>>, vector<1x16x64xbf16>
    %18 = vector.shape_cast %17 : vector<1x16x64xbf16> to vector<16x64xbf16>
    %19 = tpu.concatenate %2, %4, %6, %8, %10, %12, %14, %16, %18 in 1 : vector<16x64xbf16>, vector<16x64xbf16>, vector<16x64xbf16>, vector<16x64xbf16>, vector<16x64xbf16>, vector<16x64xbf16>, vector<16x64xbf16>, vector<16x64xbf16>, vector<16x64xbf16> -> vector<16x576xbf16>
    %c1_24 = arith.constant 1 : index
    %c0_25 = arith.constant 0 : index
    %c0_26 = arith.constant 0 : index
    %20 = vector.load %arg1[%c1_24, %c0_25, %c0_26] : memref<4x32x64xbf16, #tpu.memory_space<vmem>>, vector<1x16x64xbf16>
    %21 = vector.shape_cast %20 : vector<1x16x64xbf16> to vector<16x64xbf16>
    %c0_27 = arith.constant 0 : index
    %c1_28 = arith.constant 1 : index
    %c0_29 = arith.constant 0 : index
    %22 = vector.load %arg1[%c0_27, %c1_28, %c0_29] : memref<4x32x64xbf16, #tpu.memory_space<vmem>>, vector<1x16x64xbf16>
    %23 = vector.shape_cast %22 : vector<1x16x64xbf16> to vector<16x64xbf16>
    %c1_30 = arith.constant 1 : index
    %c1_31 = arith.constant 1 : index
    %c0_32 = arith.constant 0 : index
    %24 = vector.load %arg1[%c1_30, %c1_31, %c0_32] : memref<4x32x64xbf16, #tpu.memory_space<vmem>>, vector<1x16x64xbf16>
    %25 = vector.shape_cast %24 : vector<1x16x64xbf16> to vector<16x64xbf16>
    %c3_33 = arith.constant 3 : index
    %c0_34 = arith.constant 0 : index
    %c0_35 = arith.constant 0 : index
    %26 = vector.load %arg1[%c3_33, %c0_34, %c0_35] : memref<4x32x64xbf16, #tpu.memory_space<vmem>>, vector<1x16x64xbf16>
    %27 = vector.shape_cast %26 : vector<1x16x64xbf16> to vector<16x64xbf16>
    %c2_36 = arith.constant 2 : index
    %c1_37 = arith.constant 1 : index
    %c0_38 = arith.constant 0 : index
    %28 = vector.load %arg1[%c2_36, %c1_37, %c0_38] : memref<4x32x64xbf16, #tpu.memory_space<vmem>>, vector<1x16x64xbf16>
    %29 = vector.shape_cast %28 : vector<1x16x64xbf16> to vector<16x64xbf16>
    %c3_39 = arith.constant 3 : index
    %c1_40 = arith.constant 1 : index
    %c0_41 = arith.constant 0 : index
    %30 = vector.load %arg1[%c3_39, %c1_40, %c0_41] : memref<4x32x64xbf16, #tpu.memory_space<vmem>>, vector<1x16x64xbf16>
    %31 = vector.shape_cast %30 : vector<1x16x64xbf16> to vector<16x64xbf16>
    %c1_42 = arith.constant 1 : index
    %c3_43 = arith.constant 3 : index
    %c0_44 = arith.constant 0 : index
    %32 = vector.load %arg1[%c1_42, %c3_43, %c0_44] : memref<4x32x64xbf16, #tpu.memory_space<vmem>>, vector<1x16x64xbf16>
    %33 = vector.shape_cast %32 : vector<1x16x64xbf16> to vector<16x64xbf16>
    %c0_45 = arith.constant 0 : index
    %c4_46 = arith.constant 4 : index
    %c0_47 = arith.constant 0 : index
    %34 = vector.load %arg1[%c0_45, %c4_46, %c0_47] : memref<4x32x64xbf16, #tpu.memory_space<vmem>>, vector<1x16x64xbf16>
    %35 = vector.shape_cast %34 : vector<1x16x64xbf16> to vector<16x64xbf16>
    %c1_48 = arith.constant 1 : index
    %c4_49 = arith.constant 4 : index
    %c0_50 = arith.constant 0 : index
    %36 = vector.load %arg1[%c1_48, %c4_49, %c0_50] : memref<4x32x64xbf16, #tpu.memory_space<vmem>>, vector<1x16x64xbf16>
    %37 = vector.shape_cast %36 : vector<1x16x64xbf16> to vector<16x64xbf16>
    %38 = tpu.concatenate %21, %23, %25, %27, %29, %31, %33, %35, %37 in 1 : vector<16x64xbf16>, vector<16x64xbf16>, vector<16x64xbf16>, vector<16x64xbf16>, vector<16x64xbf16>, vector<16x64xbf16>, vector<16x64xbf16>, vector<16x64xbf16>, vector<16x64xbf16> -> vector<16x576xbf16>
    %c2_51 = arith.constant 2 : index
    %c0_52 = arith.constant 0 : index
    %c0_53 = arith.constant 0 : index
    %39 = vector.load %arg1[%c2_51, %c0_52, %c0_53] : memref<4x32x64xbf16, #tpu.memory_space<vmem>>, vector<1x16x64xbf16>
    %40 = vector.shape_cast %39 : vector<1x16x64xbf16> to vector<16x64xbf16>
    %c3_54 = arith.constant 3 : index
    %c0_55 = arith.constant 0 : index
    %c0_56 = arith.constant 0 : index
    %41 = vector.load %arg1[%c3_54, %c0_55, %c0_56] : memref<4x32x64xbf16, #tpu.memory_space<vmem>>, vector<1x16x64xbf16>
    %42 = vector.shape_cast %41 : vector<1x16x64xbf16> to vector<16x64xbf16>
    %c2_57 = arith.constant 2 : index
    %c1_58 = arith.constant 1 : index
    %c0_59 = arith.constant 0 : index
    %43 = vector.load %arg1[%c2_57, %c1_58, %c0_59] : memref<4x32x64xbf16, #tpu.memory_space<vmem>>, vector<1x16x64xbf16>
    %44 = vector.shape_cast %43 : vector<1x16x64xbf16> to vector<16x64xbf16>
    %c0_60 = arith.constant 0 : index
    %c3_61 = arith.constant 3 : index
    %c0_62 = arith.constant 0 : index
    %45 = vector.load %arg1[%c0_60, %c3_61, %c0_62] : memref<4x32x64xbf16, #tpu.memory_space<vmem>>, vector<1x16x64xbf16>
    %46 = vector.shape_cast %45 : vector<1x16x64xbf16> to vector<16x64xbf16>
    %c1_63 = arith.constant 1 : index
    %c3_64 = arith.constant 3 : index
    %c0_65 = arith.constant 0 : index
    %47 = vector.load %arg1[%c1_63, %c3_64, %c0_65] : memref<4x32x64xbf16, #tpu.memory_space<vmem>>, vector<1x16x64xbf16>
    %48 = vector.shape_cast %47 : vector<1x16x64xbf16> to vector<16x64xbf16>
    %c0_66 = arith.constant 0 : index
    %c4_67 = arith.constant 4 : index
    %c0_68 = arith.constant 0 : index
    %49 = vector.load %arg1[%c0_66, %c4_67, %c0_68] : memref<4x32x64xbf16, #tpu.memory_space<vmem>>, vector<1x16x64xbf16>
    %50 = vector.shape_cast %49 : vector<1x16x64xbf16> to vector<16x64xbf16>
    %c2_69 = arith.constant 2 : index
    %c3_70 = arith.constant 3 : index
    %c0_71 = arith.constant 0 : index
    %51 = vector.load %arg1[%c2_69, %c3_70, %c0_71] : memref<4x32x64xbf16, #tpu.memory_space<vmem>>, vector<1x16x64xbf16>
    %52 = vector.shape_cast %51 : vector<1x16x64xbf16> to vector<16x64xbf16>
    %c3_72 = arith.constant 3 : index
    %c3_73 = arith.constant 3 : index
    %c0_74 = arith.constant 0 : index
    %53 = vector.load %arg1[%c3_72, %c3_73, %c0_74] : memref<4x32x64xbf16, #tpu.memory_space<vmem>>, vector<1x16x64xbf16>
    %54 = vector.shape_cast %53 : vector<1x16x64xbf16> to vector<16x64xbf16>
    %c2_75 = arith.constant 2 : index
    %c4_76 = arith.constant 4 : index
    %c0_77 = arith.constant 0 : index
    %55 = vector.load %arg1[%c2_75, %c4_76, %c0_77] : memref<4x32x64xbf16, #tpu.memory_space<vmem>>, vector<1x16x64xbf16>
    %56 = vector.shape_cast %55 : vector<1x16x64xbf16> to vector<16x64xbf16>
    %57 = tpu.concatenate %40, %42, %44, %46, %48, %50, %52, %54, %56 in 1 : vector<16x64xbf16>, vector<16x64xbf16>, vector<16x64xbf16>, vector<16x64xbf16>, vector<16x64xbf16>, vector<16x64xbf16>, vector<16x64xbf16>, vector<16x64xbf16>, vector<16x64xbf16> -> vector<16x576xbf16>
    %c3_78 = arith.constant 3 : index
    %c0_79 = arith.constant 0 : index
    %c0_80 = arith.constant 0 : index
    %58 = vector.load %arg1[%c3_78, %c0_79, %c0_80] : memref<4x32x64xbf16, #tpu.memory_space<vmem>>, vector<1x16x64xbf16>
    %59 = vector.shape_cast %58 : vector<1x16x64xbf16> to vector<16x64xbf16>
    %c2_81 = arith.constant 2 : index
    %c1_82 = arith.constant 1 : index
    %c0_83 = arith.constant 0 : index
    %60 = vector.load %arg1[%c2_81, %c1_82, %c0_83] : memref<4x32x64xbf16, #tpu.memory_space<vmem>>, vector<1x16x64xbf16>
    %61 = vector.shape_cast %60 : vector<1x16x64xbf16> to vector<16x64xbf16>
    %c3_84 = arith.constant 3 : index
    %c1_85 = arith.constant 1 : index
    %c0_86 = arith.constant 0 : index
    %62 = vector.load %arg1[%c3_84, %c1_85, %c0_86] : memref<4x32x64xbf16, #tpu.memory_space<vmem>>, vector<1x16x64xbf16>
    %63 = vector.shape_cast %62 : vector<1x16x64xbf16> to vector<16x64xbf16>
    %c1_87 = arith.constant 1 : index
    %c3_88 = arith.constant 3 : index
    %c0_89 = arith.constant 0 : index
    %64 = vector.load %arg1[%c1_87, %c3_88, %c0_89] : memref<4x32x64xbf16, #tpu.memory_space<vmem>>, vector<1x16x64xbf16>
    %65 = vector.shape_cast %64 : vector<1x16x64xbf16> to vector<16x64xbf16>
    %c0_90 = arith.constant 0 : index
    %c4_91 = arith.constant 4 : index
    %c0_92 = arith.constant 0 : index
    %66 = vector.load %arg1[%c0_90, %c4_91, %c0_92] : memref<4x32x64xbf16, #tpu.memory_space<vmem>>, vector<1x16x64xbf16>
    %67 = vector.shape_cast %66 : vector<1x16x64xbf16> to vector<16x64xbf16>
    %c1_93 = arith.constant 1 : index
    %c4_94 = arith.constant 4 : index
    %c0_95 = arith.constant 0 : index
    %68 = vector.load %arg1[%c1_93, %c4_94, %c0_95] : memref<4x32x64xbf16, #tpu.memory_space<vmem>>, vector<1x16x64xbf16>
    %69 = vector.shape_cast %68 : vector<1x16x64xbf16> to vector<16x64xbf16>
    %c3_96 = arith.constant 3 : index
    %c3_97 = arith.constant 3 : index
    %c0_98 = arith.constant 0 : index
    %70 = vector.load %arg1[%c3_96, %c3_97, %c0_98] : memref<4x32x64xbf16, #tpu.memory_space<vmem>>, vector<1x16x64xbf16>
    %71 = vector.shape_cast %70 : vector<1x16x64xbf16> to vector<16x64xbf16>
    %c2_99 = arith.constant 2 : index
    %c4_100 = arith.constant 4 : index
    %c0_101 = arith.constant 0 : index
    %72 = vector.load %arg1[%c2_99, %c4_100, %c0_101] : memref<4x32x64xbf16, #tpu.memory_space<vmem>>, vector<1x16x64xbf16>
    %73 = vector.shape_cast %72 : vector<1x16x64xbf16> to vector<16x64xbf16>
    %c3_102 = arith.constant 3 : index
    %c4_103 = arith.constant 4 : index
    %c0_104 = arith.constant 0 : index
    %74 = vector.load %arg1[%c3_102, %c4_103, %c0_104] : memref<4x32x64xbf16, #tpu.memory_space<vmem>>, vector<1x16x64xbf16>
    %75 = vector.shape_cast %74 : vector<1x16x64xbf16> to vector<16x64xbf16>
    %76 = tpu.concatenate %59, %61, %63, %65, %67, %69, %71, %73, %75 in 1 : vector<16x64xbf16>, vector<16x64xbf16>, vector<16x64xbf16>, vector<16x64xbf16>, vector<16x64xbf16>, vector<16x64xbf16>, vector<16x64xbf16>, vector<16x64xbf16>, vector<16x64xbf16> -> vector<16x576xbf16>
    %77 = tpu.concatenate %19, %38, %57, %76 in 0 : vector<16x576xbf16>, vector<16x576xbf16>, vector<16x576xbf16>, vector<16x576xbf16> -> vector<64x576xbf16>
    %cst = arith.constant dense<0.000000e+00> : vector<64x64xf32>
    %78 = tpu.matmul %77, %0, %cst {dimension_numbers = #tpu.dot_dimension_numbers<[1], [0], [0], [1], [0, 0, 1, 1], [], []>} : vector<64x576xbf16>, vector<576x64xbf16>, vector<64x64xf32> -> vector<64x64xf32>
    %79 = vector.extract_strided_slice %78 {offsets = [0, 0], sizes = [16, 64], strides = [1, 1]} : vector<64x64xf32> to vector<16x64xf32>
    %80 = vector.extract_strided_slice %78 {offsets = [16, 0], sizes = [16, 64], strides = [1, 1]} : vector<64x64xf32> to vector<16x64xf32>
    %81 = arith.maximumf %79, %80 : vector<16x64xf32>
    %82 = vector.extract_strided_slice %78 {offsets = [32, 0], sizes = [16, 64], strides = [1, 1]} : vector<64x64xf32> to vector<16x64xf32>
    %83 = vector.extract_strided_slice %78 {offsets = [48, 0], sizes = [16, 64], strides = [1, 1]} : vector<64x64xf32> to vector<16x64xf32>
    %84 = arith.maximumf %82, %83 : vector<16x64xf32>
    %85 = arith.maximumf %81, %84 : vector<16x64xf32>
    %c0_105 = arith.constant 0 : index
    %c0_106 = arith.constant 0 : index
    %86 = vector.load %arg3[%c0_105, %c0_106] : memref<1x64xf32, #tpu.memory_space<vmem>>, vector<1x64xf32>
    %87 = vector.broadcast %86 : vector<1x64xf32> to vector<16x64xf32>
    %88 = arith.addf %85, %87 : vector<16x64xf32>
    %cst_107 = arith.constant 0.000000e+00 : f32
    %89 = vector.broadcast %cst_107 : f32 to vector<16x64xf32>
    %90 = arith.maximumf %88, %89 : vector<16x64xf32>
    %91 = arith.truncf %90 : vector<16x64xf32> to vector<16x64xbf16>
    %c0_108 = arith.constant 0 : index
    %c0_109 = arith.constant 0 : index
    %92 = vector.load %arg4[%c0_108, %c0_109] : memref<32x64xbf16, #tpu.memory_space<vmem>>, vector<16x64xbf16>
    tpu.vector_store %arg4[%c0_108, %c0_109], %91 {strides = array<i32>} : memref<32x64xbf16, #tpu.memory_space<vmem>>, vector<16x64xbf16>,
    %cst_110 = arith.constant 0.000000e+00 : bf16
    %93 = vector.broadcast %cst_110 : bf16 to vector<16x64xbf16>
    %c16 = arith.constant 16 : index
    %c0_111 = arith.constant 0 : index
    %94 = vector.load %arg4[%c16, %c0_111] : memref<32x64xbf16, #tpu.memory_space<vmem>>, vector<16x64xbf16>
    tpu.vector_store %arg4[%c16, %c0_111], %93 {strides = array<i32>} : memref<32x64xbf16, #tpu.memory_space<vmem>>, vector<16x64xbf16>,
    return
  }
  func.func @transform_0(%arg0: i32) -> (i32, i32, i32) {
    %c0_i32 = arith.constant 0 : i32
    %c0_i32_0 = arith.constant 0 : i32
    %c0_i32_1 = arith.constant 0 : i32
    return %c0_i32, %arg0, %c0_i32_0 : i32, i32, i32
  }
  func.func @transform_1(%arg0: i32) -> (i32, i32) {
    %c0_i32 = arith.constant 0 : i32
    %c0_i32_0 = arith.constant 0 : i32
    %c0_i32_1 = arith.constant 0 : i32
    return %c0_i32, %c0_i32_0 : i32, i32
  }
  func.func @transform_2(%arg0: i32) -> (i32, i32) {
    %c0_i32 = arith.constant 0 : i32
    %c0_i32_0 = arith.constant 0 : i32
    %c0_i32_1 = arith.constant 0 : i32
    return %c0_i32, %c0_i32_0 : i32, i32
  }
  func.func @transform_3(%arg0: i32) -> (i32, i32) {
    %c0_i32 = arith.constant 0 : i32
    %c0_i32_0 = arith.constant 0 : i32
    return %arg0, %c0_i32 : i32, i32
  }
}

module attributes {stable_mosaic.version = 11 : i64} {
  func.func @_mlp_head_kernel(%arg0: i32, %arg1: memref<8x256xbf16, #tpu.memory_space<vmem>>, %arg2: memref<256x64xbf16, #tpu.memory_space<vmem>>, %arg3: memref<1x64xf32, #tpu.memory_space<vmem>>, %arg4: memref<64x10xbf16, #tpu.memory_space<vmem>>, %arg5: memref<1x10xf32, #tpu.memory_space<vmem>>, %arg6: memref<8x10xf32, #tpu.memory_space<vmem>>) attributes {dimension_semantics = [#tpu.dimension_semantics<parallel>], iteration_bounds = array<i64: 1>, scalar_prefetch = 0 : i64, scratch_operands = 0 : i64, tpu.core_type = #tpu.core_type<tc>, window_params = [{transform_indices = @transform_0, window_bounds = array<i64: 8, 256>}, {pipeline_mode = #tpu.pipeline_mode<synchronous>, transform_indices = @transform_1, window_bounds = array<i64: 256, 64>}, {pipeline_mode = #tpu.pipeline_mode<synchronous>, transform_indices = @transform_2, window_bounds = array<i64: 1, 64>}, {pipeline_mode = #tpu.pipeline_mode<synchronous>, transform_indices = @transform_3, window_bounds = array<i64: 64, 10>}, {pipeline_mode = #tpu.pipeline_mode<synchronous>, transform_indices = @transform_4, window_bounds = array<i64: 1, 10>}, {transform_indices = @transform_5, window_bounds = array<i64: 8, 10>}]} {
    %c0 = arith.constant 0 : index
    %c0_0 = arith.constant 0 : index
    %0 = vector.load %arg1[%c0, %c0_0] : memref<8x256xbf16, #tpu.memory_space<vmem>>, vector<8x256xbf16>
    %c0_1 = arith.constant 0 : index
    %c0_2 = arith.constant 0 : index
    %1 = vector.load %arg2[%c0_1, %c0_2] : memref<256x64xbf16, #tpu.memory_space<vmem>>, vector<256x64xbf16>
    %cst = arith.constant dense<0.000000e+00> : vector<8x64xf32>
    %2 = tpu.matmul %0, %1, %cst {dimension_numbers = #tpu.dot_dimension_numbers<[1], [0], [0], [1], [0, 0, 1, 1], [], []>} : vector<8x256xbf16>, vector<256x64xbf16>, vector<8x64xf32> -> vector<8x64xf32>
    %c0_3 = arith.constant 0 : index
    %c0_4 = arith.constant 0 : index
    %3 = vector.load %arg3[%c0_3, %c0_4] : memref<1x64xf32, #tpu.memory_space<vmem>>, vector<1x64xf32>
    %4 = vector.broadcast %3 : vector<1x64xf32> to vector<8x64xf32>
    %5 = arith.addf %2, %4 : vector<8x64xf32>
    %cst_5 = arith.constant 0.000000e+00 : f32
    %6 = vector.broadcast %cst_5 : f32 to vector<8x64xf32>
    %7 = arith.maximumf %5, %6 : vector<8x64xf32>
    %8 = arith.truncf %7 : vector<8x64xf32> to vector<8x64xbf16>
    %c0_6 = arith.constant 0 : index
    %c0_7 = arith.constant 0 : index
    %9 = vector.load %arg4[%c0_6, %c0_7] : memref<64x10xbf16, #tpu.memory_space<vmem>>, vector<64x10xbf16>
    %cst_8 = arith.constant dense<0.000000e+00> : vector<8x10xf32>
    %10 = tpu.matmul %8, %9, %cst_8 {dimension_numbers = #tpu.dot_dimension_numbers<[1], [0], [0], [1], [0, 0, 1, 1], [], []>} : vector<8x64xbf16>, vector<64x10xbf16>, vector<8x10xf32> -> vector<8x10xf32>
    %c0_9 = arith.constant 0 : index
    %c0_10 = arith.constant 0 : index
    %11 = vector.load %arg5[%c0_9, %c0_10] : memref<1x10xf32, #tpu.memory_space<vmem>>, vector<1x10xf32>
    %12 = vector.broadcast %11 : vector<1x10xf32> to vector<8x10xf32>
    %13 = arith.addf %10, %12 : vector<8x10xf32>
    %cst_11 = arith.constant dense<0xFF800000> : vector<8xf32>
    %14 = vector.multi_reduction <maximumf>, %13, %cst_11 [1] : vector<8x10xf32> to vector<8xf32>
    %15 = vector.shape_cast %14 : vector<8xf32> to vector<8x1xf32>
    %16 = vector.broadcast %15 : vector<8x1xf32> to vector<8x10xf32>
    %17 = arith.subf %13, %16 : vector<8x10xf32>
    %18 = math.exp %17 : vector<8x10xf32>
    %cst_12 = arith.constant dense<0.000000e+00> : vector<8xf32>
    %19 = vector.multi_reduction <add>, %18, %cst_12 [1] : vector<8x10xf32> to vector<8xf32>
    %20 = vector.shape_cast %19 : vector<8xf32> to vector<8x1xf32>
    %21 = math.log %20 : vector<8x1xf32>
    %22 = vector.broadcast %21 : vector<8x1xf32> to vector<8x10xf32>
    %23 = arith.subf %17, %22 : vector<8x10xf32>
    %c0_13 = arith.constant 0 : index
    %c0_14 = arith.constant 0 : index
    %24 = vector.load %arg6[%c0_13, %c0_14] : memref<8x10xf32, #tpu.memory_space<vmem>>, vector<8x10xf32>
    tpu.vector_store %arg6[%c0_13, %c0_14], %23 {strides = array<i32>} : memref<8x10xf32, #tpu.memory_space<vmem>>, vector<8x10xf32>,
    return
  }
  func.func @transform_0(%arg0: i32) -> (i32, i32) {
    %c0_i32 = arith.constant 0 : i32
    %c0_i32_0 = arith.constant 0 : i32
    return %arg0, %c0_i32 : i32, i32
  }
  func.func @transform_1(%arg0: i32) -> (i32, i32) {
    %c0_i32 = arith.constant 0 : i32
    %c0_i32_0 = arith.constant 0 : i32
    %c0_i32_1 = arith.constant 0 : i32
    return %c0_i32, %c0_i32_0 : i32, i32
  }
  func.func @transform_2(%arg0: i32) -> (i32, i32) {
    %c0_i32 = arith.constant 0 : i32
    %c0_i32_0 = arith.constant 0 : i32
    %c0_i32_1 = arith.constant 0 : i32
    return %c0_i32, %c0_i32_0 : i32, i32
  }
  func.func @transform_3(%arg0: i32) -> (i32, i32) {
    %c0_i32 = arith.constant 0 : i32
    %c0_i32_0 = arith.constant 0 : i32
    %c0_i32_1 = arith.constant 0 : i32
    return %c0_i32, %c0_i32_0 : i32, i32
  }
  func.func @transform_4(%arg0: i32) -> (i32, i32) {
    %c0_i32 = arith.constant 0 : i32
    %c0_i32_0 = arith.constant 0 : i32
    %c0_i32_1 = arith.constant 0 : i32
    return %c0_i32, %c0_i32_0 : i32, i32
  }
  func.func @transform_5(%arg0: i32) -> (i32, i32) {
    %c0_i32 = arith.constant 0 : i32
    %c0_i32_0 = arith.constant 0 : i32
    return %arg0, %c0_i32 : i32, i32
  }
}

</mosaic_0001>

<bundles_post_ra>
// kernel: naive_cnn_forward.5
= control target key start
LH: loop header
LB: loop body
LE: loop exit
PB: predicated region body
PF: predicated region fallthrough
CT: control target
= control target key end

     0   :  { %s2341_s12 = smov 0   ;;  %s2343_s13 = smov 0   ;;  %s3408_s0 = inlined_call_operand.vmem [shape: bf16[4,160,32], index: 0, kind: input, shape index: {}]   ;;  %s3409_s1 = inlined_call_operand.vmem [shape: bf16[288,64], index: 1, kind: input, shape index: {}]   ;;  %s3410_s2 = inlined_call_operand.vmem [shape: f32[1,64], index: 2, kind: input, shape index: {}]   ;;  %s3411_s3 = inlined_call_operand.vmem [shape: bf16[160,64], index: 3, kind: output, shape index: {}]  }
   0x1   :  { %s2345_s14 = smov 0  }
   0x2 LB: > { %s1878_s15 = sadd.s32 4294967295, %s2315_s14   ;;  %s2358_s16 = sadd.s32 1, %s2315_s14   ;;  %s2315_s14 = sphi %s2345_s14, %s3523_s14   ;;  %s2311_s13 = sphi %s2343_s13, %s3522_s13   ;;  %s2307_s12 = sphi %s2341_s12, %s3521_s12  }
   0x3   : > { %s17_s17 = ssub.s32 %s2315_s14, %s2358_s16  ;;  %s20_s18 = sadd.s32 1, %s2311_s13 }
   0x4   : > { %p18_p0 = scmp.eq.s32.totalorder %s17_s17, 0  ;;  %p27_p1 = scmp.ne.s32.totalorder %s2311_s13, %s2307_s12 }
   0x5   : > { %p28_p2 = scmp.eq.s32.totalorder %s2315_s14, 0  ;;  %p1881_p4 = scmp.ge.s32.totalorder %s2315_s14, 2 }
   0x6   : > { %s2367_s19 = scalar_select %p18_p0, %s2311_s13, %s20_s18  }
   0x7   : > { %p29_p3 = por %p28_p2, %p27_p1  ;;  %127 = sbr.rel (%p1881_p4) target bundleno = 29 (0x1d), region = 24 }
   0xe   : > { %130 = sbr.rel (!%p29_p3) target bundleno = 29 (0x1d), region = 28  ;;  %s132_s20 = sand.u32 (%p29_p3), 1, %s2311_s13  }
   0xf   : > { %s2007_s21 = smul.u32 (%p29_p3), 40, %s2315_s14 }
  0x10   : > { %s2198_s22 = smul.u32 (%p29_p3), 160, %s132_s20 }
  0x11   : > { %s2375_s25 = scalar_lea.vmem (%p29_p3), %s3408_s0, %s2007_s21 }
  0x12   : > { %v153_v0 = vld [vmem:[%s2375_s25] sm:$0xff] (%p29_p3)   ;;  %v157_v1 = vld [vmem:[%s2375_s25 + $0x8] sm:$0xff] (%p29_p3)   ;;  %v161_v2 = vld [vmem:[%s2375_s25 + $0x10] sm:$0xff] (%p29_p3)   ;;  %s2380_s26 = scalar_lea.vmem (%p29_p3), [#allocation2], %s2198_s22 }
  0x13   : > { %154 = vst [vmem:[%s2380_s26] sm:$0xff] (%p29_p3), %v153_v0   ;;  %158 = vst [vmem:[%s2380_s26 + $0x8] sm:$0xff] (%p29_p3), %v157_v1   ;;  %v165_v3 = vld [vmem:[%s2375_s25 + $0x18] sm:$0xff] (%p29_p3)   ;;  %v169_v4 = vld [vmem:[%s2375_s25 + $0x20] sm:$0xff] (%p29_p3)  }
  0x14   : > { %162 = vst [vmem:[%s2380_s26 + $0x10] sm:$0xff] (%p29_p3), %v161_v2   ;;  %v173_v5 = vld [vmem:[%s2375_s25 + $0x50] sm:$0xff] (%p29_p3)   ;;  %166 = vst [vmem:[%s2380_s26 + $0x18] sm:$0xff] (%p29_p3), %v165_v3   ;;  %v177_v6 = vld [vmem:[%s2375_s25 + $0x58] sm:$0xff] (%p29_p3)  }
  0x15   : > { %170 = vst [vmem:[%s2380_s26 + $0x20] sm:$0xff] %v169_v4   ;;  %174 = vst [vmem:[%s2380_s26 + $0x28] sm:$0xff] %v173_v5   ;;  %v181_v7 = vld [vmem:[%s2375_s25 + $0x60] sm:$0xff]   ;;  %v185_v8 = vld [vmem:[%s2375_s25 + $0x68] sm:$0xff]  }
  0x16   : > { %178 = vst [vmem:[%s2380_s26 + $0x30] sm:$0xff] %v177_v6   ;;  %182 = vst [vmem:[%s2380_s26 + $0x38] sm:$0xff] %v181_v7   ;;  %v189_v9 = vld [vmem:[%s2375_s25 + $0x70] sm:$0xff]   ;;  %v193_v10 = vld [vmem:[%s2375_s25 + $0xa0] sm:$0xff]  }
  0x17   : > { %186 = vst [vmem:[%s2380_s26 + $0x40] sm:$0xff] %v185_v8   ;;  %v197_v11 = vld [vmem:[%s2375_s25 + $0xa8] sm:$0xff]   ;;  %190 = vst [vmem:[%s2380_s26 + $0x48] sm:$0xff] %v189_v9   ;;  %v201_v12 = vld [vmem:[%s2375_s25 + $0xb0] sm:$0xff]  }
  0x18   : > { %194 = vst [vmem:[%s2380_s26 + $0x50] sm:$0xff] %v193_v10   ;;  %198 = vst [vmem:[%s2380_s26 + $0x58] sm:$0xff] %v197_v11   ;;  %v205_v13 = vld [vmem:[%s2375_s25 + $0xb8] sm:$0xff]   ;;  %v209_v14 = vld [vmem:[%s2375_s25 + $0xc0] sm:$0xff]  }
  0x19   : > { %202 = vst [vmem:[%s2380_s26 + $0x60] sm:$0xff] %v201_v12   ;;  %206 = vst [vmem:[%s2380_s26 + $0x68] sm:$0xff] %v205_v13   ;;  %v213_v15 = vld [vmem:[%s2375_s25 + $0xf0] sm:$0xff]   ;;  %v217_v16 = vld [vmem:[%s2375_s25 + $0xf8] sm:$0xff]  }
  0x1a   : > { %210 = vst [vmem:[%s2380_s26 + $0x70] sm:$0xff] %v209_v14   ;;  %v221_v17 = vld [vmem:[%s2375_s25 + $0x100] sm:$0xff]   ;;  %214 = vst [vmem:[%s2380_s26 + $0x78] sm:$0xff] %v213_v15   ;;  %v225_v18 = vld [vmem:[%s2375_s25 + $0x108] sm:$0xff]  }
  0x1b   : > { %218 = vst [vmem:[%s2380_s26 + $0x80] sm:$0xff] %v217_v16   ;;  %222 = vst [vmem:[%s2380_s26 + $0x88] sm:$0xff] %v221_v17   ;;  %v229_v19 = vld [vmem:[%s2375_s25 + $0x110] sm:$0xff]  }
  0x1c   : > { %226 = vst [vmem:[%s2380_s26 + $0x90] sm:$0xff] %v225_v18   ;;  %230 = vst [vmem:[%s2380_s26 + $0x98] sm:$0xff] %v229_v19  }
  0x1d PF: > { %p1883_p5 = scmp.ge.s32.totalorder %s2315_s14, 1  ;;  %p334_p6 = scmp.lt.s32.totalorder %s2315_s14, 3 }
  0x1f   : > { %p335_p7 = pnand %p1883_p5, %p334_p6 }
  0x21   : > { %338 = sbr.rel (%p335_p7) target bundleno = 573 (0x23d), region = 69 }
  0x28   : > { %s341_s27 = sand.u32 1, %s2307_s12   ;;  %v2263_v20 = vld [vmem:[%s3409_s1 + $0x40] sm:$0xff]   ;;  %vm500_vm0 = vsmask.f32 7424  ;;  %vm646_vm1 = vsmask.f32 4352 }
  0x29   : > { %s2199_s28 = smul.u32 160, %s341_s27  ;;  %v2264_v21 = vld [vmem:[%s3409_s1] sm:$0xff]   ;;  %2016 = vmatprep.subr.bf16.mxu0 %v2263_v20  ;;  %2182 = vmatprep.subr.bf16.mxu1 %v2263_v20  ;;  %s2317_s7 = smov 32   ;;  %v2266_v54 = vld [vmem:[%s3409_s1 + $0x48] sm:$0xff]   ;;  %v2268_v7 = vld [vmem:[%s3409_s1 + $0x50] sm:$0xff]   ;;  %vm746_vm2 = vcmask 261120  }
  0x2a   : > { %2017 = vmatpush3.bf16.msra.mxu0 %v2264_v21  ;;  %2190 = vmatpush3.bf16.msra.mxu1 %v2264_v21  ;;  %s2318_s10 = smov 96   ;;  %v2267_v1 = vld [vmem:[%s3409_s1 + $0x8] sm:$0xff]   ;;  %v2269_v13 = vld [vmem:[%s3409_s1 + $0x10] sm:$0xff]   ;;  %s2319_s22 = smov 64   ;;  %vm755_vm3 = vcmask 523264   ;;  %vm764_vm4 = vcmask 785408  }
  0x2b   : > { %s2428_s6 = scalar_lea.vmem [#allocation2], %s2199_s28  ;;  %2018 = vmatprep.subr.bf16.mxu0 %v2266_v54  ;;  %2183 = vmatprep.subr.bf16.mxu1 %v2266_v54  ;;  %vm1805_vm5 = vcmask 519168  }
  0x2c   : > { %v1885_v22 = vld [vmem:[%s2428_s6 + $0x28] sm:$0xf]  ;;  %v1886_v23 = vld [vmem:[%s2428_s6 + $0x2c] sm:$0xf]  ;;  %v1887_v24 = vld [vmem:[%s2428_s6 + $0x30] sm:$0xf] }
  0x2d   : > { %v2433_v25 = vcombine.low %v1885_v22, %v1886_v23  ;;  %v2436_v26 = vld [vmem:[%s2428_s6 + $0x34] sm:$0xf]  ;;  %v2438_v27 = vcombine.low %v1886_v23, %v1887_v24  ;;  %v1893_v28 = vld [vmem:[%s2428_s6 + $0x50] sm:$0xf]  ;;  %v409_v31 = vld [vmem:[%s2428_s6 + $0x4] sm:$0xf] }
  0x2e   : > { %v2442_v29 = vld [vmem:[%s2428_s6 + $0x54] sm:$0xf]  ;;  %v410_v32 = vld [vmem:[%s2428_s6 + $0x8] sm:$0xf]  ;;  %v2450_v33 = vld [vmem:[%s2428_s6 + $0xc] sm:$0xf]  ;;  %v2466_v38 = vcombine.low %v1887_v24, %v2436_v26  ;;  %2019 = vmatpush3.bf16.msra.mxu0 %v2267_v1  ;;  %2191 = vmatpush3.bf16.msra.mxu1 %v2267_v1 }
  0x2f   : > { %3453 = vst [vmem:[#allocation3_spill] sm:$0xff] %v2433_v25  ;;  %3454 = vst [vmem:[#allocation4_spill] sm:$0xff] %v2438_v27  ;;  %v2445_v30 = vcombine.low %v1893_v28, %v2442_v29  ;;  %489 = vrot.lane.b32.xlu0 %v2433_v25, %s2317_s7  ;;  %1176 = vrot.lane.b32.xlu1 %v2438_v27, %s2317_s7  ;;  %v445_v34 = vld [vmem:[%s2428_s6] sm:$0x8]  ;;  %v2458_v35 = vcombine.low %v410_v32, %v2450_v33  ;;  %v2461_v36 = vld [vmem:[%s2428_s6 + $0x58] sm:$0xf] }
  0x30   : > { %v2463_v37 = vcombine.low %v409_v31, %v410_v32  ;;  %3457 = vst [vmem:[#allocation7_spill] sm:$0xff] %v2466_v38  ;;  %v1930_v39 = vcombine.low %v445_v34, %v409_v31  ;;  %v2469_v40 = vld [vmem:[%s2428_s6 + $0x5c] sm:$0xf]  ;;  %v408_v43 = vld [vmem:[%s2428_s6] sm:$0xf]  ;;  %v3416_v11 = vshrl.u32 %v2466_v38, 16  ;;  %2020 = vmatprep.subr.bf16.mxu0 %v2268_v7  ;;  %2184 = vmatprep.subr.bf16.mxu1 %v2268_v7 }
  0x31   : > { %3455 = vst [vmem:[#allocation5_spill] sm:$0xff] %v2445_v30  ;;  %3456 = vst [vmem:[#allocation6_spill] sm:$0xff] %v2458_v35  ;;  %v597_v41 = vshrl.u32 %v2445_v30, 16  ;;  %v599_v42 = vshll.u32 %v2445_v30, 16  ;;  %v509_v44 = vshll.u32 %v2458_v35, 16  ;;  %v513_v45 = vshrl.u32 %v2458_v35, 16 }
  0x32   : > { %v2478_v46 = vcombine.low %v2461_v36, %v2469_v40  ;;  %v2480_v47 = vcombine.low %v408_v43, %v409_v31  ;;  %v1910_v48 = vld [vmem:[%s2428_s6 + $0x28] sm:$0x8]  ;;  %v648_v49 = vshrl.u32 %v1930_v39, 16  ;;  %v651_v50 = vshll.u32 %v1930_v39, 16  ;;  %v1901_v53 = vld [vmem:[%s2428_s6 + $0x78] sm:$0xf]  ;;  %2021 = vmatpush3.bf16.msra.mxu0 %v2269_v13  ;;  %2192 = vmatpush3.bf16.msra.mxu1 %v2269_v13 }
  0x33   : > { %v601_v51 = vrot.slane %v599_v42, 1  ;;  %v1932_v52 = vcombine.low %v1910_v48, %v1886_v23  ;;  %565 = vrot.lane.b32.xlu0 %v2445_v30, %s2318_s10  ;;  %v655_v55 = vrot.slane %v513_v45, 3  ;;  %v656_v56 = vrot.slane %v509_v44, 4  ;;  %v1902_v59 = vld [vmem:[%s2428_s6 + $0x7c] sm:$0xf]  ;;  %v2273_v1 = vld [vmem:[%s3409_s1 + $0x60] sm:$0xff]  }
  0x34   : > { %3458 = vst [vmem:[#allocation8_spill] sm:$0xff] %v2478_v46  ;;  %3459 = vst [vmem:[#allocation9_spill] sm:$0xff] %v2480_v47  ;;  %v3413_v57 = vshll.u32 %v2478_v46, 16  ;;  %v502_v58 = vshrl.u32 %v2480_v47, 16  ;;  %v650_v60 = vrot.slane %v648_v49, 3  ;;  %v653_v61 = vrot.slane %v651_v50, 4 }
  0x35   : > { %v602_v62 = vor.u32 %v601_v51, %v597_v41  ;;  %v504_v63 = vshll.u32 %v2480_v47, 16  ;;  %v1903_v0 = vld [vmem:[%s2428_s6 + $0x80] sm:$0xf]  ;;  %v2499_v2 = vor.u32 %v656_v56, %v655_v55  ;;  %v2505_v4 = vrot.slane %v509_v44, 1  ;;  %v1904_v6 = vld [vmem:[%s2428_s6 + $0x84] sm:$0xf] }
  0x36   : > { %v2503_v3 = vrot.slane %v3413_v57, 1  ;;  %v691_v5 = vshrl.u32 %v1932_v52, 16  ;;  %v654_v8 = vor.u32 %v653_v61, %v650_v60  ;;  %v694_v10 = vshll.u32 %v1932_v52, 16  ;;  %v1948_v12 = vld [vmem:[%s2428_s6 + $0x78] sm:$0x8] }
  0x37   : > { %v506_v9 = vrot.slane %v504_v63, 1  ;;  %v3418_v16 = vshll.u32 %v2466_v38, 16  ;;  %v2521_v17 = vcombine.low %v1901_v53, %v1902_v59  ;;  %v2524_v18 = vld [vmem:[%s2428_s6 + $0x60] sm:$0xf]  ;;  %v2527_v19 = vld [vmem:[%s2428_s6 + $0x64] sm:$0xf]  ;;  %v2541_v28 = vcombine.low %v1903_v0, %v1904_v6 }
  0x38   : > { %v2518_v14 = vsel %vm500_vm0, %v602_v62, %v2503_v3  ;;  %v693_v15 = vrot.slane %v691_v5, 3  ;;  %v2531_v20 = vsel %vm646_vm1, %v654_v8, %v2499_v2  ;;  %v696_v22 = vrot.slane %v694_v10, 4  ;;  %v2554_v43 = vld [vmem:[%s2428_s6 + $0x10] sm:$0xf]  ;;  %v2270_v44 = vld [vmem:[%s3409_s1 + $0x58] sm:$0xff]  }
  0x39   : > { %3460 = vst [vmem:[#allocation10_spill] sm:$0xff] %v2518_v14  ;;  %3461 = vst [vmem:[#allocation11_spill] sm:$0xff] %v2531_v20  ;;  %632 = vrot.lane.b32.xlu0 %v2518_v14, %s2317_s7  ;;  %v507_v21 = vor.u32 %v506_v9, %v502_v58  ;;  %v701_v23 = vrot.slane %v3416_v11, 3  ;;  %676 = vrot.lane.b32.xlu1 %v2531_v20, %s2319_s22  ;;  %v704_v24 = vrot.slane %v3418_v16, 4  ;;  %v862_v32 = vshrl.u32 %v2521_v17, 16  ;;  %v2271_v53 = vld [vmem:[%s3409_s1 + $0x18] sm:$0xff]  }
  0x3a   : > { %v1952_v31 = vcombine.low %v1948_v12, %v1902_v59  ;;  %v697_v39 = vor.u32 %v696_v22, %v693_v15  ;;  %v864_v41 = vshll.u32 %v2521_v17, 16  ;;  %v2551_v42 = vcombine.low %v2524_v18, %v2527_v19  ;;  %v2564_v52 = vld [vmem:[%s2428_s6 + $0x14] sm:$0xf]  ;;  %v2572_v59 = vld [vmem:[%s2428_s6 + $0x38] sm:$0xf]  ;;  %2022 = vmatprep.subr.bf16.mxu0 %v2270_v44  ;;  %2185 = vmatprep.subr.bf16.mxu1 %v2270_v44 }
  0x3b   : > { %v2546_v34 = vsel %vm500_vm0, %v507_v21, %v2505_v4  ;;  %v2559_v48 = vor.u32 %v704_v24, %v701_v23  ;;  %v868_v49 = vshll.u32 %v2541_v28, 16  ;;  %v3420_v50 = vshrl.u32 %v2541_v28, 16  ;;  %v2583_v0 = vld [vmem:[%s2428_s6 + $0x3c] sm:$0xf]  ;;  %2023 = vmatpush3.bf16.msra.mxu0 %v2271_v53  ;;  %v2606_v13 = vld [vmem:[%s2428_s6 + $0x88] sm:$0xf]  ;;  %2193 = vmatpush3.bf16.msra.mxu1 %v2271_v53 }
  0x3c   : > { %v1068_v51 = vshrl.u32 %v1952_v31, 16  ;;  %v1071_v54 = vshll.u32 %v1952_v31, 16  ;;  %v866_v55 = vrot.slane %v864_v41, 1  ;;  %v3414_v56 = vshrl.u32 %v2478_v46, 16  ;;  %3463 = vst [vmem:[#allocation13_spill] sm:$0xff] %v2606_v13  ;;  %2024 = vmatprep.subr.bf16.mxu0 %v2273_v1  ;;  %v2274_v21 = vld [vmem:[%s3409_s1 + $0x20] sm:$0xff]   ;;  %2186 = vmatprep.subr.bf16.mxu1 %v2273_v1 }
  0x3d   : > { %v3412_v58 = vshll.u32 %v2551_v42, 16  ;;  %537 = vrot.lane.b32.xlu1 %v2546_v34, %s2319_s22  ;;  %v2578_v60 = vsel %vm646_vm1, %v697_v39, %v2559_v48  ;;  %v1075_v62 = vrot.slane %v3420_v50, 3  ;;  %v1076_v63 = vrot.slane %v868_v49, 4  ;;  %v2609_v15 = vld [vmem:[%s2428_s6 + $0x8c] sm:$0xf] }
  0x3e   : > { %v1070_v61 = vrot.slane %v1068_v51, 3  ;;  %734 = vrot.lane.b32.xlu0 %v2578_v60, %s2318_s10  ;;  %v1073_v5 = vrot.slane %v1071_v54, 4  ;;  %v867_v6 = vor.u32 %v866_v55, %v862_v32  ;;  %v2590_v7 = vrot.slane %v868_v49, 1  ;;  %3464 = vst [vmem:[#allocation14_spill] sm:$0xff] %v2609_v15  ;;  %v2275_v24 = vld [vmem:[%s3409_s1 + $0x68] sm:$0xff]  }
  0x3f   : > { %v2592_v8 = vor.u32 %v1076_v63, %v1075_v62  ;;  %v610_v9 = vor.u32 %v3414_v56, %v2503_v3  ;;  %v2599_v10 = vrot.slane %v3412_v58, 1  ;;  %v2603_v12 = vcombine.low %v2554_v43, %v2564_v52  ;;  %2025 = vmatpush3.bf16.msra.mxu0 %v2274_v21  ;;  %v2276_v51 = vld [vmem:[%s3409_s1 + $0x28] sm:$0xff]   ;;  %v2655_v62 = vld [vmem:[%s2428_s6 + $0x18] sm:$0xf]  ;;  %2194 = vmatpush3.bf16.msra.mxu1 %v2274_v21  ;;  %v2278_v21 = vld [vmem:[%s3409_s1 + $0x30] sm:$0xff]  }
  0x40   : > { %v1074_v22 = vor.u32 %v1073_v5, %v1070_v61  ;;  %v2616_v3 = vsel %vm500_vm0, %v867_v6, %v2590_v7  ;;  %v2620_v23 = vcombine.low %v2572_v59, %v2583_v0  ;;  %v2637_v49 = vcombine.low %v2606_v13, %v2609_v15  ;;  %2026 = vmatprep.subr.bf16.mxu0 %v2275_v24  ;;  %v2277_v5 = vld [vmem:[%s3409_s1 + $0x70] sm:$0xff]   ;;  %v2676_v57 = vld [vmem:[%s2428_s6 + $0x6c] sm:$0xf]  ;;  %v446_v14 = vld [vmem:[%s2428_s6 + $0x20] sm:$0xf] }
  0x41   : > { %3462 = vst [vmem:[#allocation12_spill] sm:$0xff] %v2603_v12  ;;  %v517_v31 = vshll.u32 %v2603_v12, 16  ;;  %v3419_v32 = vshrl.u32 %v2603_v12, 16  ;;  %v2646_v53 = vcombine.low %v2442_v29, %v2461_v36  ;;  %v2650_v54 = vsel %vm500_vm0, %v610_v9, %v2599_v10  ;;  %v2662_v36 = vld [vmem:[%s2428_s6 + $0x1c] sm:$0xf]  ;;  %2187 = vmatprep.subr.bf16.mxu1 %v2275_v24 }
  0x42   : > { %3465 = vst [vmem:[#allocation15_spill] sm:$0xff] %v2620_v23  ;;  %v2629_v39 = vsel %vm646_vm1, %v1074_v22, %v2592_v8  ;;  %1168 = vrot.lane.b32.xlu0 %v2616_v3, %s2319_s22  ;;  %v3415_v41 = vshrl.u32 %v2620_v23, 16  ;;  %v3417_v44 = vshll.u32 %v2620_v23, 16  ;;  %3467 = vst [vmem:[#allocation17_spill] sm:$0xff] %v2637_v49  ;;  %v2670_v9 = vld [vmem:[%s2428_s6 + $0x68] sm:$0xf] }
  0x43   : > { %3466 = vst [vmem:[#allocation16_spill] sm:$0xff] %v2629_v39  ;;  %1184 = vrot.lane.b32.xlu1 %v2629_v39, %s2319_s22  ;;  %3468 = vst [vmem:[#allocation18_spill] sm:$0xff] %v2646_v53  ;;  %v659_v55 = vrot.slane %v3419_v32, 3  ;;  %v660_v61 = vrot.slane %v517_v31, 4  ;;  %v519_v22 = vrot.slane %v517_v31, 1  ;;  %v875_v58 = vshll.u32 %v2637_v49, 16  ;;  %2027 = vmatpush3.bf16.msra.mxu0 %v2276_v51 }
  0x44   : > { %3469 = vst [vmem:[#allocation19_spill] sm:$0xff] %v2650_v54  ;;  %v710_v63 = vrot.slane %v3415_v41, 3  ;;  %v713_v1 = vrot.slane %v3417_v44, 4  ;;  %v3423_v56 = vshrl.u32 %v2637_v49, 16  ;;  %v2699_v41 = vld [vmem:[%s2428_s6 + $0x90] sm:$0xf]  ;;  %2028 = vmatprep.subr.bf16.mxu0 %v2277_v5  ;;  %2195 = vmatpush3.bf16.msra.mxu1 %v2276_v51 }
  0x45   : > { %v2667_v6 = vor.u32 %v660_v61, %v659_v55  ;;  %v2692_v55 = vcombine.low %v2655_v62, %v2662_v36  ;;  %v515_v61 = vor.u32 %v513_v45, %v2505_v4  ;;  %3471 = vst [vmem:[#allocation21_spill] sm:$0xff] %v2699_v41  ;;  %v2710_v11 = vld [vmem:[%s2428_s6 + $0x94] sm:$0xf]  ;;  %2188 = vmatprep.subr.bf16.mxu1 %v2277_v5  ;;  %v2282_v45 = vld [vmem:[%s3409_s1 + $0x38] sm:$0xff]   ;;  %v2727_v44 = vld [vmem:[%s2428_s6 + $0x44] sm:$0xf] }
  0x46   : > { %634 = vrot.lane.b32.xlu0 %v2650_v54, %s2317_s7  ;;  %v2688_v31 = vor.u32 %v713_v1, %v710_v63  ;;  %v2706_v63 = vcombine.low %v2670_v9, %v2676_v57  ;;  %v1891_v1 = vld [vmem:[%s2428_s6 + $0x40] sm:$0xf]  ;;  %3472 = vst [vmem:[#allocation22_spill] sm:$0xff] %v2710_v11  ;;  %v1079_v32 = vrot.slane %v3423_v56, 3  ;;  %v1080_v50 = vrot.slane %v875_v58, 4 }
  0x47   : > { %1192 = vrot.lane.b32.xlu1 %v2646_v53, %s2318_s10  ;;  %v2686_v24 = vsel %vm646_vm1, %v2499_v2, %v2667_v6  ;;  %v2281_v2 = vld [vmem:[%s3409_s1 + $0x78] sm:$0xff]   ;;  %2029 = vmatpush3.bf16.msra.mxu0 %v2278_v21  ;;  %v525_v51 = vshll.u32 %v2692_v55, 16  ;;  %v2730_v16 = vsel %vm500_vm0, %v515_v61, %v519_v22  ;;  %v877_v5 = vrot.slane %v875_v58, 1  ;;  %v2792_v35 = vld [vmem:[%s2428_s6 + $0x70] ss:$0 sps:$4 sm:$0x11]  }
  0x48   : > { %3470 = vst [vmem:[#allocation20_spill] sm:$0xff] %v2686_v24  ;;  %v2722_v4 = vsel %vm646_vm1, %v2559_v48, %v2688_v31  ;;  %2030 = vmatprep.subr.bf16.mxu0 %v2281_v2  ;;  %2196 = vmatpush3.bf16.msra.mxu1 %v2278_v21  ;;  %v2737_v48 = vcombine.low %v2699_v41, %v2710_v11  ;;  %v3476_v30 = vshrl.u32 %v2692_v55, 16  ;;  %v2259_v61 = vld [vmem:[%s2428_s6 + $0x98] ss:$0 sps:$4 sm:$0x11]   ;;  %v3477_v13 = vshll.u32 %v2706_v63, 16 }
  0x49   : > { %2189 = vmatprep.subr.bf16.mxu1 %v2281_v2  ;;  %v2743_v15 = vcombine.low %v1891_v1, %v2727_v44  ;;  %v2749_v21 = vcombine.low %v2436_v26, %v2572_v59  ;;  %v3475_v2 = vshrl.u32 %v2541_v28, 16  ;;  %v664_v11 = vrot.slane %v525_v51, 4 }
  0x4a   : > { %678 = vrot.lane.b32.xlu0 %v2686_v24, %s2319_s22  ;;  %3473 = vst [vmem:[#allocation23_spill] sm:$0xff] %v2737_v48  ;;  %v663_v58 = vrot.slane %v3476_v30, 3  ;;  %v2757_v41 = vor.u32 %v1080_v50, %v1079_v32  ;;  %v2761_v53 = vrot.slane %v3477_v13, 1  ;;  %v882_v26 = vshll.u32 %v2737_v48, 16 }
  0x4b   : > { %491 = vrot.lane.b32.xlu1 %v2466_v38, %s2317_s7  ;;  %2031 = vmatpush3.bf16.msra.mxu0 %v2282_v45  ;;  %3474 = vst [vmem:[#allocation24_spill] sm:$0xff] %v2749_v21  ;;  %v874_v56 = vor.u32 %v3475_v2, %v2590_v7  ;;  %v823_v59 = vshrl.u32 %v2433_v25, 16  ;;  %v717_v7 = vshrl.u32 %v2743_v15, 16  ;;  %v720_v30 = vshll.u32 %v2743_v15, 16 }
  0x4c   : > { %2197 = vmatpush3.bf16.msra.mxu1 %v2282_v45  ;;  %v3478_v13 = vshrl.u32 %v2551_v42, 16  ;;  %v886_v45 = vshrl.u32 %v2737_v48, 16  ;;  %v2778_v2 = vrot.slane %v882_v26, 1  ;;  %v2783_v27 = vsel %vm646_vm1, %v2592_v8, %v2757_v41 }
  0x4d   : > { %v2772_v50 = vsel %vm500_vm0, %v874_v56, %v877_v5  ;;  %3479 = vst [vmem:[#allocation25_spill] sm:$0xff] %v2783_v27  ;;  %v2785_v24 = vor.u32 %v664_v11, %v663_v58  ;;  %v2789_v54 = vrot.slane %v525_v51, 1  ;;  %v825_v20 = vshll.u32 %v2433_v25, 16 }
  0x4e   : > { %736 = vrot.lane.b32.xlu0 %v2722_v4, %s2318_s10  ;;  %v618_v32 = vor.u32 %v3478_v13, %v2599_v10  ;;  %v888_v10 = vor.u32 %v886_v45, %v2778_v2  ;;  %v890_v13 = vshll.u32 %v2259_v61, 16  ;;  %v2800_v11 = vcombine.low %v2469_v40, %v2524_v18  ;;  %v2279_v18 = vld [vmem:[%s2428_s6 + $0x48] ss:$0 sps:$4 sm:$0x11]  }
  0x4f   : > { %539 = vrot.lane.b32.xlu1 %v2730_v16, %s2319_s22  ;;  %v719_v8 = vrot.slane %v717_v7, 3  ;;  %v2803_v51 = vcombine.low %v2583_v0, %v1891_v1  ;;  %v1083_v58 = vrot.slane %v886_v45, 3  ;;  %v3483_v25 = vshrl.u32 %v2637_v49, 16 }
  0x50   : > { %3481 = vst [vmem:[#allocation26_spill] sm:$0xff] %v2800_v11  ;;  %v2812_v61 = vsel %vm500_vm0, %v618_v32, %v2761_v53  ;;  %v892_v40 = vrot.slane %v890_v13, 1  ;;  %v2822_v0 = vsel %vm646_vm1, %v2667_v6, %v2785_v24  ;;  %v624_v32 = vshrl.u32 %v2706_v63, 16 }
  0x51   : > { %3482 = vst [vmem:[#allocation27_spill] sm:$0xff] %v2812_v61  ;;  %3484 = vst [vmem:[#allocation28_spill] sm:$0xff] %v2822_v0  ;;  %v3485_v13 = vshll.u32 %v2466_v38, 16 }
  0x52   : > { %567 = vrot.lane.b32.xlu0 %v2478_v46, %s2318_s10  ;;  %v2831_v45 = vsel %vm500_vm0, %v888_v10, %v892_v40  ;;  %v2845_v10 = vcombine.low %v2450_v33, %v2554_v43  ;;  %v835_v40 = vrot.slane %v720_v30, 1  ;;  %v839_v43 = vshll.u32 %v2279_v18, 16 }
  0x53   : > { %1178 = vrot.lane.b32.xlu1 %v2749_v21, %s2317_s7  ;;  %v3480_v21 = vshrl.u32 %v2603_v12, 16  ;;  %v2816_v12 = vor.u32 %v3483_v25, %v877_v5  ;;  %v827_v5 = vrot.slane %v825_v20, 1  ;;  %v829_v6 = vrot.slane %v3485_v13, 1 }
  0x54   : > { %v628_v20 = vshll.u32 %v2792_v35, 16  ;;  %v3487_v13 = vshrl.u32 %v2466_v38, 16  ;;  %v837_v33 = vor.u32 %v835_v40, %v717_v7 }
  0x55   : > { %v523_v56 = vor.u32 %v3480_v21, %v519_v22  ;;  %v722_v22 = vrot.slane %v720_v30, 4  ;;  %v2806_v21 = vld [vmem:[%s2428_s6 + $0x70] sm:$0xf]  ;;  %v828_v48 = vor.u32 %v827_v5, %v823_v59  ;;  %v2866_v59 = vcombine.low %v2662_v36, %v446_v14 }
  0x56   : > { %1170 = vrot.lane.b32.xlu0 %v2772_v50, %s2319_s22  ;;  %v1951_v25 = vcombine.low %v2806_v21, %v2806_v21  ;;  %v831_v47 = vor.u32 %v829_v6, %v3487_v13  ;;  %v1946_v30 = vld [vmem:[%s2428_s6 + $0x50] sm:$0x8]  ;;  %v3490_v36 = vshll.u32 %v2478_v46, 16  ;;  %v3491_v5 = vshrl.u32 %v2551_v42, 16 }
  0x57   : > { %1186 = vrot.lane.b32.xlu1 %v2783_v27, %s2319_s22  ;;  %v2826_v1 = vsel %vm500_vm0, %v523_v56, %v2789_v54  ;;  %v1084_v27 = vrot.slane %v882_v26, 4  ;;  %v2839_v56 = vor.u32 %v722_v22, %v719_v8  ;;  %v3486_v26 = vshll.u32 %v2620_v23, 16 }
  0x58   : > { %v2854_v8 = vcombine.low %v2564_v52, %v2655_v62  ;;  %v1931_v22 = vcombine.low %v446_v14, %v446_v14  ;;  %v1045_v49 = vshrl.u32 %v1951_v25, 16  ;;  %v1048_v62 = vshll.u32 %v1951_v25, 16 }
  0x59   : > { %v832_v39 = vrot.slane %v3486_v26, 1  ;;  %v3488_v26 = vshrl.u32 %v2620_v23, 16  ;;  %v2873_v52 = vsel %vm646_vm1, %v2688_v31, %v2839_v56  ;;  %v3489_v14 = vshrl.u32 %v2478_v46, 16 }
  0x5a   : > { %636 = vrot.lane.b32.xlu0 %v2812_v61, %s2317_s7  ;;  %v1033_v18 = vrot.slane %v3490_v36, 4  ;;  %v1036_v31 = vrot.slane %v3491_v5, 3  ;;  %v3492_v25 = vshll.u32 %v2551_v42, 16  ;;  %v1040_v13 = vrot.slane %v624_v32, 3 }
  0x5b   : > { %1194 = vrot.lane.b32.xlu1 %v2800_v11, %s2318_s10  ;;  %v834_v61 = vor.u32 %v832_v39, %v3488_v26  ;;  %v2860_v11 = vsel %vm500_vm0, %v828_v48, %v829_v6  ;;  %v2863_v35 = vsel %vm500_vm0, %v831_v47, %v832_v39  ;;  %v841_v48 = vrot.slane %v839_v43, 1  ;;  %v2888_v6 = vld [vmem:[%s2428_s6 + $0x48] sm:$0xf] }
  0x5c   : > { %v1950_v47 = vcombine.low %v1946_v30, %v2442_v29  ;;  %v1032_v39 = vrot.slane %v3489_v14, 3  ;;  %v3493_v29 = vshll.u32 %v2706_v63, 16  ;;  %v1047_v46 = vrot.slane %v1045_v49, 3 }
  0x5d   : > { %v2876_v7 = vsel %vm500_vm0, %v834_v61, %v835_v40  ;;  %v2891_v61 = vsel %vm500_vm0, %v837_v33, %v841_v48  ;;  %v1037_v40 = vrot.slane %v3492_v25, 4  ;;  %v668_v36 = vshrl.u32 %v1931_v22, 16 }
  0x5e   : > { %680 = vrot.lane.b32.xlu0 %v2822_v0, %s2319_s22  ;;  %v1041_v26 = vrot.slane %v3493_v29, 4  ;;  %v1025_v43 = vshrl.u32 %v1950_v47, 16  ;;  %v1028_v30 = vshll.u32 %v1950_v47, 16  ;;  %v1034_v14 = vor.u32 %v1033_v18, %v1032_v39 }
  0x5f   : > { %493 = vrot.lane.b32.xlu1 %v2620_v23, %s2317_s7  ;;  %v1038_v5 = vor.u32 %v1037_v40, %v1036_v31  ;;  %v1050_v38 = vrot.slane %v1048_v62, 4  ;;  %v671_v33 = vshll.u32 %v1931_v22, 16  ;;  %v1933_v48 = vcombine.low %v2888_v6, %v2888_v6 }
  0x60   : > { %v1042_v23 = vor.u32 %v1041_v26, %v1040_v13  ;;  %v1027_v25 = vrot.slane %v1025_v43, 3  ;;  %v1030_v29 = vrot.slane %v1028_v30, 4  ;;  %v1085_v0 = vor.u32 %v1084_v27, %v1083_v58 }
  0x61   : > { %v2904_v47 = vsel %vm646_vm1, %v1034_v14, %v1038_v5  ;;  %v1051_v39 = vor.u32 %v1050_v38, %v1047_v46  ;;  %v885_v62 = vsel %vm500_vm0, %v2816_v12, %v2778_v2  ;;  %v626_v18 = vor.u32 %v624_v32, %v2761_v53  ;;  %v2255_v2 = vld [vmem:[%s2428_s6 + $0x20] ss:$0 sps:$4 sm:$0x11]   ;;  %v2929_v53 = vld [vmem:[%s2428_s6 + $0x98] sm:$0xf] }
  0x62   : > { %738 = vrot.lane.b32.xlu0 %v2873_v52, %s2318_s10  ;;  %v2907_v49 = vsel %vm646_vm1, %v1038_v5, %v1042_v23  ;;  %v1031_v22 = vor.u32 %v1030_v29, %v1027_v25  ;;  %v630_v27 = vrot.slane %v628_v20, 1  ;;  %v670_v58 = vrot.slane %v668_v36, 3 }
  0x63   : > { %541 = vrot.lane.b32.xlu1 %v2826_v1, %s2319_s22  ;;  %v2916_v31 = vsel %vm646_vm1, %v1042_v23, %v1051_v39  ;;  %v673_v40 = vrot.slane %v671_v33, 4  ;;  %v726_v38 = vshrl.u32 %v1933_v48, 16  ;;  %v729_v46 = vshll.u32 %v1933_v48, 16 }
  0x64   : > { %v2921_v13 = vsel %vm646_vm1, %v1031_v22, %v1034_v14  ;;  %v2925_v12 = vsel %vm646_vm1, %v2757_v41, %v1085_v0  ;;  %v2934_v23 = vcombine.low %v2527_v19, %v2670_v9  ;;  %v2939_v32 = vsel %vm500_vm0, %v626_v18, %v630_v27 }
  0x65   : > { %v674_v20 = vor.u32 %v673_v40, %v670_v58  ;;  %v728_v26 = vrot.slane %v726_v38, 3  ;;  %v731_v43 = vrot.slane %v729_v46, 4  ;;  %v533_v41 = vshll.u32 %v2255_v2, 16  ;;  %v3497_v58 = vld [vmem:[#allocation23_spill] sm:$0xff] }
  0x66   : > { %569 = vrot.lane.b32.xlu0 %v2551_v42, %s2318_s10  ;;  %v1953_v30 = vcombine.low %v2929_v53, %v2929_v53  ;;  %v3494_v14 = vshrl.u32 %v2692_v55, 16  ;;  %v2973_v22 = vcombine.low %v2727_v44, %v2888_v6  ;;  %v2989_v44 = vcombine.low %v2676_v57, %v2806_v21 }
  0x67   : > { %1180 = vrot.lane.b32.xlu1 %v2803_v51, %s2317_s7  ;;  %v2949_v19 = vsel %vm646_vm1, %v2785_v24, %v674_v20  ;;  %v732_v9 = vor.u32 %v731_v43, %v728_v26  ;;  %v535_v5 = vrot.slane %v533_v41, 1  ;;  %v3498_v41 = vld [vmem:[#allocation16_spill] sm:$0xff] }
  0x68   : > { %v531_v36 = vor.u32 %v3494_v14, %v2789_v54  ;;  %v1088_v33 = vshrl.u32 %v1953_v30, 16  ;;  %v1091_v48 = vshll.u32 %v1953_v30, 16  ;;  %v2968_v54 = vld [vmem:[%s3409_s1 + $0x80] sm:$0xff]  }
  0x69   : > { %v2960_v25 = vsel %vm646_vm1, %v2839_v56, %v732_v9  ;;  %2146 = vmatprep.subr.bf16.mxu1 %v2968_v54 }
  0x6a   : > { %1172 = vrot.lane.b32.xlu0 %v885_v62, %s2319_s22  ;;  %v536_v24 = vsel %vm500_vm0, %v531_v36, %v535_v5  ;;  %v1090_v29 = vrot.slane %v1088_v33, 3  ;;  %v1093_v39 = vrot.slane %v1091_v48, 4  ;;  %v3500_v5 = vld [vmem:[#allocation11_spill] sm:$0xff] }
  0x6b   : > { %1188 = vrot.lane.b32.xlu1 %v2925_v12, %s2319_s22 }
  0x6c   : > { %v1094_v56 = vor.u32 %v1093_v39, %v1090_v29  ;;  %v3501_v39 = vld [vmem:[#allocation6_spill] sm:$0xff] }
  0x6e   : > { %638 = vrot.lane.b32.xlu0 %v2939_v32, %s2317_s7  ;;  %v2981_v18 = vsel %vm646_vm1, %v1085_v0, %v1094_v56  ;;  %v3496_v0 = vld [vmem:[#allocation9_spill] sm:$0xff] }
  0x6f   : > { %1196 = vrot.lane.b32.xlu1 %v2934_v23, %s2318_s10 }
  0x72   : > { %682 = vrot.lane.b32.xlu0 %v2949_v19, %s2319_s22 }
  0x73   : > { %495 = vrot.lane.b32.xlu1 %v2743_v15, %s2317_s7 }
  0x76   : > { %740 = vrot.lane.b32.xlu0 %v2960_v25, %s2318_s10 }
  0x77   : > { %543 = vrot.lane.b32.xlu1 %v536_v24, %s2319_s22 }
  0x7a   : > { %571 = vrot.lane.b32.xlu0 %v2706_v63, %s2318_s10 }
  0x7b   : > { %1182 = vrot.lane.b32.xlu1 %v2973_v22, %s2317_s7 }
  0x7e   : > { %1174 = vrot.lane.b32.xlu0 %v2831_v45, %s2319_s22 }
  0x7f   : > { %1190 = vrot.lane.b32.xlu1 %v2981_v18, %s2319_s22 }
  0x82   : > { %894 = vrot.lane.b32.xlu0 %v2616_v3, %s2317_s7  ;;  %v3495_v3 = vld [vmem:[#allocation17_spill] sm:$0xff] }
  0x83   : > { %1198 = vrot.lane.b32.xlu1 %v2989_v44, %s2318_s10 }
  0x86   : > { %902 = vrot.lane.b32.xlu0 %v2578_v60, %s2319_s22 }
  0x87   : > { %811 = vrot.lane.b32.xlu1 %v2546_v34, %s2317_s7 }
  0x8a   : > { %910 = vrot.lane.b32.xlu0 %v2463_v37, %s2318_s10 }
  0x8b   : > { %843 = vrot.lane.b32.xlu1 %v2860_v11, %s2319_s22 }
  0x8e   : > { %896 = vrot.lane.b32.xlu0 %v2772_v50, %s2317_s7 }
  0x8f   : > { %851 = vrot.lane.b32.xlu1 %v2521_v17, %s2318_s10 }
  0x92   : > { %904 = vrot.lane.b32.xlu0 %v2722_v4, %s2319_s22 }
  0x93   : > { %813 = vrot.lane.b32.xlu1 %v2730_v16, %s2317_s7 }
  0x96   : > { %912 = vrot.lane.b32.xlu0 %v2845_v10, %s2318_s10 }
  0x97   : > { %845 = vrot.lane.b32.xlu1 %v2863_v35, %s2319_s22 }
  0x9a   : > { %898 = vrot.lane.b32.xlu0 %v885_v62, %s2317_s7 }
  0x9b   : > { %853 = vrot.lane.b32.xlu1 %v2541_v28, %s2318_s10 }
  0x9e   : > { %906 = vrot.lane.b32.xlu0 %v2873_v52, %s2319_s22 }
  0x9f   : > { %815 = vrot.lane.b32.xlu1 %v2826_v1, %s2317_s7 }
  0xa1   : > { %v490_v57 = vpop.permute.xlu0 %489  ;;  %v1177_v16 = vpop.permute.xlu1 %1176 }
  0xa2   : > { %914 = vrot.lane.b32.xlu0 %v2854_v8, %s2318_s10  ;;  %v748_v1 = vsel %vm746_vm2, %v3496_v0, %v490_v57  ;;  %v1222_v38 = vsel %vm746_vm2, %v2463_v37, %v1177_v16 }
  0xa3   : > { %847 = vrot.lane.b32.xlu1 %v2876_v7, %s2319_s22 }
  0xa5   : > { %v566_v34 = vpop.permute.xlu0 %565 }
  0xa6   : > { %900 = vrot.lane.b32.xlu0 %v2831_v45, %s2317_s7 }
  0xa7   : > { %855 = vrot.lane.b32.xlu1 %v3495_v3, %s2318_s10 }
  0xaa   : > { %908 = vrot.lane.b32.xlu0 %v2960_v25, %s2319_s22 }
  0xab   : > { %v633_v50 = vpop.permute.xlu0 %632  ;;  %817 = vrot.lane.b32.xlu1 %v536_v24, %s2317_s7  ;;  %v677_v11 = vpop.permute.xlu1 %676 }
  0xac   : > { %v779_v21 = vsel %vm746_vm2, %v2521_v17, %v633_v50  ;;  %v3502_v50 = vld [vmem:[#allocation25_spill] sm:$0xff] }
  0xad   : > { %v790_v6 = vsel %vm755_vm3, %v779_v21, %v677_v11  ;;  %v3503_v11 = vld [vmem:[#allocation19_spill] sm:$0xff] }
  0xae   : > { %916 = vrot.lane.b32.xlu0 %v2866_v59, %s2318_s10 }
  0xaf   : > { %849 = vrot.lane.b32.xlu1 %v2891_v61, %s2319_s22  ;;  %v538_v45 = vpop.permute.xlu1 %537 }
  0xb0   : > { %v757_v35 = vsel %vm755_vm3, %v748_v1, %v538_v45  ;;  %v735_v7 = vpop.permute.xlu0 %734 }
  0xb1   : > { %v798_v62 = vsel %vm764_vm4, %v790_v6, %v735_v7  ;;  %v766_v27 = vsel %vm764_vm4, %v757_v35, %v566_v34 }
  0xb2   : > { %1010 = vrot.lane.b32.xlu0 %v2463_v37, %s2317_s7  ;;  %1436 = vmatprep.mubr.bf16.mxu0 %v798_v62 }
  0xb3   : > { %857 = vrot.lane.b32.xlu1 %v3497_v58, %s2318_s10  ;;  %1437 = vmatmul.mubr.bf16.vlgmr.msra.gmra.mrb[0].mxu0 %v766_v27 }
  0xb4   : > { %v1169_v40 = vpop.permute.xlu0 %1168 }
  0xb5   : > { %v1185_v61 = vpop.permute.xlu1 %1184  ;;  %v1205_v46 = vsel %vm755_vm3, %v779_v21, %v1169_v40 }
  0xb6   : > { %1053 = vrot.lane.b32.xlu0 %v2921_v13, %s2319_s22  ;;  %v1233_v20 = vsel %vm755_vm3, %v1222_v38, %v1185_v61  ;;  %v2285_v13 = vld [vmem:[%s3409_s1 + $0x88] sm:$0xff]   ;;  %v1212_v30 = vsel %vm764_vm4, %v1205_v46, %v735_v7  ;;  %v3505_v38 = vld [vmem:[#allocation27_spill] sm:$0xff] }
  0xb7   : > { %986 = vrot.lane.b32.xlu1 %v2521_v17, %s2317_s7  ;;  %v3499_v17 = vld [vmem:[#allocation10_spill] sm:$0xff] }
  0xb8   : > { %v635_v2 = vpop.permute.xlu0 %634 }
  0xb9   : > { %v1193_v26 = vpop.permute.xlu1 %1192  ;;  %v782_v14 = vsel %vm746_vm2, %v2541_v28, %v635_v2 }
  0xba   : > { %v1241_v43 = vsel %vm764_vm4, %v1233_v20, %v1193_v26  ;;  %1096 = vrot.lane.b32.xlu0 %v3498_v41, %s2318_s10  ;;  %v3506_v26 = vld [vmem:[#allocation12_spill] sm:$0xff] }
  0xbb   : > { %994 = vrot.lane.b32.xlu1 %v3499_v17, %s2319_s22  ;;  %1532 = vmatprep.mubr.bf16.mxu1 %v1241_v43  ;;  %v3507_v43 = vld [vmem:[#allocation28_spill] sm:$0xff] }
  0xbc   : > { %1533 = vmatmul.mubr.bf16.vlgmr.msra.gmra.mrb[0].mxu1 %v1212_v30  ;;  %v679_v9 = vpop.permute.xlu0 %678 }
  0xbd   : > { %v492_v36 = vpop.permute.xlu1 %491  ;;  %2147 = vmatpush3.bf16.msra.mxu1 %v2968_v54  ;;  %v792_v33 = vsel %vm755_vm3, %v782_v14, %v679_v9 }
  0xbe   : > { %1012 = vrot.lane.b32.xlu0 %v2845_v10, %s2317_s7  ;;  %2148 = vmatprep.subr.bf16.mxu1 %v2285_v13  ;;  %v750_v54 = vsel %vm746_vm2, %v3501_v39, %v492_v36 }
  0xbf   : > { %1002 = vrot.lane.b32.xlu1 %v3500_v5, %s2318_s10 }
  0xc0   : > { %v737_v48 = vpop.permute.xlu0 %736 }
  0xc1   : > { %v540_v24 = vpop.permute.xlu1 %539  ;;  %v801_v29 = vsel %vm764_vm4, %v792_v33, %v737_v48  ;;  %2149 = vmatpush3.bf16.msra.mxu1 %v2285_v13 }
  0xc2   : > { %1055 = vrot.lane.b32.xlu0 %v2904_v47, %s2319_s22  ;;  %1444 = vmatprep.mubr.bf16.mxu0 %v801_v29  ;;  %v759_v56 = vsel %vm755_vm3, %v750_v54, %v540_v24 }
  0xc3   : > { %988 = vrot.lane.b32.xlu1 %v2541_v28, %s2317_s7  ;;  %v3504_v28 = vld [vmem:[#allocation20_spill] sm:$0xff] }
  0xc4   : > { %v568_v57 = vpop.permute.xlu0 %567 }
  0xc5   : > { %v1179_v16 = vpop.permute.xlu1 %1178  ;;  %v769_v34 = vsel %vm764_vm4, %v759_v56, %v568_v57 }
  0xc6   : > { %1098 = vrot.lane.b32.xlu0 %v3502_v50, %s2318_s10  ;;  %1445 = vmatmul.mubr.bf16.gmra.mrb[4].mxu0 %v769_v34  ;;  %v1225_v0 = vsel %vm746_vm2, %v2845_v10, %v1179_v16 }
  0xc7   : > { %996 = vrot.lane.b32.xlu1 %v3503_v11, %s2319_s22 }
  0xc8   : > { %v1171_v47 = vpop.permute.xlu0 %1170 }
  0xc9   : > { %v1187_v21 = vpop.permute.xlu1 %1186  ;;  %v1207_v1 = vsel %vm755_vm3, %v782_v14, %v1171_v47 }
  0xca   : > { %1014 = vrot.lane.b32.xlu0 %v2854_v8, %s2317_s7  ;;  %v1235_v35 = vsel %vm755_vm3, %v1225_v0, %v1187_v21  ;;  %v1214_v62 = vsel %vm764_vm4, %v1207_v1, %v737_v48 }
  0xcb   : > { %1004 = vrot.lane.b32.xlu1 %v3504_v28, %s2318_s10 }
  0xcc   : > { %v637_v45 = vpop.permute.xlu0 %636 }
  0xcd   : > { %v1195_v7 = vpop.permute.xlu1 %1194  ;;  %v785_v40 = vsel %vm746_vm2, %v3495_v3, %v637_v45 }
  0xce   : > { %v1244_v6 = vsel %vm764_vm4, %v1235_v35, %v1195_v7  ;;  %1057 = vrot.lane.b32.xlu0 %v2907_v49, %s2319_s22 }
  0xcf   : > { %990 = vrot.lane.b32.xlu1 %v3495_v3, %s2317_s7  ;;  %1540 = vmatprep.mubr.bf16.mxu1 %v1244_v6 }
  0xd0   : > { %1541 = vmatmul.mubr.bf16.gmra.mrb[4].mxu1 %v1214_v62  ;;  %v681_v27 = vpop.permute.xlu0 %680 }
  0xd1   : > { %v494_v61 = vpop.permute.xlu1 %493  ;;  %v794_v49 = vsel %vm755_vm3, %v785_v40, %v681_v27 }
  0xd2   : > { %1100 = vrot.lane.b32.xlu0 %v2925_v12, %s2318_s10  ;;  %v752_v3 = vsel %vm746_vm2, %v3506_v26, %v494_v61  ;;  %v3508_v26 = vld [vmem:[#allocation3_spill] sm:$0xff] }
  0xd3   : > { %998 = vrot.lane.b32.xlu1 %v3505_v38, %s2319_s22 }
  0xd4   : > { %v739_v46 = vpop.permute.xlu0 %738 }
  0xd5   : > { %v542_v2 = vpop.permute.xlu1 %541  ;;  %v804_v20 = vsel %vm764_vm4, %v794_v49, %v739_v46 }
  0xd6   : > { %1016 = vrot.lane.b32.xlu0 %v2866_v59, %s2317_s7  ;;  %1452 = vmatprep.mubr.bf16.mxu0 %v804_v20  ;;  %v761_v12 = vsel %vm755_vm3, %v752_v3, %v542_v2 }
  0xd7   : > { %1006 = vrot.lane.b32.xlu1 %v3507_v43, %s2318_s10 }
  0xd8   : > { %v570_v41 = vpop.permute.xlu0 %569 }
  0xd9   : > { %v1181_v13 = vpop.permute.xlu1 %1180  ;;  %v772_v30 = vsel %vm764_vm4, %v761_v12, %v570_v41 }
  0xda   : > { %1059 = vrot.lane.b32.xlu0 %v2916_v31, %s2319_s22  ;;  %1453 = vmatmul.mubr.bf16.gmra.mrb[8].mxu0 %v772_v30  ;;  %v1228_v36 = vsel %vm746_vm2, %v2854_v8, %v1181_v13 }
  0xdb   : > { %992 = vrot.lane.b32.xlu1 %v3497_v58, %s2317_s7 }
  0xdc   : > { %v1173_v9 = vpop.permute.xlu0 %1172 }
  0xdd   : > { %v1189_v14 = vpop.permute.xlu1 %1188  ;;  %v1209_v5 = vsel %vm755_vm3, %v785_v40, %v1173_v9 }
  0xde   : > { %1102 = vrot.lane.b32.xlu0 %v2981_v18, %s2318_s10  ;;  %v1237_v31 = vsel %vm755_vm3, %v1228_v36, %v1189_v14  ;;  %v1216_v18 = vsel %vm764_vm4, %v1209_v5, %v739_v46  ;;  %v3509_v5 = vld [vmem:[#allocation4_spill] sm:$0xff] }
  0xdf   : > { %1000 = vrot.lane.b32.xlu1 %v2939_v32, %s2319_s22 }
  0xe0   : > { %v639_v33 = vpop.permute.xlu0 %638 }
  0xe1   : > { %v1197_v48 = vpop.permute.xlu1 %1196  ;;  %v788_v39 = vsel %vm746_vm2, %v3497_v58, %v639_v33 }
  0xe2   : > { %v1247_v24 = vsel %vm764_vm4, %v1237_v31, %v1197_v48 }
  0xe3   : > { %1008 = vrot.lane.b32.xlu1 %v2949_v19, %s2318_s10  ;;  %1548 = vmatprep.mubr.bf16.mxu1 %v1247_v24 }
  0xe4   : > { %1549 = vmatmul.mubr.bf16.gmra.mrb[8].mxu1 %v1216_v18  ;;  %v683_v29 = vpop.permute.xlu0 %682  ;;  %v3511_v18 = vld [vmem:[#allocation24_spill] sm:$0xff] }
  0xe5   : > { %v496_v54 = vpop.permute.xlu1 %495  ;;  %v796_v56 = vsel %vm755_vm3, %v788_v39, %v683_v29 }
  0xe6   : > { %v754_v50 = vsel %vm746_vm2, %v2692_v55, %v496_v54 }
  0xe8   : > { %v741_v57 = vpop.permute.xlu0 %740 }
  0xe9   : > { %v544_v16 = vpop.permute.xlu1 %543  ;;  %v807_v34 = vsel %vm764_vm4, %v796_v56, %v741_v57 }
  0xea   : > { %1460 = vmatprep.mubr.bf16.mxu0 %v807_v34  ;;  %v763_v19 = vsel %vm755_vm3, %v754_v50, %v544_v16  ;;  %v3512_v34 = vld [vmem:[#allocation15_spill] sm:$0xff] }
  0xec   : > { %v572_v47 = vpop.permute.xlu0 %571 }
  0xed   : > { %v1183_v21 = vpop.permute.xlu1 %1182  ;;  %v775_v28 = vsel %vm764_vm4, %v763_v19, %v572_v47 }
  0xee   : > { %1461 = vmatmul.mubr.bf16.gmra.mrb[12].mxu0 %v775_v28  ;;  %v1231_v1 = vsel %vm746_vm2, %v2866_v59, %v1183_v21  ;;  %v3513_v21 = vld [vmem:[#allocation18_spill] sm:$0xff] }
  0xf0   : > { %v1175_v0 = vpop.permute.xlu0 %1174 }
  0xf1   : > { %v1191_v58 = vpop.permute.xlu1 %1190  ;;  %v1211_v45 = vsel %vm755_vm3, %v788_v39, %v1175_v0 }
  0xf2   : > { %v1239_v7 = vsel %vm755_vm3, %v1231_v1, %v1191_v58  ;;  %v1218_v62 = vsel %vm764_vm4, %v1211_v45, %v741_v57 }
  0xf4   : > { %v895_v35 = vpop.permute.xlu0 %894 }
  0xf5   : > { %v1199_v6 = vpop.permute.xlu1 %1198  ;;  %v952_v40 = vsel %vm746_vm2, %v3499_v17, %v895_v35 }
  0xf6   : > { %v1250_v55 = vsel %vm764_vm4, %v1239_v7, %v1199_v6 }
  0xf7   : > { %1556 = vmatprep.mubr.bf16.mxu1 %v1250_v55 }
  0xf8   : > { %1557 = vmatmul.mubr.bf16.gmra.mrb[12].mxu1 %v1218_v62  ;;  %v903_v27 = vpop.permute.xlu0 %902 }
  0xf9   : > { %v812_v61 = vpop.permute.xlu1 %811  ;;  %2150 = vmatprep.mubr.msk.bf16.mxu1 %vm746_vm2, %v2463_v37  ;;  %v963_v49 = vsel %vm755_vm3, %v952_v40, %v903_v27  ;;  %v2290_v27 = vld [vmem:[%s2428_s6 + $0x7c] sm:$0xf]  ;;  %v2291_v40 = vld [vmem:[%s2428_s6 + $0x80] sm:$0xf] }
  0xfa   : > { %v923_v3 = vsel %vm746_vm2, %v3508_v26, %v812_v61  ;;  %v1958_v61 = vcombine.low %v2290_v27, %v2291_v40  ;;  %v2292_v26 = vld [vmem:[%s2428_s6 + $0x84] sm:$0xf]  ;;  %s365_s6 = smul.u32 10, %s1878_s15 }
  0xfc   : > { %v911_v46 = vpop.permute.xlu0 %910  ;;  %p366_p8 = scmp.lt.s32.totalorder %s365_s6, 19 }
  0xfd   : > { %v844_v2 = vpop.permute.xlu1 %843  ;;  %v971_v20 = vsel %vm764_vm4, %v963_v49, %v911_v46 }
  0xfe   : > { %1468 = vmatprep.mubr.bf16.mxu0 %v971_v20  ;;  %v931_v17 = vsel %vm755_vm3, %v923_v3, %v844_v2  ;;  %v3515_v3 = vld [vmem:[#allocation13_spill] sm:$0xff]  ;;  %s3525_s6 = smov (!%p366_p8, %s365_s6), 19 }
  0xff   : > { %s1884_s7 = sshll.u32 %s3525_s6, 2 }
 0x100   : > { %2151 = vmatmul.mubr.msk.bf16.vlgmr.msra.gmra.mrb[16].mxu1 %vm746_vm2, %v2845_v10  ;;  %v897_v43 = vpop.permute.xlu0 %896  ;;  %s3256_s14 = scalar_lea.vmem %s3411_s3, %s1884_s7 }
 0x101   : > { %v852_v12 = vpop.permute.xlu1 %851  ;;  %2154 = vmatprep.mubr.msk.bf16.mxu1 %vm746_vm2, %v2854_v8  ;;  %v955_v13 = vsel %vm746_vm2, %v3503_v11, %v897_v43  ;;  %v3510_v8 = vld [vmem:[#allocation7_spill] sm:$0xff]  ;;  %v1959_v43 = vcombine.low %v2292_v26, %v3515_v3  ;;  %v2320_v26 = vmov 0  }
 0x102   : > { %v939_v37 = vsel %vm764_vm4, %v931_v17, %v852_v12  ;;  %1814 = vst.msk [vmem:[%s3256_s14 + $0x20] sm:$0xf] %vm1805_vm5, %v2320_v26  ;;  %1815 = vst.msk [vmem:[%s3256_s14 + $0x24] sm:$0xf] %vm1805_vm5, %v2320_v26 }
 0x103   : > { %1469 = vmatmul.mubr.bf16.gmra.mrb[16].mxu0 %v939_v37  ;;  %v3516_v37 = vld [vmem:[#allocation21_spill] sm:$0xff] }
 0x104   : > { %v905_v41 = vpop.permute.xlu0 %904 }
 0x105   : > { %v814_v30 = vpop.permute.xlu1 %813  ;;  %v965_v9 = vsel %vm755_vm3, %v955_v13, %v905_v41  ;;  %v3517_v41 = vld [vmem:[#allocation14_spill] sm:$0xff] }
 0x106   : > { %v925_v33 = vsel %vm746_vm2, %v3510_v8, %v814_v30  ;;  %v1960_v13 = vcombine.low %v3517_v41, %v3516_v37 }
 0x108   : > { %2155 = vmatmul.mubr.msk.bf16.gmra.mrb[20].mxu1 %vm746_vm2, %v2866_v59  ;;  %v913_v10 = vpop.permute.xlu0 %912 }
 0x109   : > { %v846_v14 = vpop.permute.xlu1 %845  ;;  %v974_v36 = vsel %vm764_vm4, %v965_v9, %v913_v10  ;;  %2158 = vmatprep.mubr.msk.bf16.mxu1 %vm746_vm2, %v3509_v5  ;;  %v3519_v5 = vld [vmem:[#allocation22_spill] sm:$0xff] }
 0x10a   : > { %1476 = vmatprep.mubr.bf16.mxu0 %v974_v36  ;;  %v933_v11 = vsel %vm755_vm3, %v925_v33, %v846_v14  ;;  %v1961_v8 = vcombine.low %v3519_v5, %v2929_v53 }
 0x10c   : > { %v899_v31 = vpop.permute.xlu0 %898 }
 0x10d   : > { %v854_v48 = vpop.permute.xlu1 %853  ;;  %v958_v29 = vsel %vm746_vm2, %v3505_v38, %v899_v31 }
 0x10e   : > { %v942_v24 = vsel %vm764_vm4, %v933_v11, %v854_v48 }
 0x10f   : > { %1477 = vmatmul.mubr.bf16.gmra.mrb[20].mxu0 %v942_v24 }
 0x110   : > { %2159 = vmatmul.mubr.msk.bf16.gmra.mrb[24].mxu1 %vm746_vm2, %v3511_v18  ;;  %v907_v59 = vpop.permute.xlu0 %906 }
 0x111   : > { %v816_v39 = vpop.permute.xlu1 %815  ;;  %2162 = vmatprep.mubr.msk.bf16.mxu1 %vm746_vm2, %v2803_v51  ;;  %v967_v54 = vsel %vm755_vm3, %v958_v29, %v907_v59  ;;  %v3520_v59 = vld [vmem:[#allocation8_spill] sm:$0xff] }
 0x112   : > { %v927_v50 = vsel %vm746_vm2, %v3512_v34, %v816_v39 }
 0x114   : > { %v915_v56 = vpop.permute.xlu0 %914 }
 0x115   : > { %v848_v57 = vpop.permute.xlu1 %847  ;;  %v977_v16 = vsel %vm764_vm4, %v967_v54, %v915_v56 }
 0x116   : > { %1484 = vmatprep.mubr.bf16.mxu0 %v977_v16  ;;  %v935_v38 = vsel %vm755_vm3, %v927_v50, %v848_v57 }
 0x118   : > { %2163 = vmatmul.mubr.msk.bf16.gmra.mrb[28].mxu1 %vm746_vm2, %v2973_v22  ;;  %v901_v19 = vpop.permute.xlu0 %900  ;;  %v3514_v22 = vld [vmem:[#allocation26_spill] sm:$0xff] }
 0x119   : > { %v856_v47 = vpop.permute.xlu1 %855  ;;  %2166 = vmatprep.mubr.msk.bf16.mxu1 %vm746_vm2, %v3513_v21  ;;  %v961_v0 = vsel %vm746_vm2, %v2939_v32, %v901_v19 }
 0x11a   : > { %v945_v51 = vsel %vm764_vm4, %v935_v38, %v856_v47 }
 0x11b   : > { %1485 = vmatmul.mubr.bf16.gmra.mrb[24].mxu0 %v945_v51 }
 0x11c   : > { %v909_v28 = vpop.permute.xlu0 %908 }
 0x11d   : > { %v818_v58 = vpop.permute.xlu1 %817  ;;  %v969_v1 = vsel %vm755_vm3, %v961_v0, %v909_v28 }
 0x11e   : > { %v929_v6 = vsel %vm746_vm2, %v2743_v15, %v818_v58 }
 0x120   : > { %2167 = vmatmul.mubr.msk.bf16.gmra.mrb[32].mxu1 %vm746_vm2, %v3514_v22  ;;  %v917_v45 = vpop.permute.xlu0 %916 }
 0x121   : > { %v850_v35 = vpop.permute.xlu1 %849  ;;  %v980_v7 = vsel %vm764_vm4, %v969_v1, %v917_v45  ;;  %2170 = vmatprep.mubr.msk.bf16.mxu1 %vm746_vm2, %v2934_v23 }
 0x122   : > { %1492 = vmatprep.mubr.bf16.mxu0 %v980_v7  ;;  %v937_v32 = vsel %vm755_vm3, %v929_v6, %v850_v35 }
 0x124   : > { %v1011_v55 = vpop.permute.xlu0 %1010 }
 0x125   : > { %v858_v62 = vpop.permute.xlu1 %857  ;;  %v1138_v23 = vsel %vm746_vm2, %v2578_v60, %v1011_v55 }
 0x126   : > { %v948_v49 = vsel %vm764_vm4, %v937_v32, %v858_v62 }
 0x127   : > { %1493 = vmatmul.mubr.bf16.gmra.mrb[28].mxu0 %v948_v49 }
 0x128   : > { %2171 = vmatmul.mubr.msk.bf16.gmra.mrb[36].mxu1 %vm746_vm2, %v2989_v44  ;;  %v1054_v46 = vpop.permute.xlu0 %1053  ;;  %v3518_v44 = vld [vmem:[#allocation5_spill] sm:$0xff] }
 0x129   : > { %v987_v2 = vpop.permute.xlu1 %986  ;;  %2174 = vmatprep.mubr.msk.bf16.mxu1 %vm746_vm2, %v1958_v61  ;;  %v1149_v15 = vsel %vm755_vm3, %v1138_v23, %v1054_v46 }
 0x12a   : > { %v1109_v30 = vsel %vm746_vm2, %v3518_v44, %v987_v2 }
 0x12c   : > { %v1097_v20 = vpop.permute.xlu0 %1096 }
 0x12d   : > { %v995_v17 = vpop.permute.xlu1 %994  ;;  %v1157_v12 = vsel %vm764_vm4, %v1149_v15, %v1097_v20 }
 0x12e   : > { %1500 = vmatprep.mubr.bf16.mxu0 %v1157_v12  ;;  %v1117_v9 = vsel %vm755_vm3, %v1109_v30, %v995_v17 }
 0x130   : > { %2175 = vmatmul.mubr.msk.bf16.gmra.mrb[40].mxu1 %vm746_vm2, %v1959_v43  ;;  %v1013_v60 = vpop.permute.xlu0 %1012 }
 0x131   : > { %v1003_v10 = vpop.permute.xlu1 %1002  ;;  %2178 = vmatprep.mubr.msk.bf16.mxu1 %vm746_vm2, %v1960_v13  ;;  %v1141_v33 = vsel %vm746_vm2, %v2722_v4, %v1013_v60 }
 0x132   : > { %v1125_v14 = vsel %vm764_vm4, %v1117_v9, %v1003_v10 }
 0x133   : > { %1501 = vmatmul.mubr.bf16.gmra.mrb[32].mxu0 %v1125_v14 }
 0x134   : > { %v1056_v36 = vpop.permute.xlu0 %1055 }
 0x135   : > { %v989_v31 = vpop.permute.xlu1 %988  ;;  %v1151_v11 = vsel %vm755_vm3, %v1141_v33, %v1056_v36 }
 0x136   : > { %v1111_v29 = vsel %vm746_vm2, %v3520_v59, %v989_v31 }
 0x138   : > { %2179 = vmatmul.mubr.msk.bf16.gmra.mrb[44].mxu1 %vm746_vm2, %v1961_v8  ;;  %v1099_v48 = vpop.permute.xlu0 %1098 }
 0x139   : > { %v997_v24 = vpop.permute.xlu1 %996  ;;  %v1160_v18 = vsel %vm764_vm4, %v1151_v11, %v1099_v48 }
 0x13a   : > { %1508 = vmatprep.mubr.bf16.mxu0 %v1160_v18  ;;  %v1119_v54 = vsel %vm755_vm3, %v1111_v29, %v997_v24 }
 0x13c   : > { %v1015_v39 = vpop.permute.xlu0 %1014 }
 0x13d   : > { %v1005_v53 = vpop.permute.xlu1 %1004  ;;  %v1144_v57 = vsel %vm746_vm2, %v2873_v52, %v1015_v39 }
 0x13e   : > { %v1128_v56 = vsel %vm764_vm4, %v1119_v54, %v1005_v53 }
 0x13f   : > { %1509 = vmatmul.mubr.bf16.gmra.mrb[36].mxu0 %v1128_v56 }
 0x140   : > { %v1058_v4 = vpop.permute.xlu0 %1057 }
 0x141   : > { %v991_v16 = vpop.permute.xlu1 %990  ;;  %v1153_v34 = vsel %vm755_vm3, %v1144_v57, %v1058_v4 }
 0x142   : > { %v1113_v47 = vsel %vm746_vm2, %v2551_v42, %v991_v16 }
 0x144   : > { %v1101_v50 = vpop.permute.xlu0 %1100 }
 0x145   : > { %v999_v19 = vpop.permute.xlu1 %998  ;;  %v1163_v38 = vsel %vm764_vm4, %v1153_v34, %v1101_v50 }
 0x146   : > { %1516 = vmatprep.mubr.bf16.mxu0 %v1163_v38  ;;  %v1121_v51 = vsel %vm755_vm3, %v1113_v47, %v999_v19 }
 0x148   : > { %v1017_v21 = vpop.permute.xlu0 %1016 }
 0x149   : > { %v1007_v28 = vpop.permute.xlu1 %1006  ;;  %v1147_v58 = vsel %vm746_vm2, %v2960_v25, %v1017_v21 }
 0x14a   : > { %v1131_v0 = vsel %vm764_vm4, %v1121_v51, %v1007_v28 }
 0x14b   : > { %1517 = vmatmul.mubr.bf16.gmra.mrb[40].mxu0 %v1131_v0 }
 0x14c   : > { %v1060_v52 = vpop.permute.xlu0 %1059 }
 0x14d   : > { %v993_v1 = vpop.permute.xlu1 %992  ;;  %v1155_v22 = vsel %vm755_vm3, %v1147_v58, %v1060_v52 }
 0x14e   : > { %v1115_v42 = vsel %vm746_vm2, %v2706_v63, %v993_v1 }
 0x150   : > { %v1103_v45 = vpop.permute.xlu0 %1102 }
 0x151   : > { %v1001_v35 = vpop.permute.xlu1 %1000  ;;  %v1166_v7 = vsel %vm764_vm4, %v1155_v22, %v1103_v45 }
 0x152   : > { %1524 = vmatprep.mubr.bf16.mxu0 %v1166_v7  ;;  %v1123_v6 = vsel %vm755_vm3, %v1115_v42, %v1001_v35 }
 0x155   : > { %v1009_v55 = vpop.permute.xlu1 %1008 }
 0x156   : > { %v1134_v32 = vsel %vm764_vm4, %v1123_v6, %v1009_v55 }
 0x157   : > { %1525 = vmatmul.mubr.bf16.gmra.mrb[44].mxu0 %v1134_v32 }
 0x186   : > { %v2032_v62 = vpop.f32.mrb[0].mxu0 }
 0x187   : > { %v2033_v27 = vpop.f32.mrb[1].mxu0 }
 0x188   : > { %v2034_v25 = vadd.f32 %v2033_v27, %v2032_v62  ;;  %v2035_v40 = vpop.f32.mrb[2].mxu0 }
 0x189   : > { %v2036_v61 = vpop.f32.mrb[3].mxu0 }
 0x18a   : > { %v2037_v49 = vadd.f32 %v2036_v61, %v2035_v40 }
 0x18f   : > { %v2104_v46 = vpop.f32.mrb[0].mxu1 }
 0x190   : > { %v2105_v23 = vpop.f32.mrb[1].mxu1 }
 0x191   : > { %v3249_v2 = vadd.f32 %v2105_v23, %v2104_v46  ;;  %v2107_v63 = vpop.f32.mrb[2].mxu1 }
 0x192   : > { %v2108_v15 = vpop.f32.mrb[3].mxu1 }
 0x193   : > { %v3251_v20 = vadd.f32 %v2108_v15, %v2107_v63 }
 0x199   : > { %v2038_v3 = vpop.f32.mrb[4].mxu0 }
 0x19a   : > { %v2039_v43 = vpop.f32.mrb[5].mxu0 }
 0x19b   : > { %v2040_v17 = vadd.f32 %v2039_v43, %v2038_v3  ;;  %v2041_v12 = vpop.f32.mrb[6].mxu0 }
 0x19c   : > { %v2042_v37 = vpop.f32.mrb[7].mxu0 }
 0x19d   : > { %v2043_v41 = vadd.f32 %v2042_v37, %v2041_v12 }
 0x1a3   : > { %v2110_v13 = vpop.f32.mrb[4].mxu1 }
 0x1a4   : > { %v2111_v44 = vpop.f32.mrb[5].mxu1 }
 0x1a5   : > { %v3262_v30 = vadd.f32 %v2111_v44, %v2110_v13  ;;  %v2113_v60 = vpop.f32.mrb[6].mxu1 }
 0x1a6   : > { %v2114_v9 = vpop.f32.mrb[7].mxu1 }
 0x1a7   : > { %v3264_v10 = vadd.f32 %v2114_v9, %v2113_v60 }
 0x1ad   : > { %v2044_v14 = vpop.f32.mrb[8].mxu0 }
 0x1ae   : > { %v2045_v36 = vpop.f32.mrb[9].mxu0 }
 0x1af   : > { %v2046_v5 = vadd.f32 %v2045_v36, %v2044_v14  ;;  %v2047_v8 = vpop.f32.mrb[10].mxu0 }
 0x1b0   : > { %v2048_v33 = vpop.f32.mrb[11].mxu0 }
 0x1b1   : > { %v2049_v31 = vadd.f32 %v2048_v33, %v2047_v8 }
 0x1b7   : > { %v2116_v11 = vpop.f32.mrb[8].mxu1 }
 0x1b8   : > { %v2117_v48 = vpop.f32.mrb[9].mxu1 }
 0x1b9   : > { %v3266_v24 = vadd.f32 %v2117_v48, %v2116_v11  ;;  %v2119_v18 = vpop.f32.mrb[10].mxu1 }
 0x1ba   : > { %v2120_v59 = vpop.f32.mrb[11].mxu1 }
 0x1bb   : > { %v3268_v29 = vadd.f32 %v2120_v59, %v2119_v18 }
 0x1c1   : > { %v2050_v39 = vpop.f32.mrb[12].mxu0 }
 0x1c2   : > { %v2051_v54 = vpop.f32.mrb[13].mxu0 }
 0x1c3   : > { %v2052_v53 = vadd.f32 %v2051_v54, %v2050_v39  ;;  %v2053_v56 = vpop.f32.mrb[14].mxu0 }
 0x1c4   : > { %v2054_v4 = vpop.f32.mrb[15].mxu0 }
 0x1c5   : > { %v2055_v57 = vadd.f32 %v2054_v4, %v2053_v56 }
 0x1cb   : > { %v2122_v16 = vpop.f32.mrb[12].mxu1 }
 0x1cc   : > { %v2123_v34 = vpop.f32.mrb[13].mxu1 }
 0x1cd   : > { %v3270_v50 = vadd.f32 %v2123_v34, %v2122_v16  ;;  %v2125_v19 = vpop.f32.mrb[14].mxu1 }
 0x1ce   : > { %v2126_v38 = vpop.f32.mrb[15].mxu1 }
 0x1cf   : > { %v3272_v47 = vadd.f32 %v2126_v38, %v2125_v19 }
 0x1d3   : > { %v2152_v21 = vpop.f32.mrb[16].mxu1 }
 0x1d4   : > { %v3274_v51 = vadd.f32 %v2152_v21, %v2040_v17  ;;  %v1599_v28 = vpop.f32.mrb[17].mxu1 }
 0x1d5   : > { %v3276_v0 = vadd.f32 %v2034_v25, %v1599_v28  ;;  %v2153_v52 = vpop.f32.mrb[18].mxu1 }
 0x1d6   : > { %v3278_v58 = vadd.f32 %v2153_v52, %v2043_v41  ;;  %v2056_v1 = vpop.f32.mrb[16].mxu0  ;;  %v1602_v22 = vpop.f32.mrb[19].mxu1 }
 0x1d7   : > { %v3280_v45 = vadd.f32 %v2037_v49, %v1602_v22  ;;  %v2057_v35 = vpop.f32.mrb[17].mxu0 }
 0x1d8   : > { %v2058_v7 = vadd.f32 %v2057_v35, %v2056_v1  ;;  %v2059_v42 = vpop.f32.mrb[18].mxu0 }
 0x1d9   : > { %v2060_v6 = vpop.f32.mrb[19].mxu0 }
 0x1da   : > { %v2061_v55 = vadd.f32 %v2060_v6, %v2059_v42 }
 0x1db   : > { %v2156_v32 = vpop.f32.mrb[20].mxu1 }
 0x1dc   : > { %v3282_v62 = vadd.f32 %v2156_v32, %v2052_v53  ;;  %v1615_v27 = vpop.f32.mrb[21].mxu1 }
 0x1dd   : > { %v3284_v40 = vadd.f32 %v2046_v5, %v1615_v27  ;;  %v2157_v25 = vpop.f32.mrb[22].mxu1 }
 0x1de   : > { %v3286_v61 = vadd.f32 %v2157_v25, %v2055_v57  ;;  %v1618_v46 = vpop.f32.mrb[23].mxu1 }
 0x1df   : > { %v3288_v23 = vadd.f32 %v2049_v31, %v1618_v46 }
 0x1e2   : > { %v2062_v63 = vpop.f32.mrb[20].mxu0 }
 0x1e3   : > { %v2063_v49 = vpop.f32.mrb[21].mxu0  ;;  %v2160_v15 = vpop.f32.mrb[24].mxu1 }
 0x1e4   : > { %v2064_v26 = vadd.f32 %v2063_v49, %v2062_v63  ;;  %v2065_v3 = vpop.f32.mrb[22].mxu0  ;;  %v1631_v43 = vpop.f32.mrb[25].mxu1 }
 0x1e5   : > { %v3290_v17 = vadd.f32 %v2058_v7, %v1631_v43  ;;  %v2066_v12 = vpop.f32.mrb[23].mxu0  ;;  %v2161_v37 = vpop.f32.mrb[26].mxu1 }
 0x1e6   : > { %v3292_v41 = vadd.f32 %v2160_v15, %v2064_v26  ;;  %v2067_v13 = vadd.f32 %v2066_v12, %v2065_v3  ;;  %v1634_v44 = vpop.f32.mrb[27].mxu1 }
 0x1e7   : > { %v1726_v60 = vmax.f32 %v3276_v0, %v3290_v17  ;;  %v3296_v9 = vadd.f32 %v2061_v55, %v1634_v44 }
 0x1e8   : > { %v1728_v14 = vmax.f32 %v3274_v51, %v3292_v41  ;;  %v3300_v36 = vadd.f32 %v2161_v37, %v2067_v13 }
 0x1e9   : > { %v1727_v5 = vmax.f32 %v3280_v45, %v3296_v9 }
 0x1ea   : > { %v1729_v8 = vmax.f32 %v3278_v58, %v3300_v36 }
 0x1eb   : > { %v2164_v33 = vpop.f32.mrb[28].mxu1 }
 0x1ec   : > { %v1647_v31 = vpop.f32.mrb[29].mxu1 }
 0x1ed   : > { %v2165_v11 = vpop.f32.mrb[30].mxu1 }
 0x1ee   : > { %v2068_v48 = vpop.f32.mrb[24].mxu0  ;;  %v1650_v18 = vpop.f32.mrb[31].mxu1 }
 0x1ef   : > { %v2069_v59 = vpop.f32.mrb[25].mxu0 }
 0x1f0   : > { %v2070_v39 = vadd.f32 %v2069_v59, %v2068_v48  ;;  %v2071_v54 = vpop.f32.mrb[26].mxu0 }
 0x1f1   : > { %v2072_v53 = vpop.f32.mrb[27].mxu0 }
 0x1f2   : > { %v2073_v56 = vadd.f32 %v2072_v53, %v2071_v54  ;;  %v3306_v4 = vadd.f32 %v2070_v39, %v1647_v31 }
 0x1f3   : > { %v2168_v57 = vpop.f32.mrb[32].mxu1 }
 0x1f4   : > { %v1730_v16 = vmax.f32 %v3284_v40, %v3306_v4  ;;  %v3310_v34 = vadd.f32 %v2073_v56, %v1650_v18  ;;  %v1663_v19 = vpop.f32.mrb[33].mxu1 }
 0x1f5   : > { %v2169_v38 = vpop.f32.mrb[34].mxu1 }
 0x1f6   : > { %v1731_v21 = vmax.f32 %v3288_v23, %v3310_v34  ;;  %v1666_v28 = vpop.f32.mrb[35].mxu1 }
 0x1fa   : > { %v2074_v0 = vpop.f32.mrb[28].mxu0 }
 0x1fb   : > { %v2075_v52 = vpop.f32.mrb[29].mxu0  ;;  %v3314_v1 = vpop.f32.mrb[36].mxu1 }
 0x1fc   : > { %v2076_v22 = vadd.f32 %v2075_v52, %v2074_v0  ;;  %v2077_v35 = vpop.f32.mrb[30].mxu0  ;;  %v3316_v7 = vpop.f32.mrb[37].mxu1 }
 0x1fd   : > { %v2078_v42 = vpop.f32.mrb[31].mxu0  ;;  %v3318_v6 = vpop.f32.mrb[38].mxu1 }
 0x1fe   : > { %v3320_v55 = vadd.f32 %v2164_v33, %v2076_v22  ;;  %v2079_v32 = vadd.f32 %v2078_v42, %v2077_v35  ;;  %v3322_v27 = vpop.f32.mrb[39].mxu1 }
 0x200   : > { %v1732_v25 = vmax.f32 %v3282_v62, %v3320_v55  ;;  %v3326_v46 = vadd.f32 %v2165_v11, %v2079_v32 }
 0x202   : > { %v1733_v63 = vmax.f32 %v3286_v61, %v3326_v46 }
 0x203   : > { %v2176_v49 = vpop.f32.mrb[40].mxu1 }
 0x204   : > { %v1704_v15 = vadd.f32 %v2176_v49, %v3262_v30  ;;  %v1695_v26 = vpop.f32.mrb[41].mxu1 }
 0x205   : > { %v1696_v3 = vadd.f32 %v3249_v2, %v1695_v26  ;;  %v2177_v43 = vpop.f32.mrb[42].mxu1 }
 0x206   : > { %v1707_v17 = vadd.f32 %v2177_v43, %v3264_v10  ;;  %v2080_v12 = vpop.f32.mrb[32].mxu0  ;;  %v1698_v37 = vpop.f32.mrb[43].mxu1  ;;  %v3340_v10 = vld [vmem:[%s3410_s2] ss:$0 sm:$0xff] }
 0x207   : > { %v1699_v13 = vadd.f32 %v3251_v20, %v1698_v37  ;;  %v2081_v44 = vpop.f32.mrb[33].mxu0 }
 0x208   : > { %v2082_v33 = vadd.f32 %v2081_v44, %v2080_v12  ;;  %v2083_v31 = vpop.f32.mrb[34].mxu0 }
 0x209   : > { %v2084_v11 = vpop.f32.mrb[35].mxu0 }
 0x20a   : > { %v1664_v48 = vadd.f32 %v2082_v33, %v1663_v19  ;;  %v2085_v18 = vadd.f32 %v2084_v11, %v2083_v31 }
 0x20b   : > { %v2180_v59 = vpop.f32.mrb[44].mxu1 }
 0x20c   : > { %v1734_v39 = vmax.f32 %v1664_v48, %v1696_v3  ;;  %v1667_v54 = vadd.f32 %v2085_v18, %v1666_v28  ;;  %v3335_v30 = vadd.f32 %v2180_v59, %v3270_v50  ;;  %v1711_v2 = vpop.f32.mrb[45].mxu1 }
 0x20d   : > { %v1712_v20 = vadd.f32 %v3266_v24, %v1711_v2  ;;  %v2181_v53 = vpop.f32.mrb[46].mxu1 }
 0x20e   : > { %v1742_v56 = vmax.f32 %v1726_v60, %v1734_v39  ;;  %v1735_v0 = vmax.f32 %v1667_v54, %v1699_v13  ;;  %v3344_v19 = vadd.f32 %v2181_v53, %v3272_v47  ;;  %v1714_v52 = vpop.f32.mrb[47].mxu1 }
 0x20f   : > { %v1715_v28 = vadd.f32 %v3268_v29, %v1714_v52 }
 0x210   : > { %v1757_v50 = vadd.f32 %v3340_v10, %v1742_v56  ;;  %v1743_v22 = vmax.f32 %v1727_v5, %v1735_v0 }
 0x212   : > { %v1765_v35 = vmax.f32 %v1757_v50, 0.0  ;;  %v1758_v24 = vadd.f32 %v3340_v10, %v1743_v22  ;;  %v2086_v42 = vpop.f32.mrb[36].mxu0 }
 0x213   : > { %v2087_v60 = vpop.f32.mrb[37].mxu0 }
 0x214   : > { %v2008_v32 = vpack.c.bf16 %v1765_v35, %v1765_v35  ;;  %v1766_v49 = vmax.f32 %v1758_v24, 0.0  ;;  %v2088_v26 = vadd.f32 %v2087_v60, %v2086_v42  ;;  %v2089_v47 = vpop.f32.mrb[38].mxu0 }
 0x215   : > { %v2090_v3 = vpop.f32.mrb[39].mxu0 }
 0x216   : > { %1806 = vst.msk [vmem:[%s3256_s14] sm:$0xf] %vm1805_vm5, %v2008_v32  ;;  %v2009_v29 = vpack.c.bf16 %v1766_v49, %v1766_v49  ;;  %v1672_v43 = vadd.f32 %v2168_v57, %v2088_v26  ;;  %v2091_v12 = vadd.f32 %v2090_v3, %v2089_v47 }
 0x218   : > { %1807 = vst.msk [vmem:[%s3256_s14 + $0x4] sm:$0xf] %vm1805_vm5, %v2009_v29  ;;  %v1736_v45 = vmax.f32 %v1672_v43, %v1704_v15  ;;  %v1675_v9 = vadd.f32 %v2169_v38, %v2091_v12 }
 0x21a   : > { %v1744_v5 = vmax.f32 %v1728_v14, %v1736_v45  ;;  %v1737_v37 = vmax.f32 %v1675_v9, %v1707_v17 }
 0x21c   : > { %v1759_v13 = vadd.f32 %v3340_v10, %v1744_v5  ;;  %v1745_v44 = vmax.f32 %v1729_v8, %v1737_v37 }
 0x21e   : > { %v1767_v33 = vmax.f32 %v1759_v13, 0.0  ;;  %v1760_v57 = vadd.f32 %v3340_v10, %v1745_v44  ;;  %v2092_v31 = vpop.f32.mrb[40].mxu0 }
 0x21f   : > { %v2093_v11 = vpop.f32.mrb[41].mxu0 }
 0x220   : > { %v2010_v48 = vpack.c.bf16 %v1767_v33, %v1767_v33  ;;  %v1768_v15 = vmax.f32 %v1760_v57, 0.0  ;;  %v2094_v38 = vadd.f32 %v2093_v11, %v2092_v31  ;;  %v2095_v18 = vpop.f32.mrb[42].mxu0 }
 0x221   : > { %v2096_v59 = vpop.f32.mrb[43].mxu0 }
 0x222   : > { %1808 = vst.msk [vmem:[%s3256_s14 + $0x8] sm:$0xf] %vm1805_vm5, %v2010_v48  ;;  %v2011_v51 = vpack.c.bf16 %v1768_v15, %v1768_v15  ;;  %v1680_v41 = vadd.f32 %v2094_v38, %v3316_v7  ;;  %v2097_v14 = vadd.f32 %v2096_v59, %v2095_v18 }
 0x224   : > { %1809 = vst.msk [vmem:[%s3256_s14 + $0xc] sm:$0xf] %vm1805_vm5, %v2011_v51  ;;  %v1738_v58 = vmax.f32 %v1680_v41, %v1712_v20  ;;  %v1683_v36 = vadd.f32 %v2097_v14, %v3322_v27 }
 0x226   : > { %v1746_v8 = vmax.f32 %v1730_v16, %v1738_v58  ;;  %v1739_v17 = vmax.f32 %v1683_v36, %v1715_v28 }
 0x228   : > { %v1761_v39 = vadd.f32 %v3340_v10, %v1746_v8  ;;  %v1747_v54 = vmax.f32 %v1731_v21, %v1739_v17 }
 0x22a   : > { %v1769_v7 = vmax.f32 %v1761_v39, 0.0  ;;  %v1762_v2 = vadd.f32 %v3340_v10, %v1747_v54  ;;  %v2098_v53 = vpop.f32.mrb[44].mxu0 }
 0x22b   : > { %v2099_v56 = vpop.f32.mrb[45].mxu0 }
 0x22c   : > { %v2012_v20 = vpack.c.bf16 %v1769_v7, %v1769_v7  ;;  %v1770_v0 = vmax.f32 %v1762_v2, 0.0  ;;  %v2100_v27 = vadd.f32 %v2099_v56, %v2098_v53  ;;  %v2101_v52 = vpop.f32.mrb[46].mxu0 }
 0x22d   : > { %v2102_v50 = vpop.f32.mrb[47].mxu0 }
 0x22e   : > { %1810 = vst.msk [vmem:[%s3256_s14 + $0x10] sm:$0xf] %vm1805_vm5, %v2012_v20  ;;  %v2013_v40 = vpack.c.bf16 %v1770_v0, %v1770_v0  ;;  %v1688_v4 = vadd.f32 %v3314_v1, %v2100_v27  ;;  %v2103_v16 = vadd.f32 %v2102_v50, %v2101_v52 }
 0x230   : > { %1811 = vst.msk [vmem:[%s3256_s14 + $0x14] sm:$0xf] %vm1805_vm5, %v2013_v40  ;;  %v1740_v23 = vmax.f32 %v1688_v4, %v3335_v30  ;;  %v1691_v34 = vadd.f32 %v3318_v6, %v2103_v16 }
 0x232   : > { %v1748_v21 = vmax.f32 %v1732_v25, %v1740_v23  ;;  %v1741_v28 = vmax.f32 %v1691_v34, %v3344_v19 }
 0x234   : > { %v1763_v22 = vadd.f32 %v3340_v10, %v1748_v21  ;;  %v1749_v35 = vmax.f32 %v1733_v63, %v1741_v28 }
 0x236   : > { %v1771_v1 = vmax.f32 %v1763_v22, 0.0  ;;  %v1764_v24 = vadd.f32 %v3340_v10, %v1749_v35 }
 0x238   : > { %v2014_v42 = vpack.c.bf16 %v1771_v1, %v1771_v1  ;;  %v1772_v60 = vmax.f32 %v1764_v24, 0.0 }
 0x23a   : > { %1812 = vst.msk [vmem:[%s3256_s14 + $0x18] sm:$0xf] %vm1805_vm5, %v2014_v42  ;;  %v2015_v6 = vpack.c.bf16 %v1772_v60, %v1772_v60 }
 0x23c   : > { %1813 = vst.msk [vmem:[%s3256_s14 + $0x1c] sm:$0xf] %vm1805_vm5, %v2015_v6 }
 0x23d PF: > { %p10_p9 = scmp.ge.s32.totalorder %s2358_s16, 4   ;;  %s3521_s12 = smov %s2311_s13 }
 0x23e   : > { %s3522_s13 = smov %s2367_s19  ;;  %s3523_s14 = smov %s2358_s16 }
 0x23f   :  { %12 = sbr.rel (!%p10_p9) target bundleno = 2 (0x2), region = 111 }

// kernel: naive_cnn_forward.6
= control target key start
LH: loop header
LB: loop body
LE: loop exit
PB: predicated region body
PF: predicated region fallthrough
CT: control target
= control target key end

     0   :  { %s1499_s12 = smov 0   ;;  %s1501_s13 = smov 0   ;;  %s1839_s0 = inlined_call_operand.vmem [shape: bf16[4,64,64], index: 0, kind: input, shape index: {}]   ;;  %s1840_s1 = inlined_call_operand.vmem [shape: bf16[576,64], index: 1, kind: input, shape index: {}]   ;;  %s1841_s2 = inlined_call_operand.vmem [shape: f32[1,64], index: 2, kind: input, shape index: {}]   ;;  %s1842_s3 = inlined_call_operand.vmem [shape: bf16[64,64], index: 3, kind: output, shape index: {}]  }
   0x1   :  { %s1503_s14 = smov 0  }
   0x2 LB: > { %s1162_s15 = sadd.s32 4294967295, %s1475_s14   ;;  %s1516_s16 = sadd.s32 1, %s1475_s14   ;;  %s1475_s14 = sphi %s1503_s14, %s1845_s14   ;;  %s1471_s13 = sphi %s1501_s13, %s1844_s13   ;;  %s1467_s12 = sphi %s1499_s12, %s1843_s12  }
   0x3   : > { %s17_s17 = ssub.s32 %s1475_s14, %s1516_s16  ;;  %s20_s18 = sadd.s32 1, %s1471_s13 }
   0x4   : > { %p18_p0 = scmp.eq.s32.totalorder %s17_s17, 0  ;;  %p27_p1 = scmp.ne.s32.totalorder %s1471_s13, %s1467_s12 }
   0x5   : > { %p28_p2 = scmp.eq.s32.totalorder %s1475_s14, 0  ;;  %p1165_p4 = scmp.ge.s32.totalorder %s1475_s14, 2 }
   0x6   : > { %s1525_s19 = scalar_select %p18_p0, %s1471_s13, %s20_s18  }
   0x7   : > { %p29_p3 = por %p28_p2, %p27_p1  ;;  %127 = sbr.rel (%p1165_p4) target bundleno = 22 (0x16), region = 24 }
   0xe   : > { %130 = sbr.rel (!%p29_p3) target bundleno = 22 (0x16), region = 28  ;;  %s132_s20 = sand.u32 (%p29_p3), 1, %s1471_s13  }
   0xf   : > { %s1256_s21 = sshll.u32 (%p29_p3), %s1475_s14, 4  ;;  %s1166_s22 = sshll.u32 (%p29_p3), %s132_s20, 6 }
  0x10   : > { %s137_s25 = scalar_lea.vmem (%p29_p3), %s1839_s0, %s1256_s21  ;;  %s134_s26 = scalar_lea.vmem (%p29_p3), [#allocation2], %s1166_s22 }
  0x11   : > { %v153_v0 = vld [vmem:[%s137_s25] sm:$0xff] (%p29_p3)   ;;  %v157_v1 = vld [vmem:[%s137_s25 + $0x8] sm:$0xff] (%p29_p3)  }
  0x12   : > { %v161_v2 = vld [vmem:[%s137_s25 + $0x20] sm:$0xff] (%p29_p3)   ;;  %154 = vst [vmem:[%s134_s26] sm:$0xff] (%p29_p3), %v153_v0   ;;  %158 = vst [vmem:[%s134_s26 + $0x8] sm:$0xff] (%p29_p3), %v157_v1   ;;  %v165_v3 = vld [vmem:[%s137_s25 + $0x28] sm:$0xff] (%p29_p3)  }
  0x13   : > { %162 = vst [vmem:[%s134_s26 + $0x10] sm:$0xff] (%p29_p3), %v161_v2   ;;  %v169_v4 = vld [vmem:[%s137_s25 + $0x40] sm:$0xff] (%p29_p3)   ;;  %v173_v5 = vld [vmem:[%s137_s25 + $0x48] sm:$0xff] (%p29_p3)   ;;  %166 = vst [vmem:[%s134_s26 + $0x18] sm:$0xff] (%p29_p3), %v165_v3  }
  0x14   : > { %170 = vst [vmem:[%s134_s26 + $0x20] sm:$0xff] (%p29_p3), %v169_v4   ;;  %174 = vst [vmem:[%s134_s26 + $0x28] sm:$0xff] (%p29_p3), %v173_v5   ;;  %v177_v6 = vld [vmem:[%s137_s25 + $0x60] sm:$0xff] (%p29_p3)   ;;  %v181_v7 = vld [vmem:[%s137_s25 + $0x68] sm:$0xff] (%p29_p3)  }
  0x15   : > { %178 = vst [vmem:[%s134_s26 + $0x30] sm:$0xff] %v177_v6   ;;  %182 = vst [vmem:[%s134_s26 + $0x38] sm:$0xff] %v181_v7  }
  0x16 PF: > { %p1169_p5 = scmp.ge.s32.totalorder %s1475_s14, 1  ;;  %p238_p6 = scmp.lt.s32.totalorder %s1475_s14, 3 }
  0x18   : > { %p239_p7 = pnand %p1169_p5, %p238_p6 }
  0x19   : > { %s245_s27 = sand.u32 (!%p239_p7), 1, %s1467_s12   ;;  %vm429_vm0 = vsmask.f32 (!%p239_p7), 6400  ;;  %v1416_v8 = vld [vmem:[%s1840_s1 + $0x40] sm:$0xff] (!%p239_p7)   ;;  %vm381_vm1 = vsmask.f32 (!%p239_p7), 7424 }
  0x1a   : > { %242 = sbr.rel (%p239_p7) target bundleno = 416 (0x1a0), region = 69  ;;  %s1170_s28 = sshll.u32 (!%p239_p7), %s245_s27, 6  ;;  %vm475_vm2 = vcmask (!%p239_p7), 1045504   ;;  %1259 = vmatprep.subr.bf16.mxu0 (!%p239_p7), %v1416_v8  ;;  %v1417_v20 = vld [vmem:[%s1840_s1] sm:$0xff] (!%p239_p7)   ;;  %v1418_v55 = vld [vmem:[%s1840_s1 + $0x48] sm:$0xff] (!%p239_p7)   ;;  %vm479_vm3 = vcmask (!%p239_p7), 523264  }
  0x1b   : > { %s1539_s4 = scalar_lea.vmem (!%p239_p7), [#allocation2], %s1170_s28  ;;  %s1477_s7 = smov (!%p239_p7), 64   ;;  %1260 = vmatpush3.bf16.msra.mxu0 (!%p239_p7), %v1417_v20  ;;  %v1419_v2 = vld [vmem:[%s1840_s1 + $0x8] sm:$0xff] (!%p239_p7)   ;;  %v1420_v8 = vld [vmem:[%s1840_s1 + $0xc0] sm:$0xff] (!%p239_p7)   ;;  %vm1095_vm4 = vcmask (!%p239_p7), 519168  }
  0x1c   : > { %v1175_v9 = vld [vmem:[%s1539_s4 + $0x20] sm:$0xf] (!%p239_p7)  ;;  %v1543_v10 = vld [vmem:[%s1539_s4 + $0x24] sm:$0xf] (!%p239_p7)  ;;  %v1173_v14 = vld [vmem:[%s1539_s4 + $0x10] sm:$0xf] (!%p239_p7)  ;;  %1261 = vmatprep.subr.bf16.mxu0 (!%p239_p7), %v1418_v55  ;;  %1299 = vmatprep.subr.bf16.mxu1 (!%p239_p7), %v1420_v8 }
  0x1d   : > { %v1199_v11 = vld [vmem:[%s1539_s4 + $0x20] sm:$0xe] (!%p239_p7)  ;;  %v1547_v12 = vcombine.low (!%p239_p7), %v1175_v9, %v1543_v10  ;;  %v1554_v15 = vld [vmem:[%s1539_s4 + $0x14] sm:$0xf] (!%p239_p7)  ;;  %v1180_v16 = vld [vmem:[%s1539_s4 + $0x10] sm:$0xe] (!%p239_p7) }
  0x1e   : > { %v1550_v13 = vcombine.low (!%p239_p7), %v1199_v11, %v1543_v10  ;;  %v1558_v17 = vcombine.low (!%p239_p7), %v1173_v14, %v1554_v15  ;;  %v1190_v18 = vcombine.low (!%p239_p7), %v1180_v16, %v1554_v15  ;;  %v1562_v19 = vld [vmem:[%s1539_s4 + $0x18] ss:$0 sps:$4 sm:$0x33] (!%p239_p7)   ;;  %v1402_v21 = vld [vmem:[%s1539_s4 + $0x28] ss:$0 sps:$4 sm:$0x11] (!%p239_p7)  }
  0x1f   : > { %399 = vrot.lane.b32.xlu0 (!%p239_p7), %v1547_v12, %s1477_s7  ;;  %v410_v22 = vshrl.u32 (!%p239_p7), %v1547_v12, 16  ;;  %v462_v25 = vshrl.u32 (!%p239_p7), %v1562_v19, 16  ;;  %v465_v26 = vshll.u32 (!%p239_p7), %v1562_v19, 16  ;;  %v1177_v27 = vld [vmem:[%s1539_s4 + $0x30] sm:$0xf] (!%p239_p7)  ;;  %v412_v28 = vshll.u32 (!%p239_p7), %v1547_v12, 16  ;;  %1262 = vmatpush3.bf16.msra.mxu0 (!%p239_p7), %v1419_v2 }
  0x20   : > { %376 = vrot.lane.b32.xlu1 (!%p239_p7), %v1558_v17, %s1477_s7  ;;  %v454_v23 = vshrl.u32 (!%p239_p7), %v1190_v18, 16  ;;  %v457_v24 = vshll.u32 (!%p239_p7), %v1190_v18, 16  ;;  %v417_v29 = vshll.u32 (!%p239_p7), %v1402_v21, 16  ;;  %v1578_v30 = vld [vmem:[%s1539_s4 + $0x34] sm:$0xf] (!%p239_p7)  ;;  %v539_v50 = vrot.slane (!%p239_p7), %v1562_v19, 2 }
  0x21   : > { %v1581_v31 = vld [vmem:[%s1539_s4 + $0x30] sm:$0xc]  ;;  %v464_v34 = vrot.slane %v462_v25, 1  ;;  %v467_v35 = vrot.slane %v465_v26, 2  ;;  %v349_v36 = vld [vmem:[%s1539_s4 + $0x4] sm:$0xf]  ;;  %v1588_v43 = vcombine.low %v1177_v27, %v1578_v30 }
  0x22   : > { %v456_v32 = vrot.slane %v454_v23, 1  ;;  %v459_v33 = vrot.slane %v457_v24, 2  ;;  %v414_v37 = vrot.slane %v412_v28, 1  ;;  %v419_v38 = vrot.slane %v417_v29, 1  ;;  %v365_v40 = vld [vmem:[%s1539_s4] sm:$0xc] }
  0x23   : > { %v1210_v39 = vcombine.low %v1581_v31, %v1578_v30  ;;  %v468_v42 = vor.u32 %v467_v35, %v464_v34  ;;  %v1405_v44 = vld [vmem:[%s1539_s4 + $0x8] ss:$0 sps:$4 sm:$0x33]   ;;  %v1192_v45 = vcombine.low %v365_v40, %v349_v36  ;;  %v348_v46 = vld [vmem:[%s1539_s4] sm:$0xf]  ;;  %v520_v54 = vshrl.u32 %v1588_v43, 16 }
  0x24   : > { %v460_v41 = vor.u32 %v459_v33, %v456_v32  ;;  %v415_v47 = vor.u32 %v414_v37, %v410_v22  ;;  %v1592_v48 = vcombine.low %v348_v46, %v349_v36  ;;  %v1408_v49 = vld [vmem:[%s1539_s4 + $0x8] ss:$0 sps:$4 sm:$0x11]   ;;  %v477_v53 = vrot.slane %v1405_v44, 2  ;;  %v361_v63 = vld [vmem:[%s1539_s4] sm:$0xe] }
  0x25   : > { %v476_v52 = vrot.slane %v1192_v45, 2  ;;  %v390_v59 = vshll.u32 %v1408_v49, 16  ;;  %v1409_v60 = vld [vmem:[%s1539_s4 + $0x38] ss:$0 sps:$4 sm:$0x11]   ;;  %v522_v62 = vshll.u32 %v1588_v43, 16  ;;  %v1188_v6 = vcombine.low %v361_v63, %v349_v36 }
  0x26   : > { %v1597_v51 = vsel %vm429_vm0, %v460_v41, %v468_v42  ;;  %v1606_v56 = vsel %vm381_vm1, %v415_v47, %v419_v38  ;;  %v383_v57 = vshrl.u32 %v1592_v48, 16  ;;  %v385_v58 = vshll.u32 %v1592_v48, 16  ;;  %v1201_v7 = vld [vmem:[%s1539_s4 + $0x30] sm:$0xe]  ;;  %v1421_v18 = vld [vmem:[%s1840_s1 + $0x80] sm:$0xff]   ;;  %v1427_v2 = vld [vmem:[%s1840_s1 + $0x18] sm:$0xff]  }
  0x27   : > { %470 = vrot.lane.b32.xlu0 %v1597_v51, %s1477_s7  ;;  %421 = vrot.lane.b32.xlu1 %v1606_v56, %s1477_s7  ;;  %v1614_v61 = vsel %vm475_vm2, %v476_v52, %v477_v53  ;;  %v439_v0 = vshrl.u32 %v1405_v44, 16  ;;  %v442_v1 = vshll.u32 %v1405_v44, 16  ;;  %v392_v4 = vrot.slane %v390_v59, 1  ;;  %v1632_v24 = vld [vmem:[%s1539_s4 + $0x38] ss:$0 sps:$4 sm:$0x33]  }
  0x28   : > { %v387_v3 = vrot.slane %v385_v58, 1  ;;  %v527_v5 = vshll.u32 %v1409_v60, 16  ;;  %v524_v9 = vrot.slane %v522_v62, 1  ;;  %v1206_v16 = vcombine.low %v1201_v7, %v1578_v30  ;;  %v1203_v29 = vld [vmem:[%s1539_s4 + $0x20] sm:$0xc]  ;;  %1300 = vmatpush3.bf16.msra.mxu1 %v1421_v18  ;;  %v1422_v44 = vld [vmem:[%s1840_s1 + $0x50] sm:$0xff]  }
  0x29   : > { %v441_v11 = vrot.slane %v439_v0, 1  ;;  %v444_v14 = vrot.slane %v442_v1, 2  ;;  %v431_v22 = vshrl.u32 %v1188_v6, 16  ;;  %v434_v23 = vshll.u32 %v1188_v6, 16  ;;  %v1195_v42 = vld [vmem:[%s1539_s4 + $0x10] sm:$0xc]  ;;  %1263 = vmatprep.subr.bf16.mxu0 %v1422_v44 }
  0x2a   : > { %v388_v20 = vor.u32 %v387_v3, %v383_v57  ;;  %v529_v21 = vrot.slane %v527_v5, 1  ;;  %v525_v25 = vor.u32 %v524_v9, %v520_v54  ;;  %v593_v27 = vshrl.u32 %v1206_v16, 16  ;;  %v1642_v36 = vld [vmem:[%s1539_s4 + $0x28] ss:$0 sps:$4 sm:$0x33]   ;;  %v1423_v55 = vld [vmem:[%s1840_s1 + $0x10] sm:$0xff]  }
  0x2b   : > { %515 = vrot.lane.b32.xlu0 %v1588_v43, %s1477_s7  ;;  %533 = vrot.lane.b32.xlu1 %v1614_v61, %s1477_s7  ;;  %v445_v26 = vor.u32 %v444_v14, %v441_v11  ;;  %v596_v28 = vshll.u32 %v1206_v16, 16  ;;  %v433_v33 = vrot.slane %v431_v22, 1  ;;  %v436_v34 = vrot.slane %v434_v23, 2  ;;  %v1426_v1 = vld [vmem:[%s1840_s1 + $0x58] sm:$0xff]   ;;  %v1428_v3 = vld [vmem:[%s1840_s1 + $0xd0] sm:$0xff]   ;;  %s1171_s17 = sshll.u32 %s1162_s15, 2 }
  0x2c   : > { %v1638_v32 = vsel %vm381_vm1, %v388_v20, %v392_v4  ;;  %v601_v35 = vshrl.u32 %v1632_v24, 16  ;;  %v1645_v37 = vsel %vm381_vm1, %v525_v25, %v529_v21  ;;  %v595_v38 = vrot.slane %v593_v27, 1  ;;  %1264 = vmatpush3.bf16.msra.mxu0 %v1423_v55  ;;  %v1429_v19 = vld [vmem:[%s1840_s1 + $0x90] sm:$0xff]   ;;  %v1430_v5 = vld [vmem:[%s1840_s1 + $0x60] sm:$0xff]   ;;  %v1432_v8 = vld [vmem:[%s1840_s1 + $0xd8] sm:$0xff]   ;;  %p270_p8 = scmp.lt.s32.totalorder %s1171_s17, 7 }
  0x2d   : > { %v598_v40 = vrot.slane %v596_v28, 2  ;;  %v604_v41 = vshll.u32 %v1632_v24, 16  ;;  %v437_v45 = vor.u32 %v436_v34, %v433_v33  ;;  %v1208_v47 = vcombine.low %v1203_v29, %v1543_v10  ;;  %v1424_v10 = vld [vmem:[%s1840_s1 + $0xc8] sm:$0xff]   ;;  %1265 = vmatprep.subr.bf16.mxu0 %v1426_v1  ;;  %v1431_v6 = vld [vmem:[%s1840_s1 + $0x20] sm:$0xff]   ;;  %v1433_v30 = vld [vmem:[%s1840_s1 + $0x98] sm:$0xff]  }
  0x2e   : > { %v603_v46 = vrot.slane %v601_v35, 1  ;;  %v615_v49 = vrot.slane %v1642_v36, 2  ;;  %v1198_v54 = vcombine.low %v1195_v42, %v1554_v15  ;;  %v1425_v15 = vld [vmem:[%s1840_s1 + $0x88] sm:$0xff]   ;;  %1301 = vmatprep.subr.bf16.mxu1 %v1424_v10  ;;  %v634_v4 = vrot.slane %v1210_v39, 2  ;;  %v1437_v20 = vld [vmem:[%s1840_s1 + $0xa0] sm:$0xff]   ;;  %v1438_v22 = vld [vmem:[%s1840_s1 + $0x70] sm:$0xff]  }
  0x2f   : > { %498 = vrot.lane.b32.xlu0 %v1638_v32, %s1477_s7  ;;  %531 = vrot.lane.b32.xlu1 %v1645_v37, %s1477_s7  ;;  %v599_v52 = vor.u32 %v598_v40, %v595_v38  ;;  %v606_v53 = vrot.slane %v604_v41, 2  ;;  %v1663_v57 = vsel %vm429_vm0, %v437_v45, %v445_v26  ;;  %v614_v58 = vrot.slane %v1208_v47, 2  ;;  %v1434_v39 = vld [vmem:[%s1840_s1 + $0x68] sm:$0xff]   ;;  %v1439_v26 = vld [vmem:[%s1840_s1 + $0x30] sm:$0xff]   ;;  %s1847_s17 = smov (!%p270_p8, %s1171_s17), 7 }
  0x30   : > { %v538_v60 = vrot.slane %v1198_v54, 2  ;;  %1302 = vmatpush3.bf16.msra.mxu1 %v1425_v15  ;;  %1266 = vmatpush3.bf16.msra.mxu0 %v1427_v2  ;;  %v573_v9 = vshll.u32 %v1550_v13, 16  ;;  %v578_v31 = vshrl.u32 %v1642_v36, 16  ;;  %v1435_v14 = vld [vmem:[%s1840_s1 + $0x28] sm:$0xff]   ;;  %v581_v18 = vshll.u32 %v1642_v36, 16  ;;  %v1442_v33 = vld [vmem:[%s1840_s1 + $0x78] sm:$0xff]  }
  0x31   : > { %v607_v59 = vor.u32 %v606_v53, %v603_v46  ;;  %v1677_v63 = vsel %vm475_vm2, %v614_v58, %v615_v49  ;;  %1303 = vmatprep.subr.bf16.mxu1 %v1428_v3  ;;  %1267 = vmatprep.subr.bf16.mxu0 %v1430_v5  ;;  %v635_v21 = vrot.slane %v1632_v24, 2  ;;  %v1440_v24 = vld [vmem:[%s1840_s1 + $0xe8] sm:$0xff]   ;;  %v1443_v35 = vld [vmem:[%s1840_s1 + $0x38] sm:$0xff]   ;;  %v506_v36 = vshll.u32 %v1558_v17, 16  ;;  %v1444_v38 = vld [vmem:[%s1840_s1 + $0xf0] sm:$0xff]   ;;  %s1172_s18 = sshll.u32 %s1847_s17, 2 }
  0x32   : > { %v1684_v0 = vsel %vm475_vm2, %v538_v60, %v539_v50  ;;  %v570_v50 = vshrl.u32 %v1550_v13, 16  ;;  %v575_v11 = vrot.slane %v573_v9, 2  ;;  %v580_v16 = vrot.slane %v578_v31, 1  ;;  %v1436_v13 = vld [vmem:[%s1840_s1 + $0xe0] sm:$0xff]   ;;  %v1441_v29 = vld [vmem:[%s1840_s1 + $0xa8] sm:$0xff]   ;;  %v1445_v40 = vld [vmem:[%s1840_s1 + $0xb0] sm:$0xff]   ;;  %s273_s21 = scalar_lea.vmem %s1842_s3, %s1172_s18 }
  0x33   : > { %561 = vrot.lane.b32.xlu0 %v1663_v57, %s1477_s7  ;;  %v1674_v62 = vsel %vm429_vm0, %v599_v52, %v607_v59  ;;  %v583_v25 = vrot.slane %v581_v18, 2  ;;  %v1741_v27 = vsel %vm475_vm2, %v634_v4, %v635_v21  ;;  %v1446_v41 = vld [vmem:[%s1840_s1 + $0xf8] sm:$0xff]   ;;  %v504_v42 = vshrl.u32 %v1558_v17, 16  ;;  %v1448_v46 = vld [vmem:[%s1840_s1 + $0x100] sm:$0xff]   ;;  %v1450_v59 = vld [vmem:[%s1840_s1 + $0x108] sm:$0xff]  }
  0x34   : > { %609 = vrot.lane.b32.xlu1 %v1674_v62, %s1477_s7  ;;  %1304 = vmatpush3.bf16.msra.mxu1 %v1429_v19  ;;  %v572_v7 = vrot.slane %v570_v50, 1  ;;  %v1447_v44 = vld [vmem:[%s1840_s1 + $0xb8] sm:$0xff]   ;;  %v508_v45 = vrot.slane %v506_v36, 1  ;;  %v1451_v15 = vld [vmem:[%s1840_s1 + $0x110] sm:$0xff]  }
  0x35   : > { %1268 = vmatpush3.bf16.msra.mxu0 %v1431_v6  ;;  %1305 = vmatprep.subr.bf16.mxu1 %v1432_v8  ;;  %v584_v28 = vor.u32 %v583_v25, %v580_v16  ;;  %v1449_v47 = vld [vmem:[%s1539_s4 + $0x18] ss:$0 sps:$4 sm:$0x11]  }
  0x36   : > { %1269 = vmatprep.subr.bf16.mxu0 %v1434_v39  ;;  %v576_v23 = vor.u32 %v575_v11, %v572_v7  ;;  %v509_v49 = vor.u32 %v508_v45, %v504_v42  ;;  %v511_v52 = vshll.u32 %v1449_v47, 16  ;;  %v1452_v3 = vld [vmem:[%s1840_s1 + $0x118] sm:$0xff]  }
  0x37   : > { %629 = vrot.lane.b32.xlu0 %v1677_v63, %s1477_s7 }
  0x38   : > { %627 = vrot.lane.b32.xlu1 %v1684_v0, %s1477_s7  ;;  %1306 = vmatpush3.bf16.msra.mxu1 %v1433_v30  ;;  %v1753_v34 = vsel %vm429_vm0, %v576_v23, %v584_v28  ;;  %v513_v53 = vrot.slane %v511_v52, 1 }
  0x39   : > { %1270 = vmatpush3.bf16.msra.mxu0 %v1435_v14  ;;  %1307 = vmatprep.subr.bf16.mxu1 %v1436_v13 }
  0x3a   : > { %1271 = vmatprep.subr.bf16.mxu0 %v1438_v22  ;;  %v514_v54 = vsel %vm381_vm1, %v509_v49, %v513_v53 }
  0x3c   : > { %1308 = vmatpush3.bf16.msra.mxu1 %v1437_v20 }
  0x3d   : > { %1272 = vmatpush3.bf16.msra.mxu0 %v1439_v26  ;;  %1309 = vmatprep.subr.bf16.mxu1 %v1440_v24 }
  0x3e   : > { %1273 = vmatprep.subr.bf16.mxu0 %v1442_v33 }
  0x40   : > { %1310 = vmatpush3.bf16.msra.mxu1 %v1441_v29 }
  0x41   : > { %1274 = vmatpush3.bf16.msra.mxu0 %v1443_v35  ;;  %1311 = vmatprep.subr.bf16.mxu1 %v1444_v38 }
  0x42   : > { %1347 = vmatprep.subr.bf16.mxu0 %v1448_v46 }
  0x44   : > { %1312 = vmatpush3.bf16.msra.mxu1 %v1445_v40 }
  0x45   : > { %1313 = vmatprep.subr.bf16.mxu1 %v1446_v41 }
  0x48   : > { %1314 = vmatpush3.bf16.msra.mxu1 %v1447_v44 }
  0x49   : > { %1363 = vmatprep.subr.bf16.mxu1 %v1448_v46 }
  0x91   : > { %v400_v55 = vpop.permute.xlu0 %399 }
  0x92   : > { %v377_v58 = vpop.permute.xlu1 %376  ;;  %v485_v10 = vsel %vm479_vm3, %v1638_v32, %v400_v55 }
  0x93   : > { %907 = vmatprep.mubr.bf16.mxu0 %v485_v10  ;;  %v481_v60 = vsel %vm479_vm3, %v1592_v48, %v377_v58 }
  0x94   : > { %908 = vmatmul.mubr.bf16.vlgmr.msra.gmra.mrb[0].mxu0 %v481_v60 }
  0x95   : > { %1348 = vmatpush3.bf16.msra.mxu0 %v1448_v46 }
  0x96   : > { %1349 = vmatprep.subr.bf16.mxu0 %v1450_v59 }
  0x99   : > { %v471_v1 = vpop.permute.xlu0 %470  ;;  %1350 = vmatpush3.bf16.msra.mxu0 %v1450_v59  ;;  %v422_v2 = vpop.permute.xlu1 %421 }
  0x9a   : > { %v493_v32 = vsel %vm479_vm3, %v1663_v57, %v471_v1  ;;  %1351 = vmatprep.subr.bf16.mxu0 %v1451_v15  ;;  %v489_v48 = vsel %vm479_vm3, %v1588_v43, %v422_v2  ;;  %v638_v11 = vsel %vm479_vm3, %v1645_v37, %v471_v1 }
  0x9b   : > { %972 = vmatprep.mubr.bf16.mxu1 %v493_v32 }
  0x9c   : > { %973 = vmatmul.mubr.bf16.vlgmr.msra.gmra.mrb[0].mxu1 %v489_v48 }
  0x9d   : > { %1367 = vmatpush3.bf16.msra.mxu1 %v1448_v46  ;;  %v516_v19 = vpop.permute.xlu0 %515  ;;  %1352 = vmatpush3.bf16.msra.mxu0 %v1451_v15  ;;  %v534_v50 = vpop.permute.xlu1 %533 }
  0x9e   : > { %v546_v4 = vsel %vm479_vm3, %v514_v54, %v516_v19  ;;  %1364 = vmatprep.subr.bf16.mxu1 %v1450_v59  ;;  %1353 = vmatprep.subr.bf16.mxu0 %v1452_v3  ;;  %v554_v57 = vsel %vm479_vm3, %v1597_v51, %v534_v50 }
  0x9f   : > { %915 = vmatprep.mubr.bf16.mxu0 %v546_v4  ;;  %980 = vmatprep.mubr.bf16.mxu1 %v554_v57 }
  0xa1   : > { %v499_v5 = vpop.permute.xlu0 %498  ;;  %1368 = vmatpush3.bf16.msra.mxu1 %v1450_v59  ;;  %1354 = vmatpush3.bf16.msra.mxu0 %v1452_v3  ;;  %v532_v6 = vpop.permute.xlu1 %531 }
  0xa2   : > { %v542_v43 = vsel %vm479_vm3, %v1558_v17, %v499_v5  ;;  %1365 = vmatprep.subr.bf16.mxu1 %v1451_v15  ;;  %v550_v7 = vsel %vm479_vm3, %v1606_v56, %v532_v6  ;;  %v617_v17 = vsel %vm479_vm3, %v1547_v12, %v516_v19 }
  0xa3   : > { %916 = vmatmul.mubr.bf16.gmra.mrb[4].mxu0 %v542_v43 }
  0xa4   : > { %981 = vmatmul.mubr.bf16.gmra.mrb[4].mxu1 %v550_v7 }
  0xa5   : > { %v562_v8 = vpop.permute.xlu0 %561  ;;  %1369 = vmatpush3.bf16.msra.mxu1 %v1451_v15 }
  0xa6   : > { %v620_v9 = vsel %vm479_vm3, %v1606_v56, %v562_v8  ;;  %1366 = vmatprep.subr.bf16.mxu1 %v1452_v3  ;;  %v610_v51 = vpop.permute.xlu1 %609 }
  0xa7   : > { %923 = vmatprep.mubr.bf16.mxu0 %v620_v9  ;;  %v624_v30 = vsel %vm479_vm3, %v1753_v34, %v610_v51 }
  0xa8   : > { %988 = vmatprep.mubr.bf16.mxu1 %v624_v30 }
  0xa9   : > { %v630_v31 = vpop.permute.xlu0 %629  ;;  %1370 = vmatpush3.bf16.msra.mxu1 %v1452_v3 }
  0xaa   : > { %v646_v39 = vsel %vm479_vm3, %v1674_v62, %v630_v31  ;;  %v628_v56 = vpop.permute.xlu1 %627 }
  0xab   : > { %924 = vmatmul.mubr.bf16.gmra.mrb[8].mxu0 %v617_v17  ;;  %v642_v14 = vsel %vm479_vm3, %v1614_v61, %v628_v56 }
  0xac   : > { %931 = vmatprep.mubr.bf16.mxu0 %v638_v11  ;;  %989 = vmatmul.mubr.bf16.gmra.mrb[8].mxu1 %v554_v57 }
  0xad   : > { %996 = vmatprep.mubr.bf16.mxu1 %v646_v39 }
  0xb3   : > { %932 = vmatmul.mubr.bf16.gmra.mrb[12].mxu0 %v489_v48 }
  0xb4   : > { %997 = vmatmul.mubr.bf16.gmra.mrb[12].mxu1 %v642_v14  ;;  %1355 = vmatprep.mubr.msk.bf16.mxu0 %vm479_vm3, %v1614_v61 }
  0xb5   : > { %1359 = vmatprep.mubr.msk.bf16.mxu1 %vm479_vm3, %v1677_v63 }
  0xbb   : > { %1356 = vmatmul.mubr.msk.bf16.vlgmr.msra.gmra.mrb[16].mxu0 %vm479_vm3, %v1684_v0 }
  0xbc   : > { %1360 = vmatmul.mubr.msk.bf16.vlgmr.msra.gmra.mrb[16].mxu1 %vm479_vm3, %v1741_v27 }
 0x167   : > { %v1275_v12 = vpop.f32.mrb[0].mxu0 }
 0x168   : > { %v1276_v37 = vpop.f32.mrb[1].mxu0 }
 0x169   : > { %v1277_v62 = vadd.f32 %v1276_v37, %v1275_v12  ;;  %v1278_v16 = vpop.f32.mrb[2].mxu0 }
 0x16a   : > { %v1279_v13 = vpop.f32.mrb[3].mxu0 }
 0x16b   : > { %v1280_v18 = vadd.f32 %v1279_v13, %v1278_v16 }
 0x16f   : > { %v1315_v20 = vpop.f32.mrb[0].mxu1 }
 0x170   : > { %v1316_v21 = vpop.f32.mrb[1].mxu1 }
 0x171   : > { %v1317_v22 = vadd.f32 %v1316_v21, %v1315_v20  ;;  %v1318_v23 = vpop.f32.mrb[2].mxu1 }
 0x172   : > { %v1319_v61 = vpop.f32.mrb[3].mxu1 }
 0x173   : > { %v1320_v25 = vadd.f32 %v1319_v61, %v1318_v23  ;;  %v975_v26 = vadd.f32 %v1317_v22, %v1277_v62  ;;  %v1251_v61 = vld [vmem:[%s1841_s2] ss:$0 sm:$0xff] }
 0x175   : > { %v978_v63 = vadd.f32 %v1320_v25, %v1280_v18 }
 0x176   : > { %v1281_v24 = vpop.f32.mrb[4].mxu0 }
 0x177   : > { %v1282_v28 = vpop.f32.mrb[5].mxu0  ;;  %v1321_v0 = vpop.f32.mrb[4].mxu1 }
 0x178   : > { %v1283_v29 = vadd.f32 %v1282_v28, %v1281_v24  ;;  %v1284_v33 = vpop.f32.mrb[6].mxu0  ;;  %v1322_v27 = vpop.f32.mrb[5].mxu1 }
 0x179   : > { %v1323_v34 = vadd.f32 %v1322_v27, %v1321_v0  ;;  %v1285_v35 = vpop.f32.mrb[7].mxu0  ;;  %v1324_v36 = vpop.f32.mrb[6].mxu1 }
 0x17a   : > { %v1286_v38 = vadd.f32 %v1285_v35, %v1284_v33  ;;  %v1325_v40 = vpop.f32.mrb[7].mxu1  ;;  %v1478_v35 = vmov 0  }
 0x17b   : > { %v1326_v41 = vadd.f32 %v1325_v40, %v1324_v36  ;;  %v983_v42 = vadd.f32 %v1323_v34, %v1283_v29  ;;  %1098 = vst.msk [vmem:[%s273_s21 + $0x8] sm:$0xf] %vm1095_vm4, %v1478_v35  ;;  %1099 = vst.msk [vmem:[%s273_s21 + $0xc] sm:$0xf] %vm1095_vm4, %v1478_v35 }
 0x17d   : > { %v986_v44 = vadd.f32 %v1326_v41, %v1286_v38 }
 0x17e   : > { %v1287_v45 = vpop.f32.mrb[8].mxu0 }
 0x17f   : > { %v1288_v46 = vpop.f32.mrb[9].mxu0  ;;  %v1327_v47 = vpop.f32.mrb[8].mxu1 }
 0x180   : > { %v1289_v49 = vadd.f32 %v1288_v46, %v1287_v45  ;;  %v1290_v52 = vpop.f32.mrb[10].mxu0  ;;  %v1328_v53 = vpop.f32.mrb[9].mxu1 }
 0x181   : > { %v1329_v54 = vadd.f32 %v1328_v53, %v1327_v47  ;;  %v1291_v55 = vpop.f32.mrb[11].mxu0  ;;  %v1330_v58 = vpop.f32.mrb[10].mxu1 }
 0x182   : > { %v1292_v10 = vadd.f32 %v1291_v55, %v1290_v52  ;;  %v1331_v59 = vpop.f32.mrb[11].mxu1 }
 0x183   : > { %v1332_v60 = vadd.f32 %v1331_v59, %v1330_v58  ;;  %v991_v15 = vadd.f32 %v1329_v54, %v1289_v49 }
 0x185   : > { %v994_v1 = vadd.f32 %v1332_v60, %v1292_v10 }
 0x186   : > { %v1293_v2 = vpop.f32.mrb[12].mxu0 }
 0x187   : > { %v1294_v32 = vpop.f32.mrb[13].mxu0  ;;  %v1333_v3 = vpop.f32.mrb[12].mxu1 }
 0x188   : > { %v1295_v48 = vadd.f32 %v1294_v32, %v1293_v2  ;;  %v1296_v19 = vpop.f32.mrb[14].mxu0  ;;  %v1334_v50 = vpop.f32.mrb[13].mxu1 }
 0x189   : > { %v1335_v4 = vadd.f32 %v1334_v50, %v1333_v3  ;;  %v1297_v57 = vpop.f32.mrb[15].mxu0  ;;  %v1336_v5 = vpop.f32.mrb[14].mxu1 }
 0x18a   : > { %v1298_v6 = vadd.f32 %v1297_v57, %v1296_v19  ;;  %v1337_v43 = vpop.f32.mrb[15].mxu1 }
 0x18b   : > { %v1338_v7 = vadd.f32 %v1337_v43, %v1336_v5  ;;  %v999_v8 = vadd.f32 %v1335_v4, %v1295_v48 }
 0x18d   : > { %v1002_v9 = vadd.f32 %v1338_v7, %v1298_v6 }
 0x18e   : > { %v1357_v51 = vpop.f32.mrb[16].mxu0 }
 0x18f   : > { %v1048_v30 = vadd.f32 %v1357_v51, %v983_v42  ;;  %v1039_v31 = vpop.f32.mrb[17].mxu0  ;;  %v1361_v17 = vpop.f32.mrb[16].mxu1 }
 0x190   : > { %v1040_v39 = vadd.f32 %v1039_v31, %v975_v26  ;;  %v1064_v11 = vadd.f32 %v1361_v17, %v999_v8  ;;  %v1358_v56 = vpop.f32.mrb[18].mxu0  ;;  %v1055_v14 = vpop.f32.mrb[17].mxu1 }
 0x191   : > { %v1051_v12 = vadd.f32 %v1358_v56, %v986_v44  ;;  %v1056_v37 = vadd.f32 %v1055_v14, %v991_v15  ;;  %v1042_v62 = vpop.f32.mrb[19].mxu0  ;;  %v1362_v16 = vpop.f32.mrb[18].mxu1 }
 0x192   : > { %v1070_v13 = vmax.f32 %v1040_v39, %v1048_v30  ;;  %v1043_v18 = vadd.f32 %v1042_v62, %v978_v63  ;;  %v1067_v20 = vadd.f32 %v1362_v16, %v1002_v9  ;;  %v1058_v21 = vpop.f32.mrb[19].mxu1 }
 0x193   : > { %v1072_v22 = vmax.f32 %v1056_v37, %v1064_v11  ;;  %v1059_v23 = vadd.f32 %v1058_v21, %v994_v1 }
 0x194   : > { %v1071_v25 = vmax.f32 %v1043_v18, %v1051_v12 }
 0x195   : > { %v1074_v26 = vmax.f32 %v1070_v13, %v1072_v22  ;;  %v1073_v24 = vmax.f32 %v1059_v23, %v1067_v20 }
 0x197   : > { %v1083_v28 = vadd.f32 %v1251_v61, %v1074_v26  ;;  %v1075_v0 = vmax.f32 %v1071_v25, %v1073_v24 }
 0x199   : > { %v1085_v29 = vmax.f32 %v1083_v28, 0.0  ;;  %v1084_v33 = vadd.f32 %v1251_v61, %v1075_v0 }
 0x19b   : > { %v1257_v63 = vpack.c.bf16 %v1085_v29, %v1085_v29  ;;  %v1086_v27 = vmax.f32 %v1084_v33, 0.0 }
 0x19d   : > { %1096 = vst.msk [vmem:[%s273_s21] sm:$0xf] %vm1095_vm4, %v1257_v63  ;;  %v1258_v34 = vpack.c.bf16 %v1086_v27, %v1086_v27 }
 0x19f   : > { %1097 = vst.msk [vmem:[%s273_s21 + $0x4] sm:$0xf] %vm1095_vm4, %v1258_v34 }
 0x1a0 PF: > { %p10_p9 = scmp.ge.s32.totalorder %s1516_s16, 4   ;;  %s1843_s12 = smov %s1471_s13 }
 0x1a1   : > { %s1844_s13 = smov %s1525_s19  ;;  %s1845_s14 = smov %s1516_s16 }
 0x1a2   :  { %12 = sbr.rel (!%p10_p9) target bundleno = 2 (0x2), region = 111 }

// kernel: naive_cnn_forward.7
= control target key start
LH: loop header
LB: loop body
LE: loop exit
PB: predicated region body
PF: predicated region fallthrough
CT: control target
= control target key end

     0   :  { %v399_v1 = vmov 0.0   ;;  %vm400_vm0 = vmmov 0   ;;  %vm245_vm1 = vcmask 523264   ;;  %vm289_vm2 = vcmask 80896   ;;  %s506_s1 = inlined_call_operand.vmem [shape: bf16[256,64], index: 1, kind: input, shape index: {}]   ;;  %s507_s0 = inlined_call_operand.vmem [shape: bf16[8,256], index: 0, kind: input, shape index: {}]   ;;  %s508_s3 = inlined_call_operand.vmem [shape: bf16[64,10], index: 3, kind: input, shape index: {}]   ;;  %s509_s2 = inlined_call_operand.vmem [shape: f32[1,64], index: 2, kind: input, shape index: {}]   ;;  %s510_s4 = inlined_call_operand.vmem [shape: f32[1,10], index: 4, kind: input, shape index: {}]   ;;  %s511_s5 = inlined_call_operand.vmem [shape: f32[8,10], index: 5, kind: output, shape index: {}]  }
   0x1   :  { %v373_v0 = vld [vmem:[%s506_s1 + $0x40] sm:$0xff]   ;;  %359 = vmatprep.subr.bf16.mxu1 %v399_v1  ;;  %v375_v3 = vld [vmem:[%s506_s1 + $0x48] sm:$0xff]   ;;  %v377_v5 = vld [vmem:[%s506_s1 + $0x50] sm:$0xff]   ;;  %367 = vmatprep.mubr.msk.bf16.mxu1 %vm400_vm0, %v399_v1 }
   0x2   :  { %v374_v2 = vld [vmem:[%s506_s1] sm:$0xff]   ;;  %332 = vmatprep.subr.bf16.mxu0 %v373_v0  ;;  %v376_v4 = vld [vmem:[%s506_s1 + $0x8] sm:$0xff]   ;;  %v378_v6 = vld [vmem:[%s506_s1 + $0x10] sm:$0xff]  }
   0x3   :  { %333 = vmatpush3.bf16.msra.mxu0 %v374_v2  ;;  %v379_v7 = vld [vmem:[%s506_s1 + $0x58] sm:$0xff]   ;;  %v381_v9 = vld [vmem:[%s506_s1 + $0x60] sm:$0xff]   ;;  %v383_v11 = vld [vmem:[%s506_s1 + $0x68] sm:$0xff]  }
   0x4   :  { %334 = vmatprep.subr.bf16.mxu0 %v375_v3  ;;  %v380_v8 = vld [vmem:[%s506_s1 + $0x18] sm:$0xff]   ;;  %v382_v10 = vld [vmem:[%s506_s1 + $0x20] sm:$0xff]   ;;  %v384_v15 = vld [vmem:[%s506_s1 + $0x28] sm:$0xff]  }
   0x5   :  { %v21_v12 = vld [vmem:[%s507_s0] sm:$0xff]  ;;  %v385_v16 = vld [vmem:[%s506_s1 + $0x70] sm:$0xff]   ;;  %v392_v17 = vld [vmem:[%s508_s3 + $0x8] sm:$0xff]  }
   0x6   :  { %v309_v13 = vcombine.high %v21_v12, %v21_v12  ;;  %v391_v14 = vld [vmem:[%s508_s3] sm:$0xff]   ;;  %v386_v18 = vld [vmem:[%s506_s1 + $0x30] sm:$0xff]   ;;  %v387_v19 = vld [vmem:[%s506_s1 + $0x78] sm:$0xff]   ;;  %v308_v21 = vcombine.low %v21_v12, %v21_v12 }
   0x7   :  { %335 = vmatpush3.bf16.msra.mxu0 %v376_v4  ;;  %360 = vmatpush3.bf16.msra.mxu1 %v391_v14  ;;  %v388_v20 = vld [vmem:[%s506_s1 + $0x38] sm:$0xff]   ;;  %v393_v22 = vld [vmem:[%s508_s3 + $0x10] sm:$0xff]   ;;  %v307_v25 = vld [vmem:[%s509_s2] ss:$0 sm:$0xff] }
   0x8   :  { %336 = vmatprep.subr.bf16.mxu0 %v377_v5  ;;  %196 = vmatprep.mubr.bf16.mxu0 %v309_v13  ;;  %v394_v23 = vld [vmem:[%s508_s3 + $0x18] sm:$0xff]   ;;  %v326_v33 = vld [vmem:[%s510_s4] ss:$0 sm:$0xff] }
   0x9   :  { %361 = vmatprep.subr.bf16.mxu1 %v399_v1 }
   0xb   :  { %337 = vmatpush3.bf16.msra.mxu0 %v378_v6  ;;  %362 = vmatpush3.bf16.msra.mxu1 %v392_v17 }
   0xc   :  { %338 = vmatprep.subr.bf16.mxu0 %v379_v7  ;;  %363 = vmatprep.subr.bf16.mxu1 %v399_v1 }
   0xf   :  { %339 = vmatpush3.bf16.msra.mxu0 %v380_v8  ;;  %364 = vmatpush3.bf16.msra.mxu1 %v393_v22 }
  0x10   :  { %340 = vmatprep.subr.bf16.mxu0 %v381_v9  ;;  %365 = vmatprep.subr.bf16.mxu1 %v399_v1 }
  0x13   :  { %341 = vmatpush3.bf16.msra.mxu0 %v382_v10  ;;  %366 = vmatpush3.bf16.msra.mxu1 %v394_v23 }
  0x14   :  { %342 = vmatprep.subr.bf16.mxu0 %v383_v11 }
  0x17   :  { %343 = vmatpush3.bf16.msra.mxu0 %v384_v15 }
  0x18   :  { %344 = vmatprep.subr.bf16.mxu0 %v385_v16 }
  0x1b   :  { %345 = vmatpush3.bf16.msra.mxu0 %v386_v18 }
  0x1c   :  { %346 = vmatprep.subr.bf16.mxu0 %v387_v19 }
  0x1f   :  { %347 = vmatpush3.bf16.msra.mxu0 %v388_v20 }
  0x22   :  { %197 = vmatmul.mubr.bf16.vlgmr.msra.gmra.mrb[0].mxu0 %v308_v21 }
  0xf5   :  { %v348_v24 = vpop.f32.mrb[0].mxu0 }
  0xf6   :  { %v349_v26 = vpop.f32.mrb[1].mxu0 }
  0xf7   :  { %v350_v27 = vadd.f32 %v349_v26, %v348_v24  ;;  %v351_v28 = vpop.f32.mrb[2].mxu0 }
  0xf8   :  { %v352_v29 = vpop.f32.mrb[3].mxu0 }
  0xf9   :  { %v199_v30 = vadd.f32 %v350_v27, %v307_v25 }
  0xfb   :  { %v204_v31 = vmax.f32 %v199_v30, 0.0 }
  0xfd   :  { %v205_v32 = vpack.c.bf16 %v204_v31, %v204_v31 }
  0xff   :  { %368 = vmatmul.mubr.msk.bf16.vlgmr.msra.gmra.mrb[0].mxu1 %vm245_vm1, %v205_v32 }
 0x1d2   :  { %v283_v34 = vpop.f32.mrb[0].mxu1 }
 0x1d3   :  { %v284_v35 = vadd.f32 %v326_v33, %v283_v34  ;;  %v369_v36 = vpop.f32.mrb[1].mxu1 }
 0x1d4   :  { %v286_v37 = vpop.f32.mrb[2].mxu1 }
 0x1d5   :  { %v370_v38 = vpop.f32.mrb[3].mxu1  ;;  %v290_v39 = vsel %vm289_vm2, %v284_v35, -inf }
 0x1d6   :  { %291 = vmax.xlane.f32.xlu0 %v290_v39 }
 0x263   :  { %v292_v40 = vpop.xlane.xlu0 %291 }
 0x264   :  { %v293_v41 = vsub.f32 %v284_v35, %v292_v40 }
 0x266   :  { %v294_v42 = vmul.f32 1.442695, %v293_v41 }
 0x268   :  { %395 = vpow2.f32 %v294_v42 }
 0x272   :  { %v396_v43 = vpop.eup %395 }
 0x273   :  { %v296_v44 = vsel %vm289_vm2, %v396_v43, 0.0 }
 0x274   :  { %297 = vadd.xlane.f32.xlu0 %v296_v44 }
 0x301   :  { %v298_v45 = vpop.xlane.xlu0 %297 }
 0x302   :  { %397 = vlog2.f32 %v298_v45 }
 0x30c   :  { %v398_v46 = vpop.eup %397 }
 0x30d   :  { %v300_v47 = vmul.f32 0.6931472, %v398_v46 }
 0x30f   :  { %v301_v48 = vsub.f32 %v293_v41, %v300_v47 }
 0x311   :  { %302 = vst.msk [vmem:[%s511_s5] sm:$0xff] %vm289_vm2, %v301_v48 }

// kernel: naive_cnn_forward.4
= control target key start
LH: loop header
LB: loop body
LE: loop exit
PB: predicated region body
PF: predicated region fallthrough
CT: control target
= control target key end

     0   :  { %s5846_s12 = smov 0   ;;  %s5848_s13 = smov 0   ;;  %s9908_s0 = inlined_call_operand.vmem [shape: bf16[4,576,3], index: 0, kind: input, shape index: {}]   ;;  %s9909_s1 = inlined_call_operand.vmem [shape: bf16[27,32], index: 1, kind: input, shape index: {}]   ;;  %s9910_s2 = inlined_call_operand.vmem [shape: f32[1,32], index: 2, kind: input, shape index: {}]   ;;  %s9911_s3 = inlined_call_operand.vmem [shape: bf16[576,32], index: 3, kind: output, shape index: {}]  }
   0x1   :  { %s5850_s14 = smov 0  }
   0x2 LB: > { %s5026_s15 = sadd.s32 4294967295, %s5814_s14   ;;  %s5863_s16 = sadd.s32 1, %s5814_s14   ;;  %s5814_s14 = sphi %s5850_s14, %s10970_s14   ;;  %s5810_s13 = sphi %s5848_s13, %s10969_s13   ;;  %s5806_s12 = sphi %s5846_s12, %s10968_s12  }
   0x3   : > { %s17_s17 = ssub.s32 %s5814_s14, %s5863_s16  ;;  %s20_s18 = sadd.s32 1, %s5810_s13 }
   0x4   : > { %p18_p0 = scmp.eq.s32.totalorder %s17_s17, 0  ;;  %p27_p1 = scmp.ne.s32.totalorder %s5810_s13, %s5806_s12 }
   0x5   : > { %p28_p2 = scmp.eq.s32.totalorder %s5814_s14, 0  ;;  %p5029_p4 = scmp.ge.s32.totalorder %s5814_s14, 2 }
   0x6   : > { %s5872_s19 = scalar_select %p18_p0, %s5810_s13, %s20_s18  }
   0x7   : > { %p29_p3 = por %p28_p2, %p27_p1  ;;  %127 = sbr.rel (%p5029_p4) target bundleno = 55 (0x37), region = 24 }
   0xe   : > { %130 = sbr.rel (!%p29_p3) target bundleno = 55 (0x37), region = 28  ;;  %s132_s20 = sand.u32 (%p29_p3), 1, %s5810_s13  }
   0xf   : > { %s5318_s21 = smul.u32 (%p29_p3), 144, %s5814_s14 }
  0x10   : > { %s5553_s22 = smul.u32 (%p29_p3), 576, %s132_s20 }
  0x11   : > { %s5880_s25 = scalar_lea.vmem (%p29_p3), %s9908_s0, %s5318_s21 }
  0x12   : > { %v153_v0 = vld [vmem:[%s5880_s25] sm:$0xff] (%p29_p3)   ;;  %v157_v1 = vld [vmem:[%s5880_s25 + $0x8] sm:$0xff] (%p29_p3)   ;;  %v161_v2 = vld [vmem:[%s5880_s25 + $0x10] sm:$0xff] (%p29_p3)   ;;  %s5885_s26 = scalar_lea.vmem (%p29_p3), [#allocation2], %s5553_s22 }
  0x13   : > { %154 = vst [vmem:[%s5885_s26] sm:$0xff] (%p29_p3), %v153_v0   ;;  %158 = vst [vmem:[%s5885_s26 + $0x8] sm:$0xff] (%p29_p3), %v157_v1   ;;  %v165_v3 = vld [vmem:[%s5880_s25 + $0x18] sm:$0xff] (%p29_p3)   ;;  %v169_v4 = vld [vmem:[%s5880_s25 + $0x20] sm:$0xff] (%p29_p3)  }
  0x14   : > { %162 = vst [vmem:[%s5885_s26 + $0x10] sm:$0xff] (%p29_p3), %v161_v2   ;;  %v173_v5 = vld [vmem:[%s5880_s25 + $0x28] sm:$0xff] (%p29_p3)   ;;  %166 = vst [vmem:[%s5885_s26 + $0x18] sm:$0xff] (%p29_p3), %v165_v3   ;;  %v177_v6 = vld [vmem:[%s5880_s25 + $0x30] sm:$0xff] (%p29_p3)  }
  0x15   : > { %170 = vst [vmem:[%s5885_s26 + $0x20] sm:$0xff] %v169_v4   ;;  %174 = vst [vmem:[%s5885_s26 + $0x28] sm:$0xff] %v173_v5   ;;  %v181_v7 = vld [vmem:[%s5880_s25 + $0x38] sm:$0xff]   ;;  %v185_v8 = vld [vmem:[%s5880_s25 + $0x40] sm:$0xff]  }
  0x16   : > { %178 = vst [vmem:[%s5885_s26 + $0x30] sm:$0xff] %v177_v6   ;;  %182 = vst [vmem:[%s5885_s26 + $0x38] sm:$0xff] %v181_v7   ;;  %v189_v9 = vld [vmem:[%s5880_s25 + $0x48] sm:$0xff]   ;;  %v193_v10 = vld [vmem:[%s5880_s25 + $0x50] sm:$0xff]  }
  0x17   : > { %186 = vst [vmem:[%s5885_s26 + $0x40] sm:$0xff] %v185_v8   ;;  %v197_v11 = vld [vmem:[%s5880_s25 + $0x58] sm:$0xff]   ;;  %190 = vst [vmem:[%s5885_s26 + $0x48] sm:$0xff] %v189_v9   ;;  %v201_v12 = vld [vmem:[%s5880_s25 + $0x60] sm:$0xff]  }
  0x18   : > { %194 = vst [vmem:[%s5885_s26 + $0x50] sm:$0xff] %v193_v10   ;;  %198 = vst [vmem:[%s5885_s26 + $0x58] sm:$0xff] %v197_v11   ;;  %v205_v13 = vld [vmem:[%s5880_s25 + $0x68] sm:$0xff]   ;;  %v209_v14 = vld [vmem:[%s5880_s25 + $0x70] sm:$0xff]  }
  0x19   : > { %202 = vst [vmem:[%s5885_s26 + $0x60] sm:$0xff] %v201_v12   ;;  %206 = vst [vmem:[%s5885_s26 + $0x68] sm:$0xff] %v205_v13   ;;  %v213_v15 = vld [vmem:[%s5880_s25 + $0x78] sm:$0xff]   ;;  %v217_v16 = vld [vmem:[%s5880_s25 + $0x80] sm:$0xff]  }
  0x1a   : > { %210 = vst [vmem:[%s5885_s26 + $0x70] sm:$0xff] %v209_v14   ;;  %v221_v17 = vld [vmem:[%s5880_s25 + $0x88] sm:$0xff]   ;;  %214 = vst [vmem:[%s5885_s26 + $0x78] sm:$0xff] %v213_v15   ;;  %v225_v18 = vld [vmem:[%s5880_s25 + $0x120] sm:$0xff]  }
  0x1b   : > { %218 = vst [vmem:[%s5885_s26 + $0x80] sm:$0xff] %v217_v16   ;;  %222 = vst [vmem:[%s5885_s26 + $0x88] sm:$0xff] %v221_v17   ;;  %v229_v19 = vld [vmem:[%s5880_s25 + $0x128] sm:$0xff]   ;;  %v233_v20 = vld [vmem:[%s5880_s25 + $0x130] sm:$0xff]  }
  0x1c   : > { %226 = vst [vmem:[%s5885_s26 + $0x90] sm:$0xff] %v225_v18   ;;  %230 = vst [vmem:[%s5885_s26 + $0x98] sm:$0xff] %v229_v19   ;;  %v237_v21 = vld [vmem:[%s5880_s25 + $0x138] sm:$0xff]   ;;  %v241_v22 = vld [vmem:[%s5880_s25 + $0x140] sm:$0xff]  }
  0x1d   : > { %234 = vst [vmem:[%s5885_s26 + $0xa0] sm:$0xff] %v233_v20   ;;  %v245_v23 = vld [vmem:[%s5880_s25 + $0x148] sm:$0xff]   ;;  %238 = vst [vmem:[%s5885_s26 + $0xa8] sm:$0xff] %v237_v21   ;;  %v249_v24 = vld [vmem:[%s5880_s25 + $0x150] sm:$0xff]  }
  0x1e   : > { %242 = vst [vmem:[%s5885_s26 + $0xb0] sm:$0xff] %v241_v22   ;;  %246 = vst [vmem:[%s5885_s26 + $0xb8] sm:$0xff] %v245_v23   ;;  %v253_v25 = vld [vmem:[%s5880_s25 + $0x158] sm:$0xff]   ;;  %v257_v26 = vld [vmem:[%s5880_s25 + $0x160] sm:$0xff]  }
  0x1f   : > { %250 = vst [vmem:[%s5885_s26 + $0xc0] sm:$0xff] %v249_v24   ;;  %254 = vst [vmem:[%s5885_s26 + $0xc8] sm:$0xff] %v253_v25   ;;  %v261_v27 = vld [vmem:[%s5880_s25 + $0x168] sm:$0xff]   ;;  %v265_v28 = vld [vmem:[%s5880_s25 + $0x170] sm:$0xff]  }
  0x20   : > { %258 = vst [vmem:[%s5885_s26 + $0xd0] sm:$0xff] %v257_v26   ;;  %v269_v29 = vld [vmem:[%s5880_s25 + $0x178] sm:$0xff]   ;;  %262 = vst [vmem:[%s5885_s26 + $0xd8] sm:$0xff] %v261_v27   ;;  %v273_v30 = vld [vmem:[%s5880_s25 + $0x180] sm:$0xff]  }
  0x21   : > { %266 = vst [vmem:[%s5885_s26 + $0xe0] sm:$0xff] %v265_v28   ;;  %270 = vst [vmem:[%s5885_s26 + $0xe8] sm:$0xff] %v269_v29   ;;  %v277_v31 = vld [vmem:[%s5880_s25 + $0x188] sm:$0xff]   ;;  %v281_v32 = vld [vmem:[%s5880_s25 + $0x190] sm:$0xff]  }
  0x22   : > { %274 = vst [vmem:[%s5885_s26 + $0xf0] sm:$0xff] %v273_v30   ;;  %278 = vst [vmem:[%s5885_s26 + $0xf8] sm:$0xff] %v277_v31   ;;  %v285_v33 = vld [vmem:[%s5880_s25 + $0x198] sm:$0xff]   ;;  %v289_v34 = vld [vmem:[%s5880_s25 + $0x1a0] sm:$0xff]  }
  0x23   : > { %282 = vst [vmem:[%s5885_s26 + $0x100] sm:$0xff] %v281_v32   ;;  %v293_v35 = vld [vmem:[%s5880_s25 + $0x1a8] sm:$0xff]   ;;  %286 = vst [vmem:[%s5885_s26 + $0x108] sm:$0xff] %v285_v33   ;;  %v297_v36 = vld [vmem:[%s5880_s25 + $0x240] sm:$0xff]  }
  0x24   : > { %290 = vst [vmem:[%s5885_s26 + $0x110] sm:$0xff] %v289_v34   ;;  %294 = vst [vmem:[%s5885_s26 + $0x118] sm:$0xff] %v293_v35   ;;  %v301_v37 = vld [vmem:[%s5880_s25 + $0x248] sm:$0xff]   ;;  %v305_v38 = vld [vmem:[%s5880_s25 + $0x250] sm:$0xff]  }
  0x25   : > { %298 = vst [vmem:[%s5885_s26 + $0x120] sm:$0xff] %v297_v36   ;;  %302 = vst [vmem:[%s5885_s26 + $0x128] sm:$0xff] %v301_v37   ;;  %v309_v39 = vld [vmem:[%s5880_s25 + $0x258] sm:$0xff]   ;;  %v313_v40 = vld [vmem:[%s5880_s25 + $0x260] sm:$0xff]  }
  0x26   : > { %306 = vst [vmem:[%s5885_s26 + $0x130] sm:$0xff] %v305_v38   ;;  %v317_v41 = vld [vmem:[%s5880_s25 + $0x268] sm:$0xff]   ;;  %310 = vst [vmem:[%s5885_s26 + $0x138] sm:$0xff] %v309_v39   ;;  %v321_v42 = vld [vmem:[%s5880_s25 + $0x270] sm:$0xff]  }
  0x27   : > { %314 = vst [vmem:[%s5885_s26 + $0x140] sm:$0xff] %v313_v40   ;;  %318 = vst [vmem:[%s5885_s26 + $0x148] sm:$0xff] %v317_v41   ;;  %v325_v43 = vld [vmem:[%s5880_s25 + $0x278] sm:$0xff]   ;;  %v329_v44 = vld [vmem:[%s5880_s25 + $0x280] sm:$0xff]  }
  0x28   : > { %322 = vst [vmem:[%s5885_s26 + $0x150] sm:$0xff] %v321_v42   ;;  %326 = vst [vmem:[%s5885_s26 + $0x158] sm:$0xff] %v325_v43   ;;  %v333_v45 = vld [vmem:[%s5880_s25 + $0x288] sm:$0xff]   ;;  %v337_v46 = vld [vmem:[%s5880_s25 + $0x290] sm:$0xff]  }
  0x29   : > { %330 = vst [vmem:[%s5885_s26 + $0x160] sm:$0xff] %v329_v44   ;;  %v341_v47 = vld [vmem:[%s5880_s25 + $0x298] sm:$0xff]   ;;  %334 = vst [vmem:[%s5885_s26 + $0x168] sm:$0xff] %v333_v45   ;;  %v345_v48 = vld [vmem:[%s5880_s25 + $0x2a0] sm:$0xff]  }
  0x2a   : > { %338 = vst [vmem:[%s5885_s26 + $0x170] sm:$0xff] %v337_v46   ;;  %342 = vst [vmem:[%s5885_s26 + $0x178] sm:$0xff] %v341_v47   ;;  %v349_v49 = vld [vmem:[%s5880_s25 + $0x2a8] sm:$0xff]   ;;  %v353_v50 = vld [vmem:[%s5880_s25 + $0x2b0] sm:$0xff]  }
  0x2b   : > { %346 = vst [vmem:[%s5885_s26 + $0x180] sm:$0xff] %v345_v48   ;;  %350 = vst [vmem:[%s5885_s26 + $0x188] sm:$0xff] %v349_v49   ;;  %v357_v51 = vld [vmem:[%s5880_s25 + $0x2b8] sm:$0xff]   ;;  %v361_v52 = vld [vmem:[%s5880_s25 + $0x2c0] sm:$0xff]  }
  0x2c   : > { %354 = vst [vmem:[%s5885_s26 + $0x190] sm:$0xff] %v353_v50   ;;  %v365_v53 = vld [vmem:[%s5880_s25 + $0x2c8] sm:$0xff]   ;;  %358 = vst [vmem:[%s5885_s26 + $0x198] sm:$0xff] %v357_v51   ;;  %v369_v54 = vld [vmem:[%s5880_s25 + $0x360] sm:$0xff]  }
  0x2d   : > { %362 = vst [vmem:[%s5885_s26 + $0x1a0] sm:$0xff] %v361_v52   ;;  %366 = vst [vmem:[%s5885_s26 + $0x1a8] sm:$0xff] %v365_v53   ;;  %v373_v55 = vld [vmem:[%s5880_s25 + $0x368] sm:$0xff]   ;;  %v377_v56 = vld [vmem:[%s5880_s25 + $0x370] sm:$0xff]  }
  0x2e   : > { %370 = vst [vmem:[%s5885_s26 + $0x1b0] sm:$0xff] %v369_v54   ;;  %374 = vst [vmem:[%s5885_s26 + $0x1b8] sm:$0xff] %v373_v55   ;;  %v381_v57 = vld [vmem:[%s5880_s25 + $0x378] sm:$0xff]   ;;  %v385_v58 = vld [vmem:[%s5880_s25 + $0x380] sm:$0xff]  }
  0x2f   : > { %378 = vst [vmem:[%s5885_s26 + $0x1c0] sm:$0xff] %v377_v56   ;;  %v389_v59 = vld [vmem:[%s5880_s25 + $0x388] sm:$0xff]   ;;  %382 = vst [vmem:[%s5885_s26 + $0x1c8] sm:$0xff] %v381_v57   ;;  %v393_v60 = vld [vmem:[%s5880_s25 + $0x390] sm:$0xff]  }
  0x30   : > { %386 = vst [vmem:[%s5885_s26 + $0x1d0] sm:$0xff] %v385_v58   ;;  %390 = vst [vmem:[%s5885_s26 + $0x1d8] sm:$0xff] %v389_v59   ;;  %v397_v61 = vld [vmem:[%s5880_s25 + $0x398] sm:$0xff]   ;;  %v401_v62 = vld [vmem:[%s5880_s25 + $0x3a0] sm:$0xff]  }
  0x31   : > { %394 = vst [vmem:[%s5885_s26 + $0x1e0] sm:$0xff] %v393_v60   ;;  %398 = vst [vmem:[%s5885_s26 + $0x1e8] sm:$0xff] %v397_v61   ;;  %v405_v63 = vld [vmem:[%s5880_s25 + $0x3a8] sm:$0xff]   ;;  %v409_v0 = vld [vmem:[%s5880_s25 + $0x3b0] sm:$0xff]  }
  0x32   : > { %402 = vst [vmem:[%s5885_s26 + $0x1f0] sm:$0xff] %v401_v62   ;;  %v413_v1 = vld [vmem:[%s5880_s25 + $0x3b8] sm:$0xff]   ;;  %406 = vst [vmem:[%s5885_s26 + $0x1f8] sm:$0xff] %v405_v63   ;;  %v417_v2 = vld [vmem:[%s5880_s25 + $0x3c0] sm:$0xff]  }
  0x33   : > { %410 = vst [vmem:[%s5885_s26 + $0x200] sm:$0xff] %v409_v0   ;;  %414 = vst [vmem:[%s5885_s26 + $0x208] sm:$0xff] %v413_v1   ;;  %v421_v3 = vld [vmem:[%s5880_s25 + $0x3c8] sm:$0xff]   ;;  %v425_v4 = vld [vmem:[%s5880_s25 + $0x3d0] sm:$0xff]  }
  0x34   : > { %418 = vst [vmem:[%s5885_s26 + $0x210] sm:$0xff] %v417_v2   ;;  %422 = vst [vmem:[%s5885_s26 + $0x218] sm:$0xff] %v421_v3   ;;  %v429_v5 = vld [vmem:[%s5880_s25 + $0x3d8] sm:$0xff]   ;;  %v433_v6 = vld [vmem:[%s5880_s25 + $0x3e0] sm:$0xff]  }
  0x35   : > { %426 = vst [vmem:[%s5885_s26 + $0x220] sm:$0xff] %v425_v4   ;;  %v437_v7 = vld [vmem:[%s5880_s25 + $0x3e8] sm:$0xff]   ;;  %430 = vst [vmem:[%s5885_s26 + $0x228] sm:$0xff] %v429_v5  }
  0x36   : > { %434 = vst [vmem:[%s5885_s26 + $0x230] sm:$0xff] %v433_v6   ;;  %438 = vst [vmem:[%s5885_s26 + $0x238] sm:$0xff] %v437_v7  }
  0x37 PF: > { %p5031_p5 = scmp.ge.s32.totalorder %s5814_s14, 1  ;;  %p750_p6 = scmp.lt.s32.totalorder %s5814_s14, 3 }
  0x39   : > { %p751_p7 = pnand %p5031_p5, %p750_p6 }
  0x3b   : > { %754 = sbr.rel (%p751_p7) target bundleno = 1435 (0x59b), region = 69 }
  0x42   : > { %s757_s27 = sand.u32 1, %s5806_s12   ;;  %s5816_s30 = smov 3   ;;  %vm1125_vm0 = vsmask.f32 7424  ;;  %vm4080_vm1 = vcmask 1044480   ;;  %vm4081_vm2 = vcmask 1045504  }
  0x43   : > { %s5554_s28 = smul.u32 576, %s757_s27  ;;  %s5817_s4 = smov 6   ;;  %vm1803_vm3 = vcmask 23552   ;;  %vm1836_vm4 = vcmask 48128   ;;  %vm1869_vm5 = vcmask 72704   ;;  %vm1902_vm6 = vcmask 97280  }
  0x44   : > { %s5818_s5 = smov 9   ;;  %s5819_s6 = smov 12   ;;  %vm1935_vm7 = vcmask 121856   ;;  %vm1968_vm8 = vcmask 146432   ;;  %vm2001_vm9 = vcmask 171008   ;;  %vm2034_vm10 = vcmask 195584  }
  0x45   : > { %s6031_s29 = scalar_lea.vmem [#allocation2], %s5554_s28  ;;  %s5820_s7 = smov 15   ;;  %vm3951_vm11 = vcmask 220160   ;;  %vm4927_vm12 = vcmask 257024  }
  0x46   : > { %v5589_v8 = vld [vmem:[%s6031_s29 + $0xa0] sm:$0xff]   ;;  %v5590_v9 = vld [vmem:[%s6031_s29 + $0x90] sm:$0xff]   ;;  %v5591_v10 = vld [vmem:[%s6031_s29 + $0xa8] sm:$0xff]   ;;  %s5821_s8 = smov 18   ;;  %s5822_s9 = smov 21  }
  0x47   : > { %1094 = vrot.lane.b32.xlu1 %v5589_v8, %s5816_s30  ;;  %1090 = vrot.lane.b32.xlu0 %v5590_v9, %s5816_s30  ;;  %v6039_v11 = vld [vmem:[%s6031_s29 + $0x98] sm:$0xff]   ;;  %v6048_v13 = vld [vmem:[%s6031_s29 + $0xb0] sm:$0xff]   ;;  %s5824_s18 = smov 24   ;;  %s781_s20 = smul.u32 36, %s5026_s15 }
  0x48   : > { %v6043_v12 = vld [vmem:[%s6031_s29 + $0xb8] sm:$0xff]   ;;  %v6053_v14 = vld [vmem:[%s6031_s29 + $0xc8] sm:$0xff]   ;;  %v6058_v15 = vld [vmem:[%s6031_s29 + $0xc0] sm:$0xff]  }
  0x49   : > { %v6063_v16 = vld [vmem:[%s6031_s29 + $0xd8] sm:$0xff]   ;;  %v6068_v17 = vld [vmem:[%s6031_s29 + $0xd0] sm:$0xff]   ;;  %v6071_v18 = vld [vmem:[%s6031_s29 + $0xe8] sm:$0xff]   ;;  %p782_p8 = scmp.lt.s32.totalorder %s781_s20, 71 }
  0x4a   : > { %v6074_v19 = vld [vmem:[%s6031_s29 + $0x8] sm:$0xff]   ;;  %v6077_v20 = vld [vmem:[%s6031_s29 + $0x10] sm:$0xff]   ;;  %v5607_v21 = vld [vmem:[%s6031_s29] sm:$0xff]  }
  0x4b   : > { %1096 = vrot.lane.b32.xlu1 %v5591_v10, %s5816_s30  ;;  %1092 = vrot.lane.b32.xlu0 %v6039_v11, %s5816_s30  ;;  %v6085_v22 = vld [vmem:[%s6031_s29 + $0xe0] sm:$0xff]   ;;  %v1134_v23 = vshll.u32 %v6074_v19, 16  ;;  %v6089_v24 = vld [vmem:[%s6031_s29 + $0x18] sm:$0xff]   ;;  %v1129_v25 = vshll.u32 %v5607_v21, 16  ;;  %v1138_v29 = vshrl.u32 %v6074_v19, 16  ;;  %v1142_v30 = vshll.u32 %v6077_v20, 16 }
  0x4c   : > { %v6092_v26 = vld [vmem:[%s6031_s29 + $0xf8] sm:$0xff]   ;;  %v6095_v27 = vld [vmem:[%s6031_s29 + $0xf0] sm:$0xff]   ;;  %v6102_v31 = vld [vmem:[%s6031_s29 + $0x28] sm:$0xff]   ;;  %v1150_v33 = vshll.u32 %v6089_v24, 16  ;;  %v1127_v35 = vshrl.u32 %v5607_v21, 16  ;;  %v1154_v44 = vshrl.u32 %v6089_v24, 16 }
  0x4d   : > { %v1136_v28 = vrot.slane %v1134_v23, 1  ;;  %v6107_v32 = vld [vmem:[%s6031_s29 + $0x20] sm:$0xff]   ;;  %v6111_v34 = vld [vmem:[%s6031_s29 + $0x108] sm:$0xff]   ;;  %v1131_v36 = vrot.slane %v1129_v25, 1  ;;  %v6114_v37 = vld [vmem:[%s6031_s29 + $0x30] sm:$0xff]   ;;  %v1166_v38 = vshll.u32 %v6102_v31, 16 }
  0x4e   : > { %v1144_v39 = vrot.slane %v1142_v30, 1  ;;  %v6120_v40 = vld [vmem:[%s6031_s29 + $0x38] sm:$0xff]   ;;  %v6125_v41 = vld [vmem:[%s6031_s29 + $0x100] sm:$0xff]   ;;  %v1152_v43 = vrot.slane %v1150_v33, 1  ;;  %v1158_v45 = vshll.u32 %v6107_v32, 16  ;;  %v1146_v47 = vshrl.u32 %v6077_v20, 16 }
  0x4f   : > { %1100 = vrot.lane.b32.xlu1 %v6043_v12, %s5816_s30  ;;  %1098 = vrot.lane.b32.xlu0 %v6048_v13, %s5816_s30  ;;  %v1140_v42 = vor.u32 %v1138_v29, %v1136_v28  ;;  %v1132_v46 = vor.u32 %v1131_v36, %v1127_v35  ;;  %v1168_v48 = vrot.slane %v1166_v38, 1  ;;  %v1170_v49 = vshrl.u32 %v6102_v31, 16  ;;  %v6133_v51 = vld [vmem:[%s6031_s29 + $0x40] sm:$0xff]   ;;  %v6139_v53 = vld [vmem:[%s6031_s29 + $0x48] sm:$0xff]   ;;  %s10972_s20 = smov (!%p782_p8, %s781_s20), 71 }
  0x50   : > { %v1174_v50 = vshll.u32 %v6114_v37, 16  ;;  %v1182_v52 = vshll.u32 %v6120_v40, 16  ;;  %v1156_v55 = vor.u32 %v1154_v44, %v1152_v43  ;;  %v1160_v56 = vrot.slane %v1158_v45, 1  ;;  %v6147_v57 = vld [vmem:[%s6031_s29 + $0x50] sm:$0xff]   ;;  %v6165_v5 = vld [vmem:[%s6031_s29 + $0x58] sm:$0xff]   ;;  %v6172_v9 = vld [vmem:[%s6031_s29 + $0x60] sm:$0xff]  }
  0x51   : > { %v6144_v54 = vsel %vm1125_vm0, %v1140_v42, %v1144_v39  ;;  %v6150_v58 = vsel %vm1125_vm0, %v1132_v46, %v1136_v28  ;;  %v1148_v59 = vor.u32 %v1146_v47, %v1144_v39  ;;  %v1162_v60 = vshrl.u32 %v6107_v32, 16  ;;  %v6175_v10 = vld [vmem:[%s6031_s29 + $0x68] sm:$0xff]   ;;  %s5032_s21 = sshll.u32 %s10972_s20, 2 }
  0x52   : > { %10173 = vst [vmem:[#allocation3_spill] sm:$0xff] %v6144_v54  ;;  %10174 = vst [vmem:[#allocation4_spill] sm:$0xff] %v6150_v58  ;;  %v1172_v61 = vor.u32 %v1170_v49, %v1168_v48  ;;  %v1186_v62 = vshrl.u32 %v6120_v40, 16  ;;  %v1176_v63 = vrot.slane %v1174_v50, 1  ;;  %v1184_v0 = vrot.slane %v1182_v52, 1  ;;  %s9680_s24 = scalar_lea.vmem %s9911_s3, %s5032_s21 }
  0x53   : > { %1104 = vrot.lane.b32.xlu1 %v6053_v14, %s5816_s30  ;;  %1102 = vrot.lane.b32.xlu0 %v6058_v15, %s5816_s30  ;;  %v1190_v1 = vshll.u32 %v6133_v51, 16  ;;  %v1198_v2 = vshll.u32 %v6139_v53, 16  ;;  %v6161_v3 = vsel %vm1125_vm0, %v1156_v55, %v1160_v56  ;;  %v1206_v4 = vshll.u32 %v6147_v57, 16 }
  0x54   : > { %10175 = vst [vmem:[#allocation5_spill] sm:$0xff] %v6161_v3  ;;  %v6168_v6 = vsel %vm1125_vm0, %v1148_v59, %v1152_v43  ;;  %v1164_v7 = vor.u32 %v1162_v60, %v1160_v56  ;;  %v1178_v8 = vshrl.u32 %v6114_v37, 16  ;;  %v6180_v21 = vsel %vm1125_vm0, %v1172_v61, %v1176_v63  ;;  %v6193_v43 = vld [vmem:[%s6031_s29 + $0x70] sm:$0xff]   ;;  %v5621_v56 = vld [vmem:[%s6031_s29 + $0x80] ss:$0 sps:$4 sm:$0x11]  }
  0x55   : > { %10176 = vst [vmem:[#allocation6_spill] sm:$0xff] %v6168_v6  ;;  %10177 = vst [vmem:[#allocation7_spill] sm:$0xff] %v6180_v21  ;;  %v1188_v23 = vor.u32 %v1186_v62, %v1184_v0  ;;  %v1202_v25 = vshrl.u32 %v6139_v53, 16  ;;  %v1194_v28 = vshrl.u32 %v6133_v51, 16  ;;  %v1192_v29 = vrot.slane %v1190_v1, 1 }
  0x56   : > { %v1200_v30 = vrot.slane %v1198_v2, 1  ;;  %v1208_v33 = vrot.slane %v1206_v4, 1  ;;  %v1214_v35 = vshll.u32 %v6165_v5, 16  ;;  %v6188_v36 = vsel %vm1125_vm0, %v1164_v7, %v1168_v48  ;;  %v6204_v48 = vld [vmem:[%s6031_s29 + $0x78] sm:$0xff]  }
  0x57   : > { %1108 = vrot.lane.b32.xlu1 %v6063_v16, %s5816_s30  ;;  %1106 = vrot.lane.b32.xlu0 %v6068_v17, %s5816_s30  ;;  %10178 = vst [vmem:[#allocation8_spill] sm:$0xff] %v6188_v36  ;;  %v1180_v38 = vor.u32 %v1178_v8, %v1176_v63  ;;  %v1218_v39 = vshrl.u32 %v6165_v5, 16  ;;  %v1222_v42 = vshll.u32 %v6172_v9, 16  ;;  %v1230_v44 = vshll.u32 %v6175_v10, 16 }
  0x58   : > { %v6201_v45 = vsel %vm1125_vm0, %v1188_v23, %v1192_v29  ;;  %v1204_v46 = vor.u32 %v1202_v25, %v1200_v30  ;;  %v1216_v47 = vrot.slane %v1214_v35, 1  ;;  %v1196_v50 = vor.u32 %v1194_v28, %v1192_v29 }
  0x59   : > { %10179 = vst [vmem:[#allocation9_spill] sm:$0xff] %v6201_v45  ;;  %v6207_v49 = vsel %vm1125_vm0, %v1180_v38, %v1184_v0  ;;  %v1210_v52 = vshrl.u32 %v6147_v57, 16  ;;  %v1224_v55 = vrot.slane %v1222_v42, 1  ;;  %v1234_v59 = vshrl.u32 %v6175_v10, 16 }
  0x5a   : > { %10180 = vst [vmem:[#allocation10_spill] sm:$0xff] %v6207_v49  ;;  %v1238_v60 = vshll.u32 %v6193_v43, 16  ;;  %v6218_v61 = vsel %vm1125_vm0, %v1204_v46, %v1208_v33  ;;  %v1220_v62 = vor.u32 %v1218_v39, %v1216_v47  ;;  %v1232_v63 = vrot.slane %v1230_v44, 1 }
  0x5b   : > { %1112 = vrot.lane.b32.xlu1 %v6071_v18, %s5816_s30  ;;  %1110 = vrot.lane.b32.xlu0 %v6085_v22, %s5816_s30  ;;  %10181 = vst [vmem:[#allocation11_spill] sm:$0xff] %v6218_v61  ;;  %v1246_v0 = vshll.u32 %v6204_v48, 16  ;;  %v6222_v1 = vsel %vm1125_vm0, %v1196_v50, %v1200_v30  ;;  %v1212_v2 = vor.u32 %v1210_v52, %v1208_v33  ;;  %v1226_v4 = vshrl.u32 %v6172_v9, 16  ;;  %v6263_v52 = vld [vmem:[%s6031_s29 + $0x128] sm:$0xff]  }
  0x5c   : > { %10182 = vst [vmem:[#allocation12_spill] sm:$0xff] %v6222_v1  ;;  %v1240_v7 = vrot.slane %v1238_v60, 1  ;;  %v1250_v8 = vshrl.u32 %v6204_v48, 16  ;;  %v6231_v23 = vsel %vm1125_vm0, %v1220_v62, %v1224_v55  ;;  %v1236_v25 = vor.u32 %v1234_v59, %v1232_v63  ;;  %v6278_v59 = vld [vmem:[%s6031_s29 + $0x130] sm:$0xff]   ;;  %v6283_v60 = vld [vmem:[%s6031_s29 + $0x148] sm:$0xff]   ;;  %v6288_v62 = vld [vmem:[%s6031_s29 + $0x140] sm:$0xff]  }
  0x5d   : > { %10183 = vst [vmem:[#allocation13_spill] sm:$0xff] %v6231_v23  ;;  %v1248_v28 = vrot.slane %v1246_v0, 1  ;;  %v1254_v29 = vshll.u32 %v5621_v56, 16  ;;  %v6234_v30 = vsel %vm1125_vm0, %v1212_v2, %v1216_v47  ;;  %v1228_v33 = vor.u32 %v1226_v4, %v1224_v55  ;;  %v6268_v55 = vld [vmem:[%s6031_s29 + $0x120] sm:$0xff]   ;;  %v6273_v56 = vld [vmem:[%s6031_s29 + $0x138] sm:$0xff]   ;;  %v6298_v0 = vld [vmem:[%s6031_s29 + $0x150] sm:$0xff]  }
  0x5e   : > { %10184 = vst [vmem:[#allocation14_spill] sm:$0xff] %v6234_v30  ;;  %v1242_v35 = vshrl.u32 %v6193_v43, 16  ;;  %v6242_v38 = vsel %vm1125_vm0, %v1236_v25, %v1240_v7  ;;  %v6303_v2 = vld [vmem:[%s6031_s29 + $0x168] sm:$0xff]   ;;  %v6308_v4 = vld [vmem:[%s6031_s29 + $0x160] sm:$0xff]  }
  0x5f   : > { %1116 = vrot.lane.b32.xlu1 %v6092_v26, %s5816_s30  ;;  %1114 = vrot.lane.b32.xlu0 %v6095_v27, %s5816_s30  ;;  %10185 = vst [vmem:[#allocation15_spill] sm:$0xff] %v6242_v38  ;;  %v6244_v39 = vor.u32 %v1250_v8, %v1248_v28  ;;  %v1256_v42 = vrot.slane %v1254_v29, 1  ;;  %v6247_v44 = vsel %vm1125_vm0, %v1228_v33, %v1232_v63  ;;  %v6293_v63 = vld [vmem:[%s6031_s29 + $0x158] sm:$0xff]   ;;  %v6318_v8 = vld [vmem:[%s6031_s29 + $0x170] sm:$0xff]  }
  0x60   : > { %10187 = vst [vmem:[#allocation17_spill] sm:$0xff] %v6247_v44  ;;  %v1244_v46 = vor.u32 %v1242_v35, %v1240_v7  ;;  %v6313_v7 = vld [vmem:[%s6031_s29 + $0x178] sm:$0xff]   ;;  %v6323_v25 = vld [vmem:[%s6031_s29 + $0x188] sm:$0xff]   ;;  %v6338_v33 = vld [vmem:[%s6031_s29 + $0x190] sm:$0xff]  }
  0x61   : > { %10186 = vst [vmem:[#allocation16_spill] sm:$0xff] %v6244_v39  ;;  %v6255_v47 = vsel %vm1125_vm0, %v6244_v39, %v1256_v42  ;;  %v6333_v29 = vld [vmem:[%s6031_s29 + $0x198] sm:$0xff]   ;;  %v6348_v42 = vld [vmem:[%s6031_s29 + $0x1b0] sm:$0xff]  }
  0x62   : > { %10188 = vst [vmem:[#allocation18_spill] sm:$0xff] %v6255_v47  ;;  %v6258_v50 = vsel %vm1125_vm0, %v1244_v46, %v1248_v28  ;;  %v6328_v28 = vld [vmem:[%s6031_s29 + $0x180] sm:$0xff]   ;;  %v6343_v35 = vld [vmem:[%s6031_s29 + $0x1b8] sm:$0xff]   ;;  %10191 = vst [vmem:[#allocation21_spill] sm:$0xff] %v6348_v42 }
  0x63   : > { %1120 = vrot.lane.b32.xlu1 %v6111_v34, %s5816_s30  ;;  %1118 = vrot.lane.b32.xlu0 %v6125_v41, %s5816_s30  ;;  %10189 = vst [vmem:[#allocation19_spill] sm:$0xff] %v6258_v50  ;;  %10190 = vst [vmem:[#allocation20_spill] sm:$0xff] %v6343_v35  ;;  %v6353_v46 = vld [vmem:[%s6031_s29 + $0x1c8] sm:$0xff]   ;;  %v6368_v39 = vld [vmem:[%s6031_s29 + $0x1d0] sm:$0xff]  }
  0x64   : > { %10192 = vst [vmem:[#allocation22_spill] sm:$0xff] %v6353_v46  ;;  %10195 = vst [vmem:[#allocation25_spill] sm:$0xff] %v6368_v39 }
  0x67   : > { %1260 = vrot.lane.b32.xlu1 %v6144_v54, %s5817_s4  ;;  %1258 = vrot.lane.b32.xlu0 %v6150_v58, %s5817_s4  ;;  %v6363_v58 = vld [vmem:[%s6031_s29 + $0x1d8] sm:$0xff]  }
  0x68   : > { %10194 = vst [vmem:[#allocation24_spill] sm:$0xff] %v6363_v58 }
  0x6b   : > { %1264 = vrot.lane.b32.xlu1 %v6161_v3, %s5817_s4  ;;  %1262 = vrot.lane.b32.xlu0 %v6168_v6, %s5817_s4 }
  0x6f   : > { %1268 = vrot.lane.b32.xlu1 %v6180_v21, %s5817_s4  ;;  %1266 = vrot.lane.b32.xlu0 %v6188_v36, %s5817_s4 }
  0x73   : > { %1272 = vrot.lane.b32.xlu1 %v6201_v45, %s5817_s4  ;;  %1270 = vrot.lane.b32.xlu0 %v6207_v49, %s5817_s4  ;;  %v1545_v49 = vshrl.u32 %v6273_v56, 16 }
  0x77   : > { %1276 = vrot.lane.b32.xlu1 %v6218_v61, %s5817_s4  ;;  %1274 = vrot.lane.b32.xlu0 %v6222_v1, %s5817_s4  ;;  %v1541_v61 = vshll.u32 %v6273_v56, 16 }
  0x79   : > { %v1543_v21 = vrot.slane %v1541_v61, 1 }
  0x7b   : > { %1280 = vrot.lane.b32.xlu1 %v6231_v23, %s5817_s4  ;;  %1278 = vrot.lane.b32.xlu0 %v6234_v30, %s5817_s4 }
  0x7f   : > { %1284 = vrot.lane.b32.xlu1 %v6242_v38, %s5817_s4  ;;  %1282 = vrot.lane.b32.xlu0 %v6247_v44, %s5817_s4  ;;  %v6399_v38 = vld [vmem:[%s6031_s29 + $0x200] sm:$0xff]   ;;  %v1529_v44 = vshrl.u32 %v6263_v52, 16 }
  0x80   : > { %10201 = vst [vmem:[#allocation31_spill] sm:$0xff] %v6399_v38 }
  0x83   : > { %1288 = vrot.lane.b32.xlu1 %v6255_v47, %s5817_s4  ;;  %1286 = vrot.lane.b32.xlu0 %v6258_v50, %s5817_s4  ;;  %v6358_v47 = vld [vmem:[%s6031_s29 + $0x1c0] sm:$0xff]  }
  0x84   : > { %10193 = vst [vmem:[#allocation23_spill] sm:$0xff] %v6358_v47 }
  0x87   : > { %1372 = vrot.lane.b32.xlu1 %v6263_v52, %s5818_s5  ;;  %1370 = vrot.lane.b32.xlu0 %v6268_v55, %s5818_s5 }
  0x8b   : > { %1376 = vrot.lane.b32.xlu1 %v6273_v56, %s5818_s5  ;;  %1374 = vrot.lane.b32.xlu0 %v6278_v59, %s5818_s5 }
  0x8f   : > { %1380 = vrot.lane.b32.xlu1 %v6283_v60, %s5818_s5  ;;  %1378 = vrot.lane.b32.xlu0 %v6288_v62, %s5818_s5 }
  0x93   : > { %1384 = vrot.lane.b32.xlu1 %v6293_v63, %s5818_s5  ;;  %1382 = vrot.lane.b32.xlu0 %v6298_v0, %s5818_s5 }
  0x97   : > { %1388 = vrot.lane.b32.xlu1 %v6303_v2, %s5818_s5  ;;  %1386 = vrot.lane.b32.xlu0 %v6308_v4, %s5818_s5 }
  0x9b   : > { %1392 = vrot.lane.b32.xlu1 %v6313_v7, %s5818_s5  ;;  %1390 = vrot.lane.b32.xlu0 %v6318_v8, %s5818_s5 }
  0x9f   : > { %1396 = vrot.lane.b32.xlu1 %v6323_v25, %s5818_s5  ;;  %1394 = vrot.lane.b32.xlu0 %v6328_v28, %s5818_s5 }
  0xa3   : > { %1400 = vrot.lane.b32.xlu1 %v6333_v29, %s5818_s5  ;;  %1398 = vrot.lane.b32.xlu0 %v6338_v33, %s5818_s5 }
  0xa7   : > { %1484 = vrot.lane.b32.xlu1 %v6343_v35, %s5819_s6  ;;  %1482 = vrot.lane.b32.xlu0 %v6348_v42, %s5819_s6  ;;  %v6373_v35 = vld [vmem:[%s6031_s29 + $0x1e8] sm:$0xff]   ;;  %v6378_v42 = vld [vmem:[%s6031_s29 + $0x1e0] sm:$0xff]  }
  0xa8   : > { %10196 = vst [vmem:[#allocation26_spill] sm:$0xff] %v6373_v35  ;;  %10197 = vst [vmem:[#allocation27_spill] sm:$0xff] %v6378_v42 }
  0xab   : > { %1488 = vrot.lane.b32.xlu1 %v6353_v46, %s5819_s6  ;;  %1486 = vrot.lane.b32.xlu0 %v6358_v47, %s5819_s6  ;;  %v6383_v46 = vld [vmem:[%s6031_s29 + $0x1f8] sm:$0xff]   ;;  %v6388_v47 = vld [vmem:[%s6031_s29 + $0x1f0] sm:$0xff]  }
  0xac   : > { %10198 = vst [vmem:[#allocation28_spill] sm:$0xff] %v6383_v46  ;;  %10199 = vst [vmem:[#allocation29_spill] sm:$0xff] %v6388_v47 }
  0xaf   : > { %1492 = vrot.lane.b32.xlu1 %v6363_v58, %s5819_s6  ;;  %1490 = vrot.lane.b32.xlu0 %v6368_v39, %s5819_s6  ;;  %v6393_v58 = vld [vmem:[%s6031_s29 + $0x208] sm:$0xff]   ;;  %v1525_v39 = vshll.u32 %v6263_v52, 16 }
  0xb0   : > { %10200 = vst [vmem:[#allocation30_spill] sm:$0xff] %v6393_v58 }
  0xb1   : > { %v1527_v23 = vrot.slane %v1525_v39, 1  ;;  %v6427_v39 = vld [vmem:[%s6031_s29 + $0x228] sm:$0xff]  }
  0xb2   : > { %10208 = vst [vmem:[#allocation38_spill] sm:$0xff] %v6427_v39 }
  0xb3   : > { %1496 = vrot.lane.b32.xlu1 %v6373_v35, %s5819_s6  ;;  %1494 = vrot.lane.b32.xlu0 %v6378_v42, %s5819_s6  ;;  %v1520_v42 = vshll.u32 %v6268_v55, 16  ;;  %v1531_v52 = vor.u32 %v1529_v44, %v1527_v23  ;;  %v1547_v44 = vor.u32 %v1545_v49, %v1543_v21 }
  0xb7   : > { %1500 = vrot.lane.b32.xlu1 %v6383_v46, %s5819_s6  ;;  %1498 = vrot.lane.b32.xlu0 %v6388_v47, %s5819_s6  ;;  %v6409_v46 = vld [vmem:[%s6031_s29 + $0x218] sm:$0xff]   ;;  %v1533_v47 = vshll.u32 %v6278_v59, 16 }
  0xb8   : > { %10204 = vst [vmem:[#allocation34_spill] sm:$0xff] %v6409_v46 }
  0xb9   : > { %v6401_v35 = vpop.permute.xlu1 %1094  ;;  %v6404_v50 = vpop.permute.xlu0 %1090  ;;  %v1535_v1 = vrot.slane %v1533_v47, 1  ;;  %v1573_v47 = vshll.u32 %v6293_v63, 16 }
  0xba   : > { %10202 = vst [vmem:[#allocation32_spill] sm:$0xff] %v6401_v35  ;;  %10203 = vst [vmem:[#allocation33_spill] sm:$0xff] %v6404_v50  ;;  %v6417_v35 = vld [vmem:[%s6031_s29 + $0x210] sm:$0xff]   ;;  %v1518_v50 = vshrl.u32 %v6268_v55, 16  ;;  %v1549_v55 = vshll.u32 %v6288_v62, 16 }
  0xbb   : > { %1504 = vrot.lane.b32.xlu1 %v6393_v58, %s5819_s6  ;;  %1502 = vrot.lane.b32.xlu0 %v6399_v38, %s5819_s6  ;;  %10205 = vst [vmem:[#allocation35_spill] sm:$0xff] %v6417_v35  ;;  %v1522_v58 = vrot.slane %v1520_v42, 1  ;;  %v6433_v38 = vld [vmem:[%s6031_s29 + $0x220] sm:$0xff]   ;;  %v1557_v42 = vshll.u32 %v6283_v60, 16  ;;  %v6445_v61 = vsel %vm1125_vm0, %v1531_v52, %v1535_v1  ;;  %v1553_v52 = vshrl.u32 %v6288_v62, 16 }
  0xbc   : > { %10210 = vst [vmem:[#allocation40_spill] sm:$0xff] %v6445_v61  ;;  %v1551_v56 = vrot.slane %v1549_v55, 1  ;;  %v1575_v55 = vrot.slane %v1573_v47, 1  ;;  %v1589_v62 = vshll.u32 %v6303_v2, 16 }
  0xbd   : > { %v6419_v30 = vpop.permute.xlu1 %1096  ;;  %v6422_v45 = vpop.permute.xlu0 %1092 }
  0xbe   : > { %10206 = vst [vmem:[#allocation36_spill] sm:$0xff] %v6419_v30  ;;  %10207 = vst [vmem:[#allocation37_spill] sm:$0xff] %v6422_v45  ;;  %v1523_v45 = vor.u32 %v1522_v58, %v1518_v50  ;;  %v1561_v58 = vshrl.u32 %v6283_v60, 16  ;;  %v1565_v50 = vshll.u32 %v6298_v0, 16  ;;  %v1581_v60 = vshll.u32 %v6308_v4, 16 }
  0xbf   : > { %1508 = vrot.lane.b32.xlu1 %v6409_v46, %s5819_s6  ;;  %1506 = vrot.lane.b32.xlu0 %v6417_v35, %s5819_s6  ;;  %v1537_v46 = vshrl.u32 %v6278_v59, 16  ;;  %v1559_v35 = vrot.slane %v1557_v42, 1  ;;  %v1577_v42 = vshrl.u32 %v6293_v63, 16  ;;  %v1555_v47 = vor.u32 %v1553_v52, %v1551_v56 }
  0xc0   : > { %v1569_v63 = vshrl.u32 %v6298_v0, 16  ;;  %v1605_v0 = vshll.u32 %v6313_v7, 16 }
  0xc1   : > { %v6437_v30 = vpop.permute.xlu1 %1100  ;;  %v6440_v3 = vpop.permute.xlu0 %1098  ;;  %v6491_v52 = vsel %vm1125_vm0, %v1555_v47, %v1559_v35 }
  0xc2   : > { %10209 = vst [vmem:[#allocation39_spill] sm:$0xff] %v6437_v30  ;;  %v6455_v30 = vsel %vm1125_vm0, %v1523_v45, %v1527_v23  ;;  %v6467_v45 = vsel %vm1125_vm0, %v1547_v44, %v1551_v56  ;;  %v1567_v23 = vrot.slane %v1565_v50, 1  ;;  %v1583_v44 = vrot.slane %v1581_v60, 1  ;;  %10219 = vst [vmem:[#allocation49_spill] sm:$0xff] %v6491_v52 }
  0xc3   : > { %1512 = vrot.lane.b32.xlu1 %v6427_v39, %s5819_s6  ;;  %1510 = vrot.lane.b32.xlu0 %v6433_v38, %s5819_s6  ;;  %10212 = vst [vmem:[#allocation42_spill] sm:$0xff] %v6455_v30  ;;  %v1539_v39 = vor.u32 %v1537_v46, %v1535_v1  ;;  %10213 = vst [vmem:[#allocation43_spill] sm:$0xff] %v6467_v45  ;;  %v1563_v1 = vor.u32 %v1561_v58, %v1559_v35  ;;  %v1597_v58 = vshll.u32 %v6318_v8, 16 }
  0xc4   : > { %v1585_v60 = vshrl.u32 %v6308_v4, 16  ;;  %v1607_v35 = vrot.slane %v1605_v0, 1  ;;  %v1621_v4 = vshll.u32 %v6323_v25, 16  ;;  %v1625_v0 = vshrl.u32 %v6323_v25, 16 }
  0xc5   : > { %v6452_v59 = vpop.permute.xlu1 %1104  ;;  %v6458_v49 = vpop.permute.xlu0 %1102  ;;  %v6484_v50 = vsel %vm1125_vm0, %v1563_v1, %v1567_v23  ;;  %v1617_v25 = vshrl.u32 %v6328_v28, 16 }
  0xc6   : > { %10211 = vst [vmem:[#allocation41_spill] sm:$0xff] %v6452_v59  ;;  %v6473_v59 = vsel %vm1125_vm0, %v1539_v39, %v1543_v21  ;;  %10217 = vst [vmem:[#allocation47_spill] sm:$0xff] %v6484_v50  ;;  %v1591_v21 = vrot.slane %v1589_v62, 1  ;;  %v1593_v39 = vshrl.u32 %v6303_v2, 16  ;;  %v1599_v62 = vrot.slane %v1597_v58, 1 }
  0xc7   : > { %1651 = vrot.lane.b32.xlu1 %v6445_v61, %s5820_s7  ;;  %1649 = vrot.lane.b32.xlu0 %v6455_v30, %s5820_s7  ;;  %10215 = vst [vmem:[#allocation45_spill] sm:$0xff] %v6473_v59  ;;  %v1579_v30 = vor.u32 %v1577_v42, %v1575_v55  ;;  %v1571_v42 = vor.u32 %v1569_v63, %v1567_v23  ;;  %v1613_v2 = vshll.u32 %v6328_v28, 16  ;;  %v1609_v23 = vshrl.u32 %v6313_v7, 16 }
  0xc8   : > { %v1601_v58 = vshrl.u32 %v6318_v8, 16  ;;  %v1629_v7 = vshll.u32 %v6338_v33, 16  ;;  %v1637_v8 = vshll.u32 %v6333_v29, 16 }
  0xc9   : > { %v6470_v46 = vpop.permute.xlu1 %1108  ;;  %v6476_v61 = vpop.permute.xlu0 %1106  ;;  %v6499_v1 = vsel %vm1125_vm0, %v1579_v30, %v1583_v44  ;;  %v6509_v63 = vsel %vm1125_vm0, %v1571_v42, %v1575_v55  ;;  %v1587_v30 = vor.u32 %v1585_v60, %v1583_v44  ;;  %v1611_v55 = vor.u32 %v1609_v23, %v1607_v35  ;;  %v5654_v42 = vld [vmem:[%s6031_s29 + $0x1a0] ss:$0 sps:$4 sm:$0x11]  }
  0xca   : > { %10214 = vst [vmem:[#allocation44_spill] sm:$0xff] %v6470_v46  ;;  %10216 = vst [vmem:[#allocation46_spill] sm:$0xff] %v6476_v61  ;;  %v1623_v44 = vrot.slane %v1621_v4, 1  ;;  %v1641_v23 = vshrl.u32 %v6333_v29, 16 }
  0xcb   : > { %1655 = vrot.lane.b32.xlu1 %v6467_v45, %s5820_s7  ;;  %1653 = vrot.lane.b32.xlu0 %v6473_v59, %s5820_s7  ;;  %10221 = vst [vmem:[#allocation51_spill] sm:$0xff] %v6499_v1  ;;  %10223 = vst [vmem:[#allocation53_spill] sm:$0xff] %v6509_v63 }
  0xcd   : > { %v6488_v56 = vpop.permute.xlu1 %1112  ;;  %v6494_v46 = vpop.permute.xlu0 %1110 }
  0xce   : > { %10218 = vst [vmem:[#allocation48_spill] sm:$0xff] %v6488_v56  ;;  %10220 = vst [vmem:[#allocation50_spill] sm:$0xff] %v6494_v46  ;;  %v1595_v56 = vor.u32 %v1593_v39, %v1591_v21  ;;  %v1615_v39 = vrot.slane %v1613_v2, 1  ;;  %v1603_v2 = vor.u32 %v1601_v58, %v1599_v62 }
  0xcf   : > { %1659 = vrot.lane.b32.xlu1 %v6484_v50, %s5820_s7  ;;  %1657 = vrot.lane.b32.xlu0 %v6491_v52, %s5820_s7 }
  0xd0   : > { %v6539_v4 = vsel %vm1125_vm0, %v1611_v55, %v1615_v39  ;;  %v6544_v28 = vsel %vm1125_vm0, %v1603_v2, %v1607_v35  ;;  %v1619_v58 = vor.u32 %v1617_v25, %v1615_v39 }
  0xd1   : > { %v6506_v47 = vpop.permute.xlu1 %1116  ;;  %v6512_v46 = vpop.permute.xlu0 %1114  ;;  %10229 = vst [vmem:[#allocation59_spill] sm:$0xff] %v6539_v4  ;;  %10230 = vst [vmem:[#allocation60_spill] sm:$0xff] %v6544_v28 }
  0xd2   : > { %10222 = vst [vmem:[#allocation52_spill] sm:$0xff] %v6506_v47  ;;  %10224 = vst [vmem:[#allocation54_spill] sm:$0xff] %v6512_v46  ;;  %v6521_v47 = vsel %vm1125_vm0, %v1595_v56, %v1599_v62  ;;  %v6528_v46 = vsel %vm1125_vm0, %v1587_v30, %v1591_v21  ;;  %v1631_v56 = vrot.slane %v1629_v7, 1  ;;  %v1639_v21 = vrot.slane %v1637_v8, 1 }
  0xd3   : > { %1663 = vrot.lane.b32.xlu1 %v6499_v1, %s5820_s7  ;;  %1661 = vrot.lane.b32.xlu0 %v6509_v63, %s5820_s7  ;;  %10225 = vst [vmem:[#allocation55_spill] sm:$0xff] %v6521_v47  ;;  %10227 = vst [vmem:[#allocation57_spill] sm:$0xff] %v6528_v46  ;;  %v1645_v30 = vshll.u32 %v5654_v42, 16  ;;  %v6561_v35 = vsel %vm1125_vm0, %v1619_v58, %v1623_v44 }
  0xd4   : > { %10233 = vst [vmem:[#allocation63_spill] sm:$0xff] %v6561_v35 }
  0xd5   : > { %v6525_v60 = vpop.permute.xlu1 %1120  ;;  %v6531_v1 = vpop.permute.xlu0 %1118  ;;  %v1647_v55 = vrot.slane %v1645_v30, 1 }
  0xd6   : > { %10226 = vst [vmem:[#allocation56_spill] sm:$0xff] %v6525_v60  ;;  %10228 = vst [vmem:[#allocation58_spill] sm:$0xff] %v6531_v1  ;;  %v1627_v60 = vor.u32 %v1625_v0, %v1623_v44  ;;  %v1633_v1 = vshrl.u32 %v6338_v33, 16  ;;  %v6556_v0 = vor.u32 %v1641_v23, %v1639_v21 }
  0xd7   : > { %1667 = vrot.lane.b32.xlu1 %v6521_v47, %s5820_s7  ;;  %1665 = vrot.lane.b32.xlu0 %v6528_v46, %s5820_s7 }
  0xd8   : > { %v6554_v29 = vsel %vm1125_vm0, %v1627_v60, %v1631_v56  ;;  %10232 = vst [vmem:[#allocation62_spill] sm:$0xff] %v6556_v0  ;;  %v1635_v33 = vor.u32 %v1633_v1, %v1631_v56  ;;  %v6571_v8 = vsel %vm1125_vm0, %v6556_v0, %v1647_v55 }
  0xd9   : > { %v6541_v62 = vpop.permute.xlu1 %1260  ;;  %v6547_v7 = vpop.permute.xlu0 %1258  ;;  %10231 = vst [vmem:[#allocation61_spill] sm:$0xff] %v6554_v29  ;;  %10234 = vst [vmem:[#allocation64_spill] sm:$0xff] %v6571_v8 }
  0xda   : > { %v6576_v2 = vsel %vm1125_vm0, %v1635_v33, %v1639_v21 }
  0xdb   : > { %1671 = vrot.lane.b32.xlu1 %v6539_v4, %s5820_s7  ;;  %1669 = vrot.lane.b32.xlu0 %v6544_v28, %s5820_s7  ;;  %10235 = vst [vmem:[#allocation65_spill] sm:$0xff] %v6576_v2 }
  0xdd   : > { %v6558_v42 = vpop.permute.xlu1 %1264  ;;  %v6563_v39 = vpop.permute.xlu0 %1262 }
  0xdf   : > { %1675 = vrot.lane.b32.xlu1 %v6554_v29, %s5820_s7  ;;  %1673 = vrot.lane.b32.xlu0 %v6561_v35, %s5820_s7  ;;  %v10264_v35 = vld [vmem:[#allocation12_spill] sm:$0xff]  ;;  %v10265_v29 = vld [vmem:[#allocation9_spill] sm:$0xff] }
  0xe1   : > { %v6573_v60 = vpop.permute.xlu1 %1268  ;;  %v6578_v44 = vpop.permute.xlu0 %1266 }
  0xe3   : > { %1679 = vrot.lane.b32.xlu1 %v6571_v8, %s5820_s7  ;;  %1677 = vrot.lane.b32.xlu0 %v6576_v2, %s5820_s7 }
  0xe5   : > { %v6584_v1 = vpop.permute.xlu1 %1272  ;;  %v6586_v25 = vpop.permute.xlu0 %1270 }
  0xe6   : > { %10236 = vst [vmem:[#allocation66_spill] sm:$0xff] %v6584_v1 }
  0xe7   : > { %1688 = vrot.lane.b32.xlu1 %v6077_v20, %s5821_s8  ;;  %1686 = vrot.lane.b32.xlu0 %v6074_v19, %s5821_s8 }
  0xe9   : > { %v6592_v56 = vpop.permute.xlu1 %1276  ;;  %v6594_v23 = vpop.permute.xlu0 %1274 }
  0xea   : > { %10237 = vst [vmem:[#allocation67_spill] sm:$0xff] %v6592_v56  ;;  %10238 = vst [vmem:[#allocation68_spill] sm:$0xff] %v6594_v23  ;;  %v10275_v56 = vld [vmem:[#allocation16_spill] sm:$0xff] }
  0xeb   : > { %1692 = vrot.lane.b32.xlu1 %v6107_v32, %s5821_s8  ;;  %1690 = vrot.lane.b32.xlu0 %v6089_v24, %s5821_s8 }
  0xed   : > { %v6600_v21 = vpop.permute.xlu1 %1280  ;;  %v6602_v30 = vpop.permute.xlu0 %1278 }
  0xee   : > { %10239 = vst [vmem:[#allocation69_spill] sm:$0xff] %v6600_v21  ;;  %10240 = vst [vmem:[#allocation70_spill] sm:$0xff] %v6602_v30  ;;  %v10268_v21 = vld [vmem:[#allocation14_spill] sm:$0xff] }
  0xef   : > { %1696 = vrot.lane.b32.xlu1 %v6114_v37, %s5821_s8  ;;  %1694 = vrot.lane.b32.xlu0 %v6102_v31, %s5821_s8 }
  0xf1   : > { %v6608_v19 = vpop.permute.xlu1 %1284  ;;  %v6610_v20 = vpop.permute.xlu0 %1282 }
  0xf2   : > { %10241 = vst [vmem:[#allocation71_spill] sm:$0xff] %v6608_v19  ;;  %10242 = vst [vmem:[#allocation72_spill] sm:$0xff] %v6610_v20 }
  0xf3   : > { %1700 = vrot.lane.b32.xlu1 %v6133_v51, %s5821_s8  ;;  %1698 = vrot.lane.b32.xlu0 %v6120_v40, %s5821_s8 }
  0xf5   : > { %v6616_v24 = vpop.permute.xlu1 %1288  ;;  %v6618_v32 = vpop.permute.xlu0 %1286 }
  0xf6   : > { %10243 = vst [vmem:[#allocation73_spill] sm:$0xff] %v6616_v24  ;;  %10244 = vst [vmem:[#allocation74_spill] sm:$0xff] %v6618_v32 }
  0xf7   : > { %1704 = vrot.lane.b32.xlu1 %v6147_v57, %s5821_s8  ;;  %1702 = vrot.lane.b32.xlu0 %v6139_v53, %s5821_s8  ;;  %v6639_v53 = vld [vmem:[%s6031_s29 + $0x80] sm:$0xff]  }
  0xf8   : > { %v1763_v28 = vshrl.u32 %v6639_v53, 16 }
  0xf9   : > { %v6624_v31 = vpop.permute.xlu1 %1372  ;;  %v6626_v37 = vpop.permute.xlu0 %1370 }
  0xfb   : > { %1708 = vrot.lane.b32.xlu1 %v6172_v9, %s5821_s8  ;;  %1706 = vrot.lane.b32.xlu0 %v6165_v5, %s5821_s8 }
  0xfd   : > { %v6632_v40 = vpop.permute.xlu1 %1376  ;;  %v6634_v51 = vpop.permute.xlu0 %1374 }
  0xff   : > { %1712 = vrot.lane.b32.xlu1 %v6193_v43, %s5821_s8  ;;  %1710 = vrot.lane.b32.xlu0 %v6175_v10, %s5821_s8  ;;  %v6656_v43 = vld [vmem:[%s6031_s29 + $0xa0] sm:$0xff]  }
 0x101   : > { %v6643_v57 = vpop.permute.xlu1 %1380  ;;  %v6645_v58 = vpop.permute.xlu0 %1378 }
 0x103   : > { %1716 = vrot.lane.b32.xlu1 %v6639_v53, %s5821_s8  ;;  %1714 = vrot.lane.b32.xlu0 %v6204_v48, %s5821_s8  ;;  %v6669_v48 = vld [vmem:[%s6031_s29 + $0xa8] sm:$0xff]  }
 0x105   : > { %v6651_v5 = vpop.permute.xlu1 %1384  ;;  %v6653_v9 = vpop.permute.xlu0 %1382 }
 0x106   : > { %10245 = vst [vmem:[#allocation75_spill] sm:$0xff] %v6651_v5 }
 0x107   : > { %1725 = vrot.lane.b32.xlu1 %v6656_v43, %s5822_s9  ;;  %1723 = vrot.lane.b32.xlu0 %v6039_v11, %s5822_s9 }
 0x109   : > { %v6662_v10 = vpop.permute.xlu1 %1388  ;;  %v6664_v55 = vpop.permute.xlu0 %1386 }
 0x10a   : > { %10246 = vst [vmem:[#allocation76_spill] sm:$0xff] %v6662_v10  ;;  %10247 = vst [vmem:[#allocation77_spill] sm:$0xff] %v6664_v55  ;;  %v10290_v55 = vld [vmem:[#allocation18_spill] sm:$0xff] }
 0x10b   : > { %1729 = vrot.lane.b32.xlu1 %v6048_v13, %s5822_s9  ;;  %1727 = vrot.lane.b32.xlu0 %v6669_v48, %s5822_s9  ;;  %v5659_v13 = vld [vmem:[%s9909_s1] sm:$0xff]  }
 0x10c   : > { %5417 = vmatprep.subr.bf16.mxu0 %v5659_v13  ;;  %5549 = vmatprep.subr.bf16.mxu1 %v5659_v13 }
 0x10d   : > { %v6673_v33 = vpop.permute.xlu1 %1392  ;;  %v6675_v0 = vpop.permute.xlu0 %1390  ;;  %5418 = vmatpush3.bf16.msra.mxu0 %v5659_v13  ;;  %5551 = vmatpush3.bf16.msra.mxu1 %v5659_v13 }
 0x10e   : > { %10248 = vst [vmem:[#allocation78_spill] sm:$0xff] %v6673_v33  ;;  %10249 = vst [vmem:[#allocation79_spill] sm:$0xff] %v6675_v0 }
 0x10f   : > { %1733 = vrot.lane.b32.xlu1 %v6058_v15, %s5822_s9  ;;  %1731 = vrot.lane.b32.xlu0 %v6043_v12, %s5822_s9  ;;  %v5660_v12 = vld [vmem:[%s9909_s1 + $0x8] sm:$0x3f]   ;;  %v5823_v15 = vmov 65535  }
 0x111   : > { %v6681_v11 = vpop.permute.xlu1 %1396  ;;  %v6683_v24 = vpop.permute.xlu0 %1394 }
 0x112   : > { %10250 = vst [vmem:[#allocation80_spill] sm:$0xff] %v6681_v11  ;;  %10251 = vst [vmem:[#allocation81_spill] sm:$0xff] %v6683_v24  ;;  %v4082_v11 = vsel %vm4080_vm1, 4294967295, %v5823_v15  ;;  %v5657_v24 = vld [vmem:[%s6031_s29 + $0x88] ss:$0 sps:$4 sm:$0x11]  }
 0x113   : > { %1737 = vrot.lane.b32.xlu1 %v6068_v17, %s5822_s9  ;;  %1735 = vrot.lane.b32.xlu0 %v6053_v14, %s5822_s9  ;;  %v4083_v19 = vsel %vm4081_vm2, %v4082_v11, 0  ;;  %v1767_v4 = vshll.u32 %v5657_v24, 16  ;;  %v10273_v24 = vld [vmem:[#allocation15_spill] sm:$0xff] }
 0x114   : > { %v4085_v14 = vand.u32 %v5660_v12, %v4083_v19 }
 0x115   : > { %v6692_v32 = vpop.permute.xlu1 %1400  ;;  %v6697_v17 = vpop.permute.xlu0 %1398  ;;  %v1769_v0 = vrot.slane %v1767_v4, 1 }
 0x116   : > { %10252 = vst [vmem:[#allocation82_spill] sm:$0xff] %v6692_v32  ;;  %10253 = vst [vmem:[#allocation83_spill] sm:$0xff] %v6697_v17  ;;  %5419 = vmatprep.subr.bf16.mxu0 %v4085_v14  ;;  %5550 = vmatprep.subr.bf16.mxu1 %v4085_v14 }
 0x117   : > { %1741 = vrot.lane.b32.xlu1 %v6085_v22, %s5822_s9  ;;  %1739 = vrot.lane.b32.xlu0 %v6063_v16, %s5822_s9  ;;  %v5656_v16 = vld [vmem:[%s6031_s29 + $0x110] sm:$0xff]  }
 0x118   : > { %5420 = vmatpush3.bf16.msra.mxu0 %v4085_v14  ;;  %5552 = vmatpush3.bf16.msra.mxu1 %v4085_v14  ;;  %v10260_v14 = vld [vmem:[#allocation10_spill] sm:$0xff] }
 0x119   : > { %v6703_v32 = vpop.permute.xlu1 %1484  ;;  %v6705_v2 = vpop.permute.xlu0 %1482 }
 0x11b   : > { %1745 = vrot.lane.b32.xlu1 %v6095_v27, %s5822_s9  ;;  %1743 = vrot.lane.b32.xlu0 %v6071_v18, %s5822_s9 }
 0x11d   : > { %v6711_v11 = vpop.permute.xlu1 %1488  ;;  %v6713_v22 = vpop.permute.xlu0 %1486 }
 0x11f   : > { %1749 = vrot.lane.b32.xlu1 %v6125_v41, %s5822_s9  ;;  %1747 = vrot.lane.b32.xlu0 %v6092_v26, %s5822_s9 }
 0x121   : > { %v6720_v19 = vpop.permute.xlu1 %1492  ;;  %v6722_v13 = vpop.permute.xlu0 %1490 }
 0x123   : > { %1753 = vrot.lane.b32.xlu1 %v5656_v16, %s5822_s9  ;;  %1751 = vrot.lane.b32.xlu0 %v6111_v34, %s5822_s9  ;;  %v10257_v34 = vld [vmem:[#allocation5_spill] sm:$0xff]  ;;  %v10261_v16 = vld [vmem:[#allocation7_spill] sm:$0xff] }
 0x125   : > { %v6727_v18 = vpop.permute.xlu1 %1496  ;;  %v6729_v27 = vpop.permute.xlu0 %1494 }
 0x126   : > { %10254 = vst [vmem:[#allocation84_spill] sm:$0xff] %v6727_v18 }
 0x127   : > { %1773 = vrot.lane.b32.xlu1 %v6168_v6, %s5824_s18  ;;  %1771 = vrot.lane.b32.xlu0 %v6144_v54, %s5824_s18 }
 0x129   : > { %v6735_v26 = vpop.permute.xlu1 %1500  ;;  %v6737_v41 = vpop.permute.xlu0 %1498 }
 0x12a   : > { %10255 = vst [vmem:[#allocation85_spill] sm:$0xff] %v6735_v26  ;;  %10256 = vst [vmem:[#allocation86_spill] sm:$0xff] %v6737_v41  ;;  %v10270_v26 = vld [vmem:[#allocation17_spill] sm:$0xff] }
 0x12b   : > { %1777 = vrot.lane.b32.xlu1 %v6188_v36, %s5824_s18  ;;  %1775 = vrot.lane.b32.xlu0 %v10257_v34, %s5824_s18 }
 0x12d   : > { %v6743_v12 = vpop.permute.xlu1 %1504  ;;  %v6745_v15 = vpop.permute.xlu0 %1502 }
 0x12e   : > { %10258 = vst [vmem:[#allocation87_spill] sm:$0xff] %v6743_v12  ;;  %10259 = vst [vmem:[#allocation88_spill] sm:$0xff] %v6745_v15  ;;  %v1759_v12 = vshll.u32 %v6639_v53, 16 }
 0x12f   : > { %1781 = vrot.lane.b32.xlu1 %v10260_v14, %s5824_s18  ;;  %1779 = vrot.lane.b32.xlu0 %v10261_v16, %s5824_s18 }
 0x131   : > { %v6751_v17 = vpop.permute.xlu1 %1508  ;;  %v6753_v8 = vpop.permute.xlu0 %1506 }
 0x132   : > { %10262 = vst [vmem:[#allocation89_spill] sm:$0xff] %v6751_v17  ;;  %10263 = vst [vmem:[#allocation90_spill] sm:$0xff] %v6753_v8  ;;  %v10269_v17 = vld [vmem:[#allocation11_spill] sm:$0xff]  ;;  %v1761_v8 = vrot.slane %v1759_v12, 1 }
 0x133   : > { %1785 = vrot.lane.b32.xlu1 %v10264_v35, %s5824_s18  ;;  %1783 = vrot.lane.b32.xlu0 %v10265_v29, %s5824_s18  ;;  %v10272_v12 = vld [vmem:[#allocation19_spill] sm:$0xff] }
 0x134   : > { %v6793_v63 = vsel %vm1125_vm0, %v10275_v56, %v1761_v8 }
 0x135   : > { %v6761_v33 = vpop.permute.xlu1 %1512  ;;  %v6763_v20 = vpop.permute.xlu0 %1510  ;;  %10276 = vst [vmem:[#allocation16_spill] sm:$0xff] %v6793_v63 }
 0x136   : > { %10266 = vst [vmem:[#allocation91_spill] sm:$0xff] %v6761_v33  ;;  %10267 = vst [vmem:[#allocation92_spill] sm:$0xff] %v6763_v20  ;;  %v10271_v33 = vld [vmem:[#allocation13_spill] sm:$0xff]  ;;  %v1765_v20 = vor.u32 %v1763_v28, %v1761_v8 }
 0x137   : > { %1789 = vrot.lane.b32.xlu1 %v10268_v21, %s5824_s18  ;;  %1787 = vrot.lane.b32.xlu0 %v10269_v17, %s5824_s18 }
 0x138   : > { %v6787_v53 = vsel %vm1125_vm0, %v1765_v20, %v1769_v0  ;;  %v10278_v0 = vld [vmem:[#allocation4_spill] sm:$0xff] }
 0x139   : > { %v6770_v15 = vpop.permute.xlu1 %1651  ;;  %v6772_v46 = vpop.permute.xlu0 %1649  ;;  %10274 = vst [vmem:[#allocation93_spill] sm:$0xff] %v6787_v53 }
 0x13b   : > { %1793 = vrot.lane.b32.xlu1 %v10270_v26, %s5824_s18  ;;  %1791 = vrot.lane.b32.xlu0 %v10271_v33, %s5824_s18 }
 0x13d   : > { %v6778_v47 = vpop.permute.xlu1 %1655  ;;  %v6780_v10 = vpop.permute.xlu0 %1653 }
 0x13f   : > { %1797 = vrot.lane.b32.xlu1 %v10272_v12, %s5824_s18  ;;  %1795 = vrot.lane.b32.xlu0 %v10273_v24, %s5824_s18 }
 0x141   : > { %v6789_v30 = vpop.permute.xlu1 %1659  ;;  %v6795_v4 = vpop.permute.xlu0 %1657 }
 0x143   : > { %1801 = vrot.lane.b32.xlu1 %v6787_v53, %s5824_s18  ;;  %1799 = vrot.lane.b32.xlu0 %v6793_v63, %s5824_s18 }
 0x145   : > { %v6801_v28 = vpop.permute.xlu1 %1663  ;;  %v6803_v41 = vpop.permute.xlu0 %1661 }
 0x146   : > { %10277 = vst [vmem:[#allocation94_spill] sm:$0xff] %v6801_v28 }
 0x147   : > { %2072 = vrot.lane.b32.xlu1 %v6144_v54, %s5816_s30  ;;  %2070 = vrot.lane.b32.xlu0 %v10278_v0, %s5816_s30 }
 0x149   : > { %v6809_v8 = vpop.permute.xlu1 %1667  ;;  %v6811_v56 = vpop.permute.xlu0 %1665 }
 0x14a   : > { %10279 = vst [vmem:[#allocation4_spill] sm:$0xff] %v6809_v8  ;;  %10280 = vst [vmem:[#allocation95_spill] sm:$0xff] %v6811_v56 }
 0x14b   : > { %2076 = vrot.lane.b32.xlu1 %v10257_v34, %s5816_s30  ;;  %2074 = vrot.lane.b32.xlu0 %v6168_v6, %s5816_s30 }
 0x14d   : > { %v6817_v20 = vpop.permute.xlu1 %1671  ;;  %v6819_v63 = vpop.permute.xlu0 %1669 }
 0x14e   : > { %10281 = vst [vmem:[#allocation96_spill] sm:$0xff] %v6817_v20  ;;  %10282 = vst [vmem:[#allocation97_spill] sm:$0xff] %v6819_v63 }
 0x14f   : > { %2080 = vrot.lane.b32.xlu1 %v10261_v16, %s5816_s30  ;;  %2078 = vrot.lane.b32.xlu0 %v6188_v36, %s5816_s30  ;;  %v6840_v16 = vld [vmem:[%s6031_s29 + $0x98] sm:$0xff]  }
 0x150   : > { %10287 = vst [vmem:[#allocation102_spill] sm:$0xff] %v6840_v16  ;;  %v2113_v36 = vshll.u32 %v6840_v16, 16 }
 0x151   : > { %v6825_v0 = vpop.permute.xlu1 %1675  ;;  %v6827_v53 = vpop.permute.xlu0 %1673 }
 0x152   : > { %10283 = vst [vmem:[#allocation98_spill] sm:$0xff] %v6825_v0  ;;  %10284 = vst [vmem:[#allocation99_spill] sm:$0xff] %v6827_v53 }
 0x153   : > { %2084 = vrot.lane.b32.xlu1 %v10265_v29, %s5816_s30  ;;  %2082 = vrot.lane.b32.xlu0 %v10260_v14, %s5816_s30  ;;  %v5670_v29 = vld [vmem:[%s6031_s29 + $0x90] sm:$0xff]  }
 0x154   : > { %v2108_v0 = vshll.u32 %v5670_v29, 16  ;;  %v2106_v20 = vshrl.u32 %v5670_v29, 16  ;;  %v2133_v29 = vshrl.u32 %v6669_v48, 16 }
 0x155   : > { %v6833_v34 = vpop.permute.xlu1 %1679  ;;  %v6835_v54 = vpop.permute.xlu0 %1677 }
 0x156   : > { %10285 = vst [vmem:[#allocation100_spill] sm:$0xff] %v6833_v34  ;;  %10286 = vst [vmem:[#allocation101_spill] sm:$0xff] %v6835_v54  ;;  %v2115_v34 = vrot.slane %v2113_v36, 1  ;;  %v2121_v54 = vshll.u32 %v6656_v43, 16  ;;  %v2110_v63 = vrot.slane %v2108_v0, 1  ;;  %v6871_v0 = vld [vmem:[%s6031_s29 + $0xb0] sm:$0xff]  }
 0x157   : > { %2088 = vrot.lane.b32.xlu1 %v10269_v17, %s5816_s30  ;;  %2086 = vrot.lane.b32.xlu0 %v10264_v35, %s5816_s30  ;;  %v2117_v17 = vshrl.u32 %v6840_v16, 16  ;;  %v2129_v35 = vshll.u32 %v6669_v48, 16  ;;  %10289 = vst [vmem:[#allocation104_spill] sm:$0xff] %v6871_v0  ;;  %v2137_v28 = vshll.u32 %v6871_v0, 16  ;;  %v2141_v23 = vshrl.u32 %v6871_v0, 16 }
 0x159   : > { %v6845_v6 = vpop.permute.xlu1 %1688  ;;  %v6848_v14 = vpop.permute.xlu0 %1686  ;;  %v2119_v36 = vor.u32 %v2117_v17, %v2115_v34  ;;  %v2131_v56 = vrot.slane %v2129_v35, 1  ;;  %v2111_v17 = vor.u32 %v2110_v63, %v2106_v20  ;;  %v6883_v35 = vld [vmem:[%s6031_s29 + $0xc0] sm:$0xff]  }
 0x15a   : > { %10291 = vst [vmem:[#allocation18_spill] sm:$0xff] %v6883_v35  ;;  %v2153_v48 = vshll.u32 %v6883_v35, 16 }
 0x15b   : > { %2092 = vrot.lane.b32.xlu1 %v10271_v33, %s5816_s30  ;;  %2090 = vrot.lane.b32.xlu0 %v10268_v21, %s5816_s30  ;;  %v6864_v33 = vld [vmem:[%s6031_s29 + $0xb8] sm:$0xff]   ;;  %v2123_v21 = vrot.slane %v2121_v54, 1  ;;  %v2116_v20 = vsel %vm1125_vm0, %v2111_v17, %v2115_v34  ;;  %v6909_v34 = vld [vmem:[%s6031_s29 + $0xd0] sm:$0xff]  }
 0x15c   : > { %10288 = vst [vmem:[#allocation103_spill] sm:$0xff] %v6864_v33  ;;  %v2145_v16 = vshll.u32 %v6864_v33, 16  ;;  %v2149_v54 = vshrl.u32 %v6864_v33, 16  ;;  %v2155_v61 = vrot.slane %v2153_v48, 1  ;;  %10296 = vst [vmem:[#allocation109_spill] sm:$0xff] %v6909_v34  ;;  %v2157_v48 = vshrl.u32 %v6883_v35, 16 }
 0x15d   : > { %v6857_v53 = vpop.permute.xlu1 %1692  ;;  %v6859_v8 = vpop.permute.xlu0 %1690  ;;  %v6893_v63 = vsel %vm1125_vm0, %v2119_v36, %v2123_v21 }
 0x15e   : > { %v2147_v50 = vrot.slane %v2145_v16, 1  ;;  %10293 = vst [vmem:[#allocation106_spill] sm:$0xff] %v6893_v63  ;;  %v2159_v35 = vor.u32 %v2157_v48, %v2155_v61 }
 0x15f   : > { %2096 = vrot.lane.b32.xlu1 %v10273_v24, %s5816_s30  ;;  %2094 = vrot.lane.b32.xlu0 %v10270_v26, %s5816_s30  ;;  %v2125_v24 = vshrl.u32 %v6656_v43, 16  ;;  %v6887_v26 = vld [vmem:[%s6031_s29 + $0xc8] sm:$0xff]   ;;  %v2135_v43 = vor.u32 %v2133_v29, %v2131_v56 }
 0x160   : > { %10292 = vst [vmem:[#allocation105_spill] sm:$0xff] %v6887_v26  ;;  %v2161_v5 = vshll.u32 %v6887_v26, 16  ;;  %v2165_v36 = vshrl.u32 %v6887_v26, 16  ;;  %v6930_v26 = vld [vmem:[%s6031_s29 + $0xe8] sm:$0xff]  }
 0x161   : > { %v6874_v52 = vpop.permute.xlu1 %1696  ;;  %v6877_v18 = vpop.permute.xlu0 %1694  ;;  %v2127_v33 = vor.u32 %v2125_v24, %v2123_v21  ;;  %v2169_v21 = vshll.u32 %v6909_v34, 16  ;;  %v6913_v24 = vld [vmem:[%s6031_s29 + $0xd8] sm:$0xff]   ;;  %10302 = vst [vmem:[#allocation115_spill] sm:$0xff] %v6930_v26  ;;  %v2193_v0 = vshll.u32 %v6930_v26, 16 }
 0x162   : > { %v2163_v59 = vrot.slane %v2161_v5, 1  ;;  %10297 = vst [vmem:[#allocation110_spill] sm:$0xff] %v6913_v24  ;;  %v2177_v29 = vshll.u32 %v6913_v24, 16 }
 0x163   : > { %2100 = vrot.lane.b32.xlu1 %v10290_v55, %s5816_s30  ;;  %2098 = vrot.lane.b32.xlu0 %v10272_v12, %s5816_s30  ;;  %v2139_v55 = vrot.slane %v2137_v28, 1  ;;  %v2151_v12 = vor.u32 %v2149_v54, %v2147_v50  ;;  %v6919_v5 = vsel %vm1125_vm0, %v2127_v33, %v2131_v56  ;;  %v2181_v56 = vshrl.u32 %v6913_v24, 16 }
 0x164   : > { %10299 = vst [vmem:[#allocation112_spill] sm:$0xff] %v6919_v5  ;;  %v2179_v33 = vrot.slane %v2177_v29, 1  ;;  %v2197_v29 = vshrl.u32 %v6930_v26, 16 }
 0x165   : > { %v6895_v16 = vpop.permute.xlu1 %1700  ;;  %v6899_v1 = vpop.permute.xlu0 %1698  ;;  %v6906_v28 = vsel %vm1125_vm0, %v2135_v43, %v2139_v55  ;;  %v2143_v54 = vor.u32 %v2141_v23, %v2139_v55  ;;  %v6927_v43 = vsel %vm1125_vm0, %v2151_v12, %v2155_v61  ;;  %v2171_v23 = vrot.slane %v2169_v21, 1  ;;  %v6937_v55 = vld [vmem:[%s6031_s29 + $0xe0] sm:$0xff]  }
 0x166   : > { %10294 = vst [vmem:[#allocation107_spill] sm:$0xff] %v6895_v16  ;;  %10295 = vst [vmem:[#allocation108_spill] sm:$0xff] %v6906_v28  ;;  %v2195_v21 = vrot.slane %v2193_v0, 1  ;;  %v6956_v16 = vld [vmem:[%s6031_s29 + $0xf8] sm:$0xff]  }
 0x167   : > { %2239 = vrot.lane.b32.xlu1 %v6893_v63, %s5817_s4  ;;  %2237 = vrot.lane.b32.xlu0 %v2116_v20, %s5817_s4  ;;  %10301 = vst [vmem:[#allocation114_spill] sm:$0xff] %v6927_v43  ;;  %v2167_v63 = vor.u32 %v2165_v36, %v2163_v59  ;;  %10303 = vst [vmem:[#allocation116_spill] sm:$0xff] %v6937_v55  ;;  %v6943_v36 = vsel %vm1125_vm0, %v2143_v54, %v2147_v50  ;;  %v2209_v50 = vshll.u32 %v6956_v16, 16 }
 0x168   : > { %10305 = vst [vmem:[#allocation118_spill] sm:$0xff] %v6943_v36  ;;  %10308 = vst [vmem:[#allocation121_spill] sm:$0xff] %v6956_v16  ;;  %v2183_v54 = vor.u32 %v2181_v56, %v2179_v33  ;;  %v2213_v56 = vshrl.u32 %v6956_v16, 16 }
 0x169   : > { %v6916_v17 = vpop.permute.xlu1 %1704  ;;  %v6922_v20 = vpop.permute.xlu0 %1702  ;;  %v6962_v61 = vsel %vm1125_vm0, %v2167_v63, %v2171_v23 }
 0x16a   : > { %10298 = vst [vmem:[#allocation111_spill] sm:$0xff] %v6916_v17  ;;  %10300 = vst [vmem:[#allocation113_spill] sm:$0xff] %v6922_v20  ;;  %v2173_v17 = vshrl.u32 %v6909_v34, 16  ;;  %v2189_v34 = vshrl.u32 %v6937_v55, 16 }
 0x16b   : > { %2243 = vrot.lane.b32.xlu1 %v6906_v28, %s5817_s4  ;;  %2241 = vrot.lane.b32.xlu0 %v6919_v5, %s5817_s4  ;;  %v2185_v28 = vshll.u32 %v6937_v55, 16  ;;  %v6952_v5 = vld [vmem:[%s6031_s29 + $0xf0] sm:$0xff]   ;;  %10309 = vst [vmem:[#allocation122_spill] sm:$0xff] %v6962_v61 }
 0x16c   : > { %10307 = vst [vmem:[#allocation120_spill] sm:$0xff] %v6952_v5  ;;  %v2201_v24 = vshll.u32 %v6952_v5, 16  ;;  %v2175_v26 = vor.u32 %v2173_v17, %v2171_v23  ;;  %v5658_v17 = vld [vmem:[%s6031_s29 + $0x110] ss:$0 sps:$4 sm:$0x11]   ;;  %v6986_v23 = vld [vmem:[%s6031_s29 + $0x108] sm:$0xff]  }
 0x16d   : > { %v6940_v12 = vpop.permute.xlu1 %1708  ;;  %v6946_v20 = vpop.permute.xlu0 %1706  ;;  %v2187_v0 = vrot.slane %v2185_v28, 1  ;;  %10314 = vst [vmem:[#allocation127_spill] sm:$0xff] %v6986_v23 }
 0x16e   : > { %10304 = vst [vmem:[#allocation117_spill] sm:$0xff] %v6940_v12  ;;  %10306 = vst [vmem:[#allocation119_spill] sm:$0xff] %v6946_v20  ;;  %v2203_v63 = vrot.slane %v2201_v24, 1  ;;  %v2211_v20 = vrot.slane %v2209_v50, 1  ;;  %v6992_v24 = vsel %vm1125_vm0, %v2175_v26, %v2179_v33  ;;  %v2229_v26 = vshrl.u32 %v6986_v23, 16 }
 0x16f   : > { %2247 = vrot.lane.b32.xlu1 %v6927_v43, %s5817_s4  ;;  %2245 = vrot.lane.b32.xlu0 %v6943_v36, %s5817_s4  ;;  %v6967_v43 = vsel %vm1125_vm0, %v2159_v35, %v2163_v59  ;;  %v2199_v36 = vor.u32 %v2197_v29, %v2195_v21  ;;  %v6978_v28 = vsel %vm1125_vm0, %v2183_v54, %v2187_v0  ;;  %v6981_v59 = vld [vmem:[%s6031_s29 + $0x100] sm:$0xff]   ;;  %v2233_v33 = vshll.u32 %v5658_v17, 16 }
 0x170   : > { %10311 = vst [vmem:[#allocation124_spill] sm:$0xff] %v6967_v43  ;;  %10312 = vst [vmem:[#allocation125_spill] sm:$0xff] %v6978_v28  ;;  %v2217_v35 = vshll.u32 %v6981_v59, 16  ;;  %v2191_v50 = vor.u32 %v2189_v34, %v2187_v0  ;;  %v2215_v55 = vor.u32 %v2213_v56, %v2211_v20 }
 0x171   : > { %v6964_v48 = vpop.permute.xlu1 %1712  ;;  %v6970_v12 = vpop.permute.xlu0 %1710  ;;  %10313 = vst [vmem:[#allocation126_spill] sm:$0xff] %v6981_v59  ;;  %10316 = vst [vmem:[#allocation129_spill] sm:$0xff] %v6992_v24  ;;  %v7000_v54 = vsel %vm1125_vm0, %v2199_v36, %v2203_v63  ;;  %v2235_v56 = vrot.slane %v2233_v33, 1 }
 0x172   : > { %10310 = vst [vmem:[#allocation123_spill] sm:$0xff] %v6964_v48  ;;  %10318 = vst [vmem:[#allocation131_spill] sm:$0xff] %v7000_v54  ;;  %v2219_v48 = vrot.slane %v2217_v35, 1  ;;  %v7008_v0 = vsel %vm1125_vm0, %v2191_v50, %v2195_v21 }
 0x173   : > { %2251 = vrot.lane.b32.xlu1 %v6962_v61, %s5817_s4  ;;  %2249 = vrot.lane.b32.xlu0 %v6967_v43, %s5817_s4  ;;  %v2225_v61 = vshll.u32 %v6986_v23, 16  ;;  %v2205_v43 = vshrl.u32 %v6952_v5, 16  ;;  %10319 = vst [vmem:[#allocation132_spill] sm:$0xff] %v7008_v0  ;;  %v10333_v23 = vld [vmem:[#allocation27_spill] sm:$0xff] }
 0x174   : > { %v7018_v36 = vsel %vm1125_vm0, %v2215_v55, %v2219_v48 }
 0x175   : > { %v6989_v29 = vpop.permute.xlu1 %1716  ;;  %v6995_v16 = vpop.permute.xlu0 %1714  ;;  %v2207_v5 = vor.u32 %v2205_v43, %v2203_v63  ;;  %10320 = vst [vmem:[#allocation133_spill] sm:$0xff] %v7018_v36 }
 0x176   : > { %10315 = vst [vmem:[#allocation128_spill] sm:$0xff] %v6989_v29  ;;  %10317 = vst [vmem:[#allocation130_spill] sm:$0xff] %v6995_v16  ;;  %v2227_v29 = vrot.slane %v2225_v61, 1 }
 0x177   : > { %2255 = vrot.lane.b32.xlu1 %v6978_v28, %s5817_s4  ;;  %2253 = vrot.lane.b32.xlu0 %v6992_v24, %s5817_s4  ;;  %v2221_v28 = vshrl.u32 %v6981_v59, 16  ;;  %v7025_v43 = vsel %vm1125_vm0, %v2207_v5, %v2211_v20 }
 0x178   : > { %v7020_v61 = vor.u32 %v2229_v26, %v2227_v29  ;;  %10322 = vst [vmem:[#allocation135_spill] sm:$0xff] %v7025_v43 }
 0x179   : > { %v7005_v34 = vpop.permute.xlu1 %1725  ;;  %v7011_v16 = vpop.permute.xlu0 %1723  ;;  %v2223_v21 = vor.u32 %v2221_v28, %v2219_v48  ;;  %v10324_v48 = vld [vmem:[#allocation20_spill] sm:$0xff]  ;;  %v10325_v28 = vld [vmem:[#allocation21_spill] sm:$0xff] }
 0x17a   : > { %10321 = vst [vmem:[#allocation134_spill] sm:$0xff] %v7020_v61  ;;  %v2236_v55 = vsel %vm1125_vm0, %v7020_v61, %v2235_v56  ;;  %v10326_v56 = vld [vmem:[#allocation22_spill] sm:$0xff] }
 0x17b   : > { %2259 = vrot.lane.b32.xlu1 %v7000_v54, %s5817_s4  ;;  %2257 = vrot.lane.b32.xlu0 %v7008_v0, %s5817_s4  ;;  %v7038_v50 = vsel %vm1125_vm0, %v2223_v21, %v2227_v29  ;;  %v10327_v21 = vld [vmem:[#allocation23_spill] sm:$0xff]  ;;  %v10332_v0 = vld [vmem:[#allocation33_spill] sm:$0xff] }
 0x17c   : > { %10323 = vst [vmem:[#allocation136_spill] sm:$0xff] %v7038_v50 }
 0x17d   : > { %v7022_v35 = vpop.permute.xlu1 %1729  ;;  %v7027_v63 = vpop.permute.xlu0 %1727 }
 0x17f   : > { %2263 = vrot.lane.b32.xlu1 %v7018_v36, %s5817_s4  ;;  %2261 = vrot.lane.b32.xlu0 %v7025_v43, %s5817_s4  ;;  %v10331_v43 = vld [vmem:[#allocation26_spill] sm:$0xff] }
 0x181   : > { %v7035_v17 = vpop.permute.xlu1 %1733  ;;  %v7040_v26 = vpop.permute.xlu0 %1731 }
 0x183   : > { %2267 = vrot.lane.b32.xlu1 %v2236_v55, %s5817_s4  ;;  %2265 = vrot.lane.b32.xlu0 %v7038_v50, %s5817_s4 }
 0x185   : > { %v7045_v5 = vpop.permute.xlu1 %1737  ;;  %v7047_v20 = vpop.permute.xlu0 %1735 }
 0x187   : > { %2271 = vrot.lane.b32.xlu1 %v10324_v48, %s5818_s5  ;;  %2269 = vrot.lane.b32.xlu0 %v10325_v28, %s5818_s5  ;;  %v10328_v48 = vld [vmem:[#allocation24_spill] sm:$0xff]  ;;  %v10329_v28 = vld [vmem:[#allocation25_spill] sm:$0xff] }
 0x189   : > { %v7053_v29 = vpop.permute.xlu1 %1741  ;;  %v7055_v33 = vpop.permute.xlu0 %1739 }
 0x18b   : > { %2275 = vrot.lane.b32.xlu1 %v10326_v56, %s5818_s5  ;;  %2273 = vrot.lane.b32.xlu0 %v10327_v21, %s5818_s5  ;;  %v7074_v56 = vld [vmem:[%s6031_s29 + $0x8] sm:$0xff]   ;;  %v10330_v21 = vld [vmem:[#allocation37_spill] sm:$0xff] }
 0x18c   : > { %v1807_v54 = vsel %vm1803_vm3, %v7074_v56, %v10330_v21 }
 0x18d   : > { %v7061_v55 = vpop.permute.xlu1 %1745  ;;  %v7063_v61 = vpop.permute.xlu0 %1743  ;;  %v1840_v24 = vsel %vm1836_vm4, %v1807_v54, %v6541_v62  ;;  %v10335_v54 = vld [vmem:[#allocation32_spill] sm:$0xff] }
 0x18e   : > { %v1873_v21 = vsel %vm1869_vm5, %v1840_v24, %v6624_v31  ;;  %v10334_v31 = vld [vmem:[#allocation28_spill] sm:$0xff]  ;;  %v7107_v24 = vld [vmem:[%s6031_s29 + $0x10] sm:$0xff]  }
 0x18f   : > { %2279 = vrot.lane.b32.xlu1 %v10328_v48, %s5818_s5  ;;  %2277 = vrot.lane.b32.xlu0 %v10329_v28, %s5818_s5  ;;  %v5684_v48 = vld [vmem:[%s6031_s29] sm:$0xff]  }
 0x190   : > { %v1805_v28 = vsel %vm1803_vm3, %v5684_v48, %v10332_v0  ;;  %v1906_v48 = vsel %vm1902_vm6, %v1873_v21, %v6703_v32 }
 0x191   : > { %v7069_v36 = vpop.permute.xlu1 %1749  ;;  %v7071_v50 = vpop.permute.xlu0 %1747  ;;  %v1838_v59 = vsel %vm1836_vm4, %v1805_v28, %v6547_v7  ;;  %v1939_v7 = vsel %vm1935_vm7, %v1906_v48, %v6770_v15 }
 0x192   : > { %v1871_v0 = vsel %vm1869_vm5, %v1838_v59, %v6626_v37  ;;  %v1809_v37 = vsel %vm1803_vm3, %v7107_v24, %v10335_v54  ;;  %v1972_v59 = vsel %vm1968_vm8, %v1939_v7, %v6845_v6 }
 0x193   : > { %2283 = vrot.lane.b32.xlu1 %v10331_v43, %s5818_s5  ;;  %2281 = vrot.lane.b32.xlu0 %v10333_v23, %s5818_s5  ;;  %v1904_v23 = vsel %vm1902_vm6, %v1871_v0, %v6705_v2  ;;  %v10336_v2 = vld [vmem:[#allocation29_spill] sm:$0xff]  ;;  %v1842_v15 = vsel %vm1836_vm4, %v1809_v37, %v6563_v39  ;;  %v2005_v21 = vsel %vm2001_vm9, %v1972_v59, %v7005_v34 }
 0x194   : > { %v1937_v32 = vsel %vm1935_vm7, %v1904_v23, %v6772_v46  ;;  %v1875_v46 = vsel %vm1869_vm5, %v1842_v15, %v6634_v51  ;;  %v7140_v51 = vld [vmem:[%s6031_s29 + $0x18] sm:$0xff]  }
 0x195   : > { %v7092_v43 = vpop.permute.xlu1 %1753  ;;  %v7098_v62 = vpop.permute.xlu0 %1751  ;;  %v1970_v28 = vsel %vm1968_vm8, %v1937_v32, %v6848_v14  ;;  %v1908_v39 = vsel %vm1902_vm6, %v1875_v46, %v6713_v22  ;;  %v10337_v14 = vld [vmem:[#allocation30_spill] sm:$0xff]  ;;  %v7149_v32 = vld [vmem:[%s6031_s29 + $0x20] sm:$0xff]  }
 0x196   : > { %v2003_v6 = vsel %vm2001_vm9, %v1970_v28, %v7011_v16  ;;  %v1941_v7 = vsel %vm1935_vm7, %v1908_v39, %v6780_v10  ;;  %v10339_v16 = vld [vmem:[#allocation36_spill] sm:$0xff]  ;;  %v1813_v10 = vsel %vm1803_vm3, %v7149_v32, %v6440_v3 }
 0x197   : > { %2287 = vrot.lane.b32.xlu1 %v10334_v31, %s5818_s5  ;;  %2285 = vrot.lane.b32.xlu0 %v10336_v2, %s5818_s5  ;;  %v10338_v31 = vld [vmem:[#allocation31_spill] sm:$0xff]  ;;  %v1811_v54 = vsel %vm1803_vm3, %v7140_v51, %v10339_v16  ;;  %v1974_v22 = vsel %vm1968_vm8, %v1941_v7, %v6859_v8  ;;  %v1846_v28 = vsel %vm1836_vm4, %v1813_v10, %v6578_v44 }
 0x198   : > { %v1844_v59 = vsel %vm1836_vm4, %v1811_v54, %v6558_v42  ;;  %v2007_v2 = vsel %vm2001_vm9, %v1974_v22, %v7027_v63  ;;  %v1879_v3 = vsel %vm1869_vm5, %v1846_v28, %v6645_v58  ;;  %v10341_v63 = vld [vmem:[#allocation35_spill] sm:$0xff]  ;;  %v10345_v54 = vld [vmem:[#allocation40_spill] sm:$0xff] }
 0x199   : > { %v1774_v0 = vpop.permute.xlu1 %1773  ;;  %v1772_v23 = vpop.permute.xlu0 %1771  ;;  %v1877_v8 = vsel %vm1869_vm5, %v1844_v59, %v6632_v40  ;;  %v1912_v44 = vsel %vm1902_vm6, %v1879_v3, %v6722_v13  ;;  %v10342_v13 = vld [vmem:[#allocation38_spill] sm:$0xff] }
 0x19a   : > { %v2038_v48 = vsel %vm2034_vm10, %v2005_v21, %v1774_v0  ;;  %v2036_v34 = vsel %vm2034_vm10, %v2003_v6, %v1772_v23  ;;  %v10340_v0 = vld [vmem:[#allocation34_spill] sm:$0xff]  ;;  %v1910_v42 = vsel %vm1902_vm6, %v1877_v8, %v6711_v11  ;;  %v1945_v58 = vsel %vm1935_vm7, %v1912_v44, %v6795_v4  ;;  %v7192_v4 = vld [vmem:[%s6031_s29 + $0x28] sm:$0xff]   ;;  %v7252_v8 = vld [vmem:[%s6031_s29 + $0x40] sm:$0xff]  }
 0x19b   : > { %2291 = vrot.lane.b32.xlu1 %v10337_v14, %s5818_s5  ;;  %2289 = vrot.lane.b32.xlu0 %v10338_v31, %s5818_s5  ;;  %v1943_v40 = vsel %vm1935_vm7, %v1910_v42, %v6778_v47  ;;  %10343 = vst [vmem:[#allocation20_spill] sm:$0xff] %v7192_v4  ;;  %10350 = vst [vmem:[#allocation22_spill] sm:$0xff] %v7252_v8 }
 0x19c   : > { %5421 = vmatprep.mubr.msk.bf16.mxu0 %vm3951_vm11, %v2036_v34  ;;  %v1976_v6 = vsel %vm1968_vm8, %v1943_v40, %v6857_v53  ;;  %v10344_v53 = vld [vmem:[#allocation39_spill] sm:$0xff]  ;;  %v7200_v34 = vld [vmem:[%s6031_s29 + $0x30] sm:$0xff]  }
 0x19d   : > { %5422 = vmatmul.mubr.msk.bf16.vlgmr.msra.gmra.mrb[0].mxu0 %vm3951_vm11, %v2038_v48  ;;  %v1778_v37 = vpop.permute.xlu1 %1777  ;;  %v1776_v15 = vpop.permute.xlu0 %1775  ;;  %v1978_v48 = vsel %vm1968_vm8, %v1945_v58, %v6877_v18  ;;  %v2009_v23 = vsel %vm2001_vm9, %v1976_v6, %v7022_v35  ;;  %v1815_v18 = vsel %vm1803_vm3, %v7192_v4, %v10344_v53  ;;  %v10354_v40 = vld [vmem:[#allocation75_spill] sm:$0xff]  ;;  %v10356_v6 = vld [vmem:[#allocation77_spill] sm:$0xff]  ;;  %v10360_v53 = vld [vmem:[#allocation94_spill] sm:$0xff] }
 0x19e   : > { %v2040_v21 = vsel %vm2034_vm10, %v2007_v2, %v1776_v15  ;;  %v2011_v47 = vsel %vm2001_vm9, %v1978_v48, %v7040_v26  ;;  %v2042_v39 = vsel %vm2034_vm10, %v2009_v23, %v1778_v37  ;;  %v1817_v26 = vsel %vm1803_vm3, %v7200_v34, %v6458_v49  ;;  %v7242_v15 = vld [vmem:[%s6031_s29 + $0x38] sm:$0xff]   ;;  %v10355_v58 = vld [vmem:[#allocation47_spill] sm:$0xff]  ;;  %v10357_v48 = vld [vmem:[#allocation84_spill] sm:$0xff] }
 0x19f   : > { %2295 = vrot.lane.b32.xlu1 %v10340_v0, %s5818_s5  ;;  %2293 = vrot.lane.b32.xlu0 %v10341_v63, %s5818_s5  ;;  %v1850_v31 = vsel %vm1836_vm4, %v1817_v26, %v6586_v25  ;;  %10348 = vst [vmem:[#allocation21_spill] sm:$0xff] %v7242_v15  ;;  %v10352_v0 = vld [vmem:[#allocation66_spill] sm:$0xff]  ;;  %v10353_v63 = vld [vmem:[#allocation68_spill] sm:$0xff]  ;;  %v10361_v26 = vld [vmem:[#allocation95_spill] sm:$0xff] }
 0x1a0   : > { %5425 = vmatprep.mubr.msk.bf16.mxu0 %vm3951_vm11, %v2040_v21  ;;  %v1883_v22 = vsel %vm1869_vm5, %v1850_v31, %v6653_v9  ;;  %v7536_v4 = vld [vmem:[%s6031_s29 + $0x208] sm:$0xff]  }
 0x1a1   : > { %v1782_v46 = vpop.permute.xlu1 %1781  ;;  %v1780_v11 = vpop.permute.xlu0 %1779  ;;  %v1916_v37 = vsel %vm1902_vm6, %v1883_v22, %v6729_v27  ;;  %v10363_v22 = vld [vmem:[#allocation113_spill] sm:$0xff] }
 0x1a2   : > { %v2044_v14 = vsel %vm2034_vm10, %v2011_v47, %v1780_v11  ;;  %v1949_v10 = vsel %vm1935_vm7, %v1916_v37, %v6803_v41  ;;  %v10347_v41 = vld [vmem:[#allocation45_spill] sm:$0xff]  ;;  %v10359_v47 = vld [vmem:[#allocation86_spill] sm:$0xff] }
 0x1a3   : > { %2299 = vrot.lane.b32.xlu1 %v10342_v13, %s5818_s5  ;;  %2297 = vrot.lane.b32.xlu0 %v6433_v38, %s5818_s5  ;;  %v1848_v38 = vsel %vm1836_vm4, %v1815_v18, %v6573_v60  ;;  %v10346_v60 = vld [vmem:[#allocation42_spill] sm:$0xff]  ;;  %v10358_v13 = vld [vmem:[#allocation49_spill] sm:$0xff] }
 0x1a4   : > { %v1881_v16 = vsel %vm1869_vm5, %v1848_v38, %v6643_v57 }
 0x1a5   : > { %5426 = vmatmul.mubr.msk.bf16.gmra.mrb[4].mxu0 %vm3951_vm11, %v2042_v39  ;;  %v1786_v35 = vpop.permute.xlu1 %1785  ;;  %v1784_v7 = vpop.permute.xlu0 %1783  ;;  %v1914_v49 = vsel %vm1902_vm6, %v1881_v16, %v6720_v19  ;;  %v1982_v19 = vsel %vm1968_vm8, %v1949_v10, %v6899_v1 }
 0x1a6   : > { %5429 = vmatprep.mubr.msk.bf16.mxu0 %vm3951_vm11, %v2044_v14  ;;  %v1947_v25 = vsel %vm1935_vm7, %v1914_v49, %v6789_v30  ;;  %v2015_v30 = vsel %vm2001_vm9, %v1982_v19, %v7047_v20  ;;  %v10351_v20 = vld [vmem:[#allocation46_spill] sm:$0xff]  ;;  %v10365_v19 = vld [vmem:[#allocation53_spill] sm:$0xff] }
 0x1a7   : > { %2303 = vrot.lane.b32.xlu1 %v10345_v54, %s5819_s6  ;;  %2301 = vrot.lane.b32.xlu0 %v10346_v60, %s5819_s6  ;;  %v1980_v9 = vsel %vm1968_vm8, %v1947_v25, %v6874_v52  ;;  %v10349_v52 = vld [vmem:[#allocation41_spill] sm:$0xff]  ;;  %v2048_v28 = vsel %vm2034_vm10, %v2015_v30, %v1784_v7  ;;  %v1821_v21 = vsel %vm1803_vm3, %v7252_v8, %v10351_v20  ;;  %v10362_v7 = vld [vmem:[#allocation107_spill] sm:$0xff]  ;;  %v10367_v30 = vld [vmem:[#allocation44_spill] sm:$0xff] }
 0x1a8   : > { %v2013_v2 = vsel %vm2001_vm9, %v1980_v9, %v7035_v17  ;;  %v1819_v1 = vsel %vm1803_vm3, %v7242_v15, %v10349_v52  ;;  %v1854_v44 = vsel %vm1836_vm4, %v1821_v21, %v10353_v63  ;;  %v10364_v25 = vld [vmem:[#allocation51_spill] sm:$0xff]  ;;  %v10409_v15 = vld [vmem:[#allocation117_spill] sm:$0xff] }
 0x1a9   : > { %v7224_v57 = vpop.permute.xlu1 %1789  ;;  %v1788_v59 = vpop.permute.xlu0 %1787  ;;  %v2046_v27 = vsel %vm2034_vm10, %v2013_v2, %v1782_v46  ;;  %v1852_v3 = vsel %vm1836_vm4, %v1819_v1, %v10352_v0  ;;  %v1887_v11 = vsel %vm1869_vm5, %v1854_v44, %v10356_v6  ;;  %v7298_v2 = vld [vmem:[%s6031_s29 + $0x48] sm:$0xff]   ;;  %v7312_v1 = vld [vmem:[%s6031_s29 + $0x50] sm:$0xff]   ;;  %v10370_v21 = vld [vmem:[#allocation67_spill] sm:$0xff] }
 0x1aa   : > { %v1885_v46 = vsel %vm1869_vm5, %v1852_v3, %v10354_v40  ;;  %v1920_v39 = vsel %vm1902_vm6, %v1887_v11, %v10359_v47  ;;  %10366 = vst [vmem:[#allocation23_spill] sm:$0xff] %v7298_v2  ;;  %10368 = vst [vmem:[#allocation24_spill] sm:$0xff] %v7312_v1  ;;  %v10371_v3 = vld [vmem:[#allocation70_spill] sm:$0xff]  ;;  %v10372_v44 = vld [vmem:[#allocation76_spill] sm:$0xff] }
 0x1ab   : > { %2307 = vrot.lane.b32.xlu1 %v6467_v45, %s5819_s6  ;;  %2305 = vrot.lane.b32.xlu0 %v10347_v41, %s5819_s6  ;;  %v1918_v23 = vsel %vm1902_vm6, %v1885_v46, %v10357_v48  ;;  %v1953_v38 = vsel %vm1935_vm7, %v1920_v39, %v10361_v26  ;;  %v10373_v46 = vld [vmem:[#allocation55_spill] sm:$0xff]  ;;  %v7329_v6 = vld [vmem:[%s6031_s29 + $0x1b0] sm:$0xff]   ;;  %v7333_v48 = vld [vmem:[%s6031_s29 + $0x58] sm:$0xff]  }
 0x1ac   : > { %v1951_v18 = vsel %vm1935_vm7, %v1918_v23, %v10360_v53  ;;  %v1986_v49 = vsel %vm1968_vm8, %v1953_v38, %v10363_v22  ;;  %v2339_v11 = vshll.u32 %v7329_v6, 16  ;;  %10374 = vst [vmem:[#allocation25_spill] sm:$0xff] %v7333_v48  ;;  %v10375_v23 = vld [vmem:[#allocation48_spill] sm:$0xff]  ;;  %v10378_v26 = vld [vmem:[#allocation79_spill] sm:$0xff]  ;;  %v10380_v22 = vld [vmem:[#allocation57_spill] sm:$0xff] }
 0x1ad   : > { %5430 = vmatmul.mubr.msk.bf16.gmra.mrb[8].mxu0 %vm3951_vm11, %v2046_v27  ;;  %v7249_v17 = vpop.permute.xlu1 %1793  ;;  %v7260_v42 = vpop.permute.xlu0 %1791  ;;  %v1984_v31 = vsel %vm1968_vm8, %v1951_v18, %v10362_v7  ;;  %v2019_v10 = vsel %vm2001_vm9, %v1986_v49, %v7055_v33  ;;  %v1823_v27 = vsel %vm1803_vm3, %v7298_v2, %v10367_v30  ;;  %v7308_v33 = vld [vmem:[%s6031_s29 + $0x1b8] sm:$0xff]   ;;  %v1827_v47 = vsel %vm1803_vm3, %v7333_v48, %v10375_v23  ;;  %v7339_v39 = vld [vmem:[%s6031_s29 + $0x68] sm:$0xff]   ;;  %v10379_v7 = vld [vmem:[#allocation85_spill] sm:$0xff] }
 0x1ae   : > { %5433 = vmatprep.mubr.msk.bf16.mxu0 %vm3951_vm11, %v2048_v28  ;;  %v2017_v37 = vsel %vm2001_vm9, %v1984_v31, %v7045_v5  ;;  %v2052_v5 = vsel %vm2034_vm10, %v2019_v10, %v1788_v59  ;;  %v10369_v28 = vld [vmem:[#allocation50_spill] sm:$0xff]  ;;  %v1856_v0 = vsel %vm1836_vm4, %v1823_v27, %v10370_v21  ;;  %10376 = vst [vmem:[#allocation37_spill] sm:$0xff] %v7339_v39  ;;  %v10377_v53 = vld [vmem:[#allocation52_spill] sm:$0xff]  ;;  %v10385_v21 = vld [vmem:[#allocation111_spill] sm:$0xff] }
 0x1af   : > { %2311 = vrot.lane.b32.xlu1 %v10355_v58, %s5819_s6  ;;  %2309 = vrot.lane.b32.xlu0 %v10358_v13, %s5819_s6  ;;  %v2050_v9 = vsel %vm2034_vm10, %v2017_v37, %v1786_v35  ;;  %v2344_v35 = vshll.u32 %v7308_v33, 16  ;;  %v1825_v20 = vsel %vm1803_vm3, %v7312_v1, %v10369_v28  ;;  %v1889_v40 = vsel %vm1869_vm5, %v1856_v0, %v10372_v44  ;;  %v10381_v49 = vld [vmem:[#allocation88_spill] sm:$0xff]  ;;  %v10384_v28 = vld [vmem:[#allocation97_spill] sm:$0xff]  ;;  %v10387_v23 = vld [vmem:[#allocation119_spill] sm:$0xff] }
 0x1b0   : > { %v1858_v63 = vsel %vm1836_vm4, %v1825_v20, %v10371_v3  ;;  %v7344_v18 = vsel %vm1803_vm3, %v7339_v39, %v10377_v53  ;;  %v1922_v31 = vsel %vm1902_vm6, %v1889_v40, %v10379_v7  ;;  %v10382_v10 = vld [vmem:[#allocation4_spill] sm:$0xff]  ;;  %v2337_v40 = vshrl.u32 %v7329_v6, 16  ;;  %v10396_v39 = vld [vmem:[#allocation69_spill] sm:$0xff] }
 0x1b1   : > { %v7278_v14 = vpop.permute.xlu1 %1797  ;;  %v7284_v16 = vpop.permute.xlu0 %1795  ;;  %v1891_v38 = vsel %vm1869_vm5, %v1858_v63, %v10378_v26  ;;  %v2346_v27 = vrot.slane %v2344_v35, 1  ;;  %v7366_v63 = vld [vmem:[%s6031_s29 + $0x1c0] sm:$0xff]   ;;  %v7377_v7 = vld [vmem:[%s6031_s29 + $0x1c8] sm:$0xff]   ;;  %v1860_v48 = vsel %vm1836_vm4, %v1827_v47, %v10396_v39 }
 0x1b2   : > { %v1924_v37 = vsel %vm1902_vm6, %v1891_v38, %v10381_v49  ;;  %v2352_v44 = vshll.u32 %v7366_v63, 16  ;;  %v10388_v26 = vld [vmem:[#allocation59_spill] sm:$0xff]  ;;  %v2341_v38 = vrot.slane %v2339_v11, 1 }
 0x1b3   : > { %2315 = vrot.lane.b32.xlu1 %v10364_v25, %s5819_s6  ;;  %2313 = vrot.lane.b32.xlu0 %v10365_v19, %s5819_s6  ;;  %v1957_v20 = vsel %vm1935_vm7, %v1924_v37, %v10384_v28  ;;  %v7381_v49 = vld [vmem:[%s6031_s29 + $0x60] sm:$0xff]   ;;  %v10390_v37 = vld [vmem:[#allocation54_spill] sm:$0xff]  ;;  %v10392_v28 = vld [vmem:[#allocation56_spill] sm:$0xff] }
 0x1b4   : > { %v1990_v35 = vsel %vm1968_vm8, %v1957_v20, %v10387_v23  ;;  %10389 = vst [vmem:[#allocation27_spill] sm:$0xff] %v7381_v49  ;;  %v10395_v23 = vld [vmem:[#allocation58_spill] sm:$0xff]  ;;  %v2354_v39 = vrot.slane %v2352_v44, 1  ;;  %v7436_v44 = vld [vmem:[%s6031_s29 + $0x1d0] sm:$0xff]  }
 0x1b5   : > { %5434 = vmatmul.mubr.msk.bf16.gmra.mrb[12].mxu0 %vm3951_vm11, %v2050_v9  ;;  %v7305_v52 = vpop.permute.xlu1 %1801  ;;  %v7320_v59 = vpop.permute.xlu0 %1799  ;;  %v1955_v9 = vsel %vm1935_vm7, %v1922_v31, %v10382_v10  ;;  %v2360_v31 = vshll.u32 %v7377_v7, 16  ;;  %v1829_v10 = vsel %vm1803_vm3, %v7381_v49, %v10390_v37  ;;  %v2023_v11 = vsel %vm2001_vm9, %v1990_v35, %v7063_v61  ;;  %v10399_v49 = vld [vmem:[#allocation78_spill] sm:$0xff] }
 0x1b6   : > { %5437 = vmatprep.mubr.msk.bf16.mxu0 %vm3951_vm11, %v2052_v5  ;;  %v2348_v5 = vshrl.u32 %v7308_v33, 16  ;;  %v1988_v0 = vsel %vm1968_vm8, %v1955_v9, %v10385_v21  ;;  %v7387_v9 = vld [vmem:[%s6031_s29 + $0x78] sm:$0xff]   ;;  %v10393_v21 = vld [vmem:[#allocation60_spill] sm:$0xff] }
 0x1b7   : > { %2319 = vrot.lane.b32.xlu1 %v10373_v46, %s5819_s6  ;;  %2317 = vrot.lane.b32.xlu0 %v10380_v22, %s5819_s6  ;;  %v2021_v53 = vsel %vm2001_vm9, %v1988_v0, %v7053_v29  ;;  %10391 = vst [vmem:[#allocation28_spill] sm:$0xff] %v7387_v9  ;;  %v7392_v29 = vsel %vm1803_vm3, %v7387_v9, %v10392_v28  ;;  %v7401_v0 = vld [vmem:[%s6031_s29 + $0x70] sm:$0xff]   ;;  %v2362_v2 = vrot.slane %v2360_v31, 1 }
 0x1b8   : > { %v2054_v20 = vsel %vm2034_vm10, %v2021_v53, %v7224_v57  ;;  %10394 = vst [vmem:[#allocation32_spill] sm:$0xff] %v7401_v0  ;;  %v1833_v37 = vsel %vm1803_vm3, %v7401_v0, %v10395_v23  ;;  %v2056_v28 = vsel %vm2034_vm10, %v2023_v11, %v7260_v42  ;;  %v7414_v57 = vld [vmem:[%s6031_s29 + $0x1d8] sm:$0xff]   ;;  %v10398_v53 = vld [vmem:[#allocation72_spill] sm:$0xff]  ;;  %v1893_v23 = vsel %vm1869_vm5, %v1860_v48, %v10399_v49  ;;  %v10401_v11 = vld [vmem:[#allocation81_spill] sm:$0xff] }
 0x1b9   : > { %v7356_v30 = vpop.permute.xlu1 %2072  ;;  %v7363_v3 = vpop.permute.xlu0 %2070  ;;  %v2376_v35 = vshll.u32 %v7414_v57, 16  ;;  %v1862_v9 = vsel %vm1836_vm4, %v1829_v10, %v10398_v53  ;;  %v2350_v42 = vor.u32 %v2348_v5, %v2346_v27  ;;  %v10402_v0 = vld [vmem:[#allocation61_spill] sm:$0xff]  ;;  %v2364_v10 = vshrl.u32 %v7377_v7, 16  ;;  %v10403_v53 = vld [vmem:[#allocation87_spill] sm:$0xff]  ;;  %v10404_v49 = vld [vmem:[#allocation90_spill] sm:$0xff] }
 0x1ba   : > { %10383 = vst [vmem:[#allocation26_spill] sm:$0xff] %v7356_v30  ;;  %10386 = vst [vmem:[#allocation33_spill] sm:$0xff] %v7363_v3  ;;  %v1926_v48 = vsel %vm1902_vm6, %v1893_v23, %v10403_v53  ;;  %v10405_v5 = vld [vmem:[#allocation63_spill] sm:$0xff]  ;;  %v2380_v23 = vshrl.u32 %v7414_v57, 16 }
 0x1bb   : > { %2323 = vrot.lane.b32.xlu1 %v10388_v26, %s5819_s6  ;;  %2321 = vrot.lane.b32.xlu0 %v10393_v21, %s5819_s6  ;;  %v7448_v53 = vld [vmem:[%s6031_s29 + $0x1e0] sm:$0xff]  }
 0x1bd   : > { %5438 = vmatmul.mubr.msk.bf16.gmra.mrb[16].mxu0 %vm3951_vm11, %v2054_v20  ;;  %v7411_v61 = vpop.permute.xlu1 %2076  ;;  %v7422_v47 = vpop.permute.xlu0 %2074  ;;  %v1895_v20 = vsel %vm1869_vm5, %v1862_v9, %v10401_v11  ;;  %v2368_v9 = vshll.u32 %v7436_v44, 16  ;;  %v2356_v11 = vshrl.u32 %v7366_v63, 16 }
 0x1be   : > { %10397 = vst [vmem:[#allocation29_spill] sm:$0xff] %v7411_v61  ;;  %5441 = vmatprep.mubr.msk.bf16.mxu0 %vm3951_vm11, %v2056_v28  ;;  %10400 = vst [vmem:[#allocation30_spill] sm:$0xff] %v7422_v47  ;;  %v2342_v61 = vor.u32 %v2341_v38, %v2337_v40  ;;  %v1928_v28 = vsel %vm1902_vm6, %v1895_v20, %v10404_v49  ;;  %v10406_v40 = vld [vmem:[#allocation96_spill] sm:$0xff]  ;;  %v7444_v47 = vrot.slane %v2376_v35, 1  ;;  %v2384_v20 = vshll.u32 %v7448_v53, 16  ;;  %v10408_v49 = vld [vmem:[#allocation99_spill] sm:$0xff] }
 0x1bf   : > { %2327 = vrot.lane.b32.xlu1 %v10402_v0, %s5819_s6  ;;  %2325 = vrot.lane.b32.xlu0 %v10405_v5, %s5819_s6  ;;  %v1959_v38 = vsel %vm1935_vm7, %v1926_v48, %v10406_v40  ;;  %v1961_v1 = vsel %vm1935_vm7, %v1928_v28, %v10408_v49  ;;  %v7458_v48 = vsel %vm1125_vm0, %v2350_v42, %v2354_v39  ;;  %v7461_v40 = vld [vmem:[%s6031_s29 + $0x1e8] sm:$0xff]  }
 0x1c0   : > { %v1992_v3 = vsel %vm1968_vm8, %v1959_v38, %v10409_v15  ;;  %10411 = vst [vmem:[#allocation34_spill] sm:$0xff] %v7458_v48  ;;  %v2392_v35 = vshll.u32 %v7461_v40, 16  ;;  %v10412_v28 = vld [vmem:[#allocation64_spill] sm:$0xff]  ;;  %v7471_v15 = vsel %vm1125_vm0, %v2342_v61, %v2346_v27  ;;  %v2366_v38 = vor.u32 %v2364_v10, %v2362_v2  ;;  %v10417_v10 = vld [vmem:[#allocation74_spill] sm:$0xff] }
 0x1c1   : > { %v7442_v31 = vpop.permute.xlu1 %2080  ;;  %v7455_v8 = vpop.permute.xlu0 %2078  ;;  %v2025_v30 = vsel %vm2001_vm9, %v1992_v3, %v7061_v55  ;;  %10413 = vst [vmem:[#allocation35_spill] sm:$0xff] %v7471_v15  ;;  %v2382_v3 = vor.u32 %v2380_v23, %v7444_v47  ;;  %v2372_v61 = vshrl.u32 %v7436_v44, 16 }
 0x1c2   : > { %10407 = vst [vmem:[#allocation31_spill] sm:$0xff] %v7442_v31  ;;  %10410 = vst [vmem:[#allocation36_spill] sm:$0xff] %v7455_v8  ;;  %v1994_v31 = vsel %vm1968_vm8, %v1961_v1, %v6970_v12  ;;  %v2058_v49 = vsel %vm2034_vm10, %v2025_v30, %v7249_v17  ;;  %v10414_v8 = vld [vmem:[#allocation65_spill] sm:$0xff]  ;;  %v2370_v12 = vrot.slane %v2368_v9, 1  ;;  %v2358_v1 = vor.u32 %v2356_v11, %v2354_v39  ;;  %v10416_v17 = vld [vmem:[#allocation71_spill] sm:$0xff] }
 0x1c3   : > { %2331 = vrot.lane.b32.xlu1 %v10412_v28, %s5819_s6  ;;  %v2027_v42 = vsel %vm2001_vm9, %v1994_v31, %v7071_v50  ;;  %2329 = vrot.lane.b32.xlu0 %v10414_v8, %s5819_s6  ;;  %v2386_v50 = vrot.slane %v2384_v20, 1  ;;  %v1864_v30 = vsel %vm1836_vm4, %v7344_v18, %v10416_v17  ;;  %v1866_v39 = vsel %vm1836_vm4, %v1833_v37, %v10417_v10  ;;  %v10419_v31 = vld [vmem:[#allocation80_spill] sm:$0xff]  ;;  %v10420_v20 = vld [vmem:[#allocation83_spill] sm:$0xff]  ;;  %v7502_v18 = vld [vmem:[%s6031_s29 + $0x1f0] sm:$0xff]  }
 0x1c4   : > { %v2060_v55 = vsel %vm2034_vm10, %v2027_v42, %v7284_v16  ;;  %v2394_v9 = vrot.slane %v2392_v35, 1  ;;  %v2396_v11 = vshrl.u32 %v7461_v40, 16  ;;  %v1897_v23 = vsel %vm1869_vm5, %v1864_v30, %v10419_v31  ;;  %v10422_v10 = vld [vmem:[#allocation92_spill] sm:$0xff] }
 0x1c5   : > { %5442 = vmatmul.mubr.msk.bf16.gmra.mrb[20].mxu0 %vm3951_vm11, %v2058_v49  ;;  %v7482_v27 = vpop.permute.xlu1 %2084  ;;  %v7492_v16 = vpop.permute.xlu0 %2082  ;;  %v1899_v42 = vsel %vm1869_vm5, %v1866_v39, %v10420_v20  ;;  %v2400_v37 = vshll.u32 %v7502_v18, 16  ;;  %v7506_v49 = vld [vmem:[%s6031_s29 + $0x1f8] sm:$0xff]   ;;  %v7516_v39 = vsel %vm1125_vm0, %v2366_v38, %v2370_v12  ;;  %v7519_v31 = vsel %vm1125_vm0, %v2358_v1, %v2362_v2  ;;  %v10429_v38 = vld [vmem:[#allocation123_spill] sm:$0xff] }
 0x1c6   : > { %10415 = vst [vmem:[#allocation38_spill] sm:$0xff] %v7482_v27  ;;  %5445 = vmatprep.mubr.msk.bf16.mxu0 %vm3951_vm11, %v2060_v55  ;;  %10418 = vst [vmem:[#allocation39_spill] sm:$0xff] %v7492_v16  ;;  %v2408_v35 = vshll.u32 %v7506_v49, 16  ;;  %v10421_v55 = vld [vmem:[#allocation89_spill] sm:$0xff]  ;;  %v1932_v30 = vsel %vm1902_vm6, %v1899_v42, %v10422_v10  ;;  %v10425_v20 = vld [vmem:[#allocation98_spill] sm:$0xff]  ;;  %v7526_v16 = vsel %vm1125_vm0, %v2382_v3, %v2386_v50  ;;  %v2388_v42 = vshrl.u32 %v7448_v53, 16 }
 0x1c7   : > { %2470 = vrot.lane.b32.xlu1 %v7458_v48, %s5820_s7  ;;  %v1930_v17 = vsel %vm1902_vm6, %v1897_v23, %v10421_v55  ;;  %2468 = vrot.lane.b32.xlu0 %v7471_v15, %s5820_s7  ;;  %10423 = vst [vmem:[#allocation40_spill] sm:$0xff] %v7516_v39  ;;  %10424 = vst [vmem:[#allocation45_spill] sm:$0xff] %v7519_v31  ;;  %v2374_v23 = vor.u32 %v2372_v61, %v2370_v12  ;;  %v10428_v55 = vld [vmem:[#allocation101_spill] sm:$0xff]  ;;  %v2402_v61 = vrot.slane %v2400_v37, 1 }
 0x1c8   : > { %v1963_v48 = vsel %vm1935_vm7, %v1930_v17, %v10425_v20  ;;  %10427 = vst [vmem:[#allocation46_spill] sm:$0xff] %v7526_v16  ;;  %v1965_v10 = vsel %vm1935_vm7, %v1932_v30, %v10428_v55  ;;  %v2398_v1 = vor.u32 %v2396_v11, %v2394_v9  ;;  %v2424_v17 = vshll.u32 %v7536_v4, 16  ;;  %v10431_v20 = vld [vmem:[#allocation130_spill] sm:$0xff] }
 0x1c9   : > { %v7523_v27 = vpop.permute.xlu1 %2088  ;;  %v1996_v15 = vsel %vm1968_vm8, %v1963_v48, %v10429_v38  ;;  %v7533_v2 = vpop.permute.xlu0 %2086  ;;  %v1998_v3 = vsel %vm1968_vm8, %v1965_v10, %v10431_v20  ;;  %v2410_v30 = vrot.slane %v2408_v35, 1  ;;  %v2412_v55 = vshrl.u32 %v7506_v49, 16  ;;  %v7553_v10 = vld [vmem:[%s6031_s29 + $0x200] sm:$0xff]   ;;  %v10434_v38 = vld [vmem:[#allocation73_spill] sm:$0xff] }
 0x1ca   : > { %10426 = vst [vmem:[#allocation41_spill] sm:$0xff] %v7523_v27  ;;  %10430 = vst [vmem:[#allocation66_spill] sm:$0xff] %v7533_v2  ;;  %v2029_v12 = vsel %vm2001_vm9, %v1996_v15, %v7069_v36  ;;  %v2031_v48 = vsel %vm2001_vm9, %v1998_v3, %v7098_v62  ;;  %v2416_v36 = vshll.u32 %v7553_v10, 16  ;;  %v2390_v37 = vor.u32 %v2388_v42, %v2386_v50  ;;  %v10437_v42 = vld [vmem:[#allocation91_spill] sm:$0xff]  ;;  %v10490_v27 = vld [vmem:[#allocation8_spill] sm:$0xff] }
 0x1cb   : > { %2474 = vrot.lane.b32.xlu1 %v7516_v39, %s5820_s7  ;;  %v2062_v11 = vsel %vm2034_vm10, %v2029_v12, %v7278_v14  ;;  %2472 = vrot.lane.b32.xlu0 %v7519_v31, %s5820_s7  ;;  %v2064_v15 = vsel %vm2034_vm10, %v2031_v48, %v7320_v59  ;;  %v7563_v14 = vsel %vm1125_vm0, %v2374_v23, %v7444_v47  ;;  %v2404_v35 = vshrl.u32 %v7502_v18, 16  ;;  %v10436_v48 = vld [vmem:[#allocation82_spill] sm:$0xff]  ;;  %v7578_v47 = vld [vmem:[%s6031_s29 + $0x210] sm:$0xff]  }
 0x1cc   : > { %10433 = vst [vmem:[#allocation75_spill] sm:$0xff] %v7563_v14  ;;  %v1868_v20 = vsel %vm1836_vm4, %v7392_v29, %v10434_v38  ;;  %v2426_v59 = vrot.slane %v2424_v17, 1  ;;  %v2428_v12 = vshrl.u32 %v7536_v4, 16  ;;  %v2432_v50 = vshll.u32 %v7578_v47, 16  ;;  %v7582_v23 = vld [vmem:[%s6031_s29 + $0x218] sm:$0xff]  }
 0x1cd   : > { %5446 = vmatmul.mubr.msk.bf16.gmra.mrb[24].mxu0 %vm3951_vm11, %v2062_v11  ;;  %v7559_v62 = vpop.permute.xlu1 %2092  ;;  %v7570_v3 = vpop.permute.xlu0 %2090  ;;  %v1901_v11 = vsel %vm1869_vm5, %v1868_v20, %v10436_v48  ;;  %v2440_v29 = vshll.u32 %v7582_v23, 16  ;;  %v7590_v17 = vsel %vm1125_vm0, %v2398_v1, %v2402_v61  ;;  %v2414_v38 = vor.u32 %v2412_v55, %v2410_v30  ;;  %v10439_v48 = vld [vmem:[#allocation100_spill] sm:$0xff] }
 0x1ce   : > { %10432 = vst [vmem:[#allocation68_spill] sm:$0xff] %v7559_v62  ;;  %5449 = vmatprep.mubr.msk.bf16.mxu0 %vm3951_vm11, %v2064_v15  ;;  %10435 = vst [vmem:[#allocation77_spill] sm:$0xff] %v7570_v3  ;;  %v1934_v15 = vsel %vm1902_vm6, %v1901_v11, %v10437_v42  ;;  %v2418_v20 = vrot.slane %v2416_v36, 1  ;;  %v7597_v31 = vsel %vm1125_vm0, %v2390_v37, %v2394_v9  ;;  %v2420_v11 = vshrl.u32 %v7553_v10, 16  ;;  %v10442_v42 = vld [vmem:[#allocation128_spill] sm:$0xff] }
 0x1cf   : > { %2478 = vrot.lane.b32.xlu1 %v7526_v16, %s5820_s7  ;;  %2476 = vrot.lane.b32.xlu0 %v7563_v14, %s5820_s7  ;;  %10438 = vst [vmem:[#allocation84_spill] sm:$0xff] %v7590_v17  ;;  %v1967_v16 = vsel %vm1935_vm7, %v1934_v15, %v10439_v48  ;;  %10441 = vst [vmem:[#allocation94_spill] sm:$0xff] %v7597_v31  ;;  %v2406_v62 = vor.u32 %v2404_v35, %v2402_v61  ;;  %v2434_v15 = vrot.slane %v2432_v50, 1  ;;  %v7617_v35 = vld [vmem:[%s6031_s29 + $0x220] sm:$0xff]   ;;  %v7622_v48 = vld [vmem:[%s6031_s29 + $0x228] sm:$0xff]  }
 0x1d0   : > { %v2000_v1 = vsel %vm1968_vm8, %v1967_v16, %v10442_v42  ;;  %v2430_v55 = vor.u32 %v2428_v12, %v2426_v59  ;;  %v2442_v9 = vrot.slane %v2440_v29, 1  ;;  %v2444_v37 = vshrl.u32 %v7582_v23, 16  ;;  %v5661_v12 = vld [vmem:[%s6031_s29 + $0x230] ss:$0 sps:$4 sm:$0x11]  }
 0x1d1   : > { %v7594_v39 = vpop.permute.xlu1 %2096  ;;  %v7602_v14 = vpop.permute.xlu0 %2094  ;;  %v2033_v36 = vsel %vm2001_vm9, %v2000_v1, %v7092_v43  ;;  %v7614_v16 = vsel %vm1125_vm0, %v2414_v38, %v2418_v20  ;;  %v2448_v43 = vshll.u32 %v7617_v35, 16  ;;  %v2456_v50 = vshll.u32 %v7622_v48, 16 }
 0x1d2   : > { %10440 = vst [vmem:[#allocation86_spill] sm:$0xff] %v7594_v39  ;;  %10443 = vst [vmem:[#allocation95_spill] sm:$0xff] %v7602_v14  ;;  %v2066_v61 = vsel %vm2034_vm10, %v2033_v36, %v7305_v52  ;;  %v7629_v52 = vsel %vm1125_vm0, %v2406_v62, %v2410_v30  ;;  %v2422_v42 = vor.u32 %v2420_v11, %v2418_v20  ;;  %v2436_v38 = vshrl.u32 %v7578_v47, 16  ;;  %v7752_v14 = vld [vmem:[%s6031_s29 + $0x110] sm:$0xff]  }
 0x1d3   : > { %2482 = vrot.lane.b32.xlu1 %v7590_v17, %s5820_s7  ;;  %2480 = vrot.lane.b32.xlu0 %v7597_v31, %s5820_s7  ;;  %10444 = vst [vmem:[#allocation107_spill] sm:$0xff] %v7614_v16  ;;  %10446 = vst [vmem:[#allocation44_spill] sm:$0xff] %v7629_v52  ;;  %v7637_v36 = vsel %vm1125_vm0, %v2430_v55, %v2434_v15  ;;  %v2446_v17 = vor.u32 %v2444_v37, %v2442_v9  ;;  %v2458_v31 = vrot.slane %v2456_v50, 1 }
 0x1d4   : > { %10448 = vst [vmem:[#allocation67_spill] sm:$0xff] %v7637_v36  ;;  %v2460_v30 = vshrl.u32 %v7622_v48, 16  ;;  %v2464_v62 = vshll.u32 %v5661_v12, 16  ;;  %v7645_v11 = vsel %vm1125_vm0, %v2422_v42, %v2426_v59  ;;  %10482 = vst [vmem:[#allocation99_spill] sm:$0xff] %v7752_v14 }
 0x1d5   : > { %5450 = vmatmul.mubr.msk.bf16.gmra.mrb[28].mxu0 %vm3951_vm11, %v2066_v61  ;;  %v7626_v29 = vpop.permute.xlu1 %2100  ;;  %v7632_v1 = vpop.permute.xlu0 %2098  ;;  %v2450_v61 = vrot.slane %v2448_v43, 1  ;;  %10449 = vst [vmem:[#allocation70_spill] sm:$0xff] %v7645_v11 }
 0x1d6   : > { %10445 = vst [vmem:[#allocation113_spill] sm:$0xff] %v7626_v29  ;;  %10447 = vst [vmem:[#allocation50_spill] sm:$0xff] %v7632_v1  ;;  %v2438_v29 = vor.u32 %v2436_v38, %v2434_v15  ;;  %v7657_v37 = vor.u32 %v2460_v30, %v2458_v31  ;;  %v2466_v43 = vrot.slane %v2464_v62, 1 }
 0x1d7   : > { %2486 = vrot.lane.b32.xlu1 %v7614_v16, %s5820_s7  ;;  %2484 = vrot.lane.b32.xlu0 %v7629_v52, %s5820_s7  ;;  %v2452_v16 = vshrl.u32 %v7617_v35, 16  ;;  %v7655_v55 = vsel %vm1125_vm0, %v2446_v17, %v2450_v61 }
 0x1d8   : > { %10450 = vst [vmem:[#allocation76_spill] sm:$0xff] %v7655_v55  ;;  %10451 = vst [vmem:[#allocation48_spill] sm:$0xff] %v7657_v37  ;;  %v7662_v15 = vsel %vm1125_vm0, %v2438_v29, %v2442_v9  ;;  %v7672_v17 = vsel %vm1125_vm0, %v7657_v37, %v2466_v43  ;;  %v10462_v43 = vld [vmem:[#allocation104_spill] sm:$0xff] }
 0x1d9   : > { %v7642_v20 = vpop.permute.xlu1 %2239  ;;  %v7648_v1 = vpop.permute.xlu0 %2237  ;;  %10452 = vst [vmem:[#allocation52_spill] sm:$0xff] %v7662_v15  ;;  %v2454_v12 = vor.u32 %v2452_v16, %v2450_v61  ;;  %10453 = vst [vmem:[#allocation79_spill] sm:$0xff] %v7672_v17  ;;  %v7690_v61 = vld [vmem:[%s6031_s29 + $0xa0] sm:$0xff]  }
 0x1db   : > { %2490 = vrot.lane.b32.xlu1 %v7637_v36, %s5820_s7  ;;  %2488 = vrot.lane.b32.xlu0 %v7645_v11, %s5820_s7  ;;  %v7677_v38 = vsel %vm1125_vm0, %v2454_v12, %v2458_v31  ;;  %v10459_v31 = vld [vmem:[#allocation102_spill] sm:$0xff]  ;;  %v7703_v12 = vld [vmem:[%s6031_s29 + $0xa8] sm:$0xff]   ;;  %v10470_v36 = vld [vmem:[#allocation105_spill] sm:$0xff] }
 0x1dc   : > { %10455 = vst [vmem:[#allocation88_spill] sm:$0xff] %v7677_v38 }
 0x1dd   : > { %v7659_v59 = vpop.permute.xlu1 %2243  ;;  %v7664_v50 = vpop.permute.xlu0 %2241 }
 0x1df   : > { %2494 = vrot.lane.b32.xlu1 %v7655_v55, %s5820_s7  ;;  %2492 = vrot.lane.b32.xlu0 %v7662_v15, %s5820_s7 }
 0x1e1   : > { %v7674_v42 = vpop.permute.xlu1 %2247  ;;  %v7679_v9 = vpop.permute.xlu0 %2245 }
 0x1e2   : > { %10454 = vst [vmem:[#allocation85_spill] sm:$0xff] %v7674_v42  ;;  %10456 = vst [vmem:[#allocation4_spill] sm:$0xff] %v7679_v9 }
 0x1e3   : > { %2498 = vrot.lane.b32.xlu1 %v7672_v17, %s5820_s7  ;;  %2496 = vrot.lane.b32.xlu0 %v7677_v38, %s5820_s7  ;;  %v10465_v38 = vld [vmem:[#allocation18_spill] sm:$0xff] }
 0x1e5   : > { %v7685_v16 = vpop.permute.xlu1 %2251  ;;  %v7687_v29 = vpop.permute.xlu0 %2249 }
 0x1e6   : > { %10457 = vst [vmem:[#allocation97_spill] sm:$0xff] %v7685_v16  ;;  %10458 = vst [vmem:[#allocation111_spill] sm:$0xff] %v7687_v29  ;;  %v10494_v16 = vld [vmem:[#allocation10_spill] sm:$0xff] }
 0x1e7   : > { %2502 = vrot.lane.b32.xlu1 %v7690_v61, %s5821_s8  ;;  %2500 = vrot.lane.b32.xlu0 %v10459_v31, %s5821_s8  ;;  %v10466_v31 = vld [vmem:[#allocation103_spill] sm:$0xff] }
 0x1e9   : > { %v7696_v30 = vpop.permute.xlu1 %2255  ;;  %v7698_v62 = vpop.permute.xlu0 %2253 }
 0x1ea   : > { %10460 = vst [vmem:[#allocation119_spill] sm:$0xff] %v7696_v30  ;;  %10461 = vst [vmem:[#allocation54_spill] sm:$0xff] %v7698_v62  ;;  %v10491_v62 = vld [vmem:[#allocation5_spill] sm:$0xff] }
 0x1eb   : > { %2506 = vrot.lane.b32.xlu1 %v10462_v43, %s5821_s8  ;;  %2504 = vrot.lane.b32.xlu0 %v7703_v12, %s5821_s8  ;;  %v10469_v43 = vld [vmem:[#allocation109_spill] sm:$0xff] }
 0x1ed   : > { %v7707_v37 = vpop.permute.xlu1 %2259  ;;  %v7709_v17 = vpop.permute.xlu0 %2257 }
 0x1ee   : > { %10463 = vst [vmem:[#allocation56_spill] sm:$0xff] %v7707_v37  ;;  %10464 = vst [vmem:[#allocation58_spill] sm:$0xff] %v7709_v17 }
 0x1ef   : > { %2510 = vrot.lane.b32.xlu1 %v10465_v38, %s5821_s8  ;;  %2508 = vrot.lane.b32.xlu0 %v10466_v31, %s5821_s8  ;;  %v10473_v38 = vld [vmem:[#allocation116_spill] sm:$0xff]  ;;  %v10474_v31 = vld [vmem:[#allocation110_spill] sm:$0xff] }
 0x1f1   : > { %v7715_v55 = vpop.permute.xlu1 %2263  ;;  %v7717_v15 = vpop.permute.xlu0 %2261 }
 0x1f2   : > { %10467 = vst [vmem:[#allocation69_spill] sm:$0xff] %v7715_v55  ;;  %10468 = vst [vmem:[#allocation72_spill] sm:$0xff] %v7717_v15  ;;  %v10476_v15 = vld [vmem:[#allocation115_spill] sm:$0xff] }
 0x1f3   : > { %2514 = vrot.lane.b32.xlu1 %v10469_v43, %s5821_s8  ;;  %2512 = vrot.lane.b32.xlu0 %v10470_v36, %s5821_s8  ;;  %v10475_v43 = vld [vmem:[#allocation120_spill] sm:$0xff] }
 0x1f5   : > { %v7723_v11 = vpop.permute.xlu1 %2267  ;;  %v7725_v52 = vpop.permute.xlu0 %2265 }
 0x1f6   : > { %10471 = vst [vmem:[#allocation78_spill] sm:$0xff] %v7723_v11  ;;  %10472 = vst [vmem:[#allocation81_spill] sm:$0xff] %v7725_v52  ;;  %v10478_v52 = vld [vmem:[#allocation126_spill] sm:$0xff] }
 0x1f7   : > { %2518 = vrot.lane.b32.xlu1 %v10473_v38, %s5821_s8  ;;  %2516 = vrot.lane.b32.xlu0 %v10474_v31, %s5821_s8  ;;  %v10479_v38 = vld [vmem:[#allocation121_spill] sm:$0xff] }
 0x1f9   : > { %v7731_v55 = vpop.permute.xlu1 %2271  ;;  %v7733_v39 = vpop.permute.xlu0 %2269 }
 0x1fb   : > { %2522 = vrot.lane.b32.xlu1 %v10475_v43, %s5821_s8  ;;  %2520 = vrot.lane.b32.xlu0 %v10476_v15, %s5821_s8  ;;  %v10483_v15 = vld [vmem:[#allocation127_spill] sm:$0xff] }
 0x1fd   : > { %v7739_v36 = vpop.permute.xlu1 %2275  ;;  %v7741_v11 = vpop.permute.xlu0 %2273 }
 0x1fe   : > { %10477 = vst [vmem:[#allocation87_spill] sm:$0xff] %v7739_v36 }
 0x1ff   : > { %2526 = vrot.lane.b32.xlu1 %v10478_v52, %s5821_s8  ;;  %2524 = vrot.lane.b32.xlu0 %v10479_v38, %s5821_s8  ;;  %v10486_v52 = vld [vmem:[#allocation6_spill] sm:$0xff]  ;;  %v10487_v38 = vld [vmem:[#allocation3_spill] sm:$0xff] }
 0x201   : > { %v7747_v31 = vpop.permute.xlu1 %2279  ;;  %v7749_v37 = vpop.permute.xlu0 %2277 }
 0x202   : > { %10480 = vst [vmem:[#allocation90_spill] sm:$0xff] %v7747_v31  ;;  %10481 = vst [vmem:[#allocation96_spill] sm:$0xff] %v7749_v37  ;;  %v10533_v37 = vld [vmem:[#allocation135_spill] sm:$0xff] }
 0x203   : > { %2530 = vrot.lane.b32.xlu1 %v7752_v14, %s5821_s8  ;;  %2528 = vrot.lane.b32.xlu0 %v10483_v15, %s5821_s8 }
 0x205   : > { %v7758_v43 = vpop.permute.xlu1 %2283  ;;  %v7760_v17 = vpop.permute.xlu0 %2281 }
 0x206   : > { %10484 = vst [vmem:[#allocation117_spill] sm:$0xff] %v7758_v43  ;;  %10485 = vst [vmem:[#allocation71_spill] sm:$0xff] %v7760_v17  ;;  %v10511_v17 = vld [vmem:[#allocation93_spill] sm:$0xff] }
 0x207   : > { %2534 = vrot.lane.b32.xlu1 %v10486_v52, %s5822_s9  ;;  %2532 = vrot.lane.b32.xlu0 %v10487_v38, %s5822_s9  ;;  %v10495_v52 = vld [vmem:[#allocation7_spill] sm:$0xff] }
 0x209   : > { %v7766_v30 = vpop.permute.xlu1 %2287  ;;  %v7768_v3 = vpop.permute.xlu0 %2285 }
 0x20a   : > { %10488 = vst [vmem:[#allocation74_spill] sm:$0xff] %v7766_v30  ;;  %10489 = vst [vmem:[#allocation80_spill] sm:$0xff] %v7768_v3  ;;  %v10498_v3 = vld [vmem:[#allocation12_spill] sm:$0xff] }
 0x20b   : > { %2538 = vrot.lane.b32.xlu1 %v10490_v27, %s5822_s9  ;;  %2536 = vrot.lane.b32.xlu0 %v10491_v62, %s5822_s9  ;;  %v10499_v27 = vld [vmem:[#allocation9_spill] sm:$0xff] }
 0x20d   : > { %v7774_v15 = vpop.permute.xlu1 %2291  ;;  %v7776_v43 = vpop.permute.xlu0 %2289 }
 0x20e   : > { %10492 = vst [vmem:[#allocation83_spill] sm:$0xff] %v7774_v15  ;;  %10493 = vst [vmem:[#allocation89_spill] sm:$0xff] %v7776_v43  ;;  %v10502_v43 = vld [vmem:[#allocation14_spill] sm:$0xff] }
 0x20f   : > { %2542 = vrot.lane.b32.xlu1 %v10494_v16, %s5822_s9  ;;  %2540 = vrot.lane.b32.xlu0 %v10495_v52, %s5822_s9  ;;  %v10503_v16 = vld [vmem:[#allocation11_spill] sm:$0xff] }
 0x211   : > { %v7782_v38 = vpop.permute.xlu1 %2295  ;;  %v7784_v30 = vpop.permute.xlu0 %2293 }
 0x212   : > { %10496 = vst [vmem:[#allocation92_spill] sm:$0xff] %v7782_v38  ;;  %10497 = vst [vmem:[#allocation98_spill] sm:$0xff] %v7784_v30  ;;  %v10504_v30 = vld [vmem:[#allocation17_spill] sm:$0xff] }
 0x213   : > { %2546 = vrot.lane.b32.xlu1 %v10498_v3, %s5822_s9  ;;  %2544 = vrot.lane.b32.xlu0 %v10499_v27, %s5822_s9  ;;  %v10505_v3 = vld [vmem:[#allocation13_spill] sm:$0xff] }
 0x215   : > { %v7790_v62 = vpop.permute.xlu1 %2299  ;;  %v7792_v15 = vpop.permute.xlu0 %2297 }
 0x216   : > { %10500 = vst [vmem:[#allocation101_spill] sm:$0xff] %v7790_v62  ;;  %10501 = vst [vmem:[#allocation123_spill] sm:$0xff] %v7792_v15  ;;  %v10507_v15 = vld [vmem:[#allocation19_spill] sm:$0xff] }
 0x217   : > { %2550 = vrot.lane.b32.xlu1 %v10502_v43, %s5822_s9  ;;  %2548 = vrot.lane.b32.xlu0 %v10503_v16, %s5822_s9  ;;  %v10508_v43 = vld [vmem:[#allocation15_spill] sm:$0xff] }
 0x219   : > { %v7798_v52 = vpop.permute.xlu1 %2303  ;;  %v7800_v38 = vpop.permute.xlu0 %2301 }
 0x21b   : > { %2554 = vrot.lane.b32.xlu1 %v10504_v30, %s5822_s9  ;;  %2552 = vrot.lane.b32.xlu0 %v10505_v3, %s5822_s9  ;;  %v10512_v30 = vld [vmem:[#allocation16_spill] sm:$0xff] }
 0x21d   : > { %v7806_v27 = vpop.permute.xlu1 %2307  ;;  %v7808_v62 = vpop.permute.xlu0 %2305 }
 0x21e   : > { %10506 = vst [vmem:[#allocation130_spill] sm:$0xff] %v7806_v27 }
 0x21f   : > { %2558 = vrot.lane.b32.xlu1 %v10507_v15, %s5822_s9  ;;  %2556 = vrot.lane.b32.xlu0 %v10508_v43, %s5822_s9  ;;  %v10515_v15 = vld [vmem:[#allocation112_spill] sm:$0xff]  ;;  %v10516_v43 = vld [vmem:[#allocation106_spill] sm:$0xff] }
 0x221   : > { %v7814_v16 = vpop.permute.xlu1 %2311  ;;  %v7816_v2 = vpop.permute.xlu0 %2309 }
 0x222   : > { %10509 = vst [vmem:[#allocation73_spill] sm:$0xff] %v7814_v16  ;;  %10510 = vst [vmem:[#allocation82_spill] sm:$0xff] %v7816_v2 }
 0x223   : > { %2562 = vrot.lane.b32.xlu1 %v10511_v17, %s5822_s9  ;;  %2560 = vrot.lane.b32.xlu0 %v10512_v30, %s5822_s9  ;;  %v10519_v17 = vld [vmem:[#allocation118_spill] sm:$0xff]  ;;  %v10520_v30 = vld [vmem:[#allocation108_spill] sm:$0xff] }
 0x225   : > { %v7822_v3 = vpop.permute.xlu1 %2315  ;;  %v7824_v31 = vpop.permute.xlu0 %2313 }
 0x226   : > { %10513 = vst [vmem:[#allocation91_spill] sm:$0xff] %v7822_v3  ;;  %10514 = vst [vmem:[#allocation100_spill] sm:$0xff] %v7824_v31  ;;  %v10523_v31 = vld [vmem:[#allocation124_spill] sm:$0xff] }
 0x227   : > { %2582 = vrot.lane.b32.xlu1 %v10515_v15, %s5824_s18  ;;  %2580 = vrot.lane.b32.xlu0 %v10516_v43, %s5824_s18  ;;  %v10524_v15 = vld [vmem:[#allocation114_spill] sm:$0xff] }
 0x229   : > { %v7830_v16 = vpop.permute.xlu1 %2319  ;;  %v7832_v29 = vpop.permute.xlu0 %2317 }
 0x22a   : > { %10517 = vst [vmem:[#allocation128_spill] sm:$0xff] %v7830_v16  ;;  %10518 = vst [vmem:[#allocation102_spill] sm:$0xff] %v7832_v29  ;;  %v10527_v29 = vld [vmem:[#allocation129_spill] sm:$0xff] }
 0x22b   : > { %2586 = vrot.lane.b32.xlu1 %v10519_v17, %s5824_s18  ;;  %2584 = vrot.lane.b32.xlu0 %v10520_v30, %s5824_s18  ;;  %v10528_v17 = vld [vmem:[#allocation122_spill] sm:$0xff] }
 0x22c   : > { %v5662_v30 = vld [vmem:[%s6031_s29 + $0x118] ss:$0 sps:$4 sm:$0x11]  }
 0x22d   : > { %v7838_v3 = vpop.permute.xlu1 %2323  ;;  %v7840_v42 = vpop.permute.xlu0 %2321 }
 0x22e   : > { %10521 = vst [vmem:[#allocation104_spill] sm:$0xff] %v7838_v3  ;;  %10522 = vst [vmem:[#allocation18_spill] sm:$0xff] %v7840_v42  ;;  %v2568_v3 = vshll.u32 %v7752_v14, 16 }
 0x22f   : > { %2590 = vrot.lane.b32.xlu1 %v10523_v31, %s5824_s18  ;;  %2588 = vrot.lane.b32.xlu0 %v10524_v15, %s5824_s18  ;;  %v10531_v31 = vld [vmem:[#allocation132_spill] sm:$0xff]  ;;  %v10532_v15 = vld [vmem:[#allocation125_spill] sm:$0xff] }
 0x231   : > { %v7846_v43 = vpop.permute.xlu1 %2327  ;;  %v7848_v16 = vpop.permute.xlu0 %2325 }
 0x232   : > { %10525 = vst [vmem:[#allocation103_spill] sm:$0xff] %v7846_v43  ;;  %10526 = vst [vmem:[#allocation109_spill] sm:$0xff] %v7848_v16  ;;  %v2570_v43 = vrot.slane %v2568_v3, 1  ;;  %v2572_v16 = vshrl.u32 %v7752_v14, 16  ;;  %v10535_v3 = vld [vmem:[#allocation136_spill] sm:$0xff] }
 0x233   : > { %2594 = vrot.lane.b32.xlu1 %v10527_v29, %s5824_s18  ;;  %2592 = vrot.lane.b32.xlu0 %v10528_v17, %s5824_s18  ;;  %v2576_v29 = vshll.u32 %v5662_v30, 16  ;;  %v10536_v30 = vld [vmem:[#allocation133_spill] sm:$0xff] }
 0x235   : > { %v7856_v42 = vpop.permute.xlu1 %2331  ;;  %v7858_v2 = vpop.permute.xlu0 %2329  ;;  %v2578_v36 = vrot.slane %v2576_v29, 1 }
 0x236   : > { %10529 = vst [vmem:[#allocation105_spill] sm:$0xff] %v7856_v42  ;;  %10530 = vst [vmem:[#allocation116_spill] sm:$0xff] %v7858_v2  ;;  %v10534_v42 = vld [vmem:[#allocation131_spill] sm:$0xff]  ;;  %v2574_v2 = vor.u32 %v2572_v16, %v2570_v43 }
 0x237   : > { %2598 = vrot.lane.b32.xlu1 %v10531_v31, %s5824_s18  ;;  %2596 = vrot.lane.b32.xlu0 %v10532_v15, %s5824_s18 }
 0x238   : > { %v7882_v15 = vsel %vm1125_vm0, %v2574_v2, %v2578_v36 }
 0x239   : > { %v7865_v27 = vpop.permute.xlu1 %2470  ;;  %v7867_v17 = vpop.permute.xlu0 %2468  ;;  %10537 = vst [vmem:[#allocation110_spill] sm:$0xff] %v7882_v15 }
 0x23b   : > { %2602 = vrot.lane.b32.xlu1 %v10533_v37, %s5824_s18  ;;  %2600 = vrot.lane.b32.xlu0 %v10534_v42, %s5824_s18  ;;  %v10538_v37 = vld [vmem:[#allocation134_spill] sm:$0xff] }
 0x23c   : > { %v7888_v42 = vsel %vm1125_vm0, %v10538_v37, %v2570_v43 }
 0x23d   : > { %v7873_v31 = vpop.permute.xlu1 %2474  ;;  %v7875_v9 = vpop.permute.xlu0 %2472  ;;  %10539 = vst [vmem:[#allocation120_spill] sm:$0xff] %v7888_v42 }
 0x23f   : > { %2606 = vrot.lane.b32.xlu1 %v10535_v3, %s5824_s18  ;;  %2604 = vrot.lane.b32.xlu0 %v10536_v30, %s5824_s18 }
 0x241   : > { %v7884_v14 = vpop.permute.xlu1 %2478  ;;  %v7890_v16 = vpop.permute.xlu0 %2476 }
 0x243   : > { %2610 = vrot.lane.b32.xlu1 %v7882_v15, %s5824_s18  ;;  %2608 = vrot.lane.b32.xlu0 %v7888_v42, %s5824_s18 }
 0x245   : > { %v7896_v29 = vpop.permute.xlu1 %2482  ;;  %v7898_v30 = vpop.permute.xlu0 %2480 }
 0x247   : > { %2875 = vrot.lane.b32.xlu1 %v7308_v33, %s5816_s30  ;;  %2873 = vrot.lane.b32.xlu0 %v7329_v6, %s5816_s30 }
 0x249   : > { %v7904_v2 = vpop.permute.xlu1 %2486  ;;  %v7906_v37 = vpop.permute.xlu0 %2484 }
 0x24b   : > { %2879 = vrot.lane.b32.xlu1 %v7377_v7, %s5816_s30  ;;  %2877 = vrot.lane.b32.xlu0 %v7366_v63, %s5816_s30 }
 0x24d   : > { %v7912_v36 = vpop.permute.xlu1 %2490  ;;  %v7914_v43 = vpop.permute.xlu0 %2488 }
 0x24f   : > { %2883 = vrot.lane.b32.xlu1 %v7414_v57, %s5816_s30  ;;  %2881 = vrot.lane.b32.xlu0 %v7436_v44, %s5816_s30 }
 0x251   : > { %v7920_v33 = vpop.permute.xlu1 %2494  ;;  %v7922_v6 = vpop.permute.xlu0 %2492 }
 0x252   : > { %10540 = vst [vmem:[#allocation115_spill] sm:$0xff] %v7920_v33  ;;  %v10571_v33 = vld [vmem:[#allocation33_spill] sm:$0xff] }
 0x253   : > { %2887 = vrot.lane.b32.xlu1 %v7461_v40, %s5816_s30  ;;  %2885 = vrot.lane.b32.xlu0 %v7448_v53, %s5816_s30 }
 0x255   : > { %v7928_v7 = vpop.permute.xlu1 %2498  ;;  %v7930_v42 = vpop.permute.xlu0 %2496 }
 0x256   : > { %10541 = vst [vmem:[#allocation126_spill] sm:$0xff] %v7928_v7  ;;  %10542 = vst [vmem:[#allocation121_spill] sm:$0xff] %v7930_v42 }
 0x257   : > { %2891 = vrot.lane.b32.xlu1 %v7506_v49, %s5816_s30  ;;  %2889 = vrot.lane.b32.xlu0 %v7502_v18, %s5816_s30 }
 0x259   : > { %v7936_v57 = vpop.permute.xlu1 %2502  ;;  %v7938_v44 = vpop.permute.xlu0 %2500 }
 0x25b   : > { %2895 = vrot.lane.b32.xlu1 %v7536_v4, %s5816_s30  ;;  %2893 = vrot.lane.b32.xlu0 %v7553_v10, %s5816_s30 }
 0x25d   : > { %v7944_v53 = vpop.permute.xlu1 %2506  ;;  %v7946_v40 = vpop.permute.xlu0 %2504 }
 0x25f   : > { %2899 = vrot.lane.b32.xlu1 %v7582_v23, %s5816_s30  ;;  %2897 = vrot.lane.b32.xlu0 %v7578_v47, %s5816_s30 }
 0x261   : > { %v7952_v18 = vpop.permute.xlu1 %2510  ;;  %v7954_v49 = vpop.permute.xlu0 %2508 }
 0x263   : > { %2903 = vrot.lane.b32.xlu1 %v7622_v48, %s5816_s30  ;;  %2901 = vrot.lane.b32.xlu0 %v7617_v35, %s5816_s30 }
 0x265   : > { %v7960_v4 = vpop.permute.xlu1 %2514  ;;  %v7962_v10 = vpop.permute.xlu0 %2512 }
 0x267   : > { %2907 = vrot.lane.b32.xlu1 %v10345_v54, %s5817_s4  ;;  %2905 = vrot.lane.b32.xlu0 %v10346_v60, %s5817_s4 }
 0x269   : > { %v7968_v47 = vpop.permute.xlu1 %2518  ;;  %v7970_v23 = vpop.permute.xlu0 %2516 }
 0x26b   : > { %2911 = vrot.lane.b32.xlu1 %v6467_v45, %s5817_s4  ;;  %2909 = vrot.lane.b32.xlu0 %v10347_v41, %s5817_s4 }
 0x26d   : > { %v7976_v35 = vpop.permute.xlu1 %2522  ;;  %v7978_v48 = vpop.permute.xlu0 %2520 }
 0x26f   : > { %2915 = vrot.lane.b32.xlu1 %v10355_v58, %s5817_s4  ;;  %2913 = vrot.lane.b32.xlu0 %v10358_v13, %s5817_s4 }
 0x270   : > { %v7982_v15 = vpop.f32.mrb[0].mxu0 }
 0x271   : > { %10543 = vst [vmem:[#allocation127_spill] sm:$0xff] %v7982_v15  ;;  %v7986_v3 = vpop.f32.mrb[1].mxu0  ;;  %v7988_v60 = vpop.permute.xlu1 %2526 }
 0x272   : > { %10544 = vst [vmem:[#allocation134_spill] sm:$0xff] %v7986_v3  ;;  %10545 = vst [vmem:[#allocation137_spill] sm:$0xff] %v7988_v60  ;;  %v7990_v7 = vpop.f32.mrb[2].mxu0  ;;  %v7992_v45 = vpop.permute.xlu0 %2524 }
 0x273   : > { %10546 = vst [vmem:[#allocation138_spill] sm:$0xff] %v7990_v7  ;;  %v7994_v42 = vpop.f32.mrb[3].mxu0  ;;  %2919 = vrot.lane.b32.xlu1 %v10364_v25, %s5817_s4  ;;  %2917 = vrot.lane.b32.xlu0 %v10365_v19, %s5817_s4 }
 0x274   : > { %10547 = vst [vmem:[#allocation139_spill] sm:$0xff] %v7994_v42 }
 0x275   : > { %v8000_v15 = vpop.permute.xlu1 %2530 }
 0x276   : > { %10548 = vst [vmem:[#allocation140_spill] sm:$0xff] %v8000_v15  ;;  %v8002_v58 = vpop.permute.xlu0 %2528 }
 0x277   : > { %10549 = vst [vmem:[#allocation141_spill] sm:$0xff] %v8002_v58  ;;  %2923 = vrot.lane.b32.xlu1 %v10373_v46, %s5817_s4  ;;  %2921 = vrot.lane.b32.xlu0 %v10380_v22, %s5817_s4  ;;  %v10568_v58 = vld [vmem:[#allocation26_spill] sm:$0xff] }
 0x278   : > { %v8006_v3 = vpop.f32.mrb[4].mxu0 }
 0x279   : > { %10550 = vst [vmem:[#allocation142_spill] sm:$0xff] %v8006_v3  ;;  %v8010_v7 = vpop.f32.mrb[5].mxu0  ;;  %v8012_v42 = vpop.permute.xlu1 %2534 }
 0x27a   : > { %10551 = vst [vmem:[#allocation143_spill] sm:$0xff] %v8010_v7  ;;  %v8014_v25 = vpop.f32.mrb[6].mxu0  ;;  %v8016_v13 = vpop.permute.xlu0 %2532 }
 0x27b   : > { %10552 = vst [vmem:[#allocation144_spill] sm:$0xff] %v8014_v25  ;;  %v8018_v19 = vpop.f32.mrb[7].mxu0  ;;  %2927 = vrot.lane.b32.xlu1 %v10388_v26, %s5817_s4  ;;  %2925 = vrot.lane.b32.xlu0 %v10393_v21, %s5817_s4 }
 0x27c   : > { %10553 = vst [vmem:[#allocation145_spill] sm:$0xff] %v8018_v19 }
 0x27d   : > { %v8024_v3 = vpop.permute.xlu1 %2538 }
 0x27e   : > { %v8026_v46 = vpop.permute.xlu0 %2536 }
 0x27f   : > { %2931 = vrot.lane.b32.xlu1 %v10402_v0, %s5817_s4  ;;  %2929 = vrot.lane.b32.xlu0 %v10405_v5, %s5817_s4 }
 0x280   : > { %v8030_v7 = vpop.f32.mrb[8].mxu0 }
 0x281   : > { %10554 = vst [vmem:[#allocation146_spill] sm:$0xff] %v8030_v7  ;;  %v8034_v25 = vpop.f32.mrb[9].mxu0  ;;  %v8036_v19 = vpop.permute.xlu1 %2542 }
 0x282   : > { %10555 = vst [vmem:[#allocation147_spill] sm:$0xff] %v8034_v25  ;;  %v8038_v26 = vpop.f32.mrb[10].mxu0  ;;  %v8040_v22 = vpop.permute.xlu0 %2540 }
 0x283   : > { %10556 = vst [vmem:[#allocation148_spill] sm:$0xff] %v8038_v26  ;;  %v8042_v21 = vpop.f32.mrb[11].mxu0  ;;  %2935 = vrot.lane.b32.xlu1 %v10412_v28, %s5817_s4  ;;  %2933 = vrot.lane.b32.xlu0 %v10414_v8, %s5817_s4 }
 0x284   : > { %10557 = vst [vmem:[#allocation149_spill] sm:$0xff] %v8042_v21 }
 0x285   : > { %v8048_v7 = vpop.permute.xlu1 %2546 }
 0x286   : > { %v8050_v0 = vpop.permute.xlu0 %2544 }
 0x287   : > { %2939 = vrot.lane.b32.xlu1 %v7107_v24, %s5818_s5  ;;  %2937 = vrot.lane.b32.xlu0 %v7074_v56, %s5818_s5 }
 0x288   : > { %v8054_v25 = vpop.f32.mrb[12].mxu0 }
 0x289   : > { %10558 = vst [vmem:[#allocation150_spill] sm:$0xff] %v8054_v25  ;;  %v8058_v26 = vpop.f32.mrb[13].mxu0  ;;  %v8060_v21 = vpop.permute.xlu1 %2550 }
 0x28a   : > { %10559 = vst [vmem:[#allocation151_spill] sm:$0xff] %v8058_v26  ;;  %v8062_v28 = vpop.f32.mrb[14].mxu0  ;;  %v8064_v8 = vpop.permute.xlu0 %2548 }
 0x28b   : > { %10560 = vst [vmem:[#allocation152_spill] sm:$0xff] %v8062_v28  ;;  %v8066_v5 = vpop.f32.mrb[15].mxu0  ;;  %2943 = vrot.lane.b32.xlu1 %v7149_v32, %s5818_s5  ;;  %2941 = vrot.lane.b32.xlu0 %v7140_v51, %s5818_s5  ;;  %v10563_v28 = vld [vmem:[#allocation20_spill] sm:$0xff]  ;;  %v8091_v51 = vld [vmem:[%s6031_s29 + $0x98] sm:$0xff]  }
 0x28c   : > { %10561 = vst [vmem:[#allocation153_spill] sm:$0xff] %v8066_v5  ;;  %v2615_v60 = vsel %vm1803_vm3, %v8091_v51, %v10568_v58 }
 0x28d   : > { %v8072_v24 = vpop.permute.xlu1 %2554 }
 0x28e   : > { %v8074_v56 = vpop.permute.xlu0 %2552 }
 0x28f   : > { %2947 = vrot.lane.b32.xlu1 %v7200_v34, %s5818_s5  ;;  %2945 = vrot.lane.b32.xlu0 %v10563_v28, %s5818_s5  ;;  %v5719_v28 = vld [vmem:[%s6031_s29 + $0x90] sm:$0xff]  }
 0x290   : > { %v8078_v26 = vpop.f32.mrb[16].mxu0 }
 0x291   : > { %10562 = vst [vmem:[#allocation154_spill] sm:$0xff] %v8078_v26  ;;  %v8082_v5 = vpop.f32.mrb[17].mxu0  ;;  %v8084_v25 = vpop.permute.xlu1 %2558  ;;  %v10570_v26 = vld [vmem:[#allocation22_spill] sm:$0xff] }
 0x292   : > { %10564 = vst [vmem:[#allocation20_spill] sm:$0xff] %v8082_v5  ;;  %10565 = vst [vmem:[#allocation155_spill] sm:$0xff] %v8084_v25  ;;  %v8086_v32 = vpop.f32.mrb[18].mxu0  ;;  %v8088_v15 = vpop.permute.xlu0 %2556  ;;  %v2613_v5 = vsel %vm1803_vm3, %v5719_v28, %v10571_v33  ;;  %v10572_v25 = vld [vmem:[#allocation21_spill] sm:$0xff] }
 0x293   : > { %10566 = vst [vmem:[#allocation156_spill] sm:$0xff] %v8086_v32  ;;  %10567 = vst [vmem:[#allocation157_spill] sm:$0xff] %v8088_v15  ;;  %v8096_v34 = vpop.f32.mrb[19].mxu0  ;;  %2951 = vrot.lane.b32.xlu1 %v10570_v26, %s5818_s5  ;;  %v2647_v32 = vsel %vm1836_vm4, %v2615_v60, %v7642_v20  ;;  %2949 = vrot.lane.b32.xlu0 %v10572_v25, %s5818_s5  ;;  %v2645_v15 = vsel %vm1836_vm4, %v2613_v5, %v7648_v1  ;;  %v10573_v5 = vld [vmem:[#allocation24_spill] sm:$0xff]  ;;  %v10574_v1 = vld [vmem:[#allocation30_spill] sm:$0xff] }
 0x294   : > { %10569 = vst [vmem:[#allocation26_spill] sm:$0xff] %v8096_v34  ;;  %v2679_v58 = vsel %vm1869_vm5, %v2647_v32, %v7731_v55  ;;  %v2677_v26 = vsel %vm1869_vm5, %v2645_v15, %v7733_v39  ;;  %v2617_v20 = vsel %vm1803_vm3, %v7690_v61, %v10574_v1  ;;  %v10582_v1 = vld [vmem:[#allocation29_spill] sm:$0xff] }
 0x295   : > { %v8111_v34 = vpop.permute.xlu1 %2562  ;;  %v2711_v33 = vsel %vm1902_vm6, %v2679_v58, %v7798_v52  ;;  %v2709_v60 = vsel %vm1902_vm6, %v2677_v26, %v7800_v38  ;;  %v10576_v38 = vld [vmem:[#allocation23_spill] sm:$0xff] }
 0x296   : > { %v8117_v28 = vpop.permute.xlu0 %2560  ;;  %v2743_v25 = vsel %vm1935_vm7, %v2711_v33, %v7865_v27  ;;  %v2741_v39 = vsel %vm1935_vm7, %v2709_v60, %v7867_v17  ;;  %v2649_v27 = vsel %vm1836_vm4, %v2617_v20, %v7664_v50  ;;  %v2619_v20 = vsel %vm1803_vm3, %v7703_v12, %v10582_v1 }
 0x297   : > { %2955 = vrot.lane.b32.xlu1 %v10573_v5, %s5818_s5  ;;  %v2775_v55 = vsel %vm1968_vm8, %v2743_v25, %v7936_v57  ;;  %2953 = vrot.lane.b32.xlu0 %v10576_v38, %s5818_s5  ;;  %v2773_v15 = vsel %vm1968_vm8, %v2741_v39, %v7938_v44  ;;  %v2681_v57 = vsel %vm1869_vm5, %v2649_v27, %v7741_v11  ;;  %v10580_v5 = vld [vmem:[#allocation27_spill] sm:$0xff]  ;;  %v10583_v38 = vld [vmem:[#allocation36_spill] sm:$0xff] }
 0x298   : > { %v8132_v52 = vpop.f32.mrb[20].mxu0  ;;  %v2807_v32 = vsel %vm2001_vm9, %v2775_v55, %v8012_v42  ;;  %v2805_v26 = vsel %vm2001_vm9, %v2773_v15, %v8016_v13  ;;  %v2713_v44 = vsel %vm1902_vm6, %v2681_v57, %v7808_v62  ;;  %v10581_v13 = vld [vmem:[#allocation25_spill] sm:$0xff]  ;;  %v2651_v27 = vsel %vm1836_vm4, %v2619_v20, %v7659_v59 }
 0x299   : > { %10575 = vst [vmem:[#allocation22_spill] sm:$0xff] %v8132_v52  ;;  %v8142_v58 = vpop.f32.mrb[21].mxu0  ;;  %v2583_v17 = vpop.permute.xlu1 %2582  ;;  %v2745_v11 = vsel %vm1935_vm7, %v2713_v44, %v7875_v9  ;;  %v8170_v55 = vld [vmem:[%s6031_s29 + $0xb0] sm:$0xff]   ;;  %v10587_v44 = vld [vmem:[#allocation96_spill] sm:$0xff] }
 0x29a   : > { %10577 = vst [vmem:[#allocation33_spill] sm:$0xff] %v8142_v58  ;;  %v2839_v33 = vsel %vm2034_vm10, %v2807_v32, %v2583_v17  ;;  %v8149_v60 = vpop.f32.mrb[22].mxu0  ;;  %v2581_v50 = vpop.permute.xlu0 %2580  ;;  %v2777_v62 = vsel %vm1968_vm8, %v2745_v11, %v7946_v40  ;;  %v2621_v9 = vsel %vm1803_vm3, %v8170_v55, %v10583_v38  ;;  %v10584_v17 = vld [vmem:[#allocation4_spill] sm:$0xff]  ;;  %v10585_v40 = vld [vmem:[#allocation87_spill] sm:$0xff]  ;;  %v10590_v11 = vld [vmem:[#allocation37_spill] sm:$0xff] }
 0x29b   : > { %10578 = vst [vmem:[#allocation21_spill] sm:$0xff] %v8149_v60  ;;  %v2837_v42 = vsel %vm2034_vm10, %v2805_v26, %v2581_v50  ;;  %v8154_v25 = vpop.f32.mrb[23].mxu0  ;;  %2959 = vrot.lane.b32.xlu1 %v10580_v5, %s5818_s5  ;;  %2957 = vrot.lane.b32.xlu0 %v10581_v13, %s5818_s5  ;;  %v2809_v15 = vsel %vm2001_vm9, %v2777_v62, %v8026_v46  ;;  %v10586_v50 = vld [vmem:[#allocation32_spill] sm:$0xff]  ;;  %v10588_v5 = vld [vmem:[#allocation130_spill] sm:$0xff]  ;;  %v10683_v58 = vld [vmem:[#allocation51_spill] sm:$0xff] }
 0x29c   : > { %10579 = vst [vmem:[#allocation24_spill] sm:$0xff] %v8154_v25  ;;  %5453 = vmatprep.mubr.msk.bf16.mxu0 %vm3951_vm11, %v2837_v42  ;;  %v2653_v57 = vsel %vm1836_vm4, %v2621_v9, %v10584_v17  ;;  %v2683_v26 = vsel %vm1869_vm5, %v2651_v27, %v10585_v40  ;;  %v10591_v13 = vld [vmem:[#allocation82_spill] sm:$0xff]  ;;  %v5721_v40 = vld [vmem:[%s6031_s29 + $0x80] sm:$0xff]  }
 0x29d   : > { %5454 = vmatmul.mubr.msk.bf16.gmra.mrb[32].mxu0 %vm3951_vm11, %v2839_v33  ;;  %v2587_v39 = vpop.permute.xlu1 %2586  ;;  %v2685_v42 = vsel %vm1869_vm5, %v2653_v57, %v10587_v44  ;;  %v2715_v59 = vsel %vm1902_vm6, %v2683_v26, %v10588_v5  ;;  %v10595_v26 = vld [vmem:[#allocation28_spill] sm:$0xff]  ;;  %v10599_v5 = vld [vmem:[#allocation39_spill] sm:$0xff] }
 0x29e   : > { %v2585_v32 = vpop.permute.xlu0 %2584  ;;  %v2717_v1 = vsel %vm1902_vm6, %v2685_v42, %v10591_v13  ;;  %v2747_v20 = vsel %vm1935_vm7, %v2715_v59, %v7873_v31  ;;  %v8229_v42 = vld [vmem:[%s6031_s29 + $0xc0] sm:$0xff]  }
 0x29f   : > { %v2841_v33 = vsel %vm2034_vm10, %v2809_v15, %v2585_v32  ;;  %2963 = vrot.lane.b32.xlu1 %v10586_v50, %s5818_s5  ;;  %2961 = vrot.lane.b32.xlu0 %v10590_v11, %s5818_s5  ;;  %v2749_v9 = vsel %vm1935_vm7, %v2717_v1, %v7890_v16  ;;  %v2779_v27 = vsel %vm1968_vm8, %v2747_v20, %v7944_v53  ;;  %v10597_v50 = vld [vmem:[#allocation31_spill] sm:$0xff]  ;;  %v10602_v20 = vld [vmem:[#allocation90_spill] sm:$0xff] }
 0x2a0   : > { %v8190_v46 = vpop.f32.mrb[24].mxu0  ;;  %5457 = vmatprep.mubr.msk.bf16.mxu0 %vm3951_vm11, %v2841_v33  ;;  %v2781_v17 = vsel %vm1968_vm8, %v2749_v9, %v7954_v49  ;;  %v2811_v57 = vsel %vm2001_vm9, %v2779_v27, %v8024_v3  ;;  %v8221_v33 = vld [vmem:[%s6031_s29 + $0xb8] sm:$0xff]   ;;  %10598 = vst [vmem:[#allocation36_spill] sm:$0xff] %v8229_v42  ;;  %v10601_v13 = vld [vmem:[#allocation111_spill] sm:$0xff] }
 0x2a1   : > { %10589 = vst [vmem:[#allocation30_spill] sm:$0xff] %v8190_v46  ;;  %v8199_v62 = vpop.f32.mrb[25].mxu0  ;;  %v2591_v38 = vpop.permute.xlu1 %2590  ;;  %v2813_v16 = vsel %vm2001_vm9, %v2781_v17, %v8040_v22  ;;  %v2843_v53 = vsel %vm2034_vm10, %v2811_v57, %v2587_v39  ;;  %10596 = vst [vmem:[#allocation29_spill] sm:$0xff] %v8221_v33  ;;  %v2623_v49 = vsel %vm1803_vm3, %v8221_v33, %v10597_v50  ;;  %v10600_v39 = vld [vmem:[#allocation85_spill] sm:$0xff]  ;;  %v10603_v27 = vld [vmem:[#allocation71_spill] sm:$0xff] }
 0x2a2   : > { %10592 = vst [vmem:[#allocation23_spill] sm:$0xff] %v8199_v62  ;;  %v8205_v15 = vpop.f32.mrb[26].mxu0  ;;  %v2589_v32 = vpop.permute.xlu0 %2588  ;;  %v2625_v22 = vsel %vm1803_vm3, %v8229_v42, %v10599_v5  ;;  %v2655_v59 = vsel %vm1836_vm4, %v2623_v49, %v10600_v39  ;;  %v10604_v17 = vld [vmem:[#allocation73_spill] sm:$0xff]  ;;  %v10674_v62 = vld [vmem:[#allocation12_spill] sm:$0xff]  ;;  %v8623_v25 = vld [vmem:[%s6031_s29 + $0x160] sm:$0xff]  }
 0x2a3   : > { %10593 = vst [vmem:[#allocation27_spill] sm:$0xff] %v8205_v15  ;;  %v8211_v31 = vpop.f32.mrb[27].mxu0  ;;  %2967 = vrot.lane.b32.xlu1 %v5721_v40, %s5818_s5  ;;  %2965 = vrot.lane.b32.xlu0 %v10595_v26, %s5818_s5  ;;  %v2845_v3 = vsel %vm2034_vm10, %v2813_v16, %v2589_v32  ;;  %v2657_v1 = vsel %vm1836_vm4, %v2625_v22, %v10601_v13  ;;  %v10606_v16 = vld [vmem:[#allocation100_spill] sm:$0xff]  ;;  %v10675_v46 = vld [vmem:[#allocation9_spill] sm:$0xff] }
 0x2a4   : > { %10594 = vst [vmem:[#allocation25_spill] sm:$0xff] %v8211_v31  ;;  %v2687_v9 = vsel %vm1869_vm5, %v2655_v59, %v10602_v20  ;;  %v2689_v32 = vsel %vm1869_vm5, %v2657_v1, %v10603_v27  ;;  %v10610_v1 = vld [vmem:[#allocation38_spill] sm:$0xff]  ;;  %v10612_v27 = vld [vmem:[#allocation97_spill] sm:$0xff] }
 0x2a5   : > { %5458 = vmatmul.mubr.msk.bf16.gmra.mrb[36].mxu0 %vm3951_vm11, %v2843_v53  ;;  %v2595_v44 = vpop.permute.xlu1 %2594  ;;  %v2719_v57 = vsel %vm1902_vm6, %v2687_v9, %v10604_v17  ;;  %v2721_v53 = vsel %vm1902_vm6, %v2689_v32, %v10606_v16  ;;  %v8289_v9 = vld [vmem:[%s6031_s29 + $0xd0] sm:$0xff]   ;;  %v10613_v17 = vld [vmem:[#allocation54_spill] sm:$0xff] }
 0x2a6   : > { %5461 = vmatprep.mubr.msk.bf16.mxu0 %vm3951_vm11, %v2845_v3  ;;  %v2593_v11 = vpop.permute.xlu0 %2592  ;;  %v2751_v26 = vsel %vm1935_vm7, %v2719_v57, %v7884_v14  ;;  %v2753_v49 = vsel %vm1935_vm7, %v2721_v53, %v7898_v30  ;;  %v10614_v57 = vld [vmem:[#allocation117_spill] sm:$0xff]  ;;  %v10615_v53 = vld [vmem:[#allocation6_spill] sm:$0xff] }
 0x2a7   : > { %2971 = vrot.lane.b32.xlu1 %v7690_v61, %s5819_s6  ;;  %2969 = vrot.lane.b32.xlu0 %v8091_v51, %s5819_s6  ;;  %v2783_v3 = vsel %vm1968_vm8, %v2751_v26, %v7952_v18  ;;  %v2785_v39 = vsel %vm1968_vm8, %v2753_v49, %v7962_v10  ;;  %v8279_v18 = vld [vmem:[%s6031_s29 + $0xc8] sm:$0xff]  }
 0x2a8   : > { %v8247_v40 = vpop.f32.mrb[28].mxu0  ;;  %v2815_v14 = vsel %vm2001_vm9, %v2783_v3, %v8036_v19  ;;  %v2817_v30 = vsel %vm2001_vm9, %v2785_v39, %v8050_v0  ;;  %v2627_v10 = vsel %vm1803_vm3, %v8279_v18, %v10610_v1  ;;  %v10611_v0 = vld [vmem:[#allocation66_spill] sm:$0xff]  ;;  %v10616_v26 = vld [vmem:[#allocation80_spill] sm:$0xff]  ;;  %v10617_v3 = vld [vmem:[#allocation91_spill] sm:$0xff] }
 0x2a9   : > { %10605 = vst [vmem:[#allocation4_spill] sm:$0xff] %v8247_v40  ;;  %v8255_v50 = vpop.f32.mrb[29].mxu0  ;;  %v8257_v61 = vpop.permute.xlu1 %2598  ;;  %v2847_v13 = vsel %vm2034_vm10, %v2815_v14, %v2591_v38  ;;  %v2849_v19 = vsel %vm2034_vm10, %v2817_v30, %v2593_v11  ;;  %v2629_v38 = vsel %vm1803_vm3, %v8289_v9, %v10611_v0  ;;  %v10618_v14 = vld [vmem:[#allocation3_spill] sm:$0xff]  ;;  %v10619_v30 = vld [vmem:[#allocation102_spill] sm:$0xff] }
 0x2aa   : > { %10607 = vst [vmem:[#allocation87_spill] sm:$0xff] %v8255_v50  ;;  %v8263_v5 = vpop.f32.mrb[30].mxu0  ;;  %v2597_v22 = vpop.permute.xlu0 %2596  ;;  %v2661_v11 = vsel %vm1836_vm4, %v2629_v38, %v10613_v17  ;;  %v8326_v17 = vld [vmem:[%s6031_s29 + $0x130] sm:$0xff]  }
 0x2ab   : > { %10608 = vst [vmem:[#allocation32_spill] sm:$0xff] %v8263_v5  ;;  %v8269_v59 = vpop.f32.mrb[31].mxu0  ;;  %2975 = vrot.lane.b32.xlu1 %v8170_v55, %s5819_s6  ;;  %2973 = vrot.lane.b32.xlu0 %v7703_v12, %s5819_s6  ;;  %v2659_v12 = vsel %vm1836_vm4, %v2627_v10, %v10612_v27  ;;  %v2693_v49 = vsel %vm1869_vm5, %v2661_v11, %v10616_v26  ;;  %v8334_v11 = vld [vmem:[%s6031_s29 + $0x128] sm:$0xff]  }
 0x2ac   : > { %10609 = vst [vmem:[#allocation96_spill] sm:$0xff] %v8269_v59  ;;  %v2691_v16 = vsel %vm1869_vm5, %v2659_v12, %v10614_v57  ;;  %v10653_v59 = vld [vmem:[#allocation155_spill] sm:$0xff] }
 0x2ad   : > { %5462 = vmatmul.mubr.msk.bf16.gmra.mrb[40].mxu0 %vm3951_vm11, %v2847_v13  ;;  %v8286_v20 = vpop.permute.xlu1 %2602  ;;  %v2723_v39 = vsel %vm1902_vm6, %v2691_v16, %v10617_v3  ;;  %v2725_v13 = vsel %vm1902_vm6, %v2693_v49, %v10619_v30  ;;  %v10622_v49 = vld [vmem:[#allocation119_spill] sm:$0xff]  ;;  %v10623_v30 = vld [vmem:[#allocation58_spill] sm:$0xff] }
 0x2ae   : > { %5465 = vmatprep.mubr.msk.bf16.mxu0 %vm3951_vm11, %v2849_v19  ;;  %v2601_v32 = vpop.permute.xlu0 %2600  ;;  %v2755_v1 = vsel %vm1935_vm7, %v2723_v39, %v7896_v29  ;;  %v2757_v19 = vsel %vm1935_vm7, %v2725_v13, %v7906_v37  ;;  %v10624_v13 = vld [vmem:[#allocation74_spill] sm:$0xff] }
 0x2af   : > { %3003 = vrot.lane.b32.xlu1 %v10615_v53, %s5820_s7  ;;  %3001 = vrot.lane.b32.xlu0 %v10618_v14, %s5820_s7  ;;  %v2787_v0 = vsel %vm1968_vm8, %v2755_v1, %v7960_v4  ;;  %v2789_v27 = vsel %vm1968_vm8, %v2757_v19, %v7970_v23  ;;  %v8339_v4 = vld [vmem:[%s6031_s29 + $0xd8] sm:$0xff]   ;;  %v10620_v23 = vld [vmem:[#allocation41_spill] sm:$0xff] }
 0x2b0   : > { %v2819_v12 = vsel %vm2001_vm9, %v2787_v0, %v8048_v7  ;;  %v2821_v29 = vsel %vm2001_vm9, %v2789_v27, %v8064_v8  ;;  %v2631_v7 = vsel %vm1803_vm3, %v8339_v4, %v10620_v23  ;;  %v8349_v8 = vld [vmem:[%s6031_s29 + $0xe0] sm:$0xff]   ;;  %v10625_v19 = vld [vmem:[#allocation89_spill] sm:$0xff]  ;;  %v10626_v27 = vld [vmem:[#allocation128_spill] sm:$0xff] }
 0x2b1   : > { %v8313_v10 = vpop.permute.xlu1 %2606  ;;  %v2851_v37 = vsel %vm2034_vm10, %v2819_v12, %v2595_v44  ;;  %v2853_v57 = vsel %vm2034_vm10, %v2821_v29, %v2597_v22  ;;  %v10621_v44 = vld [vmem:[#allocation77_spill] sm:$0xff]  ;;  %v2663_v3 = vsel %vm1836_vm4, %v2631_v7, %v10622_v49  ;;  %v8370_v29 = vld [vmem:[%s6031_s29 + $0x1b8] sm:$0xff]  }
 0x2b2   : > { %v8319_v38 = vpop.permute.xlu0 %2604  ;;  %v2633_v26 = vsel %vm1803_vm3, %v8349_v8, %v10621_v44  ;;  %v2695_v1 = vsel %vm1869_vm5, %v2663_v3, %v10624_v13  ;;  %v8409_v13 = vld [vmem:[%s6031_s29 + $0xf0] sm:$0xff]  }
 0x2b3   : > { %3040 = vrot.lane.b32.xlu1 %v8326_v17, %s5821_s8  ;;  %3038 = vrot.lane.b32.xlu0 %v8334_v11, %s5821_s8  ;;  %v2665_v22 = vsel %vm1836_vm4, %v2633_v26, %v10623_v30  ;;  %v2727_v12 = vsel %vm1902_vm6, %v2695_v1, %v10626_v27  ;;  %v10628_v30 = vld [vmem:[#allocation68_spill] sm:$0xff] }
 0x2b4   : > { %v2697_v0 = vsel %vm1869_vm5, %v2665_v22, %v10625_v19  ;;  %v2759_v7 = vsel %vm1935_vm7, %v2727_v12, %v7904_v2  ;;  %v10630_v1 = vld [vmem:[#allocation56_spill] sm:$0xff]  ;;  %v10632_v12 = vld [vmem:[#allocation83_spill] sm:$0xff] }
 0x2b5   : > { %5466 = vmatmul.mubr.msk.bf16.gmra.mrb[44].mxu0 %vm3951_vm11, %v2851_v37  ;;  %v8346_v16 = vpop.permute.xlu1 %2610  ;;  %v10627_v37 = vld [vmem:[#allocation18_spill] sm:$0xff]  ;;  %v2791_v44 = vsel %vm1968_vm8, %v2759_v7, %v7968_v47  ;;  %v8399_v47 = vld [vmem:[%s6031_s29 + $0xe8] sm:$0xff]  }
 0x2b6   : > { %5469 = vmatprep.mubr.msk.bf16.mxu0 %vm3951_vm11, %v2853_v57  ;;  %v8357_v39 = vpop.permute.xlu0 %2608  ;;  %v2729_v23 = vsel %vm1902_vm6, %v2697_v0, %v10627_v37  ;;  %v2823_v3 = vsel %vm2001_vm9, %v2791_v44, %v8060_v21  ;;  %v10631_v27 = vld [vmem:[#allocation72_spill] sm:$0xff]  ;;  %v10634_v7 = vld [vmem:[#allocation98_spill] sm:$0xff] }
 0x2b7   : > { %3077 = vrot.lane.b32.xlu1 %v7366_v63, %s5822_s9  ;;  %3075 = vrot.lane.b32.xlu0 %v8370_v29, %s5822_s9  ;;  %v2761_v57 = vsel %vm1935_vm7, %v2729_v23, %v7914_v43  ;;  %v2855_v43 = vsel %vm2034_vm10, %v2823_v3, %v8257_v61  ;;  %v10633_v23 = vld [vmem:[#allocation8_spill] sm:$0xff]  ;;  %v10636_v3 = vld [vmem:[#allocation5_spill] sm:$0xff] }
 0x2b8   : > { %v2793_v49 = vsel %vm1968_vm8, %v2761_v57, %v7978_v48  ;;  %v2635_v48 = vsel %vm1803_vm3, %v8399_v47, %v10628_v30  ;;  %v10635_v44 = vld [vmem:[#allocation104_spill] sm:$0xff] }
 0x2b9   : > { %v8378_v63 = vpop.permute.xlu1 %2875  ;;  %v2825_v2 = vsel %vm2001_vm9, %v2793_v49, %v8074_v56  ;;  %v10629_v56 = vld [vmem:[#allocation95_spill] sm:$0xff]  ;;  %v2667_v19 = vsel %vm1836_vm4, %v2635_v48, %v10630_v1 }
 0x2ba   : > { %v8384_v26 = vpop.permute.xlu0 %2873  ;;  %v2857_v21 = vsel %vm2034_vm10, %v2825_v2, %v2601_v32  ;;  %v2637_v61 = vsel %vm1803_vm3, %v8409_v13, %v10629_v56  ;;  %v2699_v37 = vsel %vm1869_vm5, %v2667_v19, %v10632_v12  ;;  %v10637_v2 = vld [vmem:[#allocation109_spill] sm:$0xff] }
 0x2bb   : > { %3125 = vrot.lane.b32.xlu1 %v10347_v41, %s5824_s18  ;;  %3123 = vrot.lane.b32.xlu0 %v10345_v54, %s5824_s18  ;;  %v2669_v32 = vsel %vm1836_vm4, %v2637_v61, %v10631_v27  ;;  %v2731_v49 = vsel %vm1902_vm6, %v2699_v37, %v10635_v44  ;;  %v8448_v27 = vld [vmem:[%s6031_s29 + $0x140] sm:$0xff]  }
 0x2bc   : > { %v2701_v57 = vsel %vm1869_vm5, %v2669_v32, %v10634_v7  ;;  %v2763_v30 = vsel %vm1935_vm7, %v2731_v49, %v7912_v36  ;;  %v10638_v36 = vld [vmem:[#allocation157_spill] sm:$0xff]  ;;  %v8457_v32 = vld [vmem:[%s6031_s29 + $0x138] sm:$0xff]  }
 0x2bd   : > { %5470 = vmatmul.mubr.msk.bf16.gmra.mrb[48].mxu0 %vm3951_vm11, %v2855_v43  ;;  %v8406_v22 = vpop.permute.xlu1 %2879  ;;  %v2733_v43 = vsel %vm1902_vm6, %v2701_v57, %v10637_v2  ;;  %v2795_v56 = vsel %vm1968_vm8, %v2763_v30, %v7976_v35  ;;  %v10640_v57 = vld [vmem:[#allocation50_spill] sm:$0xff]  ;;  %v10641_v49 = vld [vmem:[#allocation69_spill] sm:$0xff] }
 0x2be   : > { %5473 = vmatprep.mubr.msk.bf16.mxu0 %vm3951_vm11, %v2857_v21  ;;  %v8417_v0 = vpop.permute.xlu0 %2877  ;;  %v2765_v21 = vsel %vm1935_vm7, %v2733_v43, %v7922_v6  ;;  %v2827_v19 = vsel %vm2001_vm9, %v2795_v56, %v8072_v24  ;;  %v10639_v24 = vld [vmem:[#allocation86_spill] sm:$0xff]  ;;  %v10642_v30 = vld [vmem:[#allocation81_spill] sm:$0xff] }
 0x2bf   : > { %3007 = vrot.lane.b32.xlu1 %v10633_v23, %s5820_s7  ;;  %3005 = vrot.lane.b32.xlu0 %v10636_v3, %s5820_s7  ;;  %v2797_v1 = vsel %vm1968_vm8, %v2765_v21, %v7992_v45  ;;  %v2859_v35 = vsel %vm2034_vm10, %v2827_v19, %v8286_v20  ;;  %v8462_v45 = vld [vmem:[%s6031_s29 + $0xf8] sm:$0xff]   ;;  %v8473_v20 = vld [vmem:[%s6031_s29 + $0x100] sm:$0xff]   ;;  %v10643_v21 = vld [vmem:[#allocation92_spill] sm:$0xff] }
 0x2c0   : > { %v2829_v6 = vsel %vm2001_vm9, %v2797_v1, %v10638_v36  ;;  %v2639_v12 = vsel %vm1803_vm3, %v8462_v45, %v10639_v24  ;;  %v2641_v44 = vsel %vm1803_vm3, %v8473_v20, %v10640_v57  ;;  %v8488_v1 = vld [vmem:[%s6031_s29 + $0x1d0] sm:$0xff]   ;;  %v10645_v19 = vld [vmem:[#allocation123_spill] sm:$0xff]  ;;  %v8497_v24 = vld [vmem:[%s6031_s29 + $0x1c8] sm:$0xff]  }
 0x2c1   : > { %v8435_v48 = vpop.permute.xlu1 %2883  ;;  %v2861_v37 = vsel %vm2034_vm10, %v2829_v6, %v8319_v38  ;;  %v2671_v2 = vsel %vm1836_vm4, %v2639_v12, %v10641_v49  ;;  %v2673_v38 = vsel %vm1836_vm4, %v2641_v44, %v10642_v30  ;;  %10644 = vst [vmem:[#allocation130_spill] sm:$0xff] %v8488_v1  ;;  %v10646_v6 = vld [vmem:[#allocation103_spill] sm:$0xff]  ;;  %10647 = vst [vmem:[#allocation37_spill] sm:$0xff] %v8497_v24  ;;  %v10648_v12 = vld [vmem:[#allocation116_spill] sm:$0xff] }
 0x2c2   : > { %v8441_v61 = vpop.permute.xlu0 %2881  ;;  %v2703_v56 = vsel %vm1869_vm5, %v2671_v2, %v10643_v21  ;;  %v2705_v36 = vsel %vm1869_vm5, %v2673_v38, %v10645_v19  ;;  %v10649_v57 = vld [vmem:[#allocation115_spill] sm:$0xff]  ;;  %v10650_v2 = vld [vmem:[#allocation121_spill] sm:$0xff] }
 0x2c3   : > { %3044 = vrot.lane.b32.xlu1 %v8448_v27, %s5821_s8  ;;  %3042 = vrot.lane.b32.xlu0 %v8457_v32, %s5821_s8  ;;  %v10651_v38 = vld [vmem:[#allocation137_spill] sm:$0xff] }
 0x2c4   : > { %v10652_v19 = vld [vmem:[#allocation141_spill] sm:$0xff] }
 0x2c5   : > { %5474 = vmatmul.mubr.msk.bf16.gmra.mrb[52].mxu0 %vm3951_vm11, %v2859_v35  ;;  %v8470_v7 = vpop.permute.xlu1 %2887  ;;  %v2735_v35 = vsel %vm1902_vm6, %v2703_v56, %v10646_v6 }
 0x2c6   : > { %5477 = vmatprep.mubr.msk.bf16.mxu0 %vm3951_vm11, %v2861_v37  ;;  %v8481_v43 = vpop.permute.xlu0 %2885  ;;  %v2737_v37 = vsel %vm1902_vm6, %v2705_v36, %v10648_v12  ;;  %v2767_v44 = vsel %vm1935_vm7, %v2735_v35, %v10649_v57  ;;  %v10654_v36 = vld [vmem:[#allocation49_spill] sm:$0xff]  ;;  %v8526_v57 = vld [vmem:[%s6031_s29 + $0x108] sm:$0xff]  }
 0x2c7   : > { %3081 = vrot.lane.b32.xlu1 %v8488_v1, %s5822_s9  ;;  %3079 = vrot.lane.b32.xlu0 %v8497_v24, %s5822_s9  ;;  %v2769_v30 = vsel %vm1935_vm7, %v2737_v37, %v10650_v2  ;;  %v2799_v21 = vsel %vm1968_vm8, %v2767_v44, %v10651_v38  ;;  %v10655_v37 = vld [vmem:[#allocation43_spill] sm:$0xff]  ;;  %v10656_v44 = vld [vmem:[#allocation113_spill] sm:$0xff]  ;;  %v3158_v24 = vsel %vm1803_vm3, %v8334_v11, %v8378_v63 }
 0x2c8   : > { %v2801_v6 = vsel %vm1968_vm8, %v2769_v30, %v10652_v19  ;;  %v2831_v5 = vsel %vm2001_vm9, %v2799_v21, %v10653_v59  ;;  %v2643_v2 = vsel %vm1803_vm3, %v8526_v57, %v10656_v44  ;;  %v10661_v19 = vld [vmem:[#allocation105_spill] sm:$0xff]  ;;  %v10664_v44 = vld [vmem:[#allocation140_spill] sm:$0xff] }
 0x2c9   : > { %v8505_v49 = vpop.permute.xlu1 %2891  ;;  %v2833_v35 = vsel %vm2001_vm9, %v2801_v6, %v8117_v28  ;;  %v2863_v12 = vsel %vm2034_vm10, %v2831_v5, %v8313_v10  ;;  %v10658_v28 = vld [vmem:[#allocation78_spill] sm:$0xff]  ;;  %v10660_v10 = vld [vmem:[#allocation101_spill] sm:$0xff] }
 0x2ca   : > { %v8511_v56 = vpop.permute.xlu0 %2889  ;;  %v2865_v59 = vsel %vm2034_vm10, %v2833_v35, %v8357_v39  ;;  %v2675_v38 = vsel %vm1836_vm4, %v2643_v2, %v10658_v28  ;;  %v10662_v6 = vld [vmem:[#allocation126_spill] sm:$0xff]  ;;  %v8770_v1 = vld [vmem:[%s6031_s29 + $0x190] sm:$0xff]  }
 0x2cb   : > { %3129 = vrot.lane.b32.xlu1 %v10654_v36, %s5824_s18  ;;  %3127 = vrot.lane.b32.xlu0 %v10655_v37, %s5824_s18  ;;  %v2707_v21 = vsel %vm1869_vm5, %v2675_v38, %v10660_v10  ;;  %v10666_v38 = vld [vmem:[#allocation10_spill] sm:$0xff]  ;;  %10711 = vst [vmem:[#allocation72_spill] sm:$0xff] %v8770_v1 }
 0x2cc   : > { %v2739_v39 = vsel %vm1902_vm6, %v2707_v21, %v10661_v19  ;;  %v10667_v21 = vld [vmem:[#allocation7_spill] sm:$0xff] }
 0x2cd   : > { %5478 = vmatmul.mubr.msk.bf16.gmra.mrb[56].mxu0 %vm3951_vm11, %v2863_v12  ;;  %v8534_v30 = vpop.permute.xlu1 %2895  ;;  %v2771_v35 = vsel %vm1935_vm7, %v2739_v39, %v10662_v6  ;;  %v8571_v6 = vld [vmem:[%s6031_s29 + $0x150] sm:$0xff]  }
 0x2ce   : > { %10657 = vst [vmem:[#allocation82_spill] sm:$0xff] %v8534_v30  ;;  %5481 = vmatprep.mubr.msk.bf16.mxu0 %vm3951_vm11, %v2865_v59  ;;  %v8539_v5 = vpop.permute.xlu0 %2893  ;;  %v2803_v2 = vsel %vm1968_vm8, %v2771_v35, %v10664_v44  ;;  %v8585_v44 = vld [vmem:[%s6031_s29 + $0x1e0] sm:$0xff]  }
 0x2cf   : > { %10659 = vst [vmem:[#allocation28_spill] sm:$0xff] %v8539_v5  ;;  %2979 = vrot.lane.b32.xlu1 %v8229_v42, %s5819_s6  ;;  %2977 = vrot.lane.b32.xlu0 %v8221_v33, %s5819_s6  ;;  %v2835_v28 = vsel %vm2001_vm9, %v2803_v2, %v8111_v34  ;;  %v8576_v34 = vld [vmem:[%s6031_s29 + $0x148] sm:$0xff]   ;;  %10670 = vst [vmem:[#allocation90_spill] sm:$0xff] %v8585_v44  ;;  %v8590_v2 = vld [vmem:[%s6031_s29 + $0x1d8] sm:$0xff]  }
 0x2d0   : > { %v2867_v10 = vsel %vm2034_vm10, %v2835_v28, %v8346_v16  ;;  %10671 = vst [vmem:[#allocation71_spill] sm:$0xff] %v8590_v2  ;;  %v10691_v42 = vld [vmem:[#allocation60_spill] sm:$0xff]  ;;  %v8727_v30 = vld [vmem:[%s6031_s29 + $0x180] sm:$0xff]  }
 0x2d1   : > { %v8551_v12 = vpop.permute.xlu1 %2899  ;;  %10701 = vst [vmem:[#allocation89_spill] sm:$0xff] %v8727_v30 }
 0x2d2   : > { %10663 = vst [vmem:[#allocation31_spill] sm:$0xff] %v8551_v12  ;;  %v8555_v59 = vpop.permute.xlu0 %2897  ;;  %v10682_v12 = vld [vmem:[#allocation57_spill] sm:$0xff] }
 0x2d3   : > { %10665 = vst [vmem:[#allocation39_spill] sm:$0xff] %v8555_v59  ;;  %3011 = vrot.lane.b32.xlu1 %v10666_v38, %s5820_s7  ;;  %3009 = vrot.lane.b32.xlu0 %v10667_v21, %s5820_s7  ;;  %v8637_v59 = vld [vmem:[%s6031_s29 + $0x1f0] sm:$0xff]   ;;  %v8689_v21 = vld [vmem:[%s6031_s29 + $0x200] sm:$0xff]  }
 0x2d4   : > { %10678 = vst [vmem:[#allocation38_spill] sm:$0xff] %v8637_v59  ;;  %10689 = vst [vmem:[#allocation91_spill] sm:$0xff] %v8689_v21 }
 0x2d5   : > { %5482 = vmatmul.mubr.msk.bf16.gmra.mrb[60].mxu0 %vm3951_vm11, %v2867_v10  ;;  %v8566_v19 = vpop.permute.xlu1 %2903 }
 0x2d6   : > { %10668 = vst [vmem:[#allocation85_spill] sm:$0xff] %v8566_v19  ;;  %v8568_v39 = vpop.permute.xlu0 %2901  ;;  %v10673_v19 = vld [vmem:[#allocation47_spill] sm:$0xff] }
 0x2d7   : > { %10669 = vst [vmem:[#allocation111_spill] sm:$0xff] %v8568_v39  ;;  %3048 = vrot.lane.b32.xlu1 %v8571_v6, %s5821_s8  ;;  %3046 = vrot.lane.b32.xlu0 %v8576_v34, %s5821_s8  ;;  %v10672_v39 = vld [vmem:[#allocation53_spill] sm:$0xff] }
 0x2d9   : > { %v8580_v16 = vpop.permute.xlu1 %2907 }
 0x2da   : > { %v8582_v35 = vpop.permute.xlu0 %2905 }
 0x2db   : > { %3085 = vrot.lane.b32.xlu1 %v8585_v44, %s5822_s9  ;;  %3083 = vrot.lane.b32.xlu0 %v8590_v2, %s5822_s9 }
 0x2dd   : > { %v8594_v28 = vpop.permute.xlu1 %2911 }
 0x2de   : > { %v8596_v10 = vpop.permute.xlu0 %2909 }
 0x2df   : > { %3133 = vrot.lane.b32.xlu1 %v10672_v39, %s5824_s18  ;;  %3131 = vrot.lane.b32.xlu0 %v10673_v19, %s5824_s18 }
 0x2e1   : > { %v8602_v50 = vpop.permute.xlu1 %2915 }
 0x2e2   : > { %v8604_v40 = vpop.permute.xlu0 %2913 }
 0x2e3   : > { %2983 = vrot.lane.b32.xlu1 %v8289_v9, %s5819_s6  ;;  %2981 = vrot.lane.b32.xlu0 %v8279_v18, %s5819_s6  ;;  %v8628_v18 = vld [vmem:[%s6031_s29 + $0x158] sm:$0xff]  }
 0x2e5   : > { %v8610_v31 = vpop.permute.xlu1 %2919 }
 0x2e6   : > { %v8612_v15 = vpop.permute.xlu0 %2917 }
 0x2e7   : > { %3015 = vrot.lane.b32.xlu1 %v10674_v62, %s5820_s7  ;;  %3013 = vrot.lane.b32.xlu0 %v10675_v46, %s5820_s7  ;;  %v8642_v46 = vld [vmem:[%s6031_s29 + $0x1e8] sm:$0xff]  }
 0x2e8   : > { %10679 = vst [vmem:[#allocation66_spill] sm:$0xff] %v8642_v46 }
 0x2e9   : > { %v8618_v39 = vpop.permute.xlu1 %2923 }
 0x2ea   : > { %v8620_v2 = vpop.permute.xlu0 %2921 }
 0x2eb   : > { %3052 = vrot.lane.b32.xlu1 %v8623_v25, %s5821_s8  ;;  %3050 = vrot.lane.b32.xlu0 %v8628_v18, %s5821_s8 }
 0x2ed   : > { %v8632_v9 = vpop.permute.xlu1 %2927 }
 0x2ee   : > { %10676 = vst [vmem:[#allocation73_spill] sm:$0xff] %v8632_v9  ;;  %v8634_v62 = vpop.permute.xlu0 %2925 }
 0x2ef   : > { %10677 = vst [vmem:[#allocation100_spill] sm:$0xff] %v8634_v62  ;;  %3089 = vrot.lane.b32.xlu1 %v8637_v59, %s5822_s9  ;;  %3087 = vrot.lane.b32.xlu0 %v8642_v46, %s5822_s9  ;;  %v10692_v62 = vld [vmem:[#allocation55_spill] sm:$0xff] }
 0x2f1   : > { %v8646_v44 = vpop.permute.xlu1 %2931 }
 0x2f2   : > { %10680 = vst [vmem:[#allocation97_spill] sm:$0xff] %v8646_v44  ;;  %v8648_v60 = vpop.permute.xlu0 %2929  ;;  %v8675_v44 = vld [vmem:[%s6031_s29 + $0x170] sm:$0xff]  }
 0x2f3   : > { %10681 = vst [vmem:[#allocation54_spill] sm:$0xff] %v8648_v60  ;;  %3137 = vrot.lane.b32.xlu1 %v10682_v12, %s5824_s18  ;;  %3135 = vrot.lane.b32.xlu0 %v10683_v58, %s5824_s18  ;;  %v10686_v12 = vld [vmem:[#allocation14_spill] sm:$0xff]  ;;  %v10687_v58 = vld [vmem:[#allocation11_spill] sm:$0xff]  ;;  %10688 = vst [vmem:[#allocation80_spill] sm:$0xff] %v8675_v44 }
 0x2f5   : > { %v8654_v52 = vpop.permute.xlu1 %2935 }
 0x2f6   : > { %10684 = vst [vmem:[#allocation117_spill] sm:$0xff] %v8654_v52  ;;  %v8656_v59 = vpop.permute.xlu0 %2933 }
 0x2f7   : > { %10685 = vst [vmem:[#allocation6_spill] sm:$0xff] %v8656_v59  ;;  %2987 = vrot.lane.b32.xlu1 %v8349_v8, %s5819_s6  ;;  %2985 = vrot.lane.b32.xlu0 %v8339_v4, %s5819_s6  ;;  %v8680_v4 = vld [vmem:[%s6031_s29 + $0x168] sm:$0xff]  }
 0x2f9   : > { %v8662_v46 = vpop.permute.xlu1 %2939 }
 0x2fa   : > { %v8664_v60 = vpop.permute.xlu0 %2937 }
 0x2fb   : > { %3019 = vrot.lane.b32.xlu1 %v10686_v12, %s5820_s7  ;;  %3017 = vrot.lane.b32.xlu0 %v10687_v58, %s5820_s7  ;;  %v8694_v58 = vld [vmem:[%s6031_s29 + $0x1f8] sm:$0xff]  }
 0x2fc   : > { %10690 = vst [vmem:[#allocation3_spill] sm:$0xff] %v8694_v58 }
 0x2fd   : > { %v8670_v52 = vpop.permute.xlu1 %2943 }
 0x2fe   : > { %v8672_v59 = vpop.permute.xlu0 %2941 }
 0x2ff   : > { %3056 = vrot.lane.b32.xlu1 %v8675_v44, %s5821_s8  ;;  %3054 = vrot.lane.b32.xlu0 %v8680_v4, %s5821_s8 }
 0x301   : > { %v8684_v8 = vpop.permute.xlu1 %2947 }
 0x302   : > { %v8686_v12 = vpop.permute.xlu0 %2945 }
 0x303   : > { %3093 = vrot.lane.b32.xlu1 %v8689_v21, %s5822_s9  ;;  %3091 = vrot.lane.b32.xlu0 %v8694_v58, %s5822_s9 }
 0x305   : > { %v8698_v38 = vpop.permute.xlu1 %2951 }
 0x306   : > { %v8700_v33 = vpop.permute.xlu0 %2949 }
 0x307   : > { %3141 = vrot.lane.b32.xlu1 %v10691_v42, %s5824_s18  ;;  %3139 = vrot.lane.b32.xlu0 %v10692_v62, %s5824_s18  ;;  %v10697_v42 = vld [vmem:[#allocation17_spill] sm:$0xff] }
 0x308   : > { %v10698_v62 = vld [vmem:[#allocation13_spill] sm:$0xff] }
 0x309   : > { %v8706_v9 = vpop.permute.xlu1 %2955 }
 0x30a   : > { %10693 = vst [vmem:[#allocation102_spill] sm:$0xff] %v8706_v9  ;;  %v8708_v21 = vpop.permute.xlu0 %2953  ;;  %v8794_v9 = vld [vmem:[%s6031_s29 + $0x220] sm:$0xff]  }
 0x30b   : > { %10694 = vst [vmem:[#allocation41_spill] sm:$0xff] %v8708_v21  ;;  %2991 = vrot.lane.b32.xlu1 %v8409_v13, %s5819_s6  ;;  %2989 = vrot.lane.b32.xlu0 %v8399_v47, %s5819_s6  ;;  %v8732_v47 = vld [vmem:[%s6031_s29 + $0x178] sm:$0xff]  }
 0x30c   : > { %10702 = vst [vmem:[#allocation128_spill] sm:$0xff] %v8732_v47 }
 0x30d   : > { %v8714_v58 = vpop.permute.xlu1 %2959 }
 0x30e   : > { %10695 = vst [vmem:[#allocation77_spill] sm:$0xff] %v8714_v58  ;;  %v8716_v44 = vpop.permute.xlu0 %2957 }
 0x30f   : > { %10696 = vst [vmem:[#allocation119_spill] sm:$0xff] %v8716_v44  ;;  %3023 = vrot.lane.b32.xlu1 %v10697_v42, %s5820_s7  ;;  %3021 = vrot.lane.b32.xlu0 %v10698_v62, %s5820_s7  ;;  %v8741_v44 = vld [vmem:[%s6031_s29 + $0x210] sm:$0xff]   ;;  %v8746_v62 = vld [vmem:[%s6031_s29 + $0x208] sm:$0xff]  }
 0x310   : > { %10705 = vst [vmem:[#allocation95_spill] sm:$0xff] %v8741_v44  ;;  %10706 = vst [vmem:[#allocation56_spill] sm:$0xff] %v8746_v62 }
 0x311   : > { %v8722_v5 = vpop.permute.xlu1 %2963 }
 0x312   : > { %10699 = vst [vmem:[#allocation58_spill] sm:$0xff] %v8722_v5  ;;  %v8724_v19 = vpop.permute.xlu0 %2961 }
 0x313   : > { %10700 = vst [vmem:[#allocation74_spill] sm:$0xff] %v8724_v19  ;;  %3060 = vrot.lane.b32.xlu1 %v8727_v30, %s5821_s8  ;;  %3058 = vrot.lane.b32.xlu0 %v8732_v47, %s5821_s8  ;;  %v10707_v30 = vld [vmem:[#allocation63_spill] sm:$0xff] }
 0x314   : > { %v10709_v47 = vld [vmem:[#allocation19_spill] sm:$0xff] }
 0x315   : > { %v8736_v13 = vpop.permute.xlu1 %2967 }
 0x316   : > { %10703 = vst [vmem:[#allocation18_spill] sm:$0xff] %v8736_v13  ;;  %v8738_v42 = vpop.permute.xlu0 %2965  ;;  %v10708_v13 = vld [vmem:[#allocation59_spill] sm:$0xff] }
 0x317   : > { %10704 = vst [vmem:[#allocation68_spill] sm:$0xff] %v8738_v42  ;;  %3097 = vrot.lane.b32.xlu1 %v8741_v44, %s5822_s9  ;;  %3095 = vrot.lane.b32.xlu0 %v8746_v62, %s5822_s9 }
 0x319   : > { %v2972_v19 = vpop.permute.xlu1 %2971 }
 0x31a   : > { %v2970_v5 = vpop.permute.xlu0 %2969 }
 0x31b   : > { %3145 = vrot.lane.b32.xlu1 %v10707_v30, %s5824_s18  ;;  %3143 = vrot.lane.b32.xlu0 %v10708_v13, %s5824_s18  ;;  %v10710_v30 = vld [vmem:[#allocation15_spill] sm:$0xff] }
 0x31d   : > { %v8754_v42 = vpop.permute.xlu1 %2975 }
 0x31e   : > { %v8756_v58 = vpop.permute.xlu0 %2973 }
 0x31f   : > { %2995 = vrot.lane.b32.xlu1 %v8473_v20, %s5819_s6  ;;  %2993 = vrot.lane.b32.xlu0 %v8462_v45, %s5819_s6  ;;  %v5757_v45 = vld [vmem:[%s6031_s29 + $0x120] sm:$0xff]  }
 0x320   : > { %v3156_v20 = vsel %vm1803_vm3, %v5757_v45, %v8384_v26 }
 0x321   : > { %v3004_v62 = vpop.permute.xlu1 %3003  ;;  %v3188_v11 = vsel %vm1836_vm4, %v3156_v20, %v8582_v35 }
 0x322   : > { %v3002_v44 = vpop.permute.xlu0 %3001  ;;  %v3220_v21 = vsel %vm1869_vm5, %v3188_v11, %v8664_v60  ;;  %v10713_v11 = vld [vmem:[#allocation61_spill] sm:$0xff] }
 0x323   : > { %3027 = vrot.lane.b32.xlu1 %v10709_v47, %s5820_s7  ;;  %3025 = vrot.lane.b32.xlu0 %v10710_v30, %s5820_s7  ;;  %v3190_v30 = vsel %vm1836_vm4, %v3158_v24, %v8580_v16  ;;  %v8780_v47 = vld [vmem:[%s6031_s29 + $0x188] sm:$0xff]   ;;  %v3252_v24 = vsel %vm1902_vm6, %v3220_v21, %v2970_v5 }
 0x324   : > { %v3222_v63 = vsel %vm1869_vm5, %v3190_v30, %v8662_v46  ;;  %v3284_v35 = vsel %vm1935_vm7, %v3252_v24, %v3002_v44  ;;  %v8801_v30 = vld [vmem:[%s6031_s29 + $0x218] sm:$0xff]   ;;  %v10712_v44 = vld [vmem:[#allocation65_spill] sm:$0xff] }
 0x325   : > { %v3041_v13 = vpop.permute.xlu1 %3040  ;;  %v3254_v26 = vsel %vm1902_vm6, %v3222_v63, %v2972_v19 }
 0x326   : > { %v3039_v36 = vpop.permute.xlu0 %3038  ;;  %v3286_v16 = vsel %vm1935_vm7, %v3254_v26, %v3004_v62  ;;  %v10714_v26 = vld [vmem:[#allocation99_spill] sm:$0xff] }
 0x327   : > { %3064 = vrot.lane.b32.xlu1 %v8770_v1, %s5821_s8  ;;  %3062 = vrot.lane.b32.xlu0 %v8780_v47, %s5821_s8  ;;  %v3318_v46 = vsel %vm1968_vm8, %v3286_v16, %v3041_v13  ;;  %v3316_v60 = vsel %vm1968_vm8, %v3284_v35, %v3039_v36  ;;  %v5663_v36 = vld [vmem:[%s6031_s29 + $0x1a0] sm:$0xff]  }
 0x328   : > { %v3111_v24 = vshll.u32 %v5663_v36, 16 }
 0x329   : > { %v3078_v1 = vpop.permute.xlu1 %3077 }
 0x32a   : > { %v3076_v45 = vpop.permute.xlu0 %3075  ;;  %v3350_v62 = vsel %vm2001_vm9, %v3318_v46, %v3078_v1  ;;  %v3162_v46 = vsel %vm1803_vm3, %v8457_v32, %v8406_v22 }
 0x32b   : > { %3101 = vrot.lane.b32.xlu1 %v8794_v9, %s5822_s9  ;;  %3099 = vrot.lane.b32.xlu0 %v8801_v30, %s5822_s9  ;;  %v3348_v21 = vsel %vm2001_vm9, %v3316_v60, %v3076_v45  ;;  %v5665_v45 = vld [vmem:[%s6031_s29 + $0x1a8] ss:$0 sps:$4 sm:$0x11]   ;;  %v3160_v60 = vsel %vm1803_vm3, %v8326_v17, %v8417_v0 }
 0x32c   : > { %v3192_v22 = vsel %vm1836_vm4, %v3160_v60, %v8596_v10  ;;  %v8847_v10 = vld [vmem:[%s6031_s29 + $0x230] sm:$0xff]  }
 0x32d   : > { %v3126_v5 = vpop.permute.xlu1 %3125  ;;  %v3224_v32 = vsel %vm1869_vm5, %v3192_v22, %v8672_v59 }
 0x32e   : > { %v3382_v19 = vsel %vm2034_vm10, %v3350_v62, %v3126_v5  ;;  %v3124_v20 = vpop.permute.xlu0 %3123  ;;  %v10715_v62 = vld [vmem:[#allocation93_spill] sm:$0xff]  ;;  %v3194_v5 = vsel %vm1836_vm4, %v3162_v46, %v8594_v28  ;;  %v8852_v46 = vld [vmem:[%s6031_s29 + $0x198] sm:$0xff]  }
 0x32f   : > { %3149 = vrot.lane.b32.xlu1 %v10712_v44, %s5824_s18  ;;  %v3380_v13 = vsel %vm2034_vm10, %v3348_v21, %v3124_v20  ;;  %3147 = vrot.lane.b32.xlu0 %v10713_v11, %s5824_s18  ;;  %v3113_v21 = vrot.slane %v3111_v24, 1  ;;  %v3119_v20 = vshll.u32 %v5665_v45, 16  ;;  %v3226_v17 = vsel %vm1869_vm5, %v3194_v5, %v8670_v52 }
 0x330   : > { %5485 = vmatprep.mubr.msk.bf16.mxu1 %vm3951_vm11, %v3380_v13  ;;  %v3258_v28 = vsel %vm1902_vm6, %v3226_v17, %v8754_v42 }
 0x331   : > { %5486 = vmatmul.mubr.msk.bf16.vlgmr.msra.gmra.mrb[0].mxu1 %vm3951_vm11, %v3382_v19  ;;  %v3008_v1 = vpop.permute.xlu1 %3007  ;;  %v3115_v19 = vshrl.u32 %v5663_v36, 16  ;;  %v3121_v59 = vrot.slane %v3119_v20, 1  ;;  %v10717_v20 = vld [vmem:[#allocation62_spill] sm:$0xff] }
 0x332   : > { %v3006_v63 = vpop.permute.xlu0 %3005  ;;  %v3290_v24 = vsel %vm1935_vm7, %v3258_v28, %v3008_v1  ;;  %v8872_v17 = vsel %vm1125_vm0, %v10717_v20, %v3113_v21 }
 0x333   : > { %2999 = vrot.lane.b32.xlu1 %v10714_v26, %s5819_s6  ;;  %2997 = vrot.lane.b32.xlu0 %v8526_v57, %s5819_s6  ;;  %v10716_v57 = vld [vmem:[#allocation16_spill] sm:$0xff]  ;;  %v3256_v26 = vsel %vm1902_vm6, %v3224_v32, %v8756_v58  ;;  %v3117_v42 = vor.u32 %v3115_v19, %v3113_v21  ;;  %v3166_v21 = vsel %vm1803_vm3, %v8576_v34, %v8435_v48 }
 0x334   : > { %v3288_v52 = vsel %vm1935_vm7, %v3256_v26, %v3006_v63 }
 0x335   : > { %v3045_v16 = vpop.permute.xlu1 %3044 }
 0x336   : > { %v3043_v35 = vpop.permute.xlu0 %3042  ;;  %v3322_v45 = vsel %vm1968_vm8, %v3290_v24, %v3045_v16  ;;  %v5762_v16 = vld [vmem:[%s6031_s29 + $0x228] sm:$0xff]  }
 0x337   : > { %3031 = vrot.lane.b32.xlu1 %v10715_v62, %s5820_s7  ;;  %3029 = vrot.lane.b32.xlu0 %v10716_v57, %s5820_s7  ;;  %v3320_v58 = vsel %vm1968_vm8, %v3288_v52, %v3043_v35  ;;  %v8867_v35 = vsel %vm1125_vm0, %v3117_v42, %v3121_v59  ;;  %v10719_v52 = vld [vmem:[#allocation34_spill] sm:$0xff]  ;;  %v3198_v42 = vsel %vm1836_vm4, %v3166_v21, %v8602_v50  ;;  %v10720_v59 = vld [vmem:[#allocation35_spill] sm:$0xff] }
 0x338   : > { %v3170_v21 = vsel %vm1803_vm3, %v8628_v18, %v8470_v7 }
 0x339   : > { %v3082_v0 = vpop.permute.xlu1 %3081 }
 0x33a   : > { %v3080_v13 = vpop.permute.xlu0 %3079  ;;  %v3354_v1 = vsel %vm2001_vm9, %v3322_v45, %v3082_v0  ;;  %v3164_v45 = vsel %vm1803_vm3, %v8448_v27, %v8441_v61  ;;  %v5763_v27 = vld [vmem:[%s6031_s29 + $0xa0] sm:$0xff]  }
 0x33b   : > { %3068 = vrot.lane.b32.xlu1 %v5663_v36, %s5821_s8  ;;  %3066 = vrot.lane.b32.xlu0 %v8852_v46, %s5821_s8  ;;  %v3352_v36 = vsel %vm2001_vm9, %v3320_v58, %v3080_v13  ;;  %v10718_v13 = vld [vmem:[#allocation42_spill] sm:$0xff]  ;;  %v3196_v58 = vsel %vm1836_vm4, %v3164_v45, %v8604_v40  ;;  %v3168_v45 = vsel %vm1803_vm3, %v8571_v6, %v8481_v43 }
 0x33c   : > { %v3228_v34 = vsel %vm1869_vm5, %v3196_v58, %v8686_v12 }
 0x33d   : > { %v3130_v60 = vpop.permute.xlu1 %3129 }
 0x33e   : > { %v3386_v5 = vsel %vm2034_vm10, %v3354_v1, %v3130_v60  ;;  %v3128_v22 = vpop.permute.xlu0 %3127  ;;  %v3230_v1 = vsel %vm1869_vm5, %v3198_v42, %v8684_v8  ;;  %v3202_v42 = vsel %vm1836_vm4, %v3170_v21, %v8610_v31 }
 0x33f   : > { %v3384_v63 = vsel %vm2034_vm10, %v3352_v36, %v3128_v22  ;;  %3105 = vrot.lane.b32.xlu1 %v8847_v10, %s5822_s9  ;;  %3103 = vrot.lane.b32.xlu0 %v5762_v16, %s5822_s9 }
 0x340   : > { %5489 = vmatprep.mubr.msk.bf16.mxu1 %vm3951_vm11, %v3384_v63 }
 0x341   : > { %5490 = vmatmul.mubr.msk.bf16.gmra.mrb[4].mxu1 %vm3951_vm11, %v3386_v5  ;;  %v2980_v19 = vpop.permute.xlu1 %2979 }
 0x342   : > { %v2978_v0 = vpop.permute.xlu0 %2977  ;;  %v3262_v60 = vsel %vm1902_vm6, %v3230_v1, %v2980_v19 }
 0x343   : > { %3153 = vrot.lane.b32.xlu1 %v8867_v35, %s5824_s18  ;;  %3151 = vrot.lane.b32.xlu0 %v8872_v17, %s5824_s18  ;;  %v3260_v61 = vsel %vm1902_vm6, %v3228_v34, %v2978_v0 }
 0x345   : > { %v3012_v32 = vpop.permute.xlu1 %3011 }
 0x346   : > { %v3010_v28 = vpop.permute.xlu0 %3009  ;;  %v3294_v50 = vsel %vm1935_vm7, %v3262_v60, %v3012_v32  ;;  %v10721_v32 = vld [vmem:[#allocation112_spill] sm:$0xff] }
 0x347   : > { %3414 = vrot.lane.b32.xlu1 %v10345_v54, %s5816_s30  ;;  %3412 = vrot.lane.b32.xlu0 %v10718_v13, %s5816_s30  ;;  %v3292_v5 = vsel %vm1935_vm7, %v3260_v61, %v3010_v28  ;;  %v10722_v28 = vld [vmem:[#allocation106_spill] sm:$0xff] }
 0x349   : > { %v3049_v26 = vpop.permute.xlu1 %3048 }
 0x34a   : > { %v3047_v24 = vpop.permute.xlu0 %3046  ;;  %v3326_v40 = vsel %vm1968_vm8, %v3294_v50, %v3049_v26  ;;  %v10724_v50 = vld [vmem:[#allocation40_spill] sm:$0xff] }
 0x34b   : > { %3446 = vrot.lane.b32.xlu1 %v10719_v52, %s5817_s4  ;;  %3444 = vrot.lane.b32.xlu0 %v10720_v59, %s5817_s4  ;;  %v3324_v8 = vsel %vm1968_vm8, %v3292_v5, %v3047_v24  ;;  %v8925_v24 = vld [vmem:[%s6031_s29 + $0x1c0] sm:$0xff]   ;;  %v3234_v59 = vsel %vm1869_vm5, %v3202_v42, %v8698_v38  ;;  %v10730_v42 = vld [vmem:[#allocation41_spill] sm:$0xff] }
 0x34d   : > { %v3086_v48 = vpop.permute.xlu1 %3085 }
 0x34e   : > { %v3084_v36 = vpop.permute.xlu0 %3083  ;;  %v3358_v12 = vsel %vm2001_vm9, %v3326_v40, %v3086_v48 }
 0x34f   : > { %3478 = vrot.lane.b32.xlu1 %v5763_v27, %s5818_s5  ;;  %3476 = vrot.lane.b32.xlu0 %v8091_v51, %s5818_s5  ;;  %v3356_v63 = vsel %vm2001_vm9, %v3324_v8, %v3084_v36  ;;  %v10723_v36 = vld [vmem:[#allocation45_spill] sm:$0xff]  ;;  %v5765_v8 = vld [vmem:[%s6031_s29 + $0xa8] sm:$0xff]  }
 0x351   : > { %v3134_v22 = vpop.permute.xlu1 %3133 }
 0x352   : > { %v3390_v16 = vsel %vm2034_vm10, %v3358_v12, %v3134_v22  ;;  %v3132_v19 = vpop.permute.xlu0 %3131  ;;  %v10725_v12 = vld [vmem:[#allocation127_spill] sm:$0xff] }
 0x353   : > { %v3388_v20 = vsel %vm2034_vm10, %v3356_v63, %v3132_v19  ;;  %3510 = vrot.lane.b32.xlu1 %v10615_v53, %s5819_s6  ;;  %3508 = vrot.lane.b32.xlu0 %v10618_v14, %s5819_s6  ;;  %v10726_v19 = vld [vmem:[#allocation134_spill] sm:$0xff] }
 0x354   : > { %5493 = vmatprep.mubr.msk.bf16.mxu1 %vm3951_vm11, %v3388_v20  ;;  %v10761_v20 = vld [vmem:[#allocation46_spill] sm:$0xff] }
 0x355   : > { %5494 = vmatmul.mubr.msk.bf16.gmra.mrb[8].mxu1 %vm3951_vm11, %v3390_v16  ;;  %v2984_v51 = vpop.permute.xlu1 %2983 }
 0x356   : > { %v2982_v0 = vpop.permute.xlu0 %2981  ;;  %v3266_v58 = vsel %vm1902_vm6, %v3234_v59, %v2984_v51 }
 0x357   : > { %3542 = vrot.lane.b32.xlu1 %v10721_v32, %s5820_s7  ;;  %3540 = vrot.lane.b32.xlu0 %v10722_v28, %s5820_s7  ;;  %v10727_v32 = vld [vmem:[#allocation138_spill] sm:$0xff] }
 0x359   : > { %v3016_v13 = vpop.permute.xlu1 %3015 }
 0x35a   : > { %v3014_v26 = vpop.permute.xlu0 %3013  ;;  %v3298_v31 = vsel %vm1935_vm7, %v3266_v58, %v3016_v13  ;;  %v10732_v58 = vld [vmem:[#allocation108_spill] sm:$0xff] }
 0x35b   : > { %3574 = vrot.lane.b32.xlu1 %v8925_v24, %s5821_s8  ;;  %3572 = vrot.lane.b32.xlu0 %v8370_v29, %s5821_s8  ;;  %v3200_v29 = vsel %vm1836_vm4, %v3168_v45, %v8612_v15 }
 0x35c   : > { %v3232_v18 = vsel %vm1869_vm5, %v3200_v29, %v8700_v33 }
 0x35d   : > { %v3053_v53 = vpop.permute.xlu1 %3052  ;;  %v3264_v43 = vsel %vm1902_vm6, %v3232_v18, %v2982_v0 }
 0x35e   : > { %v3051_v14 = vpop.permute.xlu0 %3050  ;;  %v3330_v15 = vsel %vm1968_vm8, %v3298_v31, %v3053_v53  ;;  %v10733_v31 = vld [vmem:[#allocation142_spill] sm:$0xff] }
 0x35f   : > { %3606 = vrot.lane.b32.xlu1 %v10347_v41, %s5822_s9  ;;  %3604 = vrot.lane.b32.xlu0 %v10345_v54, %s5822_s9  ;;  %v3296_v54 = vsel %vm1935_vm7, %v3264_v43, %v3014_v26  ;;  %v3172_v26 = vsel %vm1803_vm3, %v8623_v25, %v8511_v56 }
 0x360   : > { %v3328_v38 = vsel %vm1968_vm8, %v3296_v54, %v3051_v14  ;;  %v10728_v14 = vld [vmem:[#allocation139_spill] sm:$0xff] }
 0x361   : > { %v3090_v7 = vpop.permute.xlu1 %3089 }
 0x362   : > { %v3088_v1 = vpop.permute.xlu0 %3087  ;;  %v3362_v33 = vsel %vm2001_vm9, %v3330_v15, %v3090_v7  ;;  %v10731_v7 = vld [vmem:[#allocation118_spill] sm:$0xff] }
 0x363   : > { %3416 = vrot.lane.b32.xlu1 %v10347_v41, %s5816_s30  ;;  %3652 = vrot.lane.b32.xlu0 %v10719_v52, %s5824_s18  ;;  %v3360_v48 = vsel %vm2001_vm9, %v3328_v38, %v3088_v1 }
 0x365   : > { %v3138_v6 = vpop.permute.xlu1 %3137 }
 0x366   : > { %v3394_v34 = vsel %vm2034_vm10, %v3362_v33, %v3138_v6  ;;  %v3136_v60 = vpop.permute.xlu0 %3135  ;;  %v10734_v6 = vld [vmem:[#allocation143_spill] sm:$0xff] }
 0x367   : > { %v3392_v41 = vsel %vm2034_vm10, %v3360_v48, %v3136_v60  ;;  %3418 = vrot.lane.b32.xlu1 %v10655_v37, %s5816_s30  ;;  %3654 = vrot.lane.b32.xlu0 %v10723_v36, %s5824_s18 }
 0x368   : > { %5497 = vmatprep.mubr.msk.bf16.mxu1 %vm3951_vm11, %v3392_v41 }
 0x369   : > { %5498 = vmatmul.mubr.msk.bf16.gmra.mrb[12].mxu1 %vm3951_vm11, %v3394_v34  ;;  %v2988_v52 = vpop.permute.xlu1 %2987 }
 0x36a   : > { %v2986_v61 = vpop.permute.xlu0 %2985 }
 0x36b   : > { %3450 = vrot.lane.b32.xlu1 %v10724_v50, %s5817_s4  ;;  %3448 = vrot.lane.b32.xlu0 %v10723_v36, %s5817_s4  ;;  %v10735_v36 = vld [vmem:[#allocation144_spill] sm:$0xff] }
 0x36d   : > { %v3020_v27 = vpop.permute.xlu1 %3019 }
 0x36e   : > { %v3018_v5 = vpop.permute.xlu0 %3017 }
 0x36f   : > { %3482 = vrot.lane.b32.xlu1 %v8170_v55, %s5818_s5  ;;  %3480 = vrot.lane.b32.xlu0 %v5765_v8, %s5818_s5  ;;  %v3174_v55 = vsel %vm1803_vm3, %v8680_v4, %v8505_v49  ;;  %v3204_v49 = vsel %vm1836_vm4, %v3172_v26, %v8620_v2  ;;  %v10729_v4 = vld [vmem:[#allocation102_spill] sm:$0xff]  ;;  %v10737_v8 = vld [vmem:[#allocation145_spill] sm:$0xff] }
 0x370   : > { %v8975_v40 = vpop.f32.mrb[32].mxu0  ;;  %v3206_v53 = vsel %vm1836_vm4, %v3174_v55, %v8618_v39  ;;  %v3236_v29 = vsel %vm1869_vm5, %v3204_v49, %v10730_v42 }
 0x371   : > { %v8981_v63 = vpop.f32.mrb[33].mxu0  ;;  %v3057_v16 = vpop.permute.xlu1 %3056  ;;  %v3238_v45 = vsel %vm1869_vm5, %v3206_v53, %v10729_v4  ;;  %v3268_v39 = vsel %vm1902_vm6, %v3236_v29, %v2986_v61  ;;  %v10739_v53 = vld [vmem:[#allocation49_spill] sm:$0xff]  ;;  %v10740_v4 = vld [vmem:[#allocation146_spill] sm:$0xff]  ;;  %v10741_v29 = vld [vmem:[#allocation147_spill] sm:$0xff] }
 0x372   : > { %v8985_v51 = vpop.f32.mrb[34].mxu0  ;;  %v3055_v0 = vpop.permute.xlu0 %3054  ;;  %v3270_v25 = vsel %vm1902_vm6, %v3238_v45, %v2988_v52  ;;  %v10753_v45 = vld [vmem:[#allocation77_spill] sm:$0xff] }
 0x373   : > { %v8992_v13 = vpop.f32.mrb[35].mxu0  ;;  %3514 = vrot.lane.b32.xlu1 %v10633_v23, %s5819_s6  ;;  %3512 = vrot.lane.b32.xlu0 %v10636_v3, %s5819_s6  ;;  %v3302_v59 = vsel %vm1935_vm7, %v3270_v25, %v3020_v27  ;;  %v3300_v3 = vsel %vm1935_vm7, %v3268_v39, %v3018_v5  ;;  %v10736_v5 = vld [vmem:[#allocation130_spill] sm:$0xff] }
 0x374   : > { %v3334_v2 = vsel %vm1968_vm8, %v3302_v59, %v3057_v16  ;;  %v3332_v1 = vsel %vm1968_vm8, %v3300_v3, %v3055_v0  ;;  %v10738_v0 = vld [vmem:[#allocation37_spill] sm:$0xff]  ;;  %v10742_v59 = vld [vmem:[#allocation148_spill] sm:$0xff] }
 0x375   : > { %v3094_v23 = vpop.permute.xlu1 %3093 }
 0x376   : > { %v3092_v56 = vpop.permute.xlu0 %3091  ;;  %v3366_v43 = vsel %vm2001_vm9, %v3334_v2, %v3094_v23 }
 0x377   : > { %3546 = vrot.lane.b32.xlu1 %v10731_v7, %s5820_s7  ;;  %3544 = vrot.lane.b32.xlu0 %v10732_v58, %s5820_s7  ;;  %v3364_v33 = vsel %vm2001_vm9, %v3332_v1, %v3092_v56  ;;  %v10752_v7 = vld [vmem:[#allocation100_spill] sm:$0xff] }
 0x378   : > { %v9018_v18 = vpop.f32.mrb[36].mxu0 }
 0x379   : > { %v9026_v15 = vpop.f32.mrb[37].mxu0  ;;  %v3142_v38 = vpop.permute.xlu1 %3141 }
 0x37a   : > { %v3398_v34 = vsel %vm2034_vm10, %v3366_v43, %v3142_v38  ;;  %v9032_v60 = vpop.f32.mrb[38].mxu0  ;;  %v3140_v41 = vpop.permute.xlu0 %3139  ;;  %v10744_v43 = vld [vmem:[#allocation82_spill] sm:$0xff]  ;;  %v10745_v38 = vld [vmem:[#allocation128_spill] sm:$0xff] }
 0x37b   : > { %v3396_v61 = vsel %vm2034_vm10, %v3364_v33, %v3140_v41  ;;  %v9037_v27 = vpop.f32.mrb[39].mxu0  ;;  %3578 = vrot.lane.b32.xlu1 %v10736_v5, %s5821_s8  ;;  %3576 = vrot.lane.b32.xlu0 %v10738_v0, %s5821_s8  ;;  %v3178_v33 = vsel %vm1803_vm3, %v10745_v38, %v10744_v43  ;;  %v10747_v41 = vld [vmem:[#allocation28_spill] sm:$0xff]  ;;  %v10749_v0 = vld [vmem:[#allocation73_spill] sm:$0xff] }
 0x37c   : > { %5501 = vmatprep.mubr.msk.bf16.mxu1 %vm3951_vm11, %v3396_v61  ;;  %v10748_v61 = vld [vmem:[#allocation80_spill] sm:$0xff] }
 0x37d   : > { %5502 = vmatmul.mubr.msk.bf16.gmra.mrb[16].mxu1 %vm3951_vm11, %v3398_v34  ;;  %v2992_v55 = vpop.permute.xlu1 %2991  ;;  %v10746_v34 = vld [vmem:[#allocation47_spill] sm:$0xff]  ;;  %v3176_v5 = vsel %vm1803_vm3, %v10748_v61, %v10747_v41 }
 0x37e   : > { %v2990_v26 = vpop.permute.xlu0 %2989  ;;  %v3208_v25 = vsel %vm1836_vm4, %v3176_v5, %v10752_v7  ;;  %v10756_v61 = vld [vmem:[#allocation119_spill] sm:$0xff] }
 0x37f   : > { %3610 = vrot.lane.b32.xlu1 %v10739_v53, %s5822_s9  ;;  %3608 = vrot.lane.b32.xlu0 %v10655_v37, %s5822_s9  ;;  %v10743_v37 = vld [vmem:[#allocation149_spill] sm:$0xff] }
 0x380   : > { %v9049_v49 = vpop.f32.mrb[40].mxu0 }
 0x381   : > { %v9055_v23 = vpop.f32.mrb[41].mxu0  ;;  %v3024_v42 = vpop.permute.xlu1 %3023 }
 0x382   : > { %v9059_v56 = vpop.f32.mrb[42].mxu0  ;;  %v3022_v39 = vpop.permute.xlu0 %3021 }
 0x383   : > { %v9063_v3 = vpop.f32.mrb[43].mxu0  ;;  %3420 = vrot.lane.b32.xlu1 %v10739_v53, %s5816_s30  ;;  %3656 = vrot.lane.b32.xlu0 %v10724_v50, %s5824_s18  ;;  %v3210_v53 = vsel %vm1836_vm4, %v3178_v33, %v10749_v0  ;;  %v10751_v50 = vld [vmem:[#allocation75_spill] sm:$0xff]  ;;  %v3240_v33 = vsel %vm1869_vm5, %v3208_v25, %v10756_v61 }
 0x384   : > { %v3242_v43 = vsel %vm1869_vm5, %v3210_v53, %v10753_v45  ;;  %v3272_v5 = vsel %vm1902_vm6, %v3240_v33, %v2990_v26 }
 0x385   : > { %v3061_v58 = vpop.permute.xlu1 %3060  ;;  %v3274_v0 = vsel %vm1902_vm6, %v3242_v43, %v2992_v55  ;;  %v3304_v55 = vsel %vm1935_vm7, %v3272_v5, %v3022_v39  ;;  %v10794_v43 = vld [vmem:[#allocation53_spill] sm:$0xff] }
 0x386   : > { %v3059_v1 = vpop.permute.xlu0 %3058  ;;  %v3306_v45 = vsel %vm1935_vm7, %v3274_v0, %v3024_v42 }
 0x387   : > { %3422 = vrot.lane.b32.xlu1 %v10746_v34, %s5816_s30  ;;  %3658 = vrot.lane.b32.xlu0 %v10751_v50, %s5824_s18  ;;  %v3338_v25 = vsel %vm1968_vm8, %v3306_v45, %v3061_v58  ;;  %v3336_v26 = vsel %vm1968_vm8, %v3304_v55, %v3059_v1  ;;  %v10763_v58 = vld [vmem:[#allocation36_spill] sm:$0xff]  ;;  %v10765_v45 = vld [vmem:[#allocation29_spill] sm:$0xff] }
 0x388   : > { %v9081_v2 = vpop.f32.mrb[44].mxu0  ;;  %v10775_v55 = vld [vmem:[#allocation124_spill] sm:$0xff] }
 0x389   : > { %10750 = vst [vmem:[#allocation83_spill] sm:$0xff] %v9081_v2  ;;  %v9091_v52 = vpop.f32.mrb[45].mxu0  ;;  %v3098_v41 = vpop.permute.xlu1 %3097  ;;  %v5782_v2 = vld [vmem:[%s6031_s29 + $0x1e8] sm:$0xff]  }
 0x38a   : > { %10755 = vst [vmem:[#allocation8_spill] sm:$0xff] %v9091_v52  ;;  %v9098_v21 = vpop.f32.mrb[46].mxu0  ;;  %v3096_v7 = vpop.permute.xlu0 %3095  ;;  %v3370_v42 = vsel %vm2001_vm9, %v3338_v25, %v3098_v41  ;;  %v5778_v52 = vld [vmem:[%s6031_s29 + $0x1d8] sm:$0xff]  }
 0x38b   : > { %10758 = vst [vmem:[#allocation98_spill] sm:$0xff] %v9098_v21  ;;  %v9104_v28 = vpop.f32.mrb[47].mxu0  ;;  %3454 = vrot.lane.b32.xlu1 %v10761_v20, %s5817_s4  ;;  %3452 = vrot.lane.b32.xlu0 %v10751_v50, %s5817_s4  ;;  %v3368_v0 = vsel %vm2001_vm9, %v3336_v26, %v3096_v7  ;;  %v10793_v21 = vld [vmem:[#allocation74_spill] sm:$0xff] }
 0x38c   : > { %10760 = vst [vmem:[#allocation104_spill] sm:$0xff] %v9104_v28 }
 0x38d   : > { %v3146_v33 = vpop.permute.xlu1 %3145 }
 0x38e   : > { %v3402_v16 = vsel %vm2034_vm10, %v3370_v42, %v3146_v33  ;;  %v3144_v54 = vpop.permute.xlu0 %3143  ;;  %v10777_v33 = vld [vmem:[#allocation114_spill] sm:$0xff] }
 0x38f   : > { %v3400_v39 = vsel %vm2034_vm10, %v3368_v0, %v3144_v54  ;;  %3486 = vrot.lane.b32.xlu1 %v10763_v58, %s5818_s5  ;;  %3484 = vrot.lane.b32.xlu0 %v10765_v45, %s5818_s5  ;;  %v10782_v54 = vld [vmem:[#allocation31_spill] sm:$0xff]  ;;  %v10785_v42 = vld [vmem:[#allocation90_spill] sm:$0xff] }
 0x390   : > { %v9121_v5 = vpop.f32.mrb[48].mxu0  ;;  %5505 = vmatprep.mubr.msk.bf16.mxu1 %vm3951_vm11, %v3400_v39  ;;  %v10772_v39 = vld [vmem:[#allocation10_spill] sm:$0xff] }
 0x391   : > { %10764 = vst [vmem:[#allocation5_spill] sm:$0xff] %v9121_v5  ;;  %v9128_v41 = vpop.f32.mrb[49].mxu0  ;;  %5506 = vmatmul.mubr.msk.bf16.gmra.mrb[20].mxu1 %vm3951_vm11, %v3402_v16  ;;  %v2996_v7 = vpop.permute.xlu1 %2995  ;;  %v10774_v16 = vld [vmem:[#allocation7_spill] sm:$0xff] }
 0x392   : > { %10767 = vst [vmem:[#allocation109_spill] sm:$0xff] %v9128_v41  ;;  %v9133_v25 = vpop.f32.mrb[50].mxu0  ;;  %v2994_v26 = vpop.permute.xlu0 %2993 }
 0x393   : > { %10769 = vst [vmem:[#allocation157_spill] sm:$0xff] %v9133_v25  ;;  %v9137_v0 = vpop.f32.mrb[51].mxu0  ;;  %3518 = vrot.lane.b32.xlu1 %v10772_v39, %s5819_s6  ;;  %3516 = vrot.lane.b32.xlu0 %v10774_v16, %s5819_s6  ;;  %v10787_v25 = vld [vmem:[#allocation89_spill] sm:$0xff] }
 0x394   : > { %10771 = vst [vmem:[#allocation86_spill] sm:$0xff] %v9137_v0  ;;  %v10788_v0 = vld [vmem:[#allocation97_spill] sm:$0xff] }
 0x395   : > { %v3028_v50 = vpop.permute.xlu1 %3027 }
 0x396   : > { %v3026_v61 = vpop.permute.xlu0 %3025 }
 0x397   : > { %3550 = vrot.lane.b32.xlu1 %v10775_v55, %s5820_s7  ;;  %3548 = vrot.lane.b32.xlu0 %v10777_v33, %s5820_s7  ;;  %v3182_v55 = vsel %vm1803_vm3, %v8780_v47, %v10782_v54  ;;  %v10790_v47 = vld [vmem:[#allocation71_spill] sm:$0xff]  ;;  %v10791_v54 = vld [vmem:[#allocation54_spill] sm:$0xff] }
 0x398   : > { %v9147_v22 = vpop.f32.mrb[52].mxu0 }
 0x399   : > { %10776 = vst [vmem:[#allocation50_spill] sm:$0xff] %v9147_v22  ;;  %v9153_v39 = vpop.f32.mrb[53].mxu0  ;;  %v3065_v41 = vpop.permute.xlu1 %3064  ;;  %v10786_v22 = vld [vmem:[#allocation39_spill] sm:$0xff] }
 0x39a   : > { %10779 = vst [vmem:[#allocation69_spill] sm:$0xff] %v9153_v39  ;;  %v9157_v16 = vpop.f32.mrb[54].mxu0  ;;  %v3063_v58 = vpop.permute.xlu0 %3062  ;;  %v3180_v28 = vsel %vm1803_vm3, %v10787_v25, %v10786_v22  ;;  %v3214_v39 = vsel %vm1836_vm4, %v3182_v55, %v10788_v0 }
 0x39b   : > { %10781 = vst [vmem:[#allocation81_spill] sm:$0xff] %v9157_v16  ;;  %v9164_v33 = vpop.f32.mrb[55].mxu0  ;;  %3582 = vrot.lane.b32.xlu1 %v10785_v42, %s5821_s8  ;;  %3580 = vrot.lane.b32.xlu0 %v10790_v47, %s5821_s8  ;;  %v3212_v1 = vsel %vm1836_vm4, %v3180_v28, %v10791_v54  ;;  %v10792_v16 = vld [vmem:[#allocation58_spill] sm:$0xff] }
 0x39c   : > { %10784 = vst [vmem:[#allocation92_spill] sm:$0xff] %v9164_v33  ;;  %v3246_v5 = vsel %vm1869_vm5, %v3214_v39, %v10792_v16  ;;  %v3244_v53 = vsel %vm1869_vm5, %v3212_v1, %v10793_v21  ;;  %v10815_v1 = vld [vmem:[#allocation111_spill] sm:$0xff]  ;;  %v5771_v33 = vld [vmem:[%s6031_s29 + $0x1b8] sm:$0xff]  }
 0x39d   : > { %v3102_v42 = vpop.permute.xlu1 %3101  ;;  %v3278_v22 = vsel %vm1902_vm6, %v3246_v5, %v2996_v7  ;;  %v3276_v0 = vsel %vm1902_vm6, %v3244_v53, %v2994_v26 }
 0x39e   : > { %v3100_v25 = vpop.permute.xlu0 %3099  ;;  %v3310_v55 = vsel %vm1935_vm7, %v3278_v22, %v3028_v50  ;;  %v3308_v47 = vsel %vm1935_vm7, %v3276_v0, %v3026_v61 }
 0x39f   : > { %3614 = vrot.lane.b32.xlu1 %v10794_v43, %s5822_s9  ;;  %v3342_v28 = vsel %vm1968_vm8, %v3310_v55, %v3065_v41  ;;  %3612 = vrot.lane.b32.xlu0 %v10746_v34, %s5822_s9  ;;  %v3340_v21 = vsel %vm1968_vm8, %v3308_v47, %v3063_v58  ;;  %v10817_v58 = vld [vmem:[#allocation117_spill] sm:$0xff] }
 0x3a0   : > { %v9190_v54 = vpop.f32.mrb[56].mxu0  ;;  %v3374_v5 = vsel %vm2001_vm9, %v3342_v28, %v3102_v42  ;;  %v3372_v26 = vsel %vm2001_vm9, %v3340_v21, %v3100_v25  ;;  %v10803_v21 = vld [vmem:[#allocation51_spill] sm:$0xff]  ;;  %v10812_v25 = vld [vmem:[#allocation84_spill] sm:$0xff] }
 0x3a1   : > { %10795 = vst [vmem:[#allocation123_spill] sm:$0xff] %v9190_v54  ;;  %v9198_v50 = vpop.f32.mrb[57].mxu0  ;;  %v3150_v7 = vpop.permute.xlu1 %3149 }
 0x3a2   : > { %10797 = vst [vmem:[#allocation103_spill] sm:$0xff] %v9198_v50  ;;  %v3406_v39 = vsel %vm2034_vm10, %v3374_v5, %v3150_v7  ;;  %v9204_v16 = vpop.f32.mrb[58].mxu0  ;;  %v3148_v34 = vpop.permute.xlu0 %3147  ;;  %v10805_v7 = vld [vmem:[#allocation94_spill] sm:$0xff] }
 0x3a3   : > { %10799 = vst [vmem:[#allocation116_spill] sm:$0xff] %v9204_v16  ;;  %v3404_v42 = vsel %vm2034_vm10, %v3372_v26, %v3148_v34  ;;  %v9209_v0 = vpop.f32.mrb[59].mxu0  ;;  %3424 = vrot.lane.b32.xlu1 %v10794_v43, %s5816_s30  ;;  %3660 = vrot.lane.b32.xlu0 %v10761_v20, %s5824_s18  ;;  %v10819_v26 = vld [vmem:[#allocation18_spill] sm:$0xff] }
 0x3a4   : > { %10801 = vst [vmem:[#allocation115_spill] sm:$0xff] %v9209_v0  ;;  %5509 = vmatprep.mubr.msk.bf16.mxu1 %vm3951_vm11, %v3404_v42  ;;  %v5766_v42 = vld [vmem:[%s6031_s29 + $0xd0] sm:$0xff]  }
 0x3a5   : > { %5510 = vmatmul.mubr.msk.bf16.gmra.mrb[24].mxu1 %vm3951_vm11, %v3406_v39  ;;  %v3000_v47 = vpop.permute.xlu1 %2999  ;;  %v10814_v39 = vld [vmem:[#allocation85_spill] sm:$0xff] }
 0x3a6   : > { %v2998_v28 = vpop.permute.xlu0 %2997 }
 0x3a7   : > { %3426 = vrot.lane.b32.xlu1 %v10803_v21, %s5816_s30  ;;  %3662 = vrot.lane.b32.xlu0 %v10805_v7, %s5824_s18 }
 0x3a8   : > { %v9221_v5 = vpop.f32.mrb[60].mxu0 }
 0x3a9   : > { %10804 = vst [vmem:[#allocation121_spill] sm:$0xff] %v9221_v5  ;;  %v9227_v34 = vpop.f32.mrb[61].mxu0  ;;  %v3032_v20 = vpop.permute.xlu1 %3031  ;;  %v5767_v5 = vld [vmem:[%s6031_s29 + $0xc8] sm:$0xff]  }
 0x3aa   : > { %10807 = vst [vmem:[#allocation137_spill] sm:$0xff] %v9227_v34  ;;  %v9231_v55 = vpop.f32.mrb[62].mxu0  ;;  %v3030_v22 = vpop.permute.xlu0 %3029  ;;  %v3186_v34 = vsel %vm1803_vm3, %v8852_v46, %v10814_v39  ;;  %v10820_v39 = vld [vmem:[#allocation68_spill] sm:$0xff] }
 0x3ab   : > { %10809 = vst [vmem:[#allocation141_spill] sm:$0xff] %v9231_v55  ;;  %v9235_v0 = vpop.f32.mrb[63].mxu0  ;;  %3458 = vrot.lane.b32.xlu1 %v10812_v25, %s5817_s4  ;;  %3456 = vrot.lane.b32.xlu0 %v10805_v7, %s5817_s4  ;;  %v10816_v55 = vld [vmem:[#allocation72_spill] sm:$0xff]  ;;  %v3218_v50 = vsel %vm1836_vm4, %v3186_v34, %v10817_v58  ;;  %v10818_v7 = vld [vmem:[#allocation6_spill] sm:$0xff] }
 0x3ac   : > { %10811 = vst [vmem:[#allocation155_spill] sm:$0xff] %v9235_v0  ;;  %v3184_v41 = vsel %vm1803_vm3, %v10816_v55, %v10815_v1  ;;  %v3250_v61 = vsel %vm1869_vm5, %v3218_v50, %v10819_v26  ;;  %v10821_v55 = vld [vmem:[#allocation12_spill] sm:$0xff]  ;;  %v10822_v50 = vld [vmem:[#allocation9_spill] sm:$0xff] }
 0x3ad   : > { %v3069_v43 = vpop.permute.xlu1 %3068  ;;  %v3216_v0 = vsel %vm1836_vm4, %v3184_v41, %v10818_v7  ;;  %v3282_v54 = vsel %vm1902_vm6, %v3250_v61, %v3000_v47  ;;  %v10825_v7 = vld [vmem:[#allocation38_spill] sm:$0xff] }
 0x3ae   : > { %v3067_v16 = vpop.permute.xlu0 %3066  ;;  %v3314_v58 = vsel %vm1935_vm7, %v3282_v54, %v3032_v20  ;;  %v10823_v20 = vld [vmem:[#allocation129_spill] sm:$0xff] }
 0x3af   : > { %3490 = vrot.lane.b32.xlu1 %v5766_v42, %s5818_s5  ;;  %3488 = vrot.lane.b32.xlu0 %v5767_v5, %s5818_s5  ;;  %v3248_v42 = vsel %vm1869_vm5, %v3216_v0, %v10820_v39  ;;  %v3346_v41 = vsel %vm1968_vm8, %v3314_v58, %v3069_v43 }
 0x3b0   : > { %v3280_v1 = vsel %vm1902_vm6, %v3248_v42, %v2998_v28  ;;  %v10827_v42 = vld [vmem:[#allocation57_spill] sm:$0xff] }
 0x3b1   : > { %v3106_v46 = vpop.permute.xlu1 %3105  ;;  %v3312_v5 = vsel %vm1935_vm7, %v3280_v1, %v3030_v22  ;;  %v10824_v22 = vld [vmem:[#allocation122_spill] sm:$0xff] }
 0x3b2   : > { %v3104_v53 = vpop.permute.xlu0 %3103  ;;  %v3344_v26 = vsel %vm1968_vm8, %v3312_v5, %v3067_v16  ;;  %v3378_v0 = vsel %vm2001_vm9, %v3346_v41, %v3106_v46  ;;  %v10828_v41 = vld [vmem:[#allocation55_spill] sm:$0xff] }
 0x3b3   : > { %3522 = vrot.lane.b32.xlu1 %v10821_v55, %s5819_s6  ;;  %3520 = vrot.lane.b32.xlu0 %v10822_v50, %s5819_s6  ;;  %v3376_v47 = vsel %vm2001_vm9, %v3344_v26, %v3104_v53  ;;  %v10826_v53 = vld [vmem:[#allocation66_spill] sm:$0xff]  ;;  %v10829_v50 = vld [vmem:[#allocation44_spill] sm:$0xff] }
 0x3b5   : > { %v3154_v61 = vpop.permute.xlu1 %3153 }
 0x3b6   : > { %v3410_v28 = vsel %vm2034_vm10, %v3378_v0, %v3154_v61  ;;  %v3152_v54 = vpop.permute.xlu0 %3151  ;;  %v10830_v0 = vld [vmem:[#allocation107_spill] sm:$0xff] }
 0x3b7   : > { %v3408_v34 = vsel %vm2034_vm10, %v3376_v47, %v3152_v54  ;;  %3554 = vrot.lane.b32.xlu1 %v10823_v20, %s5820_s7  ;;  %3552 = vrot.lane.b32.xlu0 %v10824_v22, %s5820_s7 }
 0x3b8   : > { %5513 = vmatprep.mubr.msk.bf16.mxu1 %vm3951_vm11, %v3408_v34  ;;  %v5770_v34 = vld [vmem:[%s6031_s29 + $0xd8] sm:$0xff]  }
 0x3b9   : > { %5514 = vmatmul.mubr.msk.bf16.gmra.mrb[28].mxu1 %vm3951_vm11, %v3410_v28  ;;  %v3415_v16 = vpop.permute.xlu1 %3414  ;;  %v5769_v28 = vld [vmem:[%s6031_s29 + $0x1b0] sm:$0xff]  }
 0x3ba   : > { %v3413_v43 = vpop.permute.xlu0 %3412 }
 0x3bb   : > { %3586 = vrot.lane.b32.xlu1 %v10825_v7, %s5821_s8  ;;  %3584 = vrot.lane.b32.xlu0 %v10826_v53, %s5821_s8  ;;  %v3685_v54 = vsel %vm1803_vm3, %v5769_v28, %v3413_v43  ;;  %v10832_v43 = vld [vmem:[#allocation11_spill] sm:$0xff] }
 0x3bd   : > { %v3447_v46 = vpop.permute.xlu1 %3446 }
 0x3be   : > { %v3445_v39 = vpop.permute.xlu0 %3444 }
 0x3bf   : > { %3618 = vrot.lane.b32.xlu1 %v10827_v42, %s5822_s9  ;;  %3616 = vrot.lane.b32.xlu0 %v10803_v21, %s5822_s9  ;;  %v3717_v20 = vsel %vm1836_vm4, %v3685_v54, %v3445_v39 }
 0x3c1   : > { %v3479_v1 = vpop.permute.xlu1 %3478 }
 0x3c2   : > { %v3477_v58 = vpop.permute.xlu0 %3476 }
 0x3c3   : > { %3428 = vrot.lane.b32.xlu1 %v10827_v42, %s5816_s30  ;;  %3664 = vrot.lane.b32.xlu0 %v10812_v25, %s5824_s18  ;;  %v5768_v25 = vld [vmem:[%s6031_s29 + $0xe0] sm:$0xff]   ;;  %v3749_v7 = vsel %vm1869_vm5, %v3717_v20, %v3477_v58 }
 0x3c5   : > { %v3511_v55 = vpop.permute.xlu1 %3510 }
 0x3c6   : > { %v3509_v5 = vpop.permute.xlu0 %3508 }
 0x3c7   : > { %3430 = vrot.lane.b32.xlu1 %v10828_v41, %s5816_s30  ;;  %3666 = vrot.lane.b32.xlu0 %v10829_v50, %s5824_s18  ;;  %v3781_v42 = vsel %vm1902_vm6, %v3749_v7, %v3509_v5 }
 0x3c9   : > { %v3543_v26 = vpop.permute.xlu1 %3542 }
 0x3ca   : > { %v3541_v21 = vpop.permute.xlu0 %3540 }
 0x3cb   : > { %3462 = vrot.lane.b32.xlu1 %v10830_v0, %s5817_s4  ;;  %3460 = vrot.lane.b32.xlu0 %v10829_v50, %s5817_s4  ;;  %v10831_v50 = vld [vmem:[#allocation14_spill] sm:$0xff]  ;;  %v3813_v45 = vsel %vm1935_vm7, %v3781_v42, %v3541_v21  ;;  %v10834_v21 = vld [vmem:[#allocation125_spill] sm:$0xff]  ;;  %v10836_v42 = vld [vmem:[#allocation3_spill] sm:$0xff] }
 0x3cd   : > { %v3575_v61 = vpop.permute.xlu1 %3574 }
 0x3ce   : > { %v3573_v47 = vpop.permute.xlu0 %3572 }
 0x3cf   : > { %3494 = vrot.lane.b32.xlu1 %v5768_v25, %s5818_s5  ;;  %3492 = vrot.lane.b32.xlu0 %v5770_v34, %s5818_s5  ;;  %v3687_v25 = vsel %vm1803_vm3, %v5771_v33, %v3415_v16  ;;  %v3845_v39 = vsel %vm1968_vm8, %v3813_v45, %v3573_v47  ;;  %v10833_v33 = vld [vmem:[#allocation132_spill] sm:$0xff] }
 0x3d0   : > { %v3719_v28 = vsel %vm1836_vm4, %v3687_v25, %v3447_v46  ;;  %v10837_v25 = vld [vmem:[#allocation60_spill] sm:$0xff] }
 0x3d1   : > { %v3607_v22 = vpop.permute.xlu1 %3606  ;;  %v3751_v58 = vsel %vm1869_vm5, %v3719_v28, %v3479_v1 }
 0x3d2   : > { %v3605_v53 = vpop.permute.xlu0 %3604  ;;  %v3783_v20 = vsel %vm1902_vm6, %v3751_v58, %v3511_v55  ;;  %v10839_v58 = vld [vmem:[#allocation70_spill] sm:$0xff] }
 0x3d3   : > { %3526 = vrot.lane.b32.xlu1 %v10831_v50, %s5819_s6  ;;  %3524 = vrot.lane.b32.xlu0 %v10832_v43, %s5819_s6  ;;  %v3877_v5 = vsel %vm2001_vm9, %v3845_v39, %v3605_v53  ;;  %v3815_v16 = vsel %vm1935_vm7, %v3783_v20, %v3543_v26  ;;  %v10835_v53 = vld [vmem:[#allocation91_spill] sm:$0xff] }
 0x3d4   : > { %v3847_v45 = vsel %vm1968_vm8, %v3815_v16, %v3575_v61  ;;  %v10838_v39 = vld [vmem:[#allocation59_spill] sm:$0xff]  ;;  %v5773_v16 = vld [vmem:[%s6031_s29 + $0xe8] sm:$0xff]  }
 0x3d5   : > { %v3417_v54 = vpop.permute.xlu1 %3416  ;;  %v3879_v1 = vsel %vm2001_vm9, %v3847_v45, %v3607_v22 }
 0x3d6   : > { %v3653_v34 = vpop.permute.xlu0 %3652 }
 0x3d7   : > { %v3909_v7 = vsel %vm2034_vm10, %v3877_v5, %v3653_v34  ;;  %3558 = vrot.lane.b32.xlu1 %v10833_v33, %s5820_s7  ;;  %3556 = vrot.lane.b32.xlu0 %v10834_v21, %s5820_s7  ;;  %v3689_v33 = vsel %vm1803_vm3, %v8925_v24, %v3417_v54  ;;  %v10842_v24 = vld [vmem:[#allocation13_spill] sm:$0xff] }
 0x3d8   : > { %5517 = vmatprep.mubr.msk.bf16.mxu1 %vm3951_vm11, %v3909_v7 }
 0x3d9   : > { %v3419_v46 = vpop.permute.xlu1 %3418 }
 0x3da   : > { %v3655_v47 = vpop.permute.xlu0 %3654 }
 0x3db   : > { %v3911_v55 = vsel %vm2034_vm10, %v3879_v1, %v3655_v47  ;;  %3590 = vrot.lane.b32.xlu1 %v10835_v53, %s5821_s8  ;;  %3588 = vrot.lane.b32.xlu0 %v10836_v42, %s5821_s8  ;;  %v10841_v53 = vld [vmem:[#allocation17_spill] sm:$0xff]  ;;  %v5774_v42 = vld [vmem:[%s6031_s29 + $0x1c8] sm:$0xff]  }
 0x3dc   : > { %5518 = vmatmul.mubr.msk.bf16.gmra.mrb[32].mxu1 %vm3951_vm11, %v3911_v55 }
 0x3dd   : > { %v3451_v26 = vpop.permute.xlu1 %3450 }
 0x3de   : > { %v3449_v50 = vpop.permute.xlu0 %3448 }
 0x3df   : > { %3622 = vrot.lane.b32.xlu1 %v10837_v25, %s5822_s9  ;;  %3620 = vrot.lane.b32.xlu0 %v10828_v41, %s5822_s9  ;;  %v10840_v41 = vld [vmem:[#allocation67_spill] sm:$0xff]  ;;  %v3721_v21 = vsel %vm1836_vm4, %v3689_v33, %v3449_v50 }
 0x3e1   : > { %v3483_v61 = vpop.permute.xlu1 %3482 }
 0x3e2   : > { %v3481_v22 = vpop.permute.xlu0 %3480 }
 0x3e3   : > { %3432 = vrot.lane.b32.xlu1 %v10837_v25, %s5816_s30  ;;  %3668 = vrot.lane.b32.xlu0 %v10830_v0, %s5824_s18  ;;  %v5772_v0 = vld [vmem:[%s6031_s29 + $0xf0] sm:$0xff]   ;;  %v3753_v1 = vsel %vm1869_vm5, %v3721_v21, %v3481_v22  ;;  %v3691_v25 = vsel %vm1803_vm3, %v5774_v42, %v3419_v46  ;;  %v10843_v46 = vld [vmem:[#allocation135_spill] sm:$0xff] }
 0x3e4   : > { %v3723_v54 = vsel %vm1836_vm4, %v3691_v25, %v3451_v26  ;;  %v10847_v25 = vld [vmem:[#allocation63_spill] sm:$0xff] }
 0x3e5   : > { %v3515_v43 = vpop.permute.xlu1 %3514  ;;  %v3755_v22 = vsel %vm1869_vm5, %v3723_v54, %v3483_v61 }
 0x3e6   : > { %v3513_v28 = vpop.permute.xlu0 %3512 }
 0x3e7   : > { %3434 = vrot.lane.b32.xlu1 %v10838_v39, %s5816_s30  ;;  %3670 = vrot.lane.b32.xlu0 %v10839_v58, %s5824_s18  ;;  %v3785_v55 = vsel %vm1902_vm6, %v3753_v1, %v3513_v28  ;;  %v10844_v1 = vld [vmem:[#allocation131_spill] sm:$0xff] }
 0x3e9   : > { %v3547_v5 = vpop.permute.xlu1 %3546 }
 0x3ea   : > { %v3545_v34 = vpop.permute.xlu0 %3544 }
 0x3eb   : > { %3466 = vrot.lane.b32.xlu1 %v10840_v41, %s5817_s4  ;;  %3464 = vrot.lane.b32.xlu0 %v10839_v58, %s5817_s4  ;;  %v3817_v58 = vsel %vm1935_vm7, %v3785_v55, %v3545_v34  ;;  %v10845_v55 = vld [vmem:[#allocation95_spill] sm:$0xff] }
 0x3ed   : > { %v3579_v20 = vpop.permute.xlu1 %3578 }
 0x3ee   : > { %v3577_v7 = vpop.permute.xlu0 %3576 }
 0x3ef   : > { %3498 = vrot.lane.b32.xlu1 %v5772_v0, %s5818_s5  ;;  %3496 = vrot.lane.b32.xlu0 %v5773_v16, %s5818_s5  ;;  %v3849_v50 = vsel %vm1968_vm8, %v3817_v58, %v3577_v7  ;;  %v3787_v16 = vsel %vm1902_vm6, %v3755_v22, %v3515_v43 }
 0x3f0   : > { %v3819_v34 = vsel %vm1935_vm7, %v3787_v16, %v3547_v5 }
 0x3f1   : > { %v3611_v45 = vpop.permute.xlu1 %3610  ;;  %v3851_v26 = vsel %vm1968_vm8, %v3819_v34, %v3579_v20  ;;  %v5775_v34 = vld [vmem:[%s6031_s29 + $0x100] sm:$0xff]  }
 0x3f2   : > { %v3609_v47 = vpop.permute.xlu0 %3608  ;;  %v3883_v7 = vsel %vm2001_vm9, %v3851_v26, %v3611_v45 }
 0x3f3   : > { %3530 = vrot.lane.b32.xlu1 %v10841_v53, %s5819_s6  ;;  %3528 = vrot.lane.b32.xlu0 %v10842_v24, %s5819_s6  ;;  %v3881_v28 = vsel %vm2001_vm9, %v3849_v50, %v3609_v47  ;;  %v10846_v53 = vld [vmem:[#allocation56_spill] sm:$0xff] }
 0x3f5   : > { %v3421_v0 = vpop.permute.xlu1 %3420 }
 0x3f6   : > { %v3657_v33 = vpop.permute.xlu0 %3656 }
 0x3f7   : > { %v3913_v21 = vsel %vm2034_vm10, %v3881_v28, %v3657_v33  ;;  %3562 = vrot.lane.b32.xlu1 %v10843_v46, %s5820_s7  ;;  %3560 = vrot.lane.b32.xlu0 %v10844_v1, %s5820_s7  ;;  %v10848_v28 = vld [vmem:[#allocation52_spill] sm:$0xff]  ;;  %v5776_v1 = vld [vmem:[%s6031_s29 + $0x1d0] sm:$0xff]  }
 0x3f8   : > { %5521 = vmatprep.mubr.msk.bf16.mxu1 %vm3951_vm11, %v3913_v21  ;;  %v3693_v26 = vsel %vm1803_vm3, %v5776_v1, %v3421_v0  ;;  %v10851_v1 = vld [vmem:[#allocation15_spill] sm:$0xff] }
 0x3f9   : > { %v3423_v61 = vpop.permute.xlu1 %3422 }
 0x3fa   : > { %v3659_v47 = vpop.permute.xlu0 %3658 }
 0x3fb   : > { %v3915_v43 = vsel %vm2034_vm10, %v3883_v7, %v3659_v47  ;;  %3594 = vrot.lane.b32.xlu1 %v10845_v55, %s5821_s8  ;;  %3592 = vrot.lane.b32.xlu0 %v10846_v53, %s5821_s8  ;;  %v5777_v7 = vld [vmem:[%s6031_s29 + $0xf8] sm:$0xff]  }
 0x3fc   : > { %5522 = vmatmul.mubr.msk.bf16.gmra.mrb[36].mxu1 %vm3951_vm11, %v3915_v43 }
 0x3fd   : > { %v3455_v5 = vpop.permute.xlu1 %3454 }
 0x3fe   : > { %v3453_v42 = vpop.permute.xlu0 %3452 }
 0x3ff   : > { %3626 = vrot.lane.b32.xlu1 %v10847_v25, %s5822_s9  ;;  %3624 = vrot.lane.b32.xlu0 %v10838_v39, %s5822_s9  ;;  %v3725_v47 = vsel %vm1836_vm4, %v3693_v26, %v3453_v42 }
 0x401   : > { %v3487_v20 = vpop.permute.xlu1 %3486 }
 0x402   : > { %v3485_v45 = vpop.permute.xlu0 %3484 }
 0x403   : > { %3436 = vrot.lane.b32.xlu1 %v10847_v25, %s5816_s30  ;;  %3672 = vrot.lane.b32.xlu0 %v10840_v41, %s5824_s18  ;;  %v10849_v41 = vld [vmem:[#allocation76_spill] sm:$0xff]  ;;  %v3757_v55 = vsel %vm1869_vm5, %v3725_v47, %v3485_v45 }
 0x404   : > { %v9395_v58 = vpop.f32.mrb[0].mxu1 }
 0x405   : > { %v9399_v24 = vpop.f32.mrb[1].mxu1  ;;  %v3519_v54 = vpop.permute.xlu1 %3518 }
 0x406   : > { %v9401_v50 = vpop.f32.mrb[2].mxu1  ;;  %v3517_v22 = vpop.permute.xlu0 %3516 }
 0x407   : > { %v9403_v39 = vpop.f32.mrb[3].mxu1  ;;  %3438 = vrot.lane.b32.xlu1 %v10713_v11, %s5816_s30  ;;  %3674 = vrot.lane.b32.xlu0 %v10848_v28, %s5824_s18  ;;  %v3789_v25 = vsel %vm1902_vm6, %v3757_v55, %v3517_v22 }
 0x409   : > { %v3551_v33 = vpop.permute.xlu1 %3550 }
 0x40a   : > { %v3549_v16 = vpop.permute.xlu0 %3548 }
 0x40b   : > { %3470 = vrot.lane.b32.xlu1 %v10849_v41, %s5817_s4  ;;  %3468 = vrot.lane.b32.xlu0 %v10848_v28, %s5817_s4  ;;  %v10850_v28 = vld [vmem:[#allocation19_spill] sm:$0xff]  ;;  %v3821_v48 = vsel %vm1935_vm7, %v3789_v25, %v3549_v16 }
 0x40d   : > { %v3583_v21 = vpop.permute.xlu1 %3582 }
 0x40e   : > { %v3581_v46 = vpop.permute.xlu0 %3580 }
 0x40f   : > { %3502 = vrot.lane.b32.xlu1 %v5775_v34, %s5818_s5  ;;  %3500 = vrot.lane.b32.xlu0 %v5777_v7, %s5818_s5  ;;  %v3695_v34 = vsel %vm1803_vm3, %v5778_v52, %v3423_v61  ;;  %v3853_v45 = vsel %vm1968_vm8, %v3821_v48, %v3581_v46  ;;  %v10853_v46 = vld [vmem:[#allocation133_spill] sm:$0xff] }
 0x410   : > { %v3727_v42 = vsel %vm1836_vm4, %v3695_v34, %v3455_v5  ;;  %v10852_v5 = vld [vmem:[#allocation136_spill] sm:$0xff] }
 0x411   : > { %v3615_v43 = vpop.permute.xlu1 %3614  ;;  %v3759_v7 = vsel %vm1869_vm5, %v3727_v42, %v3487_v20  ;;  %v10854_v42 = vld [vmem:[#allocation64_spill] sm:$0xff] }
 0x412   : > { %v3613_v53 = vpop.permute.xlu0 %3612  ;;  %v3791_v61 = vsel %vm1902_vm6, %v3759_v7, %v3519_v54 }
 0x413   : > { %3534 = vrot.lane.b32.xlu1 %v10850_v28, %s5819_s6  ;;  %3532 = vrot.lane.b32.xlu0 %v10851_v1, %s5819_s6  ;;  %v3885_v47 = vsel %vm2001_vm9, %v3853_v45, %v3613_v53  ;;  %v3823_v48 = vsel %vm1935_vm7, %v3791_v61, %v3551_v33 }
 0x414   : > { %v9427_v0 = vpop.f32.mrb[4].mxu1  ;;  %v3855_v20 = vsel %vm1968_vm8, %v3823_v48, %v3583_v21  ;;  %v5779_v48 = vld [vmem:[%s6031_s29 + $0x110] sm:$0xff]  }
 0x415   : > { %v9433_v26 = vpop.f32.mrb[5].mxu1  ;;  %v3425_v22 = vpop.permute.xlu1 %3424  ;;  %v3887_v28 = vsel %vm2001_vm9, %v3855_v20, %v3615_v43 }
 0x416   : > { %v9437_v55 = vpop.f32.mrb[6].mxu1  ;;  %v3661_v52 = vpop.permute.xlu0 %3660 }
 0x417   : > { %v3917_v16 = vsel %vm2034_vm10, %v3885_v47, %v3661_v52  ;;  %v9441_v25 = vpop.f32.mrb[7].mxu1  ;;  %3566 = vrot.lane.b32.xlu1 %v10852_v5, %s5820_s7  ;;  %3564 = vrot.lane.b32.xlu0 %v10853_v46, %s5820_s7  ;;  %v5780_v46 = vld [vmem:[%s6031_s29 + $0x1e0] sm:$0xff]  }
 0x418   : > { %5525 = vmatprep.mubr.msk.bf16.mxu1 %vm3951_vm11, %v3917_v16  ;;  %v3697_v20 = vsel %vm1803_vm3, %v5780_v46, %v3425_v22  ;;  %v5666_v22 = vld [vmem:[%s6031_s29 + $0x238] ss:$0 sps:$4 sm:$0x11]  }
 0x419   : > { %v3427_v53 = vpop.permute.xlu1 %3426 }
 0x41a   : > { %v3663_v54 = vpop.permute.xlu0 %3662 }
 0x41b   : > { %v3919_v34 = vsel %vm2034_vm10, %v3887_v28, %v3663_v54  ;;  %3598 = vrot.lane.b32.xlu1 %v8794_v9, %s5821_s8  ;;  %3596 = vrot.lane.b32.xlu0 %v8801_v30, %s5821_s8  ;;  %v5781_v28 = vld [vmem:[%s6031_s29 + $0x108] sm:$0xff]  }
 0x41c   : > { %5526 = vmatmul.mubr.msk.bf16.gmra.mrb[40].mxu1 %vm3951_vm11, %v3919_v34 }
 0x41d   : > { %v3459_v33 = vpop.permute.xlu1 %3458 }
 0x41e   : > { %v3457_v1 = vpop.permute.xlu0 %3456 }
 0x41f   : > { %3630 = vrot.lane.b32.xlu1 %v10712_v44, %s5822_s9  ;;  %3628 = vrot.lane.b32.xlu0 %v10713_v11, %s5822_s9  ;;  %v10855_v11 = vld [vmem:[#allocation88_spill] sm:$0xff]  ;;  %v3729_v54 = vsel %vm1836_vm4, %v3697_v20, %v3457_v1  ;;  %v3640_v1 = vshll.u32 %v8847_v10, 16 }
 0x421   : > { %v3491_v21 = vpop.permute.xlu1 %3490 }
 0x422   : > { %v3489_v43 = vpop.permute.xlu0 %3488 }
 0x423   : > { %3440 = vrot.lane.b32.xlu1 %v10712_v44, %s5816_s30  ;;  %3676 = vrot.lane.b32.xlu0 %v10849_v41, %s5824_s18  ;;  %v10856_v41 = vld [vmem:[#allocation79_spill] sm:$0xff] }
 0x425   : > { %v3523_v9 = vpop.permute.xlu1 %3522 }
 0x426   : > { %v3521_v30 = vpop.permute.xlu0 %3520 }
 0x427   : > { %3442 = vrot.lane.b32.xlu1 %v10854_v42, %s5816_s30  ;;  %3678 = vrot.lane.b32.xlu0 %v10855_v11, %s5824_s18  ;;  %v3761_v42 = vsel %vm1869_vm5, %v3729_v54, %v3489_v43 }
 0x428   : > { %v9467_v45 = vpop.f32.mrb[8].mxu1 }
 0x429   : > { %v9471_v7 = vpop.f32.mrb[9].mxu1  ;;  %v3555_v47 = vpop.permute.xlu1 %3554 }
 0x42a   : > { %v9473_v44 = vpop.f32.mrb[10].mxu1  ;;  %v3553_v52 = vpop.permute.xlu0 %3552 }
 0x42b   : > { %v9475_v61 = vpop.f32.mrb[11].mxu1  ;;  %3474 = vrot.lane.b32.xlu1 %v10856_v41, %s5817_s4  ;;  %3472 = vrot.lane.b32.xlu0 %v10855_v11, %s5817_s4  ;;  %v3793_v11 = vsel %vm1902_vm6, %v3761_v42, %v3521_v30 }
 0x42c   : > { %v3825_v38 = vsel %vm1935_vm7, %v3793_v11, %v3553_v52 }
 0x42d   : > { %v3587_v16 = vpop.permute.xlu1 %3586 }
 0x42e   : > { %v3585_v5 = vpop.permute.xlu0 %3584 }
 0x42f   : > { %3506 = vrot.lane.b32.xlu1 %v5779_v48, %s5818_s5  ;;  %3504 = vrot.lane.b32.xlu0 %v5781_v28, %s5818_s5  ;;  %v3699_v48 = vsel %vm1803_vm3, %v5782_v2, %v3427_v53  ;;  %v3857_v46 = vsel %vm1968_vm8, %v3825_v38, %v3585_v5  ;;  %v3642_v38 = vrot.slane %v3640_v1, 1  ;;  %v3648_v5 = vshll.u32 %v5666_v22, 16 }
 0x430   : > { %v3731_v43 = vsel %vm1836_vm4, %v3699_v48, %v3459_v33  ;;  %v10858_v33 = vld [vmem:[#allocation120_spill] sm:$0xff] }
 0x431   : > { %v3619_v34 = vpop.permute.xlu1 %3618  ;;  %v3763_v20 = vsel %vm1869_vm5, %v3731_v43, %v3491_v21  ;;  %v5783_v21 = vld [vmem:[%s6031_s29 + $0x230] sm:$0xff]   ;;  %v9519_v48 = vld [vmem:[%s6031_s29 + $0x228] sm:$0xff]   ;;  %v3650_v1 = vrot.slane %v3648_v5, 1 }
 0x432   : > { %v3617_v41 = vpop.permute.xlu0 %3616  ;;  %v3795_v2 = vsel %vm1902_vm6, %v3763_v20, %v3523_v9  ;;  %v3644_v52 = vshrl.u32 %v5783_v21, 16 }
 0x433   : > { %3538 = vrot.lane.b32.xlu1 %v10715_v62, %s5819_s6  ;;  %3536 = vrot.lane.b32.xlu0 %v10716_v57, %s5819_s6  ;;  %v3889_v62 = vsel %vm2001_vm9, %v3857_v46, %v3617_v41  ;;  %v10857_v57 = vld [vmem:[#allocation110_spill] sm:$0xff]  ;;  %v3827_v10 = vsel %vm1935_vm7, %v3795_v2, %v3555_v47  ;;  %v10861_v2 = vld [vmem:[#allocation48_spill] sm:$0xff] }
 0x434   : > { %v3859_v54 = vsel %vm1968_vm8, %v3827_v10, %v3587_v16  ;;  %v3646_v22 = vor.u32 %v3644_v52, %v3642_v38 }
 0x435   : > { %v3429_v30 = vpop.permute.xlu1 %3428  ;;  %v3891_v42 = vsel %vm2001_vm9, %v3859_v54, %v3619_v34  ;;  %v5785_v54 = vld [vmem:[%s6031_s29 + $0x1f0] sm:$0xff]  }
 0x436   : > { %v3665_v28 = vpop.permute.xlu0 %3664 }
 0x437   : > { %v3921_v53 = vsel %vm2034_vm10, %v3889_v62, %v3665_v28  ;;  %3570 = vrot.lane.b32.xlu1 %v10857_v57, %s5820_s7  ;;  %3568 = vrot.lane.b32.xlu0 %v10858_v33, %s5820_s7  ;;  %v3651_v62 = vsel %vm1125_vm0, %v3646_v22, %v3650_v1 }
 0x438   : > { %5529 = vmatprep.mubr.msk.bf16.mxu1 %vm3951_vm11, %v3921_v53  ;;  %v3643_v53 = vsel %vm1125_vm0, %v10861_v2, %v3642_v38 }
 0x439   : > { %v3431_v9 = vpop.permute.xlu1 %3430 }
 0x43a   : > { %v3667_v41 = vpop.permute.xlu0 %3666 }
 0x43b   : > { %v3923_v11 = vsel %vm2034_vm10, %v3891_v42, %v3667_v41  ;;  %3602 = vrot.lane.b32.xlu1 %v5783_v21, %s5821_s8  ;;  %3600 = vrot.lane.b32.xlu0 %v9519_v48, %s5821_s8 }
 0x43c   : > { %v9516_v47 = vpop.f32.mrb[12].mxu1  ;;  %5530 = vmatmul.mubr.msk.bf16.gmra.mrb[44].mxu1 %vm3951_vm11, %v3923_v11 }
 0x43d   : > { %v9524_v16 = vpop.f32.mrb[13].mxu1  ;;  %v3463_v43 = vpop.permute.xlu1 %3462 }
 0x43e   : > { %v9526_v34 = vpop.f32.mrb[14].mxu1  ;;  %v3461_v46 = vpop.permute.xlu0 %3460 }
 0x43f   : > { %10859 = vst [vmem:[#allocation43_spill] sm:$0xff] %v9526_v34  ;;  %v9528_v20 = vpop.f32.mrb[15].mxu1  ;;  %3634 = vrot.lane.b32.xlu1 %v8867_v35, %s5822_s9  ;;  %3632 = vrot.lane.b32.xlu0 %v8872_v17, %s5822_s9  ;;  %v3701_v17 = vsel %vm1803_vm3, %v5785_v54, %v3429_v30 }
 0x440   : > { %10860 = vst [vmem:[#allocation113_spill] sm:$0xff] %v9528_v20  ;;  %v3733_v41 = vsel %vm1836_vm4, %v3701_v17, %v3461_v46  ;;  %v5786_v20 = vld [vmem:[%s6031_s29 + $0x1f8] sm:$0xff]  }
 0x441   : > { %v3495_v28 = vpop.permute.xlu1 %3494  ;;  %v3703_v34 = vsel %vm1803_vm3, %v5786_v20, %v3431_v9 }
 0x442   : > { %v3493_v57 = vpop.permute.xlu0 %3492  ;;  %v3735_v54 = vsel %vm1836_vm4, %v3703_v34, %v3463_v43 }
 0x443   : > { %3682 = vrot.lane.b32.xlu1 %v3651_v62, %s5824_s18  ;;  %3680 = vrot.lane.b32.xlu0 %v3643_v53, %s5824_s18  ;;  %v3765_v22 = vsel %vm1869_vm5, %v3733_v41, %v3493_v57 }
 0x445   : > { %v3527_v10 = vpop.permute.xlu1 %3526 }
 0x446   : > { %v3525_v33 = vpop.permute.xlu0 %3524 }
 0x447   : > { %v3797_v2 = vsel %vm1902_vm6, %v3765_v22, %v3525_v33 }
 0x449   : > { %v3559_v21 = vpop.permute.xlu1 %3558 }
 0x44a   : > { %v3557_v52 = vpop.permute.xlu0 %3556 }
 0x44b   : > { %v3829_v30 = vsel %vm1935_vm7, %v3797_v2, %v3557_v52 }
 0x44d   : > { %v3591_v35 = vpop.permute.xlu1 %3590 }
 0x44e   : > { %v3589_v5 = vpop.permute.xlu0 %3588 }
 0x44f   : > { %v3861_v46 = vsel %vm1968_vm8, %v3829_v30, %v3589_v5 }
 0x450   : > { %v9541_v42 = vpop.f32.mrb[16].mxu1 }
 0x451   : > { %10862 = vst [vmem:[#allocation78_spill] sm:$0xff] %v9541_v42  ;;  %v9544_v38 = vpop.f32.mrb[17].mxu1  ;;  %v3623_v11 = vpop.permute.xlu1 %3622 }
 0x452   : > { %10863 = vst [vmem:[#allocation101_spill] sm:$0xff] %v9544_v38  ;;  %v9547_v1 = vpop.f32.mrb[18].mxu1  ;;  %v3621_v62 = vpop.permute.xlu0 %3620  ;;  %v3767_v38 = vsel %vm1869_vm5, %v3735_v54, %v3495_v28 }
 0x453   : > { %10864 = vst [vmem:[#allocation105_spill] sm:$0xff] %v9547_v1  ;;  %v9550_v53 = vpop.f32.mrb[19].mxu1  ;;  %v3893_v57 = vsel %vm2001_vm9, %v3861_v46, %v3621_v62  ;;  %v3799_v1 = vsel %vm1902_vm6, %v3767_v38, %v3527_v10 }
 0x454   : > { %10865 = vst [vmem:[#allocation126_spill] sm:$0xff] %v9550_v53  ;;  %v3831_v22 = vsel %vm1935_vm7, %v3799_v1, %v3559_v21 }
 0x455   : > { %v3433_v17 = vpop.permute.xlu1 %3432  ;;  %v3863_v9 = vsel %vm1968_vm8, %v3831_v22, %v3591_v35 }
 0x456   : > { %v3669_v41 = vpop.permute.xlu0 %3668  ;;  %v3895_v43 = vsel %vm2001_vm9, %v3863_v9, %v3623_v11 }
 0x457   : > { %v3925_v33 = vsel %vm2034_vm10, %v3893_v57, %v3669_v41  ;;  %v5787_v41 = vld [vmem:[%s6031_s29 + $0x200] sm:$0xff]  }
 0x458   : > { %5533 = vmatprep.mubr.msk.bf16.mxu1 %vm3951_vm11, %v3925_v33  ;;  %v3705_v33 = vsel %vm1803_vm3, %v5787_v41, %v3433_v17 }
 0x459   : > { %v3435_v20 = vpop.permute.xlu1 %3434 }
 0x45a   : > { %v3671_v34 = vpop.permute.xlu0 %3670 }
 0x45b   : > { %v3927_v52 = vsel %vm2034_vm10, %v3895_v43, %v3671_v34 }
 0x45c   : > { %5534 = vmatmul.mubr.msk.bf16.gmra.mrb[48].mxu1 %vm3951_vm11, %v3927_v52 }
 0x45d   : > { %v3467_v28 = vpop.permute.xlu1 %3466 }
 0x45e   : > { %v3465_v5 = vpop.permute.xlu0 %3464 }
 0x45f   : > { %v3737_v22 = vsel %vm1836_vm4, %v3705_v33, %v3465_v5 }
 0x461   : > { %v3499_v10 = vpop.permute.xlu1 %3498 }
 0x462   : > { %v3497_v38 = vpop.permute.xlu0 %3496 }
 0x463   : > { %v3769_v43 = vsel %vm1869_vm5, %v3737_v22, %v3497_v38 }
 0x464   : > { %v9567_v62 = vpop.f32.mrb[20].mxu1 }
 0x465   : > { %10866 = vst [vmem:[#allocation140_spill] sm:$0xff] %v9567_v62  ;;  %v9569_v21 = vpop.f32.mrb[21].mxu1  ;;  %v3531_v1 = vpop.permute.xlu1 %3530 }
 0x466   : > { %10867 = vst [vmem:[#allocation65_spill] sm:$0xff] %v9569_v21  ;;  %v9571_v35 = vpop.f32.mrb[22].mxu1  ;;  %v3529_v2 = vpop.permute.xlu0 %3528  ;;  %v5788_v21 = vld [vmem:[%s6031_s29 + $0x208] sm:$0xff]  }
 0x467   : > { %10868 = vst [vmem:[#allocation61_spill] sm:$0xff] %v9571_v35  ;;  %v9573_v11 = vpop.f32.mrb[23].mxu1  ;;  %v3801_v52 = vsel %vm1902_vm6, %v3769_v43, %v3529_v2  ;;  %v3707_v35 = vsel %vm1803_vm3, %v5788_v21, %v3435_v20 }
 0x468   : > { %10869 = vst [vmem:[#allocation99_spill] sm:$0xff] %v9573_v11  ;;  %v3739_v62 = vsel %vm1836_vm4, %v3707_v35, %v3467_v28 }
 0x469   : > { %v3563_v30 = vpop.permute.xlu1 %3562  ;;  %v3771_v17 = vsel %vm1869_vm5, %v3739_v62, %v3499_v10 }
 0x46a   : > { %v3561_v54 = vpop.permute.xlu0 %3560  ;;  %v3803_v38 = vsel %vm1902_vm6, %v3771_v17, %v3531_v1 }
 0x46b   : > { %v3833_v11 = vsel %vm1935_vm7, %v3801_v52, %v3561_v54  ;;  %v3835_v2 = vsel %vm1935_vm7, %v3803_v38, %v3563_v30 }
 0x46d   : > { %v3595_v46 = vpop.permute.xlu1 %3594 }
 0x46e   : > { %v3593_v57 = vpop.permute.xlu0 %3592  ;;  %v3867_v20 = vsel %vm1968_vm8, %v3835_v2, %v3595_v46  ;;  %v5789_v2 = vld [vmem:[%s6031_s29 + $0x210] sm:$0xff]  }
 0x46f   : > { %v3865_v53 = vsel %vm1968_vm8, %v3833_v11, %v3593_v57 }
 0x471   : > { %v3627_v9 = vpop.permute.xlu1 %3626 }
 0x472   : > { %v3625_v34 = vpop.permute.xlu0 %3624  ;;  %v3899_v10 = vsel %vm2001_vm9, %v3867_v20, %v3627_v9 }
 0x473   : > { %v3897_v5 = vsel %vm2001_vm9, %v3865_v53, %v3625_v34 }
 0x475   : > { %v3437_v42 = vpop.permute.xlu1 %3436 }
 0x476   : > { %v3673_v41 = vpop.permute.xlu0 %3672  ;;  %v3709_v20 = vsel %vm1803_vm3, %v5789_v2, %v3437_v42 }
 0x477   : > { %v3929_v33 = vsel %vm2034_vm10, %v3897_v5, %v3673_v41 }
 0x478   : > { %v9590_v22 = vpop.f32.mrb[24].mxu1  ;;  %5537 = vmatprep.mubr.msk.bf16.mxu1 %vm3951_vm11, %v3929_v33 }
 0x479   : > { %10870 = vst [vmem:[#allocation93_spill] sm:$0xff] %v9590_v22  ;;  %v9594_v28 = vpop.f32.mrb[25].mxu1  ;;  %v3439_v21 = vpop.permute.xlu1 %3438 }
 0x47a   : > { %10871 = vst [vmem:[#allocation16_spill] sm:$0xff] %v9594_v28  ;;  %v9597_v62 = vpop.f32.mrb[26].mxu1  ;;  %v3675_v53 = vpop.permute.xlu0 %3674 }
 0x47b   : > { %10872 = vst [vmem:[#allocation62_spill] sm:$0xff] %v9597_v62  ;;  %v3931_v1 = vsel %vm2034_vm10, %v3899_v10, %v3675_v53  ;;  %v9600_v35 = vpop.f32.mrb[27].mxu1 }
 0x47c   : > { %10873 = vst [vmem:[#allocation42_spill] sm:$0xff] %v9600_v35  ;;  %5538 = vmatmul.mubr.msk.bf16.gmra.mrb[52].mxu1 %vm3951_vm11, %v3931_v1 }
 0x47d   : > { %v3471_v11 = vpop.permute.xlu1 %3470 }
 0x47e   : > { %v3469_v30 = vpop.permute.xlu0 %3468 }
 0x47f   : > { %v3741_v10 = vsel %vm1836_vm4, %v3709_v20, %v3469_v30 }
 0x481   : > { %v3503_v54 = vpop.permute.xlu1 %3502 }
 0x482   : > { %v3501_v57 = vpop.permute.xlu0 %3500 }
 0x483   : > { %v3773_v1 = vsel %vm1869_vm5, %v3741_v10, %v3501_v57 }
 0x485   : > { %v3535_v46 = vpop.permute.xlu1 %3534 }
 0x486   : > { %v3533_v43 = vpop.permute.xlu0 %3532 }
 0x487   : > { %v3805_v62 = vsel %vm1902_vm6, %v3773_v1, %v3533_v43  ;;  %v5791_v1 = vld [vmem:[%s6031_s29 + $0x220] sm:$0xff]  }
 0x489   : > { %v3567_v34 = vpop.permute.xlu1 %3566 }
 0x48a   : > { %v3565_v52 = vpop.permute.xlu0 %3564 }
 0x48b   : > { %v3837_v28 = vsel %vm1935_vm7, %v3805_v62, %v3565_v52 }
 0x48c   : > { %v9603_v9 = vpop.f32.mrb[28].mxu1 }
 0x48d   : > { %10874 = vst [vmem:[#allocation34_spill] sm:$0xff] %v9603_v9  ;;  %v9605_v17 = vpop.f32.mrb[29].mxu1  ;;  %v3599_v5 = vpop.permute.xlu1 %3598  ;;  %v5790_v9 = vld [vmem:[%s6031_s29 + $0x218] sm:$0xff]  }
 0x48e   : > { %10875 = vst [vmem:[#allocation35_spill] sm:$0xff] %v9605_v17  ;;  %v9607_v41 = vpop.f32.mrb[30].mxu1  ;;  %v3597_v38 = vpop.permute.xlu0 %3596  ;;  %v3711_v17 = vsel %vm1803_vm3, %v5790_v9, %v3439_v21 }
 0x48f   : > { %10876 = vst [vmem:[#allocation112_spill] sm:$0xff] %v9607_v41  ;;  %v9609_v33 = vpop.f32.mrb[31].mxu1  ;;  %v3743_v41 = vsel %vm1836_vm4, %v3711_v17, %v3471_v11 }
 0x490   : > { %10877 = vst [vmem:[#allocation106_spill] sm:$0xff] %v9609_v33  ;;  %v3869_v33 = vsel %vm1968_vm8, %v3837_v28, %v3597_v38  ;;  %v3775_v42 = vsel %vm1869_vm5, %v3743_v41, %v3503_v54 }
 0x491   : > { %v3631_v53 = vpop.permute.xlu1 %3630  ;;  %v3807_v57 = vsel %vm1902_vm6, %v3775_v42, %v3535_v46 }
 0x492   : > { %v3629_v35 = vpop.permute.xlu0 %3628  ;;  %v3839_v20 = vsel %vm1935_vm7, %v3807_v57, %v3567_v34 }
 0x493   : > { %v3901_v30 = vsel %vm2001_vm9, %v3869_v33, %v3629_v35  ;;  %v3871_v21 = vsel %vm1968_vm8, %v3839_v20, %v3599_v5 }
 0x494   : > { %v3903_v28 = vsel %vm2001_vm9, %v3871_v21, %v3631_v53  ;;  %v9646_v21 = vld [vmem:[%s9910_s2] ss:$0 sm:$0xff] }
 0x495   : > { %v3441_v22 = vpop.permute.xlu1 %3440 }
 0x496   : > { %v3677_v2 = vpop.permute.xlu0 %3676  ;;  %v3713_v42 = vsel %vm1803_vm3, %v5791_v1, %v3441_v22 }
 0x497   : > { %v3933_v43 = vsel %vm2034_vm10, %v3901_v30, %v3677_v2 }
 0x498   : > { %5541 = vmatprep.mubr.msk.bf16.mxu1 %vm3951_vm11, %v3933_v43 }
 0x499   : > { %v3443_v62 = vpop.permute.xlu1 %3442 }
 0x49a   : > { %v3679_v11 = vpop.permute.xlu0 %3678  ;;  %v3715_v10 = vsel %vm1803_vm3, %v9519_v48, %v3443_v62 }
 0x49b   : > { %v3935_v54 = vsel %vm2034_vm10, %v3903_v28, %v3679_v11 }
 0x49c   : > { %5542 = vmatmul.mubr.msk.bf16.gmra.mrb[56].mxu1 %vm3951_vm11, %v3935_v54 }
 0x49d   : > { %v3475_v35 = vpop.permute.xlu1 %3474 }
 0x49e   : > { %v3473_v46 = vpop.permute.xlu0 %3472  ;;  %v3747_v30 = vsel %vm1836_vm4, %v3715_v10, %v3475_v35 }
 0x49f   : > { %v3745_v43 = vsel %vm1836_vm4, %v3713_v42, %v3473_v46 }
 0x4a1   : > { %v3507_v52 = vpop.permute.xlu1 %3506 }
 0x4a2   : > { %v3505_v9 = vpop.permute.xlu0 %3504  ;;  %v3779_v20 = vsel %vm1869_vm5, %v3747_v30, %v3507_v52 }
 0x4a3   : > { %v3777_v28 = vsel %vm1869_vm5, %v3745_v43, %v3505_v9 }
 0x4a5   : > { %v3539_v17 = vpop.permute.xlu1 %3538 }
 0x4a6   : > { %v3537_v41 = vpop.permute.xlu0 %3536  ;;  %v3811_v11 = vsel %vm1902_vm6, %v3779_v20, %v3539_v17 }
 0x4a7   : > { %v3809_v10 = vsel %vm1902_vm6, %v3777_v28, %v3537_v41 }
 0x4a9   : > { %v3571_v34 = vpop.permute.xlu1 %3570 }
 0x4aa   : > { %v3569_v38 = vpop.permute.xlu0 %3568 }
 0x4ab   : > { %v3841_v17 = vsel %vm1935_vm7, %v3809_v10, %v3569_v38 }
 0x4ad   : > { %v3603_v5 = vpop.permute.xlu1 %3602 }
 0x4ae   : > { %v3601_v33 = vpop.permute.xlu0 %3600 }
 0x4af   : > { %v5519_v53 = vpop.f32.mrb[32].mxu1  ;;  %v3873_v41 = vsel %vm1968_vm8, %v3841_v17, %v3601_v33 }
 0x4b0   : > { %v4666_v2 = vmax.f32 %v9395_v58, %v5519_v53  ;;  %v4505_v57 = vpop.f32.mrb[33].mxu1  ;;  %v10878_v58 = vmax.f32 %v10725_v12, %v8975_v40  ;;  %v3843_v53 = vsel %vm1935_vm7, %v3811_v11, %v3571_v34  ;;  %v10880_v12 = vmax.f32 %v10727_v32, %v8985_v51 }
 0x4b1   : > { %v4664_v48 = vmax.f32 %v9399_v24, %v4505_v57  ;;  %v5520_v22 = vpop.f32.mrb[34].mxu1  ;;  %v3635_v62 = vpop.permute.xlu1 %3634  ;;  %v10879_v24 = vmax.f32 %v10726_v19, %v8981_v63  ;;  %v3875_v42 = vsel %vm1968_vm8, %v3843_v53, %v3603_v5  ;;  %v10881_v19 = vmax.f32 %v10728_v14, %v8992_v13 }
 0x4b2   : > { %v4698_v54 = vmax.f32 %v10878_v58, %v4666_v2  ;;  %v4667_v35 = vmax.f32 %v9401_v50, %v5520_v22  ;;  %v4508_v46 = vpop.f32.mrb[35].mxu1  ;;  %v3633_v52 = vpop.permute.xlu0 %3632  ;;  %v3907_v63 = vsel %vm2001_vm9, %v3875_v42, %v3635_v62 }
 0x4b3   : > { %v4696_v1 = vmax.f32 %v10879_v24, %v4664_v48  ;;  %v4665_v9 = vmax.f32 %v9403_v39, %v4508_v46  ;;  %v3905_v2 = vsel %vm2001_vm9, %v3873_v41, %v3633_v52  ;;  %v10882_v46 = vmax.f32 %v10733_v31, %v9018_v18 }
 0x4b4   : > { %v4737_v40 = vadd.f32 %v9646_v21, %v4698_v54  ;;  %v4699_v50 = vmax.f32 %v10880_v12, %v4667_v35  ;;  %v10883_v24 = vmax.f32 %v10734_v6, %v9026_v15  ;;  %v10885_v31 = vmax.f32 %v10737_v8, %v9037_v27 }
 0x4b5   : > { %v4735_v34 = vadd.f32 %v9646_v21, %v4696_v1  ;;  %v4697_v39 = vmax.f32 %v10881_v19, %v4665_v9  ;;  %v3683_v38 = vpop.permute.xlu1 %3682 }
 0x4b6   : > { %v4769_v30 = vmax.f32 %v4737_v40, 0.0  ;;  %v4738_v5 = vadd.f32 %v9646_v21, %v4699_v50  ;;  %v3939_v57 = vsel %vm2034_vm10, %v3907_v63, %v3683_v38  ;;  %v3681_v51 = vpop.permute.xlu0 %3680 }
 0x4b7   : > { %v4767_v32 = vmax.f32 %v4735_v34, 0.0  ;;  %v4736_v13 = vadd.f32 %v9646_v21, %v4697_v39  ;;  %v3937_v14 = vsel %vm2034_vm10, %v3905_v2, %v3681_v51  ;;  %v10886_v39 = vmax.f32 %v10740_v4, %v9049_v49 }
 0x4b8   : > { %v5321_v33 = vpack.c.bf16 %v4769_v30, %v4769_v30  ;;  %v4770_v43 = vmax.f32 %v4738_v5, 0.0  ;;  %5545 = vmatprep.mubr.msk.bf16.mxu1 %vm3951_vm11, %v3937_v14  ;;  %v10887_v2 = vmax.f32 %v10741_v29, %v9055_v23  ;;  %v10889_v4 = vmax.f32 %v10743_v37, %v9063_v3 }
 0x4b9   : > { %v5319_v20 = vpack.c.bf16 %v4767_v32, %v4767_v32  ;;  %v4768_v48 = vmax.f32 %v4736_v13, 0.0  ;;  %5546 = vmatmul.mubr.msk.bf16.gmra.mrb[60].mxu1 %vm3951_vm11, %v3939_v57 }
 0x4ba   : > { %4930 = vst.msk [vmem:[%s9680_s24 + $0x8] sm:$0xf] %vm4927_vm12, %v5321_v33  ;;  %v5322_v22 = vpack.c.bf16 %v4770_v43, %v4770_v43 }
 0x4bb   : > { %4928 = vst.msk [vmem:[%s9680_s24] sm:$0xf] %vm4927_vm12, %v5319_v20  ;;  %v5320_v62 = vpack.c.bf16 %v4768_v48, %v4768_v48 }
 0x4bc   : > { %4931 = vst.msk [vmem:[%s9680_s24 + $0xc] sm:$0xf] %vm4927_vm12, %v5322_v22 }
 0x4bd   : > { %4929 = vst.msk [vmem:[%s9680_s24 + $0x4] sm:$0xf] %vm4927_vm12, %v5320_v62 }
 0x4cf   : > { %v5523_v28 = vpop.f32.mrb[36].mxu1 }
 0x4d0   : > { %v4670_v11 = vmax.f32 %v9427_v0, %v5523_v28  ;;  %v4521_v58 = vpop.f32.mrb[37].mxu1  ;;  %v10890_v28 = vld [vmem:[#allocation150_spill] sm:$0xff] }
 0x4d1   : > { %v4668_v54 = vmax.f32 %v9433_v26, %v4521_v58  ;;  %v5524_v35 = vpop.f32.mrb[38].mxu1  ;;  %v10884_v26 = vmax.f32 %v10735_v36, %v9032_v60 }
 0x4d2   : > { %v4702_v52 = vmax.f32 %v10882_v46, %v4670_v11  ;;  %v4671_v10 = vmax.f32 %v9437_v55, %v5524_v35  ;;  %v4524_v53 = vpop.f32.mrb[39].mxu1  ;;  %v10891_v11 = vld [vmem:[#allocation83_spill] sm:$0xff] }
 0x4d3   : > { %v4700_v1 = vmax.f32 %v10883_v24, %v4668_v54  ;;  %v4669_v9 = vmax.f32 %v9441_v25, %v4524_v53  ;;  %v10892_v58 = vmax.f32 %v10890_v28, %v10891_v11  ;;  %v10893_v35 = vld [vmem:[#allocation43_spill] sm:$0xff]  ;;  %v10895_v53 = vld [vmem:[#allocation8_spill] sm:$0xff] }
 0x4d4   : > { %v4741_v0 = vadd.f32 %v9646_v21, %v4702_v52  ;;  %v4703_v17 = vmax.f32 %v10884_v26, %v4671_v10  ;;  %v10894_v10 = vld [vmem:[#allocation151_spill] sm:$0xff]  ;;  %v10898_v26 = vld [vmem:[#allocation152_spill] sm:$0xff] }
 0x4d5   : > { %v4739_v18 = vadd.f32 %v9646_v21, %v4700_v1  ;;  %v4701_v55 = vmax.f32 %v10885_v31, %v4669_v9  ;;  %v10896_v24 = vmax.f32 %v10894_v10, %v10895_v53  ;;  %v10897_v9 = vld [vmem:[#allocation113_spill] sm:$0xff] }
 0x4d6   : > { %v4773_v42 = vmax.f32 %v4741_v0, 0.0  ;;  %v4742_v15 = vadd.f32 %v9646_v21, %v4703_v17 }
 0x4d7   : > { %v4771_v6 = vmax.f32 %v4739_v18, 0.0  ;;  %v4740_v25 = vadd.f32 %v9646_v21, %v4701_v55  ;;  %v10901_v55 = vld [vmem:[#allocation153_spill] sm:$0xff] }
 0x4d8   : > { %v5325_v40 = vpack.c.bf16 %v4773_v42, %v4773_v42  ;;  %v4774_v12 = vmax.f32 %v4742_v15, 0.0  ;;  %v10902_v42 = vld [vmem:[#allocation104_spill] sm:$0xff] }
 0x4d9   : > { %v5323_v50 = vpack.c.bf16 %v4771_v6, %v4771_v6  ;;  %v4772_v41 = vmax.f32 %v4740_v25, 0.0  ;;  %v10903_v15 = vmax.f32 %v10901_v55, %v10902_v42  ;;  %v10923_v55 = vld [vmem:[#allocation50_spill] sm:$0xff] }
 0x4da   : > { %4934 = vst.msk [vmem:[%s9680_s24 + $0x18] sm:$0xf] %vm4927_vm12, %v5325_v40  ;;  %v5326_v60 = vpack.c.bf16 %v4774_v12, %v4774_v12 }
 0x4db   : > { %4932 = vst.msk [vmem:[%s9680_s24 + $0x10] sm:$0xf] %vm4927_vm12, %v5323_v50  ;;  %v5324_v36 = vpack.c.bf16 %v4772_v41, %v4772_v41 }
 0x4dc   : > { %4935 = vst.msk [vmem:[%s9680_s24 + $0x1c] sm:$0xf] %vm4927_vm12, %v5326_v60 }
 0x4dd   : > { %4933 = vst.msk [vmem:[%s9680_s24 + $0x14] sm:$0xf] %vm4927_vm12, %v5324_v36 }
 0x4ef   : > { %v5527_v27 = vpop.f32.mrb[40].mxu1 }
 0x4f0   : > { %v4674_v8 = vmax.f32 %v9467_v45, %v5527_v27  ;;  %v4537_v34 = vpop.f32.mrb[41].mxu1 }
 0x4f1   : > { %v4672_v63 = vmax.f32 %v9471_v7, %v4537_v34  ;;  %v5528_v19 = vpop.f32.mrb[42].mxu1  ;;  %v10888_v7 = vmax.f32 %v10742_v59, %v9059_v56  ;;  %v5825_v34 = vmov 0  }
 0x4f2   : > { %v4706_v38 = vmax.f32 %v10886_v39, %v4674_v8  ;;  %v4675_v30 = vmax.f32 %v9473_v44, %v5528_v19  ;;  %v4540_v5 = vpop.f32.mrb[43].mxu1  ;;  %4960 = vst.msk [vmem:[%s9680_s24 + $0x80] sm:$0xf] %vm4927_vm12, %v5825_v34  ;;  %4961 = vst.msk [vmem:[%s9680_s24 + $0x84] sm:$0xf] %vm4927_vm12, %v5825_v34  ;;  %v10904_v39 = vld [vmem:[#allocation78_spill] sm:$0xff] }
 0x4f3   : > { %v4704_v57 = vmax.f32 %v10887_v2, %v4672_v63  ;;  %v4673_v51 = vmax.f32 %v9475_v61, %v4540_v5  ;;  %4962 = vst.msk [vmem:[%s9680_s24 + $0x88] sm:$0xf] %vm4927_vm12, %v5825_v34  ;;  %4963 = vst.msk [vmem:[%s9680_s24 + $0x8c] sm:$0xf] %vm4927_vm12, %v5825_v34  ;;  %v10905_v5 = vld [vmem:[#allocation101_spill] sm:$0xff] }
 0x4f4   : > { %v4745_v45 = vadd.f32 %v9646_v21, %v4706_v38  ;;  %v4707_v32 = vmax.f32 %v10888_v7, %v4675_v30  ;;  %v10930_v34 = vld [vmem:[#allocation21_spill] sm:$0xff] }
 0x4f5   : > { %v4743_v49 = vadd.f32 %v9646_v21, %v4704_v57  ;;  %v4705_v44 = vmax.f32 %v10889_v4, %v4673_v51  ;;  %v10906_v51 = vld [vmem:[#allocation154_spill] sm:$0xff] }
 0x4f6   : > { %v4777_v13 = vmax.f32 %v4745_v45, 0.0  ;;  %v4746_v23 = vadd.f32 %v9646_v21, %v4707_v32  ;;  %v10907_v45 = vld [vmem:[#allocation5_spill] sm:$0xff] }
 0x4f7   : > { %v4775_v29 = vmax.f32 %v4743_v49, 0.0  ;;  %v4744_v61 = vadd.f32 %v9646_v21, %v4705_v44  ;;  %v10908_v7 = vmax.f32 %v10906_v51, %v10907_v45  ;;  %v10909_v49 = vld [vmem:[#allocation105_spill] sm:$0xff] }
 0x4f8   : > { %v5329_v14 = vpack.c.bf16 %v4777_v13, %v4777_v13  ;;  %v4778_v33 = vmax.f32 %v4746_v23, 0.0  ;;  %v10910_v13 = vld [vmem:[#allocation20_spill] sm:$0xff]  ;;  %v10911_v23 = vld [vmem:[#allocation109_spill] sm:$0xff] }
 0x4f9   : > { %v5327_v43 = vpack.c.bf16 %v4775_v29, %v4775_v29  ;;  %v4776_v20 = vmax.f32 %v4744_v61, 0.0  ;;  %v10912_v29 = vmax.f32 %v10910_v13, %v10911_v23 }
 0x4fa   : > { %4938 = vst.msk [vmem:[%s9680_s24 + $0x28] sm:$0xf] %vm4927_vm12, %v5329_v14  ;;  %v5330_v56 = vpack.c.bf16 %v4778_v33, %v4778_v33  ;;  %v10913_v14 = vld [vmem:[#allocation126_spill] sm:$0xff] }
 0x4fb   : > { %4936 = vst.msk [vmem:[%s9680_s24 + $0x20] sm:$0xf] %vm4927_vm12, %v5327_v43  ;;  %v5328_v59 = vpack.c.bf16 %v4776_v20, %v4776_v20  ;;  %v10914_v20 = vld [vmem:[#allocation156_spill] sm:$0xff] }
 0x4fc   : > { %4939 = vst.msk [vmem:[%s9680_s24 + $0x2c] sm:$0xf] %vm4927_vm12, %v5330_v56  ;;  %v10915_v56 = vld [vmem:[#allocation157_spill] sm:$0xff] }
 0x4fd   : > { %4937 = vst.msk [vmem:[%s9680_s24 + $0x24] sm:$0xf] %vm4927_vm12, %v5328_v59  ;;  %v10916_v59 = vmax.f32 %v10914_v20, %v10915_v56  ;;  %v10937_v20 = vld [vmem:[#allocation16_spill] sm:$0xff] }
 0x50f   : > { %v5531_v3 = vpop.f32.mrb[44].mxu1 }
 0x510   : > { %v4678_v37 = vmax.f32 %v9516_v47, %v5531_v3  ;;  %v4553_v48 = vpop.f32.mrb[45].mxu1 }
 0x511   : > { %v4676_v22 = vmax.f32 %v9524_v16, %v4553_v48  ;;  %v5532_v62 = vpop.f32.mrb[46].mxu1  ;;  %v10899_v16 = vld [vmem:[#allocation98_spill] sm:$0xff] }
 0x512   : > { %v4710_v54 = vmax.f32 %v10892_v58, %v4678_v37  ;;  %v4679_v46 = vmax.f32 %v10893_v35, %v5532_v62  ;;  %v4556_v52 = vpop.f32.mrb[47].mxu1  ;;  %v10900_v17 = vmax.f32 %v10898_v26, %v10899_v16  ;;  %v10917_v48 = vld [vmem:[#allocation26_spill] sm:$0xff]  ;;  %v10921_v16 = vld [vmem:[#allocation65_spill] sm:$0xff] }
 0x513   : > { %v4708_v1 = vmax.f32 %v10896_v24, %v4676_v22  ;;  %v4677_v0 = vmax.f32 %v10897_v9, %v4556_v52  ;;  %v10918_v22 = vld [vmem:[#allocation86_spill] sm:$0xff] }
 0x514   : > { %v4749_v47 = vadd.f32 %v9646_v21, %v4710_v54  ;;  %v4711_v18 = vmax.f32 %v10900_v17, %v4679_v46  ;;  %v10919_v62 = vmax.f32 %v10917_v48, %v10918_v22 }
 0x515   : > { %v4747_v31 = vadd.f32 %v9646_v21, %v4708_v1  ;;  %v4709_v6 = vmax.f32 %v10903_v15, %v4677_v0  ;;  %v10920_v0 = vld [vmem:[#allocation140_spill] sm:$0xff] }
 0x516   : > { %v4781_v25 = vmax.f32 %v4749_v47, 0.0  ;;  %v4750_v40 = vadd.f32 %v9646_v21, %v4711_v18 }
 0x517   : > { %v4779_v12 = vmax.f32 %v4747_v31, 0.0  ;;  %v4748_v50 = vadd.f32 %v9646_v21, %v4709_v6  ;;  %v10922_v31 = vld [vmem:[#allocation22_spill] sm:$0xff]  ;;  %v10925_v6 = vld [vmem:[#allocation61_spill] sm:$0xff] }
 0x518   : > { %v5333_v41 = vpack.c.bf16 %v4781_v25, %v4781_v25  ;;  %v4782_v60 = vmax.f32 %v4750_v40, 0.0  ;;  %v10924_v42 = vmax.f32 %v10922_v31, %v10923_v55 }
 0x519   : > { %v5331_v36 = vpack.c.bf16 %v4779_v12, %v4779_v12  ;;  %v4780_v27 = vmax.f32 %v4748_v50, 0.0  ;;  %v10926_v12 = vld [vmem:[#allocation33_spill] sm:$0xff] }
 0x51a   : > { %4942 = vst.msk [vmem:[%s9680_s24 + $0x38] sm:$0xf] %vm4927_vm12, %v5333_v41  ;;  %v5334_v8 = vpack.c.bf16 %v4782_v60, %v4782_v60  ;;  %v10927_v50 = vld [vmem:[#allocation69_spill] sm:$0xff] }
 0x51b   : > { %4940 = vst.msk [vmem:[%s9680_s24 + $0x30] sm:$0xf] %vm4927_vm12, %v5331_v36  ;;  %v5332_v63 = vpack.c.bf16 %v4780_v27, %v4780_v27  ;;  %v10928_v41 = vmax.f32 %v10926_v12, %v10927_v50  ;;  %v10929_v36 = vld [vmem:[#allocation99_spill] sm:$0xff] }
 0x51c   : > { %4943 = vst.msk [vmem:[%s9680_s24 + $0x3c] sm:$0xf] %vm4927_vm12, %v5334_v8 }
 0x51d   : > { %4941 = vst.msk [vmem:[%s9680_s24 + $0x34] sm:$0xf] %vm4927_vm12, %v5332_v63  ;;  %v10931_v63 = vld [vmem:[#allocation81_spill] sm:$0xff] }
 0x52f   : > { %v5535_v19 = vpop.f32.mrb[48].mxu1 }
 0x530   : > { %v4682_v38 = vmax.f32 %v10904_v39, %v5535_v19  ;;  %v4569_v30 = vpop.f32.mrb[49].mxu1  ;;  %v10932_v19 = vmax.f32 %v10930_v34, %v10931_v63  ;;  %v10953_v34 = vld [vmem:[#allocation35_spill] sm:$0xff] }
 0x531   : > { %v4680_v2 = vmax.f32 %v10905_v5, %v4569_v30  ;;  %v5536_v57 = vpop.f32.mrb[50].mxu1  ;;  %v10933_v30 = vld [vmem:[#allocation24_spill] sm:$0xff] }
 0x532   : > { %v4714_v32 = vmax.f32 %v10908_v7, %v4682_v38  ;;  %v4683_v4 = vmax.f32 %v10909_v49, %v5536_v57  ;;  %v4572_v44 = vpop.f32.mrb[51].mxu1  ;;  %v10934_v5 = vld [vmem:[#allocation92_spill] sm:$0xff] }
 0x533   : > { %v4712_v61 = vmax.f32 %v10912_v29, %v4680_v2  ;;  %v4681_v33 = vmax.f32 %v10913_v14, %v4572_v44  ;;  %v10935_v2 = vmax.f32 %v10933_v30, %v10934_v5  ;;  %v10936_v14 = vld [vmem:[#allocation93_spill] sm:$0xff] }
 0x534   : > { %v4753_v43 = vadd.f32 %v9646_v21, %v4714_v32  ;;  %v4715_v3 = vmax.f32 %v10916_v59, %v4683_v4 }
 0x535   : > { %v4751_v37 = vadd.f32 %v9646_v21, %v4712_v61  ;;  %v4713_v28 = vmax.f32 %v10919_v62, %v4681_v33  ;;  %v10941_v62 = vld [vmem:[#allocation62_spill] sm:$0xff] }
 0x536   : > { %v4785_v11 = vmax.f32 %v4753_v43, 0.0  ;;  %v4754_v58 = vadd.f32 %v9646_v21, %v4715_v3  ;;  %v10938_v3 = vld [vmem:[#allocation30_spill] sm:$0xff] }
 0x537   : > { %v4783_v54 = vmax.f32 %v4751_v37, 0.0  ;;  %v4752_v35 = vadd.f32 %v9646_v21, %v4713_v28  ;;  %v10939_v37 = vld [vmem:[#allocation123_spill] sm:$0xff] }
 0x538   : > { %v5337_v46 = vpack.c.bf16 %v4785_v11, %v4785_v11  ;;  %v4786_v52 = vmax.f32 %v4754_v58, 0.0  ;;  %v10940_v48 = vmax.f32 %v10938_v3, %v10939_v37  ;;  %v10942_v58 = vld [vmem:[#allocation23_spill] sm:$0xff] }
 0x539   : > { %v5335_v10 = vpack.c.bf16 %v4783_v54, %v4783_v54  ;;  %v4784_v53 = vmax.f32 %v4752_v35, 0.0  ;;  %v10943_v54 = vld [vmem:[#allocation103_spill] sm:$0xff] }
 0x53a   : > { %4946 = vst.msk [vmem:[%s9680_s24 + $0x48] sm:$0xf] %vm4927_vm12, %v5337_v46  ;;  %v5338_v24 = vpack.c.bf16 %v4786_v52, %v4786_v52  ;;  %v10944_v35 = vmax.f32 %v10942_v58, %v10943_v54  ;;  %v10945_v52 = vld [vmem:[#allocation42_spill] sm:$0xff] }
 0x53b   : > { %4944 = vst.msk [vmem:[%s9680_s24 + $0x40] sm:$0xf] %vm4927_vm12, %v5335_v10  ;;  %v5336_v1 = vpack.c.bf16 %v4784_v53, %v4784_v53 }
 0x53c   : > { %4947 = vst.msk [vmem:[%s9680_s24 + $0x4c] sm:$0xf] %vm4927_vm12, %v5338_v24  ;;  %v10946_v24 = vld [vmem:[#allocation27_spill] sm:$0xff] }
 0x53d   : > { %4945 = vst.msk [vmem:[%s9680_s24 + $0x44] sm:$0xf] %vm4927_vm12, %v5336_v1  ;;  %v10947_v1 = vld [vmem:[#allocation116_spill] sm:$0xff] }
 0x54f   : > { %v5539_v9 = vpop.f32.mrb[52].mxu1 }
 0x550   : > { %v4686_v47 = vmax.f32 %v10920_v0, %v5539_v9  ;;  %v4585_v26 = vpop.f32.mrb[53].mxu1  ;;  %v10948_v9 = vmax.f32 %v10946_v24, %v10947_v1 }
 0x551   : > { %v4684_v17 = vmax.f32 %v10921_v16, %v4585_v26  ;;  %v5540_v18 = vpop.f32.mrb[54].mxu1  ;;  %v10949_v26 = vld [vmem:[#allocation25_spill] sm:$0xff]  ;;  %v10950_v16 = vld [vmem:[#allocation115_spill] sm:$0xff] }
 0x552   : > { %v4718_v15 = vmax.f32 %v10924_v42, %v4686_v47  ;;  %v4687_v25 = vmax.f32 %v10925_v6, %v5540_v18  ;;  %v4588_v40 = vpop.f32.mrb[55].mxu1 }
 0x553   : > { %v4716_v60 = vmax.f32 %v10928_v41, %v4684_v17  ;;  %v4685_v27 = vmax.f32 %v10929_v36, %v4588_v40  ;;  %v10951_v17 = vmax.f32 %v10949_v26, %v10950_v16  ;;  %v10952_v36 = vld [vmem:[#allocation34_spill] sm:$0xff] }
 0x554   : > { %v4757_v8 = vadd.f32 %v9646_v21, %v4718_v15  ;;  %v4719_v39 = vmax.f32 %v10932_v19, %v4687_v25 }
 0x555   : > { %v4755_v38 = vadd.f32 %v9646_v21, %v4716_v60  ;;  %v4717_v57 = vmax.f32 %v10935_v2, %v4685_v27  ;;  %v10957_v2 = vld [vmem:[#allocation112_spill] sm:$0xff] }
 0x556   : > { %v4789_v51 = vmax.f32 %v4757_v8, 0.0  ;;  %v4758_v45 = vadd.f32 %v9646_v21, %v4719_v39  ;;  %v10954_v39 = vld [vmem:[#allocation4_spill] sm:$0xff] }
 0x557   : > { %v4787_v7 = vmax.f32 %v4755_v38, 0.0  ;;  %v4756_v32 = vadd.f32 %v9646_v21, %v4717_v57  ;;  %v10955_v38 = vld [vmem:[#allocation121_spill] sm:$0xff] }
 0x558   : > { %v5341_v49 = vpack.c.bf16 %v4789_v51, %v4789_v51  ;;  %v4790_v4 = vmax.f32 %v4758_v45, 0.0  ;;  %v10956_v30 = vmax.f32 %v10954_v39, %v10955_v38  ;;  %v10958_v45 = vld [vmem:[#allocation87_spill] sm:$0xff] }
 0x559   : > { %v5339_v44 = vpack.c.bf16 %v4787_v7, %v4787_v7  ;;  %v4788_v13 = vmax.f32 %v4756_v32, 0.0  ;;  %v10959_v7 = vld [vmem:[#allocation137_spill] sm:$0xff] }
 0x55a   : > { %4950 = vst.msk [vmem:[%s9680_s24 + $0x58] sm:$0xf] %vm4927_vm12, %v5341_v49  ;;  %v5342_v23 = vpack.c.bf16 %v4790_v4, %v4790_v4  ;;  %v10960_v32 = vmax.f32 %v10958_v45, %v10959_v7  ;;  %v10961_v4 = vld [vmem:[#allocation106_spill] sm:$0xff] }
 0x55b   : > { %4948 = vst.msk [vmem:[%s9680_s24 + $0x50] sm:$0xf] %vm4927_vm12, %v5339_v44  ;;  %v5340_v29 = vpack.c.bf16 %v4788_v13, %v4788_v13 }
 0x55c   : > { %4951 = vst.msk [vmem:[%s9680_s24 + $0x5c] sm:$0xf] %vm4927_vm12, %v5342_v23  ;;  %v10962_v23 = vld [vmem:[#allocation32_spill] sm:$0xff] }
 0x55d   : > { %4949 = vst.msk [vmem:[%s9680_s24 + $0x54] sm:$0xf] %vm4927_vm12, %v5340_v29  ;;  %v10963_v29 = vld [vmem:[#allocation141_spill] sm:$0xff] }
 0x56f   : > { %v5543_v61 = vpop.f32.mrb[56].mxu1 }
 0x570   : > { %v4690_v33 = vmax.f32 %v10936_v14, %v5543_v61  ;;  %v4601_v43 = vpop.f32.mrb[57].mxu1  ;;  %v10964_v61 = vmax.f32 %v10962_v23, %v10963_v29 }
 0x571   : > { %v4688_v56 = vmax.f32 %v10937_v20, %v4601_v43  ;;  %v5544_v59 = vpop.f32.mrb[58].mxu1  ;;  %v10965_v43 = vld [vmem:[#allocation96_spill] sm:$0xff]  ;;  %v10966_v20 = vld [vmem:[#allocation155_spill] sm:$0xff] }
 0x572   : > { %v4722_v22 = vmax.f32 %v10940_v48, %v4690_v33  ;;  %v4691_v28 = vmax.f32 %v10941_v62, %v5544_v59  ;;  %v4604_v11 = vpop.f32.mrb[59].mxu1 }
 0x573   : > { %v4720_v46 = vmax.f32 %v10944_v35, %v4688_v56  ;;  %v4689_v10 = vmax.f32 %v10945_v52, %v4604_v11  ;;  %v10967_v56 = vmax.f32 %v10965_v43, %v10966_v20 }
 0x574   : > { %v4761_v53 = vadd.f32 %v9646_v21, %v4722_v22  ;;  %v4723_v0 = vmax.f32 %v10948_v9, %v4691_v28 }
 0x575   : > { %v4759_v47 = vadd.f32 %v9646_v21, %v4720_v46  ;;  %v4721_v18 = vmax.f32 %v10951_v17, %v4689_v10 }
 0x576   : > { %v4793_v31 = vmax.f32 %v4761_v53, 0.0  ;;  %v4762_v55 = vadd.f32 %v9646_v21, %v4723_v0 }
 0x577   : > { %v4791_v42 = vmax.f32 %v4759_v47, 0.0  ;;  %v4760_v15 = vadd.f32 %v9646_v21, %v4721_v18 }
 0x578   : > { %v5345_v6 = vpack.c.bf16 %v4793_v31, %v4793_v31  ;;  %v4794_v25 = vmax.f32 %v4762_v55, 0.0 }
 0x579   : > { %v5343_v40 = vpack.c.bf16 %v4791_v42, %v4791_v42  ;;  %v4792_v12 = vmax.f32 %v4760_v15, 0.0 }
 0x57a   : > { %4954 = vst.msk [vmem:[%s9680_s24 + $0x68] sm:$0xf] %vm4927_vm12, %v5345_v6  ;;  %v5346_v50 = vpack.c.bf16 %v4794_v25, %v4794_v25 }
 0x57b   : > { %4952 = vst.msk [vmem:[%s9680_s24 + $0x60] sm:$0xf] %vm4927_vm12, %v5343_v40  ;;  %v5344_v41 = vpack.c.bf16 %v4792_v12, %v4792_v12 }
 0x57c   : > { %4955 = vst.msk [vmem:[%s9680_s24 + $0x6c] sm:$0xf] %vm4927_vm12, %v5346_v50 }
 0x57d   : > { %4953 = vst.msk [vmem:[%s9680_s24 + $0x64] sm:$0xf] %vm4927_vm12, %v5344_v41 }
 0x58c   : > { %v5547_v60 = vpop.f32.mrb[60].mxu1 }
 0x58d   : > { %v4694_v27 = vmax.f32 %v10952_v36, %v5547_v60  ;;  %v4617_v8 = vpop.f32.mrb[61].mxu1 }
 0x58e   : > { %v4692_v63 = vmax.f32 %v10953_v34, %v4617_v8  ;;  %v5548_v19 = vpop.f32.mrb[62].mxu1 }
 0x58f   : > { %v4726_v5 = vmax.f32 %v10956_v30, %v4694_v27  ;;  %v4695_v57 = vmax.f32 %v10957_v2, %v5548_v19  ;;  %v4620_v51 = vpop.f32.mrb[63].mxu1 }
 0x590   : > { %v4724_v49 = vmax.f32 %v10960_v32, %v4692_v63  ;;  %v4693_v44 = vmax.f32 %v10961_v4, %v4620_v51 }
 0x591   : > { %v4765_v13 = vadd.f32 %v9646_v21, %v4726_v5  ;;  %v4727_v14 = vmax.f32 %v10964_v61, %v4695_v57 }
 0x592   : > { %v4763_v33 = vadd.f32 %v9646_v21, %v4724_v49  ;;  %v4725_v59 = vmax.f32 %v10967_v56, %v4693_v44 }
 0x593   : > { %v4797_v3 = vmax.f32 %v4765_v13, 0.0  ;;  %v4766_v37 = vadd.f32 %v9646_v21, %v4727_v14 }
 0x594   : > { %v4795_v48 = vmax.f32 %v4763_v33, 0.0  ;;  %v4764_v22 = vadd.f32 %v9646_v21, %v4725_v59 }
 0x595   : > { %v5349_v62 = vpack.c.bf16 %v4797_v3, %v4797_v3  ;;  %v4798_v28 = vmax.f32 %v4766_v37, 0.0 }
 0x596   : > { %v5347_v11 = vpack.c.bf16 %v4795_v48, %v4795_v48  ;;  %v4796_v58 = vmax.f32 %v4764_v22, 0.0 }
 0x597   : > { %4958 = vst.msk [vmem:[%s9680_s24 + $0x78] sm:$0xf] %vm4927_vm12, %v5349_v62  ;;  %v5350_v54 = vpack.c.bf16 %v4798_v28, %v4798_v28 }
 0x598   : > { %4956 = vst.msk [vmem:[%s9680_s24 + $0x70] sm:$0xf] %vm4927_vm12, %v5347_v11  ;;  %v5348_v35 = vpack.c.bf16 %v4796_v58, %v4796_v58 }
 0x599   : > { %4959 = vst.msk [vmem:[%s9680_s24 + $0x7c] sm:$0xf] %vm4927_vm12, %v5350_v54 }
 0x59a   : > { %4957 = vst.msk [vmem:[%s9680_s24 + $0x74] sm:$0xf] %vm4927_vm12, %v5348_v35 }
 0x59b PF: > { %p10_p9 = scmp.ge.s32.totalorder %s5863_s16, 4   ;;  %s10968_s12 = smov %s5810_s13 }
 0x59c   : > { %s10969_s13 = smov %s5872_s19  ;;  %s10970_s14 = smov %s5863_s16 }
 0x59d   :  { %12 = sbr.rel (!%p10_p9) target bundleno = 2 (0x2), region = 111 }

</bundles_post_ra>
